<compile_context>
chip_gen: v5e
topology: v5e:2x2
jax: 0.10.0
libtpu: 0.0.40
codegen_flags: <defaults>
</compile_context>

<pallas_src>
import jax
import jax.numpy as jnp
from jax.experimental import pallas as pl
from jax.experimental.pallas import tpu as pltpu


_VMEM_LIMIT = 48 * 1024 * 1024  # explicit scoped-VMEM budget (v5e/v6e/v7x safe)


def _round_up(n, m):
    return pl.cdiv(n, m) * m


def _pick_tile(total, candidates=(1024, 512, 256, 128)):
    # `total` is always a multiple of 128, so this always returns >= 128.
    for t in candidates:
        if total % t == 0:
            return t
    return total


# ---------------------------------------------------------------------------
# Kernel 1: coarse MLP
#   Linear(C,1024) -> ReLU -> Linear(1024,1024) -> ReLU -> Linear(1024, Npad)
# tiled over the (padded) output dimension of the last Linear; the hidden
# activation lives in a VMEM scratch computed at grid step 0.
# Also emits base = fg @ Wc1[:C]  (the feature_global term of final_conv's
# first 1x1 conv), hoisted here so it is computed once per B*G row instead of
# once per fine point.
# ---------------------------------------------------------------------------
def mlp_kernel(x_ref, w1_ref, b1_ref, w2_ref, b2_ref, w3_ref, b3_ref,
               wc1a_ref, coarse_ref, base_ref, h_ref):
    @pl.when(pl.program_id(0) == 0)
    def _():
        x = x_ref[...]                                              # (BG, C) bf16
        h = jnp.dot(x, w1_ref[...], preferred_element_type=jnp.float32) + b1_ref[...]
        h = jnp.maximum(h, 0.0).astype(jnp.bfloat16)
        h = jnp.dot(h, w2_ref[...], preferred_element_type=jnp.float32) + b2_ref[...]
        h_ref[...] = jnp.maximum(h, 0.0).astype(jnp.bfloat16)
        # hoisted feature_global contribution to final_conv's first conv
        base_ref[...] = jnp.dot(x, wc1a_ref[...], preferred_element_type=jnp.float32)

    coarse_ref[...] = (jnp.dot(h_ref[...], w3_ref[...],
                               preferred_element_type=jnp.float32) + b3_ref[...])


# ---------------------------------------------------------------------------
# Kernel 2: final_conv (three 1x1 convs, BatchNorm folded into the weights)
# plus the "+ center" residual.  One grid step handles TF fine points of one
# B*G group.  The pre-activation of conv1 is assembled from:
#   base (per-group, from kernel 1) + seedbias (precomputed, constant) +
#   center @ wc1c (in-kernel).
# ---------------------------------------------------------------------------
def final_conv_kernel(base_ref, seedbias_ref, center_ref, wc1c_ref,
                      wc2_ref, bc2_ref, wc3_ref, bc3_ref, o_ref):
    center = center_ref[0]                                          # (TF, 3) f32
    pre1 = (seedbias_ref[...]                                       # (TF, 512)
            + base_ref[0]                                           # (1, 512) bcast
            + jnp.dot(center.astype(jnp.bfloat16), wc1c_ref[...],
                      preferred_element_type=jnp.float32))
    h = jnp.maximum(pre1, 0.0).astype(jnp.bfloat16)                 # conv1+BN1+ReLU
    h = jnp.dot(h, wc2_ref[...], preferred_element_type=jnp.float32) + bc2_ref[...]
    h = jnp.maximum(h, 0.0).astype(jnp.bfloat16)                    # conv2+BN2+ReLU
    o_ref[0] = (jnp.dot(h, wc3_ref[...], preferred_element_type=jnp.float32)
                + bc3_ref[...] + center)                            # conv3 + center


# ---------------------------------------------------------------------------
# Parameter init (deterministic, synthetic — mirrors the module's shapes)
# ---------------------------------------------------------------------------
def init_params(key, encoder_channel, num_fine):
    C = encoder_channel
    num_coarse = num_fine // 4
    cin = C + 3 + 2
    ks = jax.random.split(key, 12)

    def lin(k, fan_in, shape):
        bound = 1.0 / jnp.sqrt(jnp.float32(fan_in))
        return jax.random.uniform(k, shape, jnp.float32, -bound, bound)

    params = dict(
        # MLP
        w1=lin(ks[0], C, (C, 1024)),          b1=lin(ks[1], C, (1, 1024)),
        w2=lin(ks[2], 1024, (1024, 1024)),    b2=lin(ks[3], 1024, (1, 1024)),
        w3=lin(ks[4], 1024, (1024, 3 * num_coarse)),
        b3=lin(ks[5], 1024, (1, 3 * num_coarse)),
        # final_conv (weights stored transposed: (in, out), channels-last matmul)
        wc1=lin(ks[6], cin, (cin, 512)),      bc1=lin(ks[7], cin, (1, 512)),
        wc2=lin(ks[8], 512, (512, 512)),      bc2=lin(ks[9], 512, (1, 512)),
        wc3=lin(ks[10], 512, (512, 3)),       bc3=lin(ks[11], 512, (1, 3)),
        # BatchNorm1d parameters + running stats (PyTorch defaults).
        gamma1=jnp.ones((512,), jnp.float32), beta1=jnp.zeros((512,), jnp.float32),
        mean1=jnp.zeros((512,), jnp.float32), var1=jnp.ones((512,), jnp.float32),
        gamma2=jnp.ones((512,), jnp.float32), beta2=jnp.zeros((512,), jnp.float32),
        mean2=jnp.zeros((512,), jnp.float32), var2=jnp.ones((512,), jnp.float32),
    )

    # folding_seed: (2, grid_size**2) exactly as in __init__
    g = jnp.linspace(-0.05, 0.05, 2, dtype=jnp.float32)
    a = jnp.broadcast_to(g[None, :], (2, 2)).reshape(1, 4)
    b = jnp.broadcast_to(g[:, None], (2, 2)).reshape(1, 4)
    params["folding_seed"] = jnp.concatenate([a, b], axis=0)  # (2, 4)
    return params


# ---------------------------------------------------------------------------
# Forward wrapper
# ---------------------------------------------------------------------------
def decoder_forward(feature_global, params, num_fine):
    B, G, C = feature_global.shape
    grid_size = 2
    num_coarse = num_fine // 4
    BG = B * G
    bf16 = jnp.bfloat16

    fg = feature_global.reshape(BG, C).astype(jnp.float32)

    # ---- fold BatchNorm (inference mode) into the 1x1-conv weights --------
    # y = BN(x@W + b) = x@(W*s) + (b*s + beta - mean*s),  s = gamma/sqrt(var+eps)
    # TODO(synk): training-mode BN (batch statistics) is not reproduced here.
    eps = 1e-5
    s1 = params["gamma1"] * jax.lax.rsqrt(params["var1"] + eps)
    t1 = params["beta1"] - params["mean1"] * s1
    s2 = params["gamma2"] * jax.lax.rsqrt(params["var2"] + eps)
    t2 = params["beta2"] - params["mean2"] * s2
    wc1f = params["wc1"] * s1[None, :]
    bc1f = params["bc1"] * s1[None, :] + t1[None, :]
    wc2f = params["wc2"] * s2[None, :]
    bc2f = params["bc2"] * s2[None, :] + t2[None, :]

    # split conv1 weight along its input channels:
    #   [0:C]   feature_global term (hoisted per B*G row)
    #   [C:C+2] folding-seed term   (4 unique rows, precomputed)
    #   [C+2:]  center term         (in-kernel per fine point)
    wc1a, wc1b, wc1c = wc1f[:C], wc1f[C:C + 2], wc1f[C + 2:]

    # ---- MLP: coarse points (output dim padded to 128 and tiled) ----------
    N = 3 * num_coarse
    Npad = _round_up(N, 128)
    TN = _pick_tile(Npad)
    w3p = jnp.zeros((1024, Npad), jnp.float32).at[:, :N].set(params["w3"]).astype(bf16)
    b3p = jnp.zeros((1, Npad), jnp.float32).at[:, :N].set(params["b3"])

    coarse_pad, base = pl.pallas_call(
        mlp_kernel,
        out_shape=(jax.ShapeDtypeStruct((BG, Npad), jnp.float32),
                   jax.ShapeDtypeStruct((BG, 512), jnp.float32)),
        grid=(Npad // TN,),
        in_specs=[
            pl.BlockSpec((BG, C), lambda j: (0, 0)),          # fg
            pl.BlockSpec((C, 1024), lambda j: (0, 0)),        # w1
            pl.BlockSpec((1, 1024), lambda j: (0, 0)),        # b1
            pl.BlockSpec((1024, 1024), lambda j: (0, 0)),     # w2
            pl.BlockSpec((1, 1024), lambda j: (0, 0)),        # b2
            pl.BlockSpec((1024, TN), lambda j: (0, j)),       # w3 (tiled over N)
            pl.BlockSpec((1, TN), lambda j: (0, j)),          # b3 (tiled over N)
            pl.BlockSpec((C, 512), lambda j: (0, 0)),         # wc1a (hoisted term)
        ],
        out_specs=(pl.BlockSpec((BG, TN), lambda j: (0, j)),  # coarse (padded)
                   pl.BlockSpec((BG, 512), lambda j: (0, 0))),  # base
        scratch_shapes=[pltpu.VMEM((BG, 1024), bf16)],
        compiler_params=pltpu.CompilerParams(
            dimension_semantics=("arbitrary",),
            vmem_limit_bytes=_VMEM_LIMIT),
    )(fg.astype(bf16), params["w1"].astype(bf16), params["b1"],
      params["w2"].astype(bf16), params["b2"], w3p, b3p, wc1a.astype(bf16))

    coarse = coarse_pad[:, :N].reshape(BG, num_coarse, 3)

    # ---- fine path: folding features + final_conv --------------------------
    num_fine_pad = _round_up(num_fine, 128)
    TF = _pick_tile(num_fine_pad)
    n_ftiles = num_fine_pad // TF

    # center / point_feat: each coarse point repeated grid_size**2 times.
    center = jnp.broadcast_to(
        coarse[:, :, None, :], (BG, num_coarse, grid_size ** 2, 3)
    ).reshape(BG, num_fine, 3)
    center_p = jnp.pad(center, ((0, 0), (0, num_fine_pad - num_fine), (0, 0)))

    # folding-seed contribution to conv1: 4 unique rows tiled to one row tile,
    # fused with the folded conv1 bias.  Constant across the whole grid.
    seedW = params["folding_seed"].T @ wc1b                          # (4, 512)
    seedbias = jnp.tile(seedW, (TF // grid_size ** 2, 1)) + bc1f     # (TF, 512)

    base3 = base.reshape(BG, 1, 512)

    fine_rows = pl.pallas_call(
        final_conv_kernel,
        out_shape=jax.ShapeDtypeStruct((BG, num_fine_pad, 3), jnp.float32),
        grid=(BG, n_ftiles),
        in_specs=[
            pl.BlockSpec((1, 1, 512), lambda b, j: (b, 0, 0)),   # base (fg term)
            pl.BlockSpec((TF, 512), lambda b, j: (0, 0)),        # seed term + bias1
            pl.BlockSpec((1, TF, 3), lambda b, j: (b, j, 0)),    # center
            pl.BlockSpec((3, 512), lambda b, j: (0, 0)),         # wc1c
            pl.BlockSpec((512, 512), lambda b, j: (0, 0)),       # wc2 (BN folded)
            pl.BlockSpec((1, 512), lambda b, j: (0, 0)),         # bc2 (BN folded)
            pl.BlockSpec((512, 3), lambda b, j: (0, 0)),         # wc3
            pl.BlockSpec((1, 3), lambda b, j: (0, 0)),           # bc3
        ],
        out_specs=pl.BlockSpec((1, TF, 3), lambda b, j: (b, j, 0)),
        compiler_params=pltpu.CompilerParams(
            dimension_semantics=("parallel", "parallel"),
            vmem_limit_bytes=_VMEM_LIMIT),
    )(base3, seedbias, center_p, wc1c.astype(bf16), wc2f.astype(bf16),
      bc2f, params["wc3"].astype(bf16), params["bc3"])

    # matches torch: fine.reshape(bs, g, 3, num_fine).transpose(-1, -2)
    fine = fine_rows[:, :num_fine, :].reshape(B, G, num_fine, 3)
    coarse = coarse.reshape(B, G, num_coarse, 3)
    return coarse, fine


# ---------------------------------------------------------------------------
if __name__ == "__main__":
    B, G = 2, 2
    encoder_channel = 32
    num_fine = 32                      # num_coarse = 8, grid_size = 2
    key = jax.random.PRNGKey(0)
    k_param, k_x = jax.random.split(key)

    params = init_params(k_param, encoder_channel, num_fine)
    feature_global = jax.random.normal(k_x, (B, G, encoder_channel), jnp.float32)

    fwd = jax.jit(decoder_forward, static_argnums=2)
    coarse, fine = fwd(feature_global, params, num_fine)
    jax.block_until_ready((coarse, fine))

    assert coarse.shape == (B, G, num_fine // 4, 3), coarse.shape
    assert fine.shape == (B, G, num_fine, 3), fine.shape
    assert coarse.dtype == jnp.float32 and fine.dtype == jnp.float32
    print("KERNEL_OK")
</pallas_src>

<mosaic_0001>
module attributes {stable_mosaic.version = 11 : i64} {
  func.func @mlp_kernel(%arg0: i32, %arg1: memref<4x32xbf16, #tpu.memory_space<vmem>>, %arg2: memref<32x1024xbf16, #tpu.memory_space<vmem>>, %arg3: memref<1x1024xf32, #tpu.memory_space<vmem>>, %arg4: memref<1024x1024xbf16, #tpu.memory_space<vmem>>, %arg5: memref<1x1024xf32, #tpu.memory_space<vmem>>, %arg6: memref<1024x128xbf16, #tpu.memory_space<vmem>>, %arg7: memref<1x128xf32, #tpu.memory_space<vmem>>, %arg8: memref<32x512xbf16, #tpu.memory_space<vmem>>, %arg9: memref<4x128xf32, #tpu.memory_space<vmem>>, %arg10: memref<4x512xf32, #tpu.memory_space<vmem>>, %arg11: memref<4x1024xbf16, #tpu.memory_space<vmem>>) attributes {dimension_semantics = [#tpu.dimension_semantics<arbitrary>], iteration_bounds = array<i64: 1>, scalar_prefetch = 0 : i64, scratch_operands = 1 : i64, tpu.core_type = #tpu.core_type<tc>, window_params = [{pipeline_mode = #tpu.pipeline_mode<synchronous>, transform_indices = @transform_0, window_bounds = array<i64: 4, 32>}, {pipeline_mode = #tpu.pipeline_mode<synchronous>, transform_indices = @transform_1, window_bounds = array<i64: 32, 1024>}, {pipeline_mode = #tpu.pipeline_mode<synchronous>, transform_indices = @transform_2, window_bounds = array<i64: 1, 1024>}, {pipeline_mode = #tpu.pipeline_mode<synchronous>, transform_indices = @transform_3, window_bounds = array<i64: 1024, 1024>}, {pipeline_mode = #tpu.pipeline_mode<synchronous>, transform_indices = @transform_4, window_bounds = array<i64: 1, 1024>}, {transform_indices = @transform_5, window_bounds = array<i64: 1024, 128>}, {transform_indices = @transform_6, window_bounds = array<i64: 1, 128>}, {pipeline_mode = #tpu.pipeline_mode<synchronous>, transform_indices = @transform_7, window_bounds = array<i64: 32, 512>}, {transform_indices = @transform_8, window_bounds = array<i64: 4, 128>}, {pipeline_mode = #tpu.pipeline_mode<synchronous>, transform_indices = @transform_9, window_bounds = array<i64: 4, 512>}]} {
    %c0_i32 = arith.constant 0 : i32
    %0 = arith.cmpi eq, %arg0, %c0_i32 : i32
    %1 = arith.extui %0 : i1 to i32
    %c0_i32_0 = arith.constant 0 : i32
    %2 = arith.cmpi ne, %1, %c0_i32_0 : i32
    scf.if %2 {
      %c0_8 = arith.constant 0 : index
      %c0_9 = arith.constant 0 : index
      %10 = vector.load %arg1[%c0_8, %c0_9] : memref<4x32xbf16, #tpu.memory_space<vmem>>, vector<4x32xbf16>
      %c0_10 = arith.constant 0 : index
      %c0_11 = arith.constant 0 : index
      %11 = vector.load %arg2[%c0_10, %c0_11] : memref<32x1024xbf16, #tpu.memory_space<vmem>>, vector<32x1024xbf16>
      %cst_12 = arith.constant dense<0.000000e+00> : vector<4x1024xf32>
      %12 = tpu.matmul %10, %11, %cst_12 {dimension_numbers = #tpu.dot_dimension_numbers<[1], [0], [0], [1], [0, 0, 1, 1], [], []>} : vector<4x32xbf16>, vector<32x1024xbf16>, vector<4x1024xf32> -> vector<4x1024xf32>
      %c0_13 = arith.constant 0 : index
      %c0_14 = arith.constant 0 : index
      %13 = vector.load %arg3[%c0_13, %c0_14] : memref<1x1024xf32, #tpu.memory_space<vmem>>, vector<1x1024xf32>
      %14 = vector.broadcast %13 : vector<1x1024xf32> to vector<4x1024xf32>
      %15 = arith.addf %12, %14 : vector<4x1024xf32>
      %cst_15 = arith.constant 0.000000e+00 : f32
      %16 = vector.broadcast %cst_15 : f32 to vector<4x1024xf32>
      %17 = arith.maximumf %15, %16 : vector<4x1024xf32>
      %18 = arith.truncf %17 : vector<4x1024xf32> to vector<4x1024xbf16>
      %c0_16 = arith.constant 0 : index
      %c0_17 = arith.constant 0 : index
      %19 = vector.load %arg4[%c0_16, %c0_17] : memref<1024x1024xbf16, #tpu.memory_space<vmem>>, vector<1024x1024xbf16>
      %cst_18 = arith.constant dense<0.000000e+00> : vector<4x1024xf32>
      %20 = tpu.matmul %18, %19, %cst_18 {dimension_numbers = #tpu.dot_dimension_numbers<[1], [0], [0], [1], [0, 0, 1, 1], [], []>} : vector<4x1024xbf16>, vector<1024x1024xbf16>, vector<4x1024xf32> -> vector<4x1024xf32>
      %c0_19 = arith.constant 0 : index
      %c0_20 = arith.constant 0 : index
      %21 = vector.load %arg5[%c0_19, %c0_20] : memref<1x1024xf32, #tpu.memory_space<vmem>>, vector<1x1024xf32>
      %22 = vector.broadcast %21 : vector<1x1024xf32> to vector<4x1024xf32>
      %23 = arith.addf %20, %22 : vector<4x1024xf32>
      %cst_21 = arith.constant 0.000000e+00 : f32
      %24 = vector.broadcast %cst_21 : f32 to vector<4x1024xf32>
      %25 = arith.maximumf %23, %24 : vector<4x1024xf32>
      %26 = arith.truncf %25 : vector<4x1024xf32> to vector<4x1024xbf16>
      %c0_22 = arith.constant 0 : index
      %c0_23 = arith.constant 0 : index
      %27 = vector.load %arg11[%c0_22, %c0_23] : memref<4x1024xbf16, #tpu.memory_space<vmem>>, vector<4x1024xbf16>
      tpu.vector_store %arg11[%c0_22, %c0_23], %26 {strides = array<i32>} : memref<4x1024xbf16, #tpu.memory_space<vmem>>, vector<4x1024xbf16>,
      %c0_24 = arith.constant 0 : index
      %c0_25 = arith.constant 0 : index
      %28 = vector.load %arg8[%c0_24, %c0_25] : memref<32x512xbf16, #tpu.memory_space<vmem>>, vector<32x512xbf16>
      %cst_26 = arith.constant dense<0.000000e+00> : vector<4x512xf32>
      %29 = tpu.matmul %10, %28, %cst_26 {dimension_numbers = #tpu.dot_dimension_numbers<[1], [0], [0], [1], [0, 0, 1, 1], [], []>} : vector<4x32xbf16>, vector<32x512xbf16>, vector<4x512xf32> -> vector<4x512xf32>
      %c0_27 = arith.constant 0 : index
      %c0_28 = arith.constant 0 : index
      %30 = vector.load %arg10[%c0_27, %c0_28] : memref<4x512xf32, #tpu.memory_space<vmem>>, vector<4x512xf32>
      tpu.vector_store %arg10[%c0_27, %c0_28], %29 {strides = array<i32>} : memref<4x512xf32, #tpu.memory_space<vmem>>, vector<4x512xf32>,
    } else {
    }
    %c0 = arith.constant 0 : index
    %c0_1 = arith.constant 0 : index
    %3 = vector.load %arg11[%c0, %c0_1] : memref<4x1024xbf16, #tpu.memory_space<vmem>>, vector<4x1024xbf16>
    %c0_2 = arith.constant 0 : index
    %c0_3 = arith.constant 0 : index
    %4 = vector.load %arg6[%c0_2, %c0_3] : memref<1024x128xbf16, #tpu.memory_space<vmem>>, vector<1024x128xbf16>
    %cst = arith.constant dense<0.000000e+00> : vector<4x128xf32>
    %5 = tpu.matmul %3, %4, %cst {dimension_numbers = #tpu.dot_dimension_numbers<[1], [0], [0], [1], [0, 0, 1, 1], [], []>} : vector<4x1024xbf16>, vector<1024x128xbf16>, vector<4x128xf32> -> vector<4x128xf32>
    %c0_4 = arith.constant 0 : index
    %c0_5 = arith.constant 0 : index
    %6 = vector.load %arg7[%c0_4, %c0_5] : memref<1x128xf32, #tpu.memory_space<vmem>>, vector<1x128xf32>
    %7 = vector.broadcast %6 : vector<1x128xf32> to vector<4x128xf32>
    %8 = arith.addf %5, %7 : vector<4x128xf32>
    %c0_6 = arith.constant 0 : index
    %c0_7 = arith.constant 0 : index
    %9 = vector.load %arg9[%c0_6, %c0_7] : memref<4x128xf32, #tpu.memory_space<vmem>>, vector<4x128xf32>
    tpu.vector_store %arg9[%c0_6, %c0_7], %8 {strides = array<i32>} : memref<4x128xf32, #tpu.memory_space<vmem>>, vector<4x128xf32>,
    return
  }
  func.func @transform_0(%arg0: i32) -> (i32, i32) {
    %c0_i32 = arith.constant 0 : i32
    %c0_i32_0 = arith.constant 0 : i32
    %c0_i32_1 = arith.constant 0 : i32
    return %c0_i32, %c0_i32_0 : i32, i32
  }
  func.func @transform_1(%arg0: i32) -> (i32, i32) {
    %c0_i32 = arith.constant 0 : i32
    %c0_i32_0 = arith.constant 0 : i32
    %c0_i32_1 = arith.constant 0 : i32
    return %c0_i32, %c0_i32_0 : i32, i32
  }
  func.func @transform_2(%arg0: i32) -> (i32, i32) {
    %c0_i32 = arith.constant 0 : i32
    %c0_i32_0 = arith.constant 0 : i32
    %c0_i32_1 = arith.constant 0 : i32
    return %c0_i32, %c0_i32_0 : i32, i32
  }
  func.func @transform_3(%arg0: i32) -> (i32, i32) {
    %c0_i32 = arith.constant 0 : i32
    %c0_i32_0 = arith.constant 0 : i32
    %c0_i32_1 = arith.constant 0 : i32
    return %c0_i32, %c0_i32_0 : i32, i32
  }
  func.func @transform_4(%arg0: i32) -> (i32, i32) {
    %c0_i32 = arith.constant 0 : i32
    %c0_i32_0 = arith.constant 0 : i32
    %c0_i32_1 = arith.constant 0 : i32
    return %c0_i32, %c0_i32_0 : i32, i32
  }
  func.func @transform_5(%arg0: i32) -> (i32, i32) {
    %c0_i32 = arith.constant 0 : i32
    %c0_i32_0 = arith.constant 0 : i32
    return %c0_i32, %arg0 : i32, i32
  }
  func.func @transform_6(%arg0: i32) -> (i32, i32) {
    %c0_i32 = arith.constant 0 : i32
    %c0_i32_0 = arith.constant 0 : i32
    return %c0_i32, %arg0 : i32, i32
  }
  func.func @transform_7(%arg0: i32) -> (i32, i32) {
    %c0_i32 = arith.constant 0 : i32
    %c0_i32_0 = arith.constant 0 : i32
    %c0_i32_1 = arith.constant 0 : i32
    return %c0_i32, %c0_i32_0 : i32, i32
  }
  func.func @transform_8(%arg0: i32) -> (i32, i32) {
    %c0_i32 = arith.constant 0 : i32
    %c0_i32_0 = arith.constant 0 : i32
    return %c0_i32, %arg0 : i32, i32
  }
  func.func @transform_9(%arg0: i32) -> (i32, i32) {
    %c0_i32 = arith.constant 0 : i32
    %c0_i32_0 = arith.constant 0 : i32
    %c0_i32_1 = arith.constant 0 : i32
    return %c0_i32, %c0_i32_0 : i32, i32
  }
}

module attributes {stable_mosaic.version = 11 : i64} {
  func.func @final_conv_kernel(%arg0: i32, %arg1: i32, %arg2: memref<1x1x512xf32, #tpu.memory_space<vmem>>, %arg3: memref<128x512xf32, #tpu.memory_space<vmem>>, %arg4: memref<1x128x3xf32, #tpu.memory_space<vmem>>, %arg5: memref<3x512xbf16, #tpu.memory_space<vmem>>, %arg6: memref<512x512xbf16, #tpu.memory_space<vmem>>, %arg7: memref<1x512xf32, #tpu.memory_space<vmem>>, %arg8: memref<512x3xbf16, #tpu.memory_space<vmem>>, %arg9: memref<1x3xf32, #tpu.memory_space<vmem>>, %arg10: memref<1x128x3xf32, #tpu.memory_space<vmem>>) attributes {dimension_semantics = [#tpu.dimension_semantics<parallel>, #tpu.dimension_semantics<parallel>], iteration_bounds = array<i64: 4, 1>, scalar_prefetch = 0 : i64, scratch_operands = 0 : i64, tpu.core_type = #tpu.core_type<tc>, window_params = [{transform_indices = @transform_0, window_bounds = array<i64: 1, 1, 512>}, {pipeline_mode = #tpu.pipeline_mode<synchronous>, transform_indices = @transform_1, window_bounds = array<i64: 128, 512>}, {transform_indices = @transform_2, window_bounds = array<i64: 1, 128, 3>}, {pipeline_mode = #tpu.pipeline_mode<synchronous>, transform_indices = @transform_3, window_bounds = array<i64: 3, 512>}, {pipeline_mode = #tpu.pipeline_mode<synchronous>, transform_indices = @transform_4, window_bounds = array<i64: 512, 512>}, {pipeline_mode = #tpu.pipeline_mode<synchronous>, transform_indices = @transform_5, window_bounds = array<i64: 1, 512>}, {pipeline_mode = #tpu.pipeline_mode<synchronous>, transform_indices = @transform_6, window_bounds = array<i64: 512, 3>}, {pipeline_mode = #tpu.pipeline_mode<synchronous>, transform_indices = @transform_7, window_bounds = array<i64: 1, 3>}, {transform_indices = @transform_8, window_bounds = array<i64: 1, 128, 3>}]} {
    %c0 = arith.constant 0 : index
    %c0_0 = arith.constant 0 : index
    %c0_1 = arith.constant 0 : index
    %0 = vector.load %arg4[%c0, %c0_0, %c0_1] : memref<1x128x3xf32, #tpu.memory_space<vmem>>, vector<1x128x3xf32>
    %1 = vector.shape_cast %0 : vector<1x128x3xf32> to vector<128x3xf32>
    %c0_2 = arith.constant 0 : index
    %c0_3 = arith.constant 0 : index
    %2 = vector.load %arg3[%c0_2, %c0_3] : memref<128x512xf32, #tpu.memory_space<vmem>>, vector<128x512xf32>
    %c0_4 = arith.constant 0 : index
    %c0_5 = arith.constant 0 : index
    %c0_6 = arith.constant 0 : index
    %3 = vector.load %arg2[%c0_4, %c0_5, %c0_6] : memref<1x1x512xf32, #tpu.memory_space<vmem>>, vector<1x1x512xf32>
    %4 = vector.shape_cast %3 : vector<1x1x512xf32> to vector<1x512xf32>
    %5 = vector.broadcast %4 : vector<1x512xf32> to vector<128x512xf32>
    %6 = arith.addf %2, %5 : vector<128x512xf32>
    %7 = arith.truncf %1 : vector<128x3xf32> to vector<128x3xbf16>
    %c0_7 = arith.constant 0 : index
    %c0_8 = arith.constant 0 : index
    %8 = vector.load %arg5[%c0_7, %c0_8] : memref<3x512xbf16, #tpu.memory_space<vmem>>, vector<3x512xbf16>
    %cst = arith.constant dense<0.000000e+00> : vector<128x512xf32>
    %9 = tpu.matmul %7, %8, %cst {dimension_numbers = #tpu.dot_dimension_numbers<[1], [0], [0], [1], [0, 0, 1, 1], [], []>} : vector<128x3xbf16>, vector<3x512xbf16>, vector<128x512xf32> -> vector<128x512xf32>
    %10 = arith.addf %6, %9 : vector<128x512xf32>
    %cst_9 = arith.constant 0.000000e+00 : f32
    %11 = vector.broadcast %cst_9 : f32 to vector<128x512xf32>
    %12 = arith.maximumf %10, %11 : vector<128x512xf32>
    %13 = arith.truncf %12 : vector<128x512xf32> to vector<128x512xbf16>
    %c0_10 = arith.constant 0 : index
    %c0_11 = arith.constant 0 : index
    %14 = vector.load %arg6[%c0_10, %c0_11] : memref<512x512xbf16, #tpu.memory_space<vmem>>, vector<512x512xbf16>
    %cst_12 = arith.constant dense<0.000000e+00> : vector<128x512xf32>
    %15 = tpu.matmul %13, %14, %cst_12 {dimension_numbers = #tpu.dot_dimension_numbers<[1], [0], [0], [1], [0, 0, 1, 1], [], []>} : vector<128x512xbf16>, vector<512x512xbf16>, vector<128x512xf32> -> vector<128x512xf32>
    %c0_13 = arith.constant 0 : index
    %c0_14 = arith.constant 0 : index
    %16 = vector.load %arg7[%c0_13, %c0_14] : memref<1x512xf32, #tpu.memory_space<vmem>>, vector<1x512xf32>
    %17 = vector.broadcast %16 : vector<1x512xf32> to vector<128x512xf32>
    %18 = arith.addf %15, %17 : vector<128x512xf32>
    %cst_15 = arith.constant 0.000000e+00 : f32
    %19 = vector.broadcast %cst_15 : f32 to vector<128x512xf32>
    %20 = arith.maximumf %18, %19 : vector<128x512xf32>
    %21 = arith.truncf %20 : vector<128x512xf32> to vector<128x512xbf16>
    %c0_16 = arith.constant 0 : index
    %c0_17 = arith.constant 0 : index
    %22 = vector.load %arg8[%c0_16, %c0_17] : memref<512x3xbf16, #tpu.memory_space<vmem>>, vector<512x3xbf16>
    %cst_18 = arith.constant dense<0.000000e+00> : vector<128x3xf32>
    %23 = tpu.matmul %21, %22, %cst_18 {dimension_numbers = #tpu.dot_dimension_numbers<[1], [0], [0], [1], [0, 0, 1, 1], [], []>} : vector<128x512xbf16>, vector<512x3xbf16>, vector<128x3xf32> -> vector<128x3xf32>
    %c0_19 = arith.constant 0 : index
    %c0_20 = arith.constant 0 : index
    %24 = vector.load %arg9[%c0_19, %c0_20] : memref<1x3xf32, #tpu.memory_space<vmem>>, vector<1x3xf32>
    %25 = vector.broadcast %24 : vector<1x3xf32> to vector<128x3xf32>
    %26 = arith.addf %23, %25 : vector<128x3xf32>
    %27 = arith.addf %26, %1 : vector<128x3xf32>
    %c0_21 = arith.constant 0 : index
    %c0_22 = arith.constant 0 : index
    %c0_23 = arith.constant 0 : index
    %28 = vector.load %arg10[%c0_21, %c0_22, %c0_23] : memref<1x128x3xf32, #tpu.memory_space<vmem>>, vector<1x128x3xf32>
    %29 = vector.shape_cast %28 : vector<1x128x3xf32> to vector<128x3xf32>
    %30 = vector.shape_cast %27 : vector<128x3xf32> to vector<1x128x3xf32>
    tpu.vector_store %arg10[%c0_21, %c0_22, %c0_23], %30 {strides = array<i32>} : memref<1x128x3xf32, #tpu.memory_space<vmem>>, vector<1x128x3xf32>,
    return
  }
  func.func @transform_0(%arg0: i32, %arg1: i32) -> (i32, i32, i32) {
    %c0_i32 = arith.constant 0 : i32
    %c0_i32_0 = arith.constant 0 : i32
    %c0_i32_1 = arith.constant 0 : i32
    return %arg0, %c0_i32, %c0_i32_0 : i32, i32, i32
  }
  func.func @transform_1(%arg0: i32, %arg1: i32) -> (i32, i32) {
    %c0_i32 = arith.constant 0 : i32
    %c0_i32_0 = arith.constant 0 : i32
    %c0_i32_1 = arith.constant 0 : i32
    return %c0_i32, %c0_i32_0 : i32, i32
  }
  func.func @transform_2(%arg0: i32, %arg1: i32) -> (i32, i32, i32) {
    %c0_i32 = arith.constant 0 : i32
    %c0_i32_0 = arith.constant 0 : i32
    return %arg0, %arg1, %c0_i32 : i32, i32, i32
  }
  func.func @transform_3(%arg0: i32, %arg1: i32) -> (i32, i32) {
    %c0_i32 = arith.constant 0 : i32
    %c0_i32_0 = arith.constant 0 : i32
    %c0_i32_1 = arith.constant 0 : i32
    return %c0_i32, %c0_i32_0 : i32, i32
  }
  func.func @transform_4(%arg0: i32, %arg1: i32) -> (i32, i32) {
    %c0_i32 = arith.constant 0 : i32
    %c0_i32_0 = arith.constant 0 : i32
    %c0_i32_1 = arith.constant 0 : i32
    return %c0_i32, %c0_i32_0 : i32, i32
  }
  func.func @transform_5(%arg0: i32, %arg1: i32) -> (i32, i32) {
    %c0_i32 = arith.constant 0 : i32
    %c0_i32_0 = arith.constant 0 : i32
    %c0_i32_1 = arith.constant 0 : i32
    return %c0_i32, %c0_i32_0 : i32, i32
  }
  func.func @transform_6(%arg0: i32, %arg1: i32) -> (i32, i32) {
    %c0_i32 = arith.constant 0 : i32
    %c0_i32_0 = arith.constant 0 : i32
    %c0_i32_1 = arith.constant 0 : i32
    return %c0_i32, %c0_i32_0 : i32, i32
  }
  func.func @transform_7(%arg0: i32, %arg1: i32) -> (i32, i32) {
    %c0_i32 = arith.constant 0 : i32
    %c0_i32_0 = arith.constant 0 : i32
    %c0_i32_1 = arith.constant 0 : i32
    return %c0_i32, %c0_i32_0 : i32, i32
  }
  func.func @transform_8(%arg0: i32, %arg1: i32) -> (i32, i32, i32) {
    %c0_i32 = arith.constant 0 : i32
    %c0_i32_0 = arith.constant 0 : i32
    return %arg0, %arg1, %c0_i32 : i32, i32, i32
  }
}

</mosaic_0001>

<bundles_post_ra>
// kernel: tile.9
= control target key start
LH: loop header
LB: loop body
LE: loop exit
PB: predicated region body
PF: predicated region fallthrough
CT: control target
= control target key end

     0   :  { %s2056_s0 = inlined_call_operand.vmem [shape: f32[32,4,512], index: 0, kind: input, shape index: {}]   ;;  %s2057_s1 = inlined_call_operand.vmem [shape: f32[128,512], index: 1, kind: output, shape index: {}]  }
   0x1   :  { %v1024_v0 = vld [vmem:[%s2056_s0 + $0x1fc] sm:$0xf]  ;;  %v1025_v1 = vld [vmem:[%s2056_s0 + $0x1f8] sm:$0xf]  ;;  %v1026_v2 = vld [vmem:[%s2056_s0 + $0x1f4] sm:$0xf] }
   0x2   :  { %7 = vst [vmem:[#allocation0 + $0x148] sm:$0xf] %v1024_v0  ;;  %v1027_v3 = vld [vmem:[%s2056_s0 + $0x1f0] sm:$0xf]  ;;  %v1028_v4 = vld [vmem:[%s2056_s0 + $0x1ec] sm:$0xf] }
   0x3   :  { %11 = vst [vmem:[#allocation0 + $0x48] sm:$0xf] %v1025_v1  ;;  %v1029_v5 = vld [vmem:[%s2056_s0 + $0x1e8] sm:$0xf]  ;;  %v1030_v6 = vld [vmem:[%s2056_s0 + $0x1e4] sm:$0xf] }
   0x4   :  { %15 = vst [vmem:[#allocation0 + $0x320] sm:$0xf] %v1026_v2  ;;  %v1031_v7 = vld [vmem:[%s2056_s0 + $0x1e0] sm:$0xf]  ;;  %v1032_v8 = vld [vmem:[%s2056_s0 + $0x1dc] sm:$0xf] }
   0x5   :  { %19 = vst [vmem:[#allocation0 + $0x3e0] sm:$0xf] %v1027_v3  ;;  %v1033_v9 = vld [vmem:[%s2056_s0 + $0x1d8] sm:$0xf]  ;;  %v1034_v10 = vld [vmem:[%s2056_s0 + $0x1d4] sm:$0xf] }
   0x6   :  { %23 = vst [vmem:[#allocation0 + $0x3a8] sm:$0xf] %v1028_v4  ;;  %v1035_v11 = vld [vmem:[%s2056_s0 + $0x1d0] sm:$0xf]  ;;  %v1036_v12 = vld [vmem:[%s2056_s0 + $0x1cc] sm:$0xf] }
   0x7   :  { %27 = vst [vmem:[#allocation0 + $0x90] sm:$0xf] %v1029_v5  ;;  %v1037_v13 = vld [vmem:[%s2056_s0 + $0x1c8] sm:$0xf]  ;;  %v1038_v14 = vld [vmem:[%s2056_s0 + $0x1c4] sm:$0xf] }
   0x8   :  { %31 = vst [vmem:[#allocation0 + $0xc8] sm:$0xf] %v1030_v6  ;;  %v1039_v15 = vld [vmem:[%s2056_s0 + $0x1c0] sm:$0xf]  ;;  %v1040_v16 = vld [vmem:[%s2056_s0 + $0x1bc] sm:$0xf] }
   0x9   :  { %35 = vst [vmem:[#allocation0 + $0x3b0] sm:$0xf] %v1031_v7  ;;  %v1041_v17 = vld [vmem:[%s2056_s0 + $0x1b8] sm:$0xf]  ;;  %v1042_v18 = vld [vmem:[%s2056_s0 + $0x1b4] sm:$0xf] }
   0xa   :  { %39 = vst [vmem:[#allocation0 + $0x78] sm:$0xf] %v1032_v8  ;;  %v1043_v19 = vld [vmem:[%s2056_s0 + $0x1b0] sm:$0xf]  ;;  %v1044_v20 = vld [vmem:[%s2056_s0 + $0x1ac] sm:$0xf] }
   0xb   :  { %43 = vst [vmem:[#allocation0 + $0x2e8] sm:$0xf] %v1033_v9  ;;  %v1045_v21 = vld [vmem:[%s2056_s0 + $0x1a8] sm:$0xf]  ;;  %v1046_v22 = vld [vmem:[%s2056_s0 + $0x1a4] sm:$0xf] }
   0xc   :  { %47 = vst [vmem:[#allocation0 + $0x2e0] sm:$0xf] %v1034_v10  ;;  %v1047_v23 = vld [vmem:[%s2056_s0 + $0x1a0] sm:$0xf]  ;;  %v1048_v24 = vld [vmem:[%s2056_s0 + $0x19c] sm:$0xf] }
   0xd   :  { %51 = vst [vmem:[#allocation0 + $0x360] sm:$0xf] %v1035_v11  ;;  %v1049_v25 = vld [vmem:[%s2056_s0 + $0x198] sm:$0xf]  ;;  %v1050_v26 = vld [vmem:[%s2056_s0 + $0x194] sm:$0xf] }
   0xe   :  { %55 = vst [vmem:[#allocation0 + $0xd8] sm:$0xf] %v1036_v12  ;;  %v1051_v27 = vld [vmem:[%s2056_s0 + $0x190] sm:$0xf]  ;;  %v1052_v28 = vld [vmem:[%s2056_s0 + $0x18c] sm:$0xf] }
   0xf   :  { %59 = vst [vmem:[#allocation0 + $0x2a8] sm:$0xf] %v1037_v13  ;;  %v1053_v29 = vld [vmem:[%s2056_s0 + $0x188] sm:$0xf]  ;;  %v1054_v30 = vld [vmem:[%s2056_s0 + $0x184] sm:$0xf] }
  0x10   :  { %63 = vst [vmem:[#allocation0 + $0x2f0] sm:$0xf] %v1038_v14  ;;  %v1055_v31 = vld [vmem:[%s2056_s0 + $0x180] sm:$0xf]  ;;  %v1056_v32 = vld [vmem:[%s2056_s0 + $0x17c] sm:$0xf] }
  0x11   :  { %67 = vst [vmem:[#allocation0 + $0x398] sm:$0xf] %v1039_v15  ;;  %v1057_v33 = vld [vmem:[%s2056_s0 + $0x178] sm:$0xf]  ;;  %v1058_v34 = vld [vmem:[%s2056_s0 + $0x174] sm:$0xf] }
  0x12   :  { %71 = vst [vmem:[#allocation0 + $0x118] sm:$0xf] %v1040_v16  ;;  %v1059_v35 = vld [vmem:[%s2056_s0 + $0x170] sm:$0xf]  ;;  %v1060_v36 = vld [vmem:[%s2056_s0 + $0x16c] sm:$0xf] }
  0x13   :  { %75 = vst [vmem:[#allocation0 + $0x70] sm:$0xf] %v1041_v17  ;;  %v1061_v37 = vld [vmem:[%s2056_s0 + $0x168] sm:$0xf]  ;;  %v1062_v38 = vld [vmem:[%s2056_s0 + $0x164] sm:$0xf] }
  0x14   :  { %79 = vst [vmem:[#allocation0 + $0xc0] sm:$0xf] %v1042_v18  ;;  %v1063_v39 = vld [vmem:[%s2056_s0 + $0x160] sm:$0xf]  ;;  %v1064_v40 = vld [vmem:[%s2056_s0 + $0x15c] sm:$0xf] }
  0x15   :  { %83 = vst [vmem:[#allocation0 + $0xb8] sm:$0xf] %v1043_v19  ;;  %v1065_v41 = vld [vmem:[%s2056_s0 + $0x158] sm:$0xf]  ;;  %v1066_v42 = vld [vmem:[%s2056_s0 + $0x154] sm:$0xf] }
  0x16   :  { %87 = vst [vmem:[#allocation0 + $0x378] sm:$0xf] %v1044_v20  ;;  %v1067_v43 = vld [vmem:[%s2056_s0 + $0x150] sm:$0xf]  ;;  %v1068_v44 = vld [vmem:[%s2056_s0 + $0x14c] sm:$0xf] }
  0x17   :  { %91 = vst [vmem:[#allocation0 + $0x250] sm:$0xf] %v1045_v21  ;;  %v1069_v45 = vld [vmem:[%s2056_s0 + $0x148] sm:$0xf]  ;;  %v1070_v46 = vld [vmem:[%s2056_s0 + $0x144] sm:$0xf] }
  0x18   :  { %95 = vst [vmem:[#allocation0 + $0x240] sm:$0xf] %v1046_v22  ;;  %v1071_v47 = vld [vmem:[%s2056_s0 + $0x140] sm:$0xf]  ;;  %v1072_v48 = vld [vmem:[%s2056_s0 + $0x13c] sm:$0xf] }
  0x19   :  { %99 = vst [vmem:[#allocation0 + $0x290] sm:$0xf] %v1047_v23  ;;  %v1073_v49 = vld [vmem:[%s2056_s0 + $0x138] sm:$0xf]  ;;  %v1074_v50 = vld [vmem:[%s2056_s0 + $0x134] sm:$0xf] }
  0x1a   :  { %103 = vst [vmem:[#allocation0 + $0x10] sm:$0xf] %v1048_v24  ;;  %v1075_v51 = vld [vmem:[%s2056_s0 + $0x130] sm:$0xf]  ;;  %v1076_v52 = vld [vmem:[%s2056_s0 + $0x12c] sm:$0xf] }
  0x1b   :  { %107 = vst [vmem:[#allocation0 + $0x100] sm:$0xf] %v1049_v25  ;;  %v1077_v53 = vld [vmem:[%s2056_s0 + $0x128] sm:$0xf]  ;;  %v1078_v54 = vld [vmem:[%s2056_s0 + $0x124] sm:$0xf] }
  0x1c   :  { %111 = vst [vmem:[#allocation0 + $0x168] sm:$0xf] %v1050_v26  ;;  %v1079_v55 = vld [vmem:[%s2056_s0 + $0x120] sm:$0xf]  ;;  %v1080_v56 = vld [vmem:[%s2056_s0 + $0x11c] sm:$0xf] }
  0x1d   :  { %115 = vst [vmem:[#allocation0 + $0x3d0] sm:$0xf] %v1051_v27  ;;  %v1081_v57 = vld [vmem:[%s2056_s0 + $0x118] sm:$0xf]  ;;  %v1082_v58 = vld [vmem:[%s2056_s0 + $0x114] sm:$0xf] }
  0x1e   :  { %119 = vst [vmem:[#allocation0 + $0x2c0] sm:$0xf] %v1052_v28  ;;  %v1083_v59 = vld [vmem:[%s2056_s0 + $0x110] sm:$0xf]  ;;  %v1084_v60 = vld [vmem:[%s2056_s0 + $0x10c] sm:$0xf] }
  0x1f   :  { %123 = vst [vmem:[#allocation0 + $0x338] sm:$0xf] %v1053_v29  ;;  %v1085_v61 = vld [vmem:[%s2056_s0 + $0x108] sm:$0xf]  ;;  %v1086_v62 = vld [vmem:[%s2056_s0 + $0x104] sm:$0xf] }
  0x20   :  { %127 = vst [vmem:[#allocation0 + $0x238] sm:$0xf] %v1054_v30  ;;  %v1087_v63 = vld [vmem:[%s2056_s0 + $0x100] sm:$0xf]  ;;  %v1088_v0 = vld [vmem:[%s2056_s0 + $0xfc] sm:$0xf] }
  0x21   :  { %131 = vst [vmem:[#allocation0 + $0x178] sm:$0xf] %v1055_v31  ;;  %v1089_v1 = vld [vmem:[%s2056_s0 + $0xf8] sm:$0xf]  ;;  %v1090_v2 = vld [vmem:[%s2056_s0 + $0xf4] sm:$0xf] }
  0x22   :  { %135 = vst [vmem:[#allocation0 + $0x2f8] sm:$0xf] %v1056_v32  ;;  %v1091_v3 = vld [vmem:[%s2056_s0 + $0xf0] sm:$0xf]  ;;  %v1092_v4 = vld [vmem:[%s2056_s0 + $0xec] sm:$0xf] }
  0x23   :  { %139 = vst [vmem:[#allocation0 + $0x38] sm:$0xf] %v1057_v33  ;;  %v1093_v5 = vld [vmem:[%s2056_s0 + $0xe8] sm:$0xf]  ;;  %v1094_v6 = vld [vmem:[%s2056_s0 + $0xe4] sm:$0xf] }
  0x24   :  { %143 = vst [vmem:[#allocation0 + $0x2a0] sm:$0xf] %v1058_v34  ;;  %v1095_v7 = vld [vmem:[%s2056_s0 + $0xe0] sm:$0xf]  ;;  %v1096_v8 = vld [vmem:[%s2056_s0 + $0xdc] sm:$0xf] }
  0x25   :  { %147 = vst [vmem:[#allocation0 + $0x18] sm:$0xf] %v1059_v35  ;;  %v1097_v9 = vld [vmem:[%s2056_s0 + $0xd8] sm:$0xf]  ;;  %v1098_v10 = vld [vmem:[%s2056_s0 + $0xd4] sm:$0xf] }
  0x26   :  { %151 = vst [vmem:[#allocation0 + $0x1e0] sm:$0xf] %v1060_v36  ;;  %v1099_v11 = vld [vmem:[%s2056_s0 + $0xd0] sm:$0xf]  ;;  %v1100_v12 = vld [vmem:[%s2056_s0 + $0xcc] sm:$0xf] }
  0x27   :  { %155 = vst [vmem:[#allocation0] sm:$0xf] %v1061_v37  ;;  %v1101_v13 = vld [vmem:[%s2056_s0 + $0xc8] sm:$0xf]  ;;  %v1102_v14 = vld [vmem:[%s2056_s0 + $0xc4] sm:$0xf] }
  0x28   :  { %159 = vst [vmem:[#allocation0 + $0x3f0] sm:$0xf] %v1062_v38  ;;  %v1103_v15 = vld [vmem:[%s2056_s0 + $0xc0] sm:$0xf]  ;;  %v1104_v16 = vld [vmem:[%s2056_s0 + $0xbc] sm:$0xf] }
  0x29   :  { %163 = vst [vmem:[#allocation0 + $0x2d0] sm:$0xf] %v1063_v39  ;;  %v1105_v17 = vld [vmem:[%s2056_s0 + $0xb8] sm:$0xf]  ;;  %v1106_v18 = vld [vmem:[%s2056_s0 + $0xb4] sm:$0xf] }
  0x2a   :  { %167 = vst [vmem:[#allocation0 + $0x158] sm:$0xf] %v1064_v40  ;;  %v1107_v19 = vld [vmem:[%s2056_s0 + $0xb0] sm:$0xf]  ;;  %v1108_v20 = vld [vmem:[%s2056_s0 + $0xac] sm:$0xf] }
  0x2b   :  { %171 = vst [vmem:[#allocation0 + $0x8] sm:$0xf] %v1065_v41  ;;  %v1109_v21 = vld [vmem:[%s2056_s0 + $0xa8] sm:$0xf]  ;;  %v1110_v22 = vld [vmem:[%s2056_s0 + $0xa4] sm:$0xf] }
  0x2c   :  { %175 = vst [vmem:[#allocation0 + $0x358] sm:$0xf] %v1066_v42  ;;  %v1111_v23 = vld [vmem:[%s2056_s0 + $0xa0] sm:$0xf]  ;;  %v1112_v24 = vld [vmem:[%s2056_s0 + $0x9c] sm:$0xf] }
  0x2d   :  { %179 = vst [vmem:[#allocation0 + $0x138] sm:$0xf] %v1067_v43  ;;  %v1113_v25 = vld [vmem:[%s2056_s0 + $0x98] sm:$0xf]  ;;  %v1114_v26 = vld [vmem:[%s2056_s0 + $0x94] sm:$0xf] }
  0x2e   :  { %183 = vst [vmem:[#allocation0 + $0x348] sm:$0xf] %v1068_v44  ;;  %v1115_v27 = vld [vmem:[%s2056_s0 + $0x90] sm:$0xf]  ;;  %v1116_v28 = vld [vmem:[%s2056_s0 + $0x8c] sm:$0xf] }
  0x2f   :  { %187 = vst [vmem:[#allocation0 + $0x218] sm:$0xf] %v1069_v45  ;;  %v1117_v29 = vld [vmem:[%s2056_s0 + $0x88] sm:$0xf]  ;;  %v1118_v30 = vld [vmem:[%s2056_s0 + $0x84] sm:$0xf] }
  0x30   :  { %191 = vst [vmem:[#allocation0 + $0x208] sm:$0xf] %v1070_v46  ;;  %v1119_v31 = vld [vmem:[%s2056_s0 + $0x80] sm:$0xf]  ;;  %v1120_v32 = vld [vmem:[%s2056_s0 + $0x7c] sm:$0xf] }
  0x31   :  { %195 = vst [vmem:[#allocation0 + $0x3e8] sm:$0xf] %v1071_v47  ;;  %v1121_v33 = vld [vmem:[%s2056_s0 + $0x78] sm:$0xf]  ;;  %v1122_v34 = vld [vmem:[%s2056_s0 + $0x74] sm:$0xf] }
  0x32   :  { %199 = vst [vmem:[#allocation0 + $0x1c8] sm:$0xf] %v1072_v48  ;;  %v1123_v35 = vld [vmem:[%s2056_s0 + $0x70] sm:$0xf]  ;;  %v1124_v36 = vld [vmem:[%s2056_s0 + $0x6c] sm:$0xf] }
  0x33   :  { %203 = vst [vmem:[#allocation0 + $0x1b8] sm:$0xf] %v1073_v49  ;;  %v1125_v37 = vld [vmem:[%s2056_s0 + $0x68] sm:$0xf]  ;;  %v1126_v38 = vld [vmem:[%s2056_s0 + $0x64] sm:$0xf] }
  0x34   :  { %207 = vst [vmem:[#allocation0 + $0x368] sm:$0xf] %v1074_v50  ;;  %v1127_v39 = vld [vmem:[%s2056_s0 + $0x60] sm:$0xf]  ;;  %v1128_v40 = vld [vmem:[%s2056_s0 + $0x5c] sm:$0xf] }
  0x35   :  { %211 = vst [vmem:[#allocation0 + $0x58] sm:$0xf] %v1075_v51  ;;  %v1129_v41 = vld [vmem:[%s2056_s0 + $0x58] sm:$0xf]  ;;  %v1130_v42 = vld [vmem:[%s2056_s0 + $0x54] sm:$0xf] }
  0x36   :  { %215 = vst [vmem:[#allocation0 + $0x1f0] sm:$0xf] %v1076_v52  ;;  %v1131_v43 = vld [vmem:[%s2056_s0 + $0x50] sm:$0xf]  ;;  %v1132_v44 = vld [vmem:[%s2056_s0 + $0x4c] sm:$0xf] }
  0x37   :  { %219 = vst [vmem:[#allocation0 + $0x328] sm:$0xf] %v1077_v53  ;;  %v1133_v45 = vld [vmem:[%s2056_s0 + $0x48] sm:$0xf]  ;;  %v1134_v46 = vld [vmem:[%s2056_s0 + $0x44] sm:$0xf] }
  0x38   :  { %223 = vst [vmem:[#allocation0 + $0x370] sm:$0xf] %v1078_v54  ;;  %v1135_v47 = vld [vmem:[%s2056_s0 + $0x40] sm:$0xf]  ;;  %v1136_v48 = vld [vmem:[%s2056_s0 + $0x3c] sm:$0xf] }
  0x39   :  { %227 = vst [vmem:[#allocation0 + $0x108] sm:$0xf] %v1079_v55  ;;  %v1137_v49 = vld [vmem:[%s2056_s0 + $0x38] sm:$0xf]  ;;  %v1138_v50 = vld [vmem:[%s2056_s0 + $0x34] sm:$0xf] }
  0x3a   :  { %231 = vst [vmem:[#allocation0 + $0xa0] sm:$0xf] %v1080_v56  ;;  %v1139_v51 = vld [vmem:[%s2056_s0 + $0x30] sm:$0xf]  ;;  %v1140_v52 = vld [vmem:[%s2056_s0 + $0x2c] sm:$0xf] }
  0x3b   :  { %235 = vst [vmem:[#allocation0 + $0x190] sm:$0xf] %v1081_v57  ;;  %v1141_v53 = vld [vmem:[%s2056_s0 + $0x28] sm:$0xf]  ;;  %v1142_v54 = vld [vmem:[%s2056_s0 + $0x24] sm:$0xf] }
  0x3c   :  { %239 = vst [vmem:[#allocation0 + $0xa8] sm:$0xf] %v1082_v58  ;;  %v1143_v55 = vld [vmem:[%s2056_s0 + $0x20] sm:$0xf]  ;;  %v1144_v56 = vld [vmem:[%s2056_s0 + $0x1c] sm:$0xf] }
  0x3d   :  { %243 = vst [vmem:[#allocation0 + $0x270] sm:$0xf] %v1083_v59  ;;  %v1145_v57 = vld [vmem:[%s2056_s0 + $0x18] sm:$0xf]  ;;  %v1146_v58 = vld [vmem:[%s2056_s0 + $0x14] sm:$0xf] }
  0x3e   :  { %247 = vst [vmem:[#allocation0 + $0x220] sm:$0xf] %v1084_v60  ;;  %v1147_v59 = vld [vmem:[%s2056_s0 + $0x10] sm:$0xf]  ;;  %v1148_v60 = vld [vmem:[%s2056_s0 + $0xc] sm:$0xf] }
  0x3f   :  { %251 = vst [vmem:[#allocation0 + $0x3c8] sm:$0xf] %v1085_v61  ;;  %v1149_v61 = vld [vmem:[%s2056_s0 + $0x8] sm:$0xf] }
  0x40   :  { %255 = vst [vmem:[#allocation0 + $0x2b8] sm:$0xf] %v1086_v62  ;;  %v1150_v62 = vld [vmem:[%s2056_s0 + $0x4] sm:$0xf] }
  0x41   :  { %259 = vst [vmem:[#allocation0 + $0x150] sm:$0xf] %v1087_v63  ;;  %v512_v63 = vld [vmem:[%s2056_s0] sm:$0xf] }
  0x42   :  { %263 = vst [vmem:[#allocation0 + $0x2c8] sm:$0xf] %v1088_v0 }
  0x43   :  { %267 = vst [vmem:[#allocation0 + $0x1f8] sm:$0xf] %v1089_v1 }
  0x44   :  { %271 = vst [vmem:[#allocation0 + $0xe0] sm:$0xf] %v1090_v2 }
  0x45   :  { %275 = vst [vmem:[#allocation0 + $0x1d8] sm:$0xf] %v1091_v3 }
  0x46   :  { %279 = vst [vmem:[#allocation0 + $0x388] sm:$0xf] %v1092_v4 }
  0x47   :  { %283 = vst [vmem:[#allocation0 + $0xf8] sm:$0xf] %v1093_v5 }
  0x48   :  { %287 = vst [vmem:[#allocation0 + $0x318] sm:$0xf] %v1094_v6 }
  0x49   :  { %291 = vst [vmem:[#allocation0 + $0x280] sm:$0xf] %v1095_v7 }
  0x4a   :  { %295 = vst [vmem:[#allocation0 + $0xd0] sm:$0xf] %v1096_v8 }
  0x4b   :  { %299 = vst [vmem:[#allocation0 + $0x198] sm:$0xf] %v1097_v9 }
  0x4c   :  { %303 = vst [vmem:[#allocation0 + $0x40] sm:$0xf] %v1098_v10 }
  0x4d   :  { %307 = vst [vmem:[#allocation0 + $0x140] sm:$0xf] %v1099_v11 }
  0x4e   :  { %311 = vst [vmem:[#allocation0 + $0x1b0] sm:$0xf] %v1100_v12 }
  0x4f   :  { %315 = vst [vmem:[#allocation0 + $0x3b8] sm:$0xf] %v1101_v13 }
  0x50   :  { %319 = vst [vmem:[#allocation0 + $0x3d8] sm:$0xf] %v1102_v14 }
  0x51   :  { %323 = vst [vmem:[#allocation0 + $0x310] sm:$0xf] %v1103_v15 }
  0x52   :  { %327 = vst [vmem:[#allocation0 + $0x170] sm:$0xf] %v1104_v16 }
  0x53   :  { %331 = vst [vmem:[#allocation0 + $0x50] sm:$0xf] %v1105_v17 }
  0x54   :  { %335 = vst [vmem:[#allocation0 + $0x30] sm:$0xf] %v1106_v18 }
  0x55   :  { %339 = vst [vmem:[#allocation0 + $0x298] sm:$0xf] %v1107_v19 }
  0x56   :  { %343 = vst [vmem:[#allocation0 + $0x130] sm:$0xf] %v1108_v20 }
  0x57   :  { %347 = vst [vmem:[#allocation0 + $0x1e8] sm:$0xf] %v1109_v21 }
  0x58   :  { %351 = vst [vmem:[#allocation0 + $0x20] sm:$0xf] %v1110_v22 }
  0x59   :  { %355 = vst [vmem:[#allocation0 + $0x210] sm:$0xf] %v1111_v23 }
  0x5a   :  { %359 = vst [vmem:[#allocation0 + $0x248] sm:$0xf] %v1112_v24 }
  0x5b   :  { %363 = vst [vmem:[#allocation0 + $0x230] sm:$0xf] %v1113_v25 }
  0x5c   :  { %367 = vst [vmem:[#allocation0 + $0x128] sm:$0xf] %v1114_v26 }
  0x5d   :  { %371 = vst [vmem:[#allocation0 + $0x228] sm:$0xf] %v1115_v27 }
  0x5e   :  { %375 = vst [vmem:[#allocation0 + $0x3a0] sm:$0xf] %v1116_v28 }
  0x5f   :  { %379 = vst [vmem:[#allocation0 + $0x2d8] sm:$0xf] %v1117_v29 }
  0x60   :  { %383 = vst [vmem:[#allocation0 + $0x260] sm:$0xf] %v1118_v30 }
  0x61   :  { %387 = vst [vmem:[#allocation0 + $0x110] sm:$0xf] %v1119_v31 }
  0x62   :  { %391 = vst [vmem:[#allocation0 + $0x200] sm:$0xf] %v1120_v32 }
  0x63   :  { %395 = vst [vmem:[#allocation0 + $0x1c0] sm:$0xf] %v1121_v33 }
  0x64   :  { %399 = vst [vmem:[#allocation0 + $0x60] sm:$0xf] %v1122_v34 }
  0x65   :  { %403 = vst [vmem:[#allocation0 + $0x68] sm:$0xf] %v1123_v35  ;;  %v653_v35 = vld [vmem:[#allocation0 + $0x3a0] sm:$0xf]  }
  0x66   :  { %407 = vst [vmem:[#allocation0 + $0x258] sm:$0xf] %v1124_v36  ;;  %v649_v34 = vld [vmem:[#allocation0 + $0x2d8] sm:$0xf]   ;;  %v657_v36 = vld [vmem:[#allocation0 + $0x228] sm:$0xf]  }
  0x67   :  { %411 = vst [vmem:[#allocation0 + $0x350] sm:$0xf] %v1125_v37  ;;  %v645_v33 = vld [vmem:[#allocation0 + $0x260] sm:$0xf]   ;;  %v661_v37 = vld [vmem:[#allocation0 + $0x128] sm:$0xf]  }
  0x68   :  { %415 = vst [vmem:[#allocation0 + $0x1a0] sm:$0xf] %v1126_v38  ;;  %v641_v32 = vld [vmem:[#allocation0 + $0x110] sm:$0xf]  }
  0x69   :  { %419 = vst [vmem:[#allocation0 + $0x120] sm:$0xf] %v1127_v39  ;;  %v637_v31 = vld [vmem:[#allocation0 + $0x200] sm:$0xf]   ;;  %v665_v38 = vld [vmem:[#allocation0 + $0x230] sm:$0xf]  }
  0x6a   :  { %423 = vst [vmem:[#allocation0 + $0x308] sm:$0xf] %v1128_v40  ;;  %v633_v30 = vld [vmem:[#allocation0 + $0x1c0] sm:$0xf]   ;;  %v669_v39 = vld [vmem:[#allocation0 + $0x248] sm:$0xf]  }
  0x6b   :  { %427 = vst [vmem:[#allocation0 + $0x278] sm:$0xf] %v1129_v41  ;;  %v629_v29 = vld [vmem:[#allocation0 + $0x60] sm:$0xf]   ;;  %v673_v40 = vld [vmem:[#allocation0 + $0x210] sm:$0xf]  }
  0x6c   :  { %431 = vst [vmem:[#allocation0 + $0x288] sm:$0xf] %v1130_v42  ;;  %v625_v28 = vld [vmem:[#allocation0 + $0x68] sm:$0xf]   ;;  %v677_v41 = vld [vmem:[#allocation0 + $0x20] sm:$0xf]  }
  0x6d   :  { %435 = vst [vmem:[#allocation0 + $0x28] sm:$0xf] %v1131_v43  ;;  %v621_v27 = vld [vmem:[#allocation0 + $0x258] sm:$0xf]   ;;  %v681_v42 = vld [vmem:[#allocation0 + $0x1e8] sm:$0xf]  }
  0x6e   :  { %439 = vst [vmem:[#allocation0 + $0x1a8] sm:$0xf] %v1132_v44  ;;  %v617_v26 = vld [vmem:[#allocation0 + $0x350] sm:$0xf]   ;;  %v689_v44 = vld [vmem:[#allocation0 + $0x298] sm:$0xf]  }
  0x6f   :  { %443 = vst [vmem:[#allocation0 + $0x80] sm:$0xf] %v1133_v45  ;;  %v613_v25 = vld [vmem:[#allocation0 + $0x1a0] sm:$0xf]   ;;  %v685_v43 = vld [vmem:[#allocation0 + $0x130] sm:$0xf]  }
  0x70   :  { %447 = vst [vmem:[#allocation0 + $0x340] sm:$0xf] %v1134_v46  ;;  %v609_v24 = vld [vmem:[#allocation0 + $0x120] sm:$0xf]   ;;  %v693_v45 = vld [vmem:[#allocation0 + $0x30] sm:$0xf]  }
  0x71   :  { %451 = vst [vmem:[#allocation0 + $0x3c0] sm:$0xf] %v1135_v47  ;;  %v605_v23 = vld [vmem:[#allocation0 + $0x308] sm:$0xf]   ;;  %v697_v46 = vld [vmem:[#allocation0 + $0x50] sm:$0xf]  }
  0x72   :  { %455 = vst [vmem:[#allocation0 + $0x380] sm:$0xf] %v1136_v48  ;;  %v601_v22 = vld [vmem:[#allocation0 + $0x278] sm:$0xf]   ;;  %v701_v47 = vld [vmem:[#allocation0 + $0x170] sm:$0xf]  }
  0x73   :  { %459 = vst [vmem:[#allocation0 + $0xf0] sm:$0xf] %v1137_v49  ;;  %v597_v21 = vld [vmem:[#allocation0 + $0x288] sm:$0xf]   ;;  %v705_v48 = vld [vmem:[#allocation0 + $0x310] sm:$0xf]  }
  0x74   :  { %463 = vst [vmem:[#allocation0 + $0x88] sm:$0xf] %v1138_v50  ;;  %v593_v20 = vld [vmem:[#allocation0 + $0x28] sm:$0xf]   ;;  %v709_v49 = vld [vmem:[#allocation0 + $0x3d8] sm:$0xf]  }
  0x75   :  { %467 = vst [vmem:[#allocation0 + $0x330] sm:$0xf] %v1139_v51  ;;  %v589_v19 = vld [vmem:[#allocation0 + $0x1a8] sm:$0xf]   ;;  %v713_v50 = vld [vmem:[#allocation0 + $0x3b8] sm:$0xf]  }
  0x76   :  { %471 = vst [vmem:[#allocation0 + $0x180] sm:$0xf] %v1140_v52  ;;  %v585_v18 = vld [vmem:[#allocation0 + $0x80] sm:$0xf]   ;;  %v717_v51 = vld [vmem:[#allocation0 + $0x1b0] sm:$0xf]  }
  0x77   :  { %475 = vst [vmem:[#allocation0 + $0x98] sm:$0xf] %v1141_v53  ;;  %v581_v17 = vld [vmem:[#allocation0 + $0x340] sm:$0xf]  }
  0x78   :  { %479 = vst [vmem:[#allocation0 + $0x1d0] sm:$0xf] %v1142_v54  ;;  %v577_v16 = vld [vmem:[#allocation0 + $0x3c0] sm:$0xf]   ;;  %v729_v54 = vld [vmem:[#allocation0 + $0x198] sm:$0xf]  }
  0x79   :  { %483 = vst [vmem:[#allocation0 + $0xb0] sm:$0xf] %v1143_v55  ;;  %v573_v15 = vld [vmem:[#allocation0 + $0x380] sm:$0xf]   ;;  %v733_v55 = vld [vmem:[#allocation0 + $0xd0] sm:$0xf]  }
  0x7a   :  { %487 = vst [vmem:[#allocation0 + $0x2b0] sm:$0xf] %v1144_v56  ;;  %v569_v14 = vld [vmem:[#allocation0 + $0xf0] sm:$0xf]   ;;  %v721_v52 = vld [vmem:[#allocation0 + $0x140] sm:$0xf]  }
  0x7b   :  { %491 = vst [vmem:[#allocation0 + $0x300] sm:$0xf] %v1145_v57  ;;  %v565_v13 = vld [vmem:[#allocation0 + $0x88] sm:$0xf]   ;;  %v725_v53 = vld [vmem:[#allocation0 + $0x40] sm:$0xf]  }
  0x7c   :  { %495 = vst [vmem:[#allocation0 + $0x390] sm:$0xf] %v1146_v58  ;;  %v561_v12 = vld [vmem:[#allocation0 + $0x330] sm:$0xf]   ;;  %v737_v56 = vld [vmem:[#allocation0 + $0x280] sm:$0xf]  }
  0x7d   :  { %499 = vst [vmem:[#allocation0 + $0x3f8] sm:$0xf] %v1147_v59  ;;  %v557_v11 = vld [vmem:[#allocation0 + $0x180] sm:$0xf]   ;;  %v741_v57 = vld [vmem:[#allocation0 + $0x318] sm:$0xf]  }
  0x7e   :  { %503 = vst [vmem:[#allocation0 + $0x160] sm:$0xf] %v1148_v60  ;;  %v553_v10 = vld [vmem:[#allocation0 + $0x98] sm:$0xf]   ;;  %v749_v59 = vld [vmem:[#allocation0 + $0x388] sm:$0xf]  }
  0x7f   :  { %507 = vst [vmem:[#allocation0 + $0x188] sm:$0xf] %v1149_v61  ;;  %v549_v9 = vld [vmem:[#allocation0 + $0x1d0] sm:$0xf]   ;;  %v745_v58 = vld [vmem:[#allocation0 + $0xf8] sm:$0xf]  }
  0x80   :  { %511 = vst [vmem:[#allocation0 + $0xe8] sm:$0xf] %v1150_v62  ;;  %v545_v7 = vld [vmem:[#allocation0 + $0xb0] sm:$0xf]   ;;  %v753_v60 = vld [vmem:[#allocation0 + $0x1d8] sm:$0xf]  }
  0x81   :  { %513 = vst [vmem:[#allocation0 + $0x268] sm:$0xf] %v512_v63  ;;  %v541_v0 = vld [vmem:[#allocation0 + $0x2b0] sm:$0xf]   ;;  %v757_v61 = vld [vmem:[#allocation0 + $0xe0] sm:$0xf]  }
  0x82   :  { %v537_v1 = vld [vmem:[#allocation0 + $0x300] sm:$0xf]   ;;  %1157 = vst [vmem:[%s2057_s1 + $0x1c] sm:$0xf] %v541_v0   ;;  %v761_v62 = vld [vmem:[#allocation0 + $0x1f8] sm:$0xf]  }
  0x83   :  { %v533_v2 = vld [vmem:[#allocation0 + $0x390] sm:$0xf]   ;;  %1156 = vst [vmem:[%s2057_s1 + $0x14] sm:$0xf] %v537_v1   ;;  %v765_v63 = vld [vmem:[#allocation0 + $0x2c8] sm:$0xf]  }
  0x84   :  { %v529_v3 = vld [vmem:[#allocation0 + $0x3f8] sm:$0xf]   ;;  %1155 = vst [vmem:[%s2057_s1 + $0xc] sm:$0xf] %v533_v2   ;;  %v769_v0 = vld [vmem:[#allocation0 + $0x150] sm:$0xf]  }
  0x85   :  { %v525_v4 = vld [vmem:[#allocation0 + $0x160] sm:$0xf]   ;;  %1154 = vst [vmem:[%s2057_s1 + $0x4] sm:$0xf] %v529_v3   ;;  %v773_v1 = vld [vmem:[#allocation0 + $0x2b8] sm:$0xf]  }
  0x86   :  { %v521_v5 = vld [vmem:[#allocation0 + $0x188] sm:$0xf]   ;;  %1153 = vst [vmem:[%s2057_s1 + $0x18] sm:$0xf] %v525_v4   ;;  %v781_v3 = vld [vmem:[#allocation0 + $0x220] sm:$0xf]  }
  0x87   :  { %v517_v6 = vld [vmem:[#allocation0 + $0xe8] sm:$0xf]   ;;  %1152 = vst [vmem:[%s2057_s1 + $0x10] sm:$0xf] %v521_v5   ;;  %v785_v4 = vld [vmem:[#allocation0 + $0x270] sm:$0xf]  }
  0x88   :  { %v514_v8 = vld [vmem:[#allocation0 + $0x268] sm:$0xf]   ;;  %1151 = vst [vmem:[%s2057_s1 + $0x8] sm:$0xf] %v517_v6   ;;  %v793_v6 = vld [vmem:[#allocation0 + $0x190] sm:$0xf]  }
  0x89   :  { %515 = vst [vmem:[%s2057_s1] sm:$0xf] %v514_v8   ;;  %v777_v2 = vld [vmem:[#allocation0 + $0x3c8] sm:$0xf]  }
  0x8a   :  { %1158 = vst [vmem:[%s2057_s1 + $0x20] sm:$0xf] %v545_v7   ;;  %v789_v5 = vld [vmem:[#allocation0 + $0xa8] sm:$0xf]   ;;  %v797_v7 = vld [vmem:[#allocation0 + $0xa0] sm:$0xf]  }
  0x8b   :  { %1159 = vst [vmem:[%s2057_s1 + $0x28] sm:$0xf] %v549_v9   ;;  %v801_v8 = vld [vmem:[#allocation0 + $0x108] sm:$0xf]   ;;  %v805_v9 = vld [vmem:[#allocation0 + $0x370] sm:$0xf]  }
  0x8c   :  { %1160 = vst [vmem:[%s2057_s1 + $0x30] sm:$0xf] %v553_v10   ;;  %v809_v10 = vld [vmem:[#allocation0 + $0x328] sm:$0xf]  }
  0x8d   :  { %1161 = vst [vmem:[%s2057_s1 + $0x38] sm:$0xf] %v557_v11   ;;  %v813_v11 = vld [vmem:[#allocation0 + $0x1f0] sm:$0xf]  }
  0x8e   :  { %1162 = vst [vmem:[%s2057_s1 + $0x24] sm:$0xf] %v561_v12   ;;  %v817_v12 = vld [vmem:[#allocation0 + $0x58] sm:$0xf]  }
  0x8f   :  { %1163 = vst [vmem:[%s2057_s1 + $0x2c] sm:$0xf] %v565_v13   ;;  %v821_v13 = vld [vmem:[#allocation0 + $0x368] sm:$0xf]  }
  0x90   :  { %1164 = vst [vmem:[%s2057_s1 + $0x34] sm:$0xf] %v569_v14   ;;  %v825_v14 = vld [vmem:[#allocation0 + $0x1b8] sm:$0xf]  }
  0x91   :  { %1165 = vst [vmem:[%s2057_s1 + $0x3c] sm:$0xf] %v573_v15   ;;  %v829_v15 = vld [vmem:[#allocation0 + $0x1c8] sm:$0xf]  }
  0x92   :  { %1166 = vst [vmem:[%s2057_s1 + $0x40] sm:$0xf] %v577_v16   ;;  %v833_v16 = vld [vmem:[#allocation0 + $0x3e8] sm:$0xf]  }
  0x93   :  { %1167 = vst [vmem:[%s2057_s1 + $0x48] sm:$0xf] %v581_v17   ;;  %v837_v17 = vld [vmem:[#allocation0 + $0x208] sm:$0xf]  }
  0x94   :  { %1168 = vst [vmem:[%s2057_s1 + $0x50] sm:$0xf] %v585_v18   ;;  %v841_v18 = vld [vmem:[#allocation0 + $0x218] sm:$0xf]  }
  0x95   :  { %1169 = vst [vmem:[%s2057_s1 + $0x58] sm:$0xf] %v589_v19   ;;  %v845_v19 = vld [vmem:[#allocation0 + $0x348] sm:$0xf]  }
  0x96   :  { %1170 = vst [vmem:[%s2057_s1 + $0x44] sm:$0xf] %v593_v20   ;;  %v849_v20 = vld [vmem:[#allocation0 + $0x138] sm:$0xf]  }
  0x97   :  { %1171 = vst [vmem:[%s2057_s1 + $0x4c] sm:$0xf] %v597_v21   ;;  %v853_v21 = vld [vmem:[#allocation0 + $0x358] sm:$0xf]  }
  0x98   :  { %1172 = vst [vmem:[%s2057_s1 + $0x54] sm:$0xf] %v601_v22   ;;  %v857_v22 = vld [vmem:[#allocation0 + $0x8] sm:$0xf]  }
  0x99   :  { %1173 = vst [vmem:[%s2057_s1 + $0x5c] sm:$0xf] %v605_v23   ;;  %v861_v23 = vld [vmem:[#allocation0 + $0x158] sm:$0xf]  }
  0x9a   :  { %1174 = vst [vmem:[%s2057_s1 + $0x60] sm:$0xf] %v609_v24   ;;  %v865_v24 = vld [vmem:[#allocation0 + $0x2d0] sm:$0xf]  }
  0x9b   :  { %1175 = vst [vmem:[%s2057_s1 + $0x68] sm:$0xf] %v613_v25   ;;  %v869_v25 = vld [vmem:[#allocation0 + $0x3f0] sm:$0xf]  }
  0x9c   :  { %1176 = vst [vmem:[%s2057_s1 + $0x70] sm:$0xf] %v617_v26   ;;  %v873_v26 = vld [vmem:[#allocation0] sm:$0xf]  }
  0x9d   :  { %1177 = vst [vmem:[%s2057_s1 + $0x78] sm:$0xf] %v621_v27   ;;  %v877_v27 = vld [vmem:[#allocation0 + $0x1e0] sm:$0xf]  }
  0x9e   :  { %1178 = vst [vmem:[%s2057_s1 + $0x64] sm:$0xf] %v625_v28   ;;  %v881_v28 = vld [vmem:[#allocation0 + $0x18] sm:$0xf]  }
  0x9f   :  { %1179 = vst [vmem:[%s2057_s1 + $0x6c] sm:$0xf] %v629_v29   ;;  %v885_v29 = vld [vmem:[#allocation0 + $0x2a0] sm:$0xf]  }
  0xa0   :  { %1180 = vst [vmem:[%s2057_s1 + $0x74] sm:$0xf] %v633_v30   ;;  %v889_v30 = vld [vmem:[#allocation0 + $0x38] sm:$0xf]  }
  0xa1   :  { %1181 = vst [vmem:[%s2057_s1 + $0x7c] sm:$0xf] %v637_v31   ;;  %v893_v31 = vld [vmem:[#allocation0 + $0x2f8] sm:$0xf]  }
  0xa2   :  { %1182 = vst [vmem:[%s2057_s1 + $0x80] sm:$0xf] %v641_v32   ;;  %v897_v32 = vld [vmem:[#allocation0 + $0x178] sm:$0xf]  }
  0xa3   :  { %1183 = vst [vmem:[%s2057_s1 + $0x88] sm:$0xf] %v645_v33   ;;  %v901_v33 = vld [vmem:[#allocation0 + $0x238] sm:$0xf]  }
  0xa4   :  { %1184 = vst [vmem:[%s2057_s1 + $0x90] sm:$0xf] %v649_v34   ;;  %v905_v34 = vld [vmem:[#allocation0 + $0x338] sm:$0xf]  }
  0xa5   :  { %1185 = vst [vmem:[%s2057_s1 + $0x98] sm:$0xf] %v653_v35   ;;  %v909_v35 = vld [vmem:[#allocation0 + $0x2c0] sm:$0xf]  }
  0xa6   :  { %1186 = vst [vmem:[%s2057_s1 + $0x84] sm:$0xf] %v657_v36   ;;  %v913_v36 = vld [vmem:[#allocation0 + $0x3d0] sm:$0xf]  }
  0xa7   :  { %1187 = vst [vmem:[%s2057_s1 + $0x8c] sm:$0xf] %v661_v37   ;;  %v917_v37 = vld [vmem:[#allocation0 + $0x168] sm:$0xf]  }
  0xa8   :  { %1188 = vst [vmem:[%s2057_s1 + $0x94] sm:$0xf] %v665_v38   ;;  %v921_v38 = vld [vmem:[#allocation0 + $0x100] sm:$0xf]  }
  0xa9   :  { %1189 = vst [vmem:[%s2057_s1 + $0x9c] sm:$0xf] %v669_v39   ;;  %v925_v39 = vld [vmem:[#allocation0 + $0x10] sm:$0xf]  }
  0xaa   :  { %1190 = vst [vmem:[%s2057_s1 + $0xa0] sm:$0xf] %v673_v40   ;;  %v929_v40 = vld [vmem:[#allocation0 + $0x290] sm:$0xf]  }
  0xab   :  { %1191 = vst [vmem:[%s2057_s1 + $0xa8] sm:$0xf] %v677_v41   ;;  %v933_v41 = vld [vmem:[#allocation0 + $0x240] sm:$0xf]  }
  0xac   :  { %1192 = vst [vmem:[%s2057_s1 + $0xb0] sm:$0xf] %v681_v42   ;;  %v937_v42 = vld [vmem:[#allocation0 + $0x250] sm:$0xf]  }
  0xad   :  { %1193 = vst [vmem:[%s2057_s1 + $0xb8] sm:$0xf] %v685_v43   ;;  %v941_v43 = vld [vmem:[#allocation0 + $0x378] sm:$0xf]  }
  0xae   :  { %1194 = vst [vmem:[%s2057_s1 + $0xa4] sm:$0xf] %v689_v44   ;;  %v945_v44 = vld [vmem:[#allocation0 + $0xb8] sm:$0xf]  }
  0xaf   :  { %1195 = vst [vmem:[%s2057_s1 + $0xac] sm:$0xf] %v693_v45   ;;  %v949_v45 = vld [vmem:[#allocation0 + $0xc0] sm:$0xf]  }
  0xb0   :  { %1196 = vst [vmem:[%s2057_s1 + $0xb4] sm:$0xf] %v697_v46   ;;  %v953_v46 = vld [vmem:[#allocation0 + $0x70] sm:$0xf]  }
  0xb1   :  { %1197 = vst [vmem:[%s2057_s1 + $0xbc] sm:$0xf] %v701_v47   ;;  %v957_v47 = vld [vmem:[#allocation0 + $0x118] sm:$0xf]  }
  0xb2   :  { %1198 = vst [vmem:[%s2057_s1 + $0xc0] sm:$0xf] %v705_v48   ;;  %v961_v48 = vld [vmem:[#allocation0 + $0x398] sm:$0xf]  }
  0xb3   :  { %1199 = vst [vmem:[%s2057_s1 + $0xc8] sm:$0xf] %v709_v49   ;;  %v965_v49 = vld [vmem:[#allocation0 + $0x2f0] sm:$0xf]  }
  0xb4   :  { %1200 = vst [vmem:[%s2057_s1 + $0xd0] sm:$0xf] %v713_v50   ;;  %v969_v50 = vld [vmem:[#allocation0 + $0x2a8] sm:$0xf]  }
  0xb5   :  { %1201 = vst [vmem:[%s2057_s1 + $0xd8] sm:$0xf] %v717_v51   ;;  %v973_v51 = vld [vmem:[#allocation0 + $0xd8] sm:$0xf]  }
  0xb6   :  { %1202 = vst [vmem:[%s2057_s1 + $0xc4] sm:$0xf] %v721_v52   ;;  %v977_v52 = vld [vmem:[#allocation0 + $0x360] sm:$0xf]  }
  0xb7   :  { %1203 = vst [vmem:[%s2057_s1 + $0xcc] sm:$0xf] %v725_v53   ;;  %v981_v53 = vld [vmem:[#allocation0 + $0x2e0] sm:$0xf]  }
  0xb8   :  { %1204 = vst [vmem:[%s2057_s1 + $0xd4] sm:$0xf] %v729_v54   ;;  %v985_v54 = vld [vmem:[#allocation0 + $0x2e8] sm:$0xf]  }
  0xb9   :  { %1205 = vst [vmem:[%s2057_s1 + $0xdc] sm:$0xf] %v733_v55   ;;  %v989_v55 = vld [vmem:[#allocation0 + $0x78] sm:$0xf]  }
  0xba   :  { %1206 = vst [vmem:[%s2057_s1 + $0xe0] sm:$0xf] %v737_v56   ;;  %v993_v56 = vld [vmem:[#allocation0 + $0x3b0] sm:$0xf]  }
  0xbb   :  { %1207 = vst [vmem:[%s2057_s1 + $0xe8] sm:$0xf] %v741_v57   ;;  %v997_v57 = vld [vmem:[#allocation0 + $0xc8] sm:$0xf]  }
  0xbc   :  { %1208 = vst [vmem:[%s2057_s1 + $0xf0] sm:$0xf] %v745_v58   ;;  %v1001_v58 = vld [vmem:[#allocation0 + $0x90] sm:$0xf]  }
  0xbd   :  { %1209 = vst [vmem:[%s2057_s1 + $0xf8] sm:$0xf] %v749_v59   ;;  %v1005_v59 = vld [vmem:[#allocation0 + $0x3a8] sm:$0xf]  }
  0xbe   :  { %1210 = vst [vmem:[%s2057_s1 + $0xe4] sm:$0xf] %v753_v60   ;;  %v1009_v60 = vld [vmem:[#allocation0 + $0x3e0] sm:$0xf]  }
  0xbf   :  { %1211 = vst [vmem:[%s2057_s1 + $0xec] sm:$0xf] %v757_v61   ;;  %v1013_v61 = vld [vmem:[#allocation0 + $0x320] sm:$0xf]  }
  0xc0   :  { %1212 = vst [vmem:[%s2057_s1 + $0xf4] sm:$0xf] %v761_v62   ;;  %v1017_v62 = vld [vmem:[#allocation0 + $0x48] sm:$0xf]  }
  0xc1   :  { %1213 = vst [vmem:[%s2057_s1 + $0xfc] sm:$0xf] %v765_v63   ;;  %v1021_v63 = vld [vmem:[#allocation0 + $0x148] sm:$0xf]  }
  0xc2   :  { %1214 = vst [vmem:[%s2057_s1 + $0x100] sm:$0xf] %v769_v0  }
  0xc3   :  { %1215 = vst [vmem:[%s2057_s1 + $0x108] sm:$0xf] %v773_v1  }
  0xc4   :  { %1216 = vst [vmem:[%s2057_s1 + $0x110] sm:$0xf] %v777_v2  }
  0xc5   :  { %1217 = vst [vmem:[%s2057_s1 + $0x118] sm:$0xf] %v781_v3  }
  0xc6   :  { %1218 = vst [vmem:[%s2057_s1 + $0x104] sm:$0xf] %v785_v4  }
  0xc7   :  { %1219 = vst [vmem:[%s2057_s1 + $0x10c] sm:$0xf] %v789_v5  }
  0xc8   :  { %1220 = vst [vmem:[%s2057_s1 + $0x114] sm:$0xf] %v793_v6  }
  0xc9   :  { %1221 = vst [vmem:[%s2057_s1 + $0x11c] sm:$0xf] %v797_v7  }
  0xca   :  { %1222 = vst [vmem:[%s2057_s1 + $0x120] sm:$0xf] %v801_v8  }
  0xcb   :  { %1223 = vst [vmem:[%s2057_s1 + $0x128] sm:$0xf] %v805_v9  }
  0xcc   :  { %1224 = vst [vmem:[%s2057_s1 + $0x130] sm:$0xf] %v809_v10  }
  0xcd   :  { %1225 = vst [vmem:[%s2057_s1 + $0x138] sm:$0xf] %v813_v11  }
  0xce   :  { %1226 = vst [vmem:[%s2057_s1 + $0x124] sm:$0xf] %v817_v12  }
  0xcf   :  { %1227 = vst [vmem:[%s2057_s1 + $0x12c] sm:$0xf] %v821_v13  }
  0xd0   :  { %1228 = vst [vmem:[%s2057_s1 + $0x134] sm:$0xf] %v825_v14  }
  0xd1   :  { %1229 = vst [vmem:[%s2057_s1 + $0x13c] sm:$0xf] %v829_v15  }
  0xd2   :  { %1230 = vst [vmem:[%s2057_s1 + $0x140] sm:$0xf] %v833_v16  }
  0xd3   :  { %1231 = vst [vmem:[%s2057_s1 + $0x148] sm:$0xf] %v837_v17  }
  0xd4   :  { %1232 = vst [vmem:[%s2057_s1 + $0x150] sm:$0xf] %v841_v18  }
  0xd5   :  { %1233 = vst [vmem:[%s2057_s1 + $0x158] sm:$0xf] %v845_v19  }
  0xd6   :  { %1234 = vst [vmem:[%s2057_s1 + $0x144] sm:$0xf] %v849_v20  }
  0xd7   :  { %1235 = vst [vmem:[%s2057_s1 + $0x14c] sm:$0xf] %v853_v21  }
  0xd8   :  { %1236 = vst [vmem:[%s2057_s1 + $0x154] sm:$0xf] %v857_v22  }
  0xd9   :  { %1237 = vst [vmem:[%s2057_s1 + $0x15c] sm:$0xf] %v861_v23  }
  0xda   :  { %1238 = vst [vmem:[%s2057_s1 + $0x160] sm:$0xf] %v865_v24  }
  0xdb   :  { %1239 = vst [vmem:[%s2057_s1 + $0x168] sm:$0xf] %v869_v25  }
  0xdc   :  { %1240 = vst [vmem:[%s2057_s1 + $0x170] sm:$0xf] %v873_v26  }
  0xdd   :  { %1241 = vst [vmem:[%s2057_s1 + $0x178] sm:$0xf] %v877_v27  }
  0xde   :  { %1242 = vst [vmem:[%s2057_s1 + $0x164] sm:$0xf] %v881_v28  }
  0xdf   :  { %1243 = vst [vmem:[%s2057_s1 + $0x16c] sm:$0xf] %v885_v29  }
  0xe0   :  { %1244 = vst [vmem:[%s2057_s1 + $0x174] sm:$0xf] %v889_v30  }
  0xe1   :  { %1245 = vst [vmem:[%s2057_s1 + $0x17c] sm:$0xf] %v893_v31  }
  0xe2   :  { %1246 = vst [vmem:[%s2057_s1 + $0x180] sm:$0xf] %v897_v32  }
  0xe3   :  { %1247 = vst [vmem:[%s2057_s1 + $0x188] sm:$0xf] %v901_v33  }
  0xe4   :  { %1248 = vst [vmem:[%s2057_s1 + $0x190] sm:$0xf] %v905_v34  }
  0xe5   :  { %1249 = vst [vmem:[%s2057_s1 + $0x198] sm:$0xf] %v909_v35  }
  0xe6   :  { %1250 = vst [vmem:[%s2057_s1 + $0x184] sm:$0xf] %v913_v36  }
  0xe7   :  { %1251 = vst [vmem:[%s2057_s1 + $0x18c] sm:$0xf] %v917_v37  }
  0xe8   :  { %1252 = vst [vmem:[%s2057_s1 + $0x194] sm:$0xf] %v921_v38  }
  0xe9   :  { %1253 = vst [vmem:[%s2057_s1 + $0x19c] sm:$0xf] %v925_v39  }
  0xea   :  { %1254 = vst [vmem:[%s2057_s1 + $0x1a0] sm:$0xf] %v929_v40  }
  0xeb   :  { %1255 = vst [vmem:[%s2057_s1 + $0x1a8] sm:$0xf] %v933_v41  }
  0xec   :  { %1256 = vst [vmem:[%s2057_s1 + $0x1b0] sm:$0xf] %v937_v42  }
  0xed   :  { %1257 = vst [vmem:[%s2057_s1 + $0x1b8] sm:$0xf] %v941_v43  }
  0xee   :  { %1258 = vst [vmem:[%s2057_s1 + $0x1a4] sm:$0xf] %v945_v44  }
  0xef   :  { %1259 = vst [vmem:[%s2057_s1 + $0x1ac] sm:$0xf] %v949_v45  }
  0xf0   :  { %1260 = vst [vmem:[%s2057_s1 + $0x1b4] sm:$0xf] %v953_v46  }
  0xf1   :  { %1261 = vst [vmem:[%s2057_s1 + $0x1bc] sm:$0xf] %v957_v47  }
  0xf2   :  { %1262 = vst [vmem:[%s2057_s1 + $0x1c0] sm:$0xf] %v961_v48  }
  0xf3   :  { %1263 = vst [vmem:[%s2057_s1 + $0x1c8] sm:$0xf] %v965_v49  }
  0xf4   :  { %1264 = vst [vmem:[%s2057_s1 + $0x1d0] sm:$0xf] %v969_v50  }
  0xf5   :  { %1265 = vst [vmem:[%s2057_s1 + $0x1d8] sm:$0xf] %v973_v51  }
  0xf6   :  { %1266 = vst [vmem:[%s2057_s1 + $0x1c4] sm:$0xf] %v977_v52  }
  0xf7   :  { %1267 = vst [vmem:[%s2057_s1 + $0x1cc] sm:$0xf] %v981_v53  }
  0xf8   :  { %1268 = vst [vmem:[%s2057_s1 + $0x1d4] sm:$0xf] %v985_v54  }
  0xf9   :  { %1269 = vst [vmem:[%s2057_s1 + $0x1dc] sm:$0xf] %v989_v55  }
  0xfa   :  { %1270 = vst [vmem:[%s2057_s1 + $0x1e0] sm:$0xf] %v993_v56  }
  0xfb   :  { %1271 = vst [vmem:[%s2057_s1 + $0x1e8] sm:$0xf] %v997_v57  }
  0xfc   :  { %1272 = vst [vmem:[%s2057_s1 + $0x1f0] sm:$0xf] %v1001_v58  }
  0xfd   :  { %1273 = vst [vmem:[%s2057_s1 + $0x1f8] sm:$0xf] %v1005_v59  }
  0xfe   :  { %1274 = vst [vmem:[%s2057_s1 + $0x1e4] sm:$0xf] %v1009_v60  }
  0xff   :  { %1275 = vst [vmem:[%s2057_s1 + $0x1ec] sm:$0xf] %v1013_v61  }
 0x100   :  { %1276 = vst [vmem:[%s2057_s1 + $0x1f4] sm:$0xf] %v1017_v62  }
 0x101   :  { %1277 = vst [vmem:[%s2057_s1 + $0x1fc] sm:$0xf] %v1021_v63  }

// kernel: decoder_forward.3
= control target key start
LH: loop header
LB: loop body
LE: loop exit
PB: predicated region body
PF: predicated region fallthrough
CT: control target
= control target key end

     0   :  { %s4129_s27 = smov 0   ;;  %s4131_s28 = smov 0   ;;  %s5775_s0 = inlined_call_operand.vmem [shape: f32[4,1,512], index: 0, kind: input, shape index: {}]   ;;  %s5776_s1 = inlined_call_operand.vmem [shape: f32[128,512], index: 1, kind: input, shape index: {}]   ;;  %s5777_s2 = inlined_call_operand.vmem [shape: f32[4,128,3], index: 2, kind: input, shape index: {}]   ;;  %s5778_s3 = inlined_call_operand.vmem [shape: bf16[3,512], index: 3, kind: input, shape index: {}]   ;;  %s5779_s4 = inlined_call_operand.vmem [shape: bf16[512,512], index: 4, kind: input, shape index: {}]   ;;  %s5780_s5 = inlined_call_operand.vmem [shape: f32[1,512], index: 5, kind: input, shape index: {}]   ;;  %s5781_s6 = inlined_call_operand.vmem [shape: bf16[512,3], index: 6, kind: input, shape index: {}]   ;;  %s5782_s7 = inlined_call_operand.vmem [shape: f32[1,3], index: 7, kind: input, shape index: {}]   ;;  %s5783_s8 = inlined_call_operand.vmem [shape: f32[4,128,3], index: 8, kind: output, shape index: {}]  }
   0x1   :  { %s4133_s29 = smov 0  }
   0x2 LB: > { %s30_s30 = sadd.s32 1, %s4077_s28  ;;  %p3174_p0 = scmp.ge.s32.totalorder %s4081_s29, 1  ;;  %s4081_s29 = sphi %s4133_s29, %s18_s29   ;;  %s4077_s28 = sphi %s4131_s28, %s5789_s28   ;;  %s4073_s27 = sphi %s4129_s27, %s5788_s27  }
   0x3   : > { %p32_p1 = scmp.ge.s32.totalorder %s30_s30, 4  ;;  %p292_p2 = scmp.lt.s32.totalorder %s4081_s29, 5 }
   0x5   : > { %s5791_s30 = smov (%p32_p1, %s30_s30), 0  ;;  %p293_p3 = pnand %p3174_p0, %p292_p2 }
   0x7   : > { %296 = sbr.rel (%p293_p3) target bundleno = 962 (0x3c2), region = 52 }
   0xc   : > { %v525_v0 = vld [vmem:[%s5778_s3] sm:$0xff]  ;;  %vm557_vm0 = vcmask 1040384   ;;  %p338_p4 = scmp.lt.s32.totalorder %s4073_s27, 3  ;;  %vm558_vm1 = vcmask 1041408   ;;  %v4083_v1 = vmov 65535   ;;  %vm532_vm2 = vcmask 23552  }
   0xd   : > { %527 = vst [vmem:[#allocation1] ss:$4 sm:$0xff] %v525_v0  ;;  %v559_v2 = vsel %vm557_vm0, 4294967295, %v4083_v1  ;;  %v3582_v4 = vld [vmem:[%s5779_s4 + $0x2e0] sm:$0xf] }
   0xe   : > { %s5793_s27 = smov (!%p338_p4, %s4073_s27), 3  ;;  %v560_v3 = vsel %vm558_vm1, %v559_v2, 0  ;;  %v3950_v5 = vld [vmem:[%s5779_s4 + $0x2ec] sm:$0xf0]  ;;  %v3326_v6 = vld [vmem:[%s5779_s4 + $0xe0] sm:$0xf] }
   0xf   : > { %s3854_s11 = sshll.u32 %s5793_s27, 7  ;;  %v3886_v7 = vld [vmem:[%s5779_s4 + $0xec] sm:$0xf0]  ;;  %v3710_v10 = vld [vmem:[%s5779_s4 + $0x3e0] sm:$0xf]  ;;  %v3583_v20 = vor.u32 %v3950_v5, %v3582_v4  ;;  %s3175_s15 = sshll.u32 %s5793_s27, 2 }
  0x10   : > { %s4158_s14 = scalar_lea.vmem %s5777_s2, %s3854_s11  ;;  %v3982_v11 = vld [vmem:[%s5779_s4 + $0x3ec] sm:$0xf0]  ;;  %v3454_v12 = vld [vmem:[%s5779_s4 + $0x1e0] sm:$0xf]  ;;  %v3327_v21 = vor.u32 %v3886_v7, %v3326_v6  ;;  %s341_s22 = scalar_lea.vmem %s5775_s0, %s3175_s15 }
  0x11   : > { %v363_v8 = vld [vmem:[%s4158_s14] sm:$0xff]  ;;  %v364_v9 = vld [vmem:[%s4158_s14 + $0x8] sm:$0xff]  ;;  %v3918_v13 = vld [vmem:[%s5779_s4 + $0x1ec] sm:$0xf0]  ;;  %v3711_v25 = vor.u32 %v3982_v11, %v3710_v10  ;;  %s5702_s9 = scalar_lea.vmem %s5783_s8, %s3854_s11 }
  0x12   : > { %v517_v24 = vpack.c.bf16 %v364_v9, %v363_v8  ;;  %v3455_v26 = vor.u32 %v3918_v13, %v3454_v12  ;;  %v3566_v27 = vld [vmem:[%s5779_s4 + $0x2c0] sm:$0xf]  ;;  %v3946_v28 = vld [vmem:[%s5779_s4 + $0x2cc] sm:$0xf0]  ;;  %v366_v40 = vld [vmem:[%s4158_s14 + $0x18] sm:$0xff] }
  0x13   : > { %v3310_v29 = vld [vmem:[%s5779_s4 + $0xc0] sm:$0xf]  ;;  %v3567_v30 = vor.u32 %v3946_v28, %v3566_v27  ;;  %v3882_v31 = vld [vmem:[%s5779_s4 + $0xcc] sm:$0xf0]  ;;  %v368_v55 = vld [vmem:[%s4158_s14 + $0x28] sm:$0xff] }
  0x14   : > { %v528_v14 = vld.sshfl [vmem:[#allocation1] sm:$0xff pattern:$0x73625140]  ;;  %v529_v15 = vld.sshfl [vmem:[#allocation1 + $0x8] sm:$0xff pattern:$0x73625140]  ;;  %v3311_v34 = vor.u32 %v3882_v31, %v3310_v29 }
  0x15   : > { %v561_v16 = vand.u32 %v560_v3, %v528_v14  ;;  %v563_v17 = vand.u32 %v560_v3, %v529_v15  ;;  %v530_v18 = vld.sshfl [vmem:[#allocation1 + $0x10] sm:$0xff pattern:$0x73625140]  ;;  %v531_v19 = vld.sshfl [vmem:[#allocation1 + $0x18] sm:$0xff pattern:$0x73625140] }
  0x16   : > { %v565_v22 = vand.u32 %v560_v3, %v530_v18  ;;  %v567_v23 = vand.u32 %v560_v3, %v531_v19  ;;  %v3694_v32 = vld [vmem:[%s5779_s4 + $0x3c0] sm:$0xf]  ;;  %v3978_v33 = vld [vmem:[%s5779_s4 + $0x3cc] sm:$0xf0]  ;;  %v370_v6 = vld [vmem:[%s4158_s14 + $0x38] sm:$0xff] }
  0x17   : > { %576 = vmatpush.bf16.msra.mxu0 %v561_v16  ;;  %625 = vmatpush.bf16.msra.mxu1 %v563_v17  ;;  %v3695_v35 = vor.u32 %v3978_v33, %v3694_v32  ;;  %v3438_v36 = vld [vmem:[%s5779_s4 + $0x1c0] sm:$0xf]  ;;  %v3914_v37 = vld [vmem:[%s5779_s4 + $0x1cc] sm:$0xf0] }
  0x18   : > { %674 = vmatpush.bf16.msra.mxu2 %v565_v22  ;;  %723 = vmatpush.bf16.msra.mxu3 %v567_v23  ;;  %v3439_v38 = vor.u32 %v3914_v37, %v3438_v36  ;;  %v365_v39 = vld [vmem:[%s4158_s14 + $0x10] sm:$0xff]  ;;  %v3550_v42 = vld [vmem:[%s5779_s4 + $0x2a0] sm:$0xf]  ;;  %v374_v36 = vld [vmem:[%s4158_s14 + $0x58] sm:$0xff] }
  0x19   : > { %v518_v41 = vpack.c.bf16 %v366_v40, %v365_v39  ;;  %v3942_v43 = vld [vmem:[%s5779_s4 + $0x2ac] sm:$0xf0]  ;;  %v3294_v44 = vld [vmem:[%s5779_s4 + $0xa0] sm:$0xf] }
  0x1a   : > { %3180 = vmatmul.msk.bf16.vlgmr.msra.gmra.mxu0 %vm532_vm2, %v517_v24  ;;  %3188 = vmatmul.msk.bf16.vlgmr.msra.gmra.mxu1 %vm532_vm2, %v517_v24  ;;  %v3551_v45 = vor.u32 %v3942_v43, %v3550_v42  ;;  %v3878_v46 = vld [vmem:[%s5779_s4 + $0xac] sm:$0xf0]  ;;  %v3678_v47 = vld [vmem:[%s5779_s4 + $0x3a0] sm:$0xf] }
  0x1b   : > { %1703 = vmatpush.bf16.msrb.mxu0 %v3327_v21  ;;  %3196 = vmatmul.msk.bf16.vlgmr.msra.gmra.mxu2 %vm532_vm2, %v517_v24  ;;  %v3974_v48 = vld [vmem:[%s5779_s4 + $0x3ac] sm:$0xf0]  ;;  %v3295_v49 = vor.u32 %v3878_v46, %v3294_v44  ;;  %v3422_v51 = vld [vmem:[%s5779_s4 + $0x1a0] sm:$0xf]  ;;  %v372_v21 = vld [vmem:[%s4158_s14 + $0x48] sm:$0xff] }
  0x1c   : > { %1801 = vmatpush.bf16.msrb.mxu2 %v3583_v20  ;;  %3204 = vmatmul.msk.bf16.vlgmr.msra.gmra.mxu3 %vm532_vm2, %v517_v24  ;;  %v3679_v50 = vor.u32 %v3974_v48, %v3678_v47  ;;  %v3910_v52 = vld [vmem:[%s5779_s4 + $0x1ac] sm:$0xf0]  ;;  %v367_v54 = vld [vmem:[%s4158_s14 + $0x20] sm:$0xff] }
  0x1d   : > { %1850 = vmatpush.bf16.msrb.mxu3 %v3711_v25  ;;  %1752 = vmatpush.bf16.msrb.mxu1 %v3455_v26  ;;  %v3423_v53 = vor.u32 %v3910_v52, %v3422_v51  ;;  %v519_v56 = vpack.c.bf16 %v368_v55, %v367_v54  ;;  %v3534_v57 = vld [vmem:[%s5779_s4 + $0x280] sm:$0xf]  ;;  %v3938_v58 = vld [vmem:[%s5779_s4 + $0x28c] sm:$0xf0]  ;;  %v376_v51 = vld [vmem:[%s4158_s14 + $0x68] sm:$0xff] }
  0x1e   : > { %v3278_v59 = vld [vmem:[%s5779_s4 + $0x80] sm:$0xf]  ;;  %v3535_v60 = vor.u32 %v3938_v58, %v3534_v57  ;;  %v3874_v61 = vld [vmem:[%s5779_s4 + $0x8c] sm:$0xf0] }
  0x1f   : > { %1704 = vmatpush.bf16.msrb.mxu0 %v3311_v34  ;;  %v3662_v62 = vld [vmem:[%s5779_s4 + $0x380] sm:$0xf]  ;;  %v3970_v63 = vld [vmem:[%s5779_s4 + $0x38c] sm:$0xf0]  ;;  %v3279_v0 = vor.u32 %v3874_v61, %v3278_v59 }
  0x20   : > { %1802 = vmatpush.bf16.msrb.mxu2 %v3567_v30  ;;  %v3663_v1 = vor.u32 %v3970_v63, %v3662_v62  ;;  %v3406_v2 = vld [vmem:[%s5779_s4 + $0x180] sm:$0xf]  ;;  %v3906_v3 = vld [vmem:[%s5779_s4 + $0x18c] sm:$0xf0] }
  0x21   : > { %1851 = vmatpush.bf16.msrb.mxu3 %v3695_v35  ;;  %1753 = vmatpush.bf16.msrb.mxu1 %v3439_v38  ;;  %v3407_v4 = vor.u32 %v3906_v3, %v3406_v2  ;;  %v369_v5 = vld [vmem:[%s4158_s14 + $0x30] sm:$0xff]  ;;  %v3518_v8 = vld [vmem:[%s5779_s4 + $0x260] sm:$0xf] }
  0x22   : > { %v520_v7 = vpack.c.bf16 %v370_v6, %v369_v5  ;;  %v3934_v9 = vld [vmem:[%s5779_s4 + $0x26c] sm:$0xf0]  ;;  %v3262_v10 = vld [vmem:[%s5779_s4 + $0x60] sm:$0xf]  ;;  %v3584_v5 = vld [vmem:[%s5779_s4 + $0x2f0] sm:$0xf0] }
  0x23   : > { %1705 = vmatpush.bf16.msrb.mxu0 %v3295_v49  ;;  %v3519_v11 = vor.u32 %v3934_v9, %v3518_v8  ;;  %v3870_v12 = vld [vmem:[%s5779_s4 + $0x6c] sm:$0xf0]  ;;  %v3646_v13 = vld [vmem:[%s5779_s4 + $0x360] sm:$0xf]  ;;  %v3328_v8 = vld [vmem:[%s5779_s4 + $0xf0] sm:$0xf0] }
  0x24   : > { %1803 = vmatpush.bf16.msrb.mxu2 %v3551_v45  ;;  %v3966_v14 = vld [vmem:[%s5779_s4 + $0x36c] sm:$0xf0]  ;;  %v3263_v15 = vor.u32 %v3870_v12, %v3262_v10  ;;  %v3390_v17 = vld [vmem:[%s5779_s4 + $0x160] sm:$0xf]  ;;  %v3980_v9 = vld [vmem:[%s5779_s4 + $0x3e4] sm:$0xf] }
  0x25   : > { %1852 = vmatpush.bf16.msrb.mxu3 %v3679_v50  ;;  %1754 = vmatpush.bf16.msrb.mxu1 %v3423_v53  ;;  %v3647_v16 = vor.u32 %v3966_v14, %v3646_v13  ;;  %v3902_v18 = vld [vmem:[%s5779_s4 + $0x16c] sm:$0xf0]  ;;  %v371_v20 = vld [vmem:[%s4158_s14 + $0x40] sm:$0xff] }
  0x26   : > { %v3391_v19 = vor.u32 %v3902_v18, %v3390_v17  ;;  %v521_v22 = vpack.c.bf16 %v372_v21, %v371_v20  ;;  %v3502_v23 = vld [vmem:[%s5779_s4 + $0x240] sm:$0xf]  ;;  %v3930_v24 = vld [vmem:[%s5779_s4 + $0x24c] sm:$0xf0]  ;;  %v3456_v17 = vld [vmem:[%s5779_s4 + $0x1f0] sm:$0xf0] }
  0x27   : > { %1706 = vmatpush.bf16.msrb.mxu0 %v3279_v0  ;;  %v3246_v25 = vld [vmem:[%s5779_s4 + $0x40] sm:$0xf]  ;;  %v3503_v26 = vor.u32 %v3930_v24, %v3502_v23  ;;  %v3866_v27 = vld [vmem:[%s5779_s4 + $0x4c] sm:$0xf0]  ;;  %v378_v0 = vld [vmem:[%s4158_s14 + $0x78] sm:$0xff] }
  0x28   : > { %1804 = vmatpush.bf16.msrb.mxu2 %v3535_v60  ;;  %v3630_v28 = vld [vmem:[%s5779_s4 + $0x340] sm:$0xf]  ;;  %v3962_v29 = vld [vmem:[%s5779_s4 + $0x34c] sm:$0xf0]  ;;  %v3247_v30 = vor.u32 %v3866_v27, %v3246_v25 }
  0x29   : > { %1853 = vmatpush.bf16.msrb.mxu3 %v3663_v1  ;;  %1755 = vmatpush.bf16.msrb.mxu1 %v3407_v4  ;;  %v3631_v31 = vor.u32 %v3962_v29, %v3630_v28  ;;  %v3374_v32 = vld [vmem:[%s5779_s4 + $0x140] sm:$0xf]  ;;  %v3898_v33 = vld [vmem:[%s5779_s4 + $0x14c] sm:$0xf0]  ;;  %v3948_v4 = vld [vmem:[%s5779_s4 + $0x2e4] sm:$0xf] }
  0x2a   : > { %3181 = vmatmul.msk.bf16.gmra.mxu0 %vm532_vm2, %v518_v41  ;;  %3189 = vmatmul.msk.bf16.gmra.mxu1 %vm532_vm2, %v518_v41  ;;  %v3375_v34 = vor.u32 %v3898_v33, %v3374_v32  ;;  %v373_v35 = vld [vmem:[%s4158_s14 + $0x50] sm:$0xff]  ;;  %v3486_v38 = vld [vmem:[%s5779_s4 + $0x220] sm:$0xf]  ;;  %v3587_v6 = vor.u32 %v3948_v4, %v3584_v5  ;;  %v3944_v33 = vld [vmem:[%s5779_s4 + $0x2c4] sm:$0xf] }
  0x2b   : > { %3197 = vmatmul.msk.bf16.gmra.mxu2 %vm532_vm2, %v518_v41  ;;  %1707 = vmatpush.bf16.msrb.mxu0 %v3263_v15  ;;  %v522_v37 = vpack.c.bf16 %v374_v36, %v373_v35  ;;  %v3926_v39 = vld [vmem:[%s5779_s4 + $0x22c] sm:$0xf0]  ;;  %v3230_v40 = vld [vmem:[%s5779_s4 + $0x20] sm:$0xf] }
  0x2c   : > { %3205 = vmatmul.msk.bf16.gmra.mxu3 %vm532_vm2, %v518_v41  ;;  %1805 = vmatpush.bf16.msrb.mxu2 %v3519_v11  ;;  %v3487_v41 = vor.u32 %v3926_v39, %v3486_v38  ;;  %v3862_v42 = vld [vmem:[%s5779_s4 + $0x2c] sm:$0xf0]  ;;  %v3614_v43 = vld [vmem:[%s5779_s4 + $0x320] sm:$0xf]  ;;  %v3712_v11 = vld [vmem:[%s5779_s4 + $0x3f0] sm:$0xf0] }
  0x2d   : > { %1854 = vmatpush.bf16.msrb.mxu3 %v3647_v16  ;;  %1756 = vmatpush.bf16.msrb.mxu1 %v3391_v19  ;;  %v3958_v44 = vld [vmem:[%s5779_s4 + $0x32c] sm:$0xf0]  ;;  %v3231_v45 = vor.u32 %v3862_v42, %v3230_v40  ;;  %v3358_v47 = vld [vmem:[%s5779_s4 + $0x120] sm:$0xf]  ;;  %v3715_v13 = vor.u32 %v3980_v9, %v3712_v11  ;;  %v3916_v16 = vld [vmem:[%s5779_s4 + $0x1e4] sm:$0xf] }
  0x2e   : > { %v3615_v46 = vor.u32 %v3958_v44, %v3614_v43  ;;  %v3894_v48 = vld [vmem:[%s5779_s4 + $0x12c] sm:$0xf0]  ;;  %v375_v50 = vld [vmem:[%s4158_s14 + $0x60] sm:$0xff]  ;;  %v380_v19 = vld [vmem:[%s5776_s1 + $0x8] sm:$0xff]  ;;  %v3459_v20 = vor.u32 %v3916_v16, %v3456_v17 }
  0x2f   : > { %1708 = vmatpush.bf16.msrb.mxu0 %v3247_v30  ;;  %v3359_v49 = vor.u32 %v3894_v48, %v3358_v47  ;;  %v523_v52 = vpack.c.bf16 %v376_v51, %v375_v50  ;;  %v3470_v53 = vld [vmem:[%s5779_s4 + $0x200] sm:$0xf]  ;;  %v3922_v54 = vld [vmem:[%s5779_s4 + $0x20c] sm:$0xf0]  ;;  %v386_v47 = vld [vmem:[%s5776_s1 + $0x38] sm:$0xff] }
  0x30   : > { %1806 = vmatpush.bf16.msrb.mxu2 %v3503_v26  ;;  %v3471_v55 = vor.u32 %v3922_v54, %v3470_v53  ;;  %v3858_v57 = vld [vmem:[%s5779_s4 + $0xc] sm:$0xf0]  ;;  %v3598_v58 = vld [vmem:[%s5779_s4 + $0x300] sm:$0xf]  ;;  %v384_v26 = vld [vmem:[%s5776_s1 + $0x28] sm:$0xff] }
  0x31   : > { %1855 = vmatpush.bf16.msrb.mxu3 %v3631_v31  ;;  %1757 = vmatpush.bf16.msrb.mxu1 %v3375_v34  ;;  %v3954_v60 = vld [vmem:[%s5779_s4 + $0x30c] sm:$0xf0]  ;;  %v3342_v61 = vld [vmem:[%s5779_s4 + $0x100] sm:$0xf]  ;;  %v3568_v34 = vld [vmem:[%s5779_s4 + $0x2d0] sm:$0xf0] }
  0x32   : > { %v3890_v62 = vld [vmem:[%s5779_s4 + $0x10c] sm:$0xf0]  ;;  %v3599_v1 = vor.u32 %v3954_v60, %v3598_v58  ;;  %v443_v12 = vld [vmem:[%s341_s22] sm:$0xf]  ;;  %v3571_v39 = vor.u32 %v3944_v33, %v3568_v34  ;;  %v3880_v50 = vld [vmem:[%s5779_s4 + $0xc4] sm:$0xf] }
  0x33   : > { %1709 = vmatpush.bf16.msrb.mxu0 %v3231_v45  ;;  %v377_v63 = vld [vmem:[%s4158_s14 + $0x70] sm:$0xff]  ;;  %v3343_v2 = vor.u32 %v3890_v62, %v3342_v61  ;;  %v4422_v14 = vperm.slane %v443_v12, 0  ;;  %v4424_v15 = vperm.slane %v443_v12, 1  ;;  %v379_v18 = vld [vmem:[%s5776_s1] sm:$0xff]  ;;  %v4448_v31 = vperm.slane %v443_v12, 2  ;;  %v390_v33 = vld [vmem:[%s5776_s1 + $0x58] sm:$0xff] }
  0x34   : > { %1807 = vmatpush.bf16.msrb.mxu2 %v3487_v41  ;;  %v524_v3 = vpack.c.bf16 %v378_v0, %v377_v63  ;;  %v383_v25 = vld [vmem:[%s5776_s1 + $0x20] sm:$0xff]  ;;  %v4450_v32 = vperm.slane %v443_v12, 3  ;;  %v381_v35 = vld [vmem:[%s5776_s1 + $0x10] sm:$0xff] }
  0x35   : > { %1856 = vmatpush.bf16.msrb.mxu3 %v3615_v46  ;;  %1758 = vmatpush.bf16.msrb.mxu1 %v3359_v49  ;;  %v453_v23 = vadd.f32 %v4422_v14, %v379_v18  ;;  %v454_v24 = vadd.f32 %v4424_v15, %v380_v19  ;;  %v457_v29 = vadd.f32 %v4422_v14, %v383_v25  ;;  %v385_v46 = vld [vmem:[%s5776_s1 + $0x30] sm:$0xff]  ;;  %v3912_v62 = vld [vmem:[%s5779_s4 + $0x1c4] sm:$0xf] }
  0x36   : > { %v458_v30 = vadd.f32 %v4424_v15, %v384_v26  ;;  %v455_v48 = vadd.f32 %v4448_v31, %v381_v35  ;;  %v3312_v51 = vld [vmem:[%s5779_s4 + $0xd0] sm:$0xf0]  ;;  %v460_v58 = vadd.f32 %v4450_v32, %v386_v47  ;;  %v391_v19 = vld [vmem:[%s5776_s1 + $0x60] sm:$0xff] }
  0x37   : > { %v3315_v54 = vor.u32 %v3880_v50, %v3312_v51  ;;  %v3440_v63 = vld [vmem:[%s5779_s4 + $0x1d0] sm:$0xf0]  ;;  %v465_v25 = vadd.f32 %v4422_v14, %v391_v19  ;;  %v3972_v51 = vld [vmem:[%s5779_s4 + $0x3a4] sm:$0xf] }
  0x38   : > { %1808 = vmatpush.bf16.msrb.mxu2 %v3471_v55  ;;  %v3976_v55 = vld [vmem:[%s5779_s4 + $0x3c4] sm:$0xf]  ;;  %v3443_v4 = vor.u32 %v3912_v62, %v3440_v63  ;;  %v3296_v47 = vld [vmem:[%s5779_s4 + $0xb0] sm:$0xf0] }
  0x39   : > { %1857 = vmatpush.bf16.msrb.mxu3 %v3599_v1  ;;  %1759 = vmatpush.bf16.msrb.mxu1 %v3343_v2  ;;  %v387_v2 = vld [vmem:[%s5776_s1 + $0x40] sm:$0xff] }
  0x3a   : > { %3182 = vmatmul.msk.bf16.gmra.mxu0 %vm532_vm2, %v519_v56  ;;  %3190 = vmatmul.msk.bf16.gmra.mxu1 %vm532_vm2, %v519_v56  ;;  %v461_v11 = vadd.f32 %v4422_v14, %v387_v2 }
  0x3b   : > { %3198 = vmatmul.msk.bf16.gmra.mxu2 %vm532_vm2, %v519_v56 }
  0x3c   : > { %3206 = vmatmul.msk.bf16.gmra.mxu3 %vm532_vm2, %v519_v56  ;;  %v3214_v56 = vld [vmem:[%s5779_s4] sm:$0xf]  ;;  %1997 = vmatpush.bf16.msra.mxu2 %v3587_v6 }
  0x3d   : > { %v3215_v59 = vor.u32 %v3858_v57, %v3214_v56  ;;  %2046 = vmatpush.bf16.msra.mxu3 %v3715_v13  ;;  %1948 = vmatpush.bf16.msra.mxu1 %v3459_v20  ;;  %v3696_v56 = vld [vmem:[%s5779_s4 + $0x3d0] sm:$0xf0]  ;;  %v459_v57 = vadd.f32 %v4448_v31, %v385_v46  ;;  %v392_v20 = vld [vmem:[%s5776_s1 + $0x68] sm:$0xff]  ;;  %v3876_v46 = vld [vmem:[%s5779_s4 + $0xa4] sm:$0xf] }
  0x3e   : > { %v466_v26 = vadd.f32 %v4424_v15, %v392_v20  ;;  %v3299_v50 = vor.u32 %v3876_v46, %v3296_v47  ;;  %v3872_v46 = vld [vmem:[%s5779_s4 + $0x84] sm:$0xf]  ;;  %v3280_v47 = vld [vmem:[%s5779_s4 + $0x90] sm:$0xf0] }
  0x3f   : > { %1710 = vmatpush.bf16.msrb.mxu0 %v3215_v59  ;;  %v3699_v59 = vor.u32 %v3976_v55, %v3696_v56 }
  0x40   : > { %1998 = vmatpush.bf16.msra.mxu2 %v3571_v39 }
  0x41   : > { %2047 = vmatpush.bf16.msra.mxu3 %v3699_v59  ;;  %1949 = vmatpush.bf16.msra.mxu1 %v3443_v4  ;;  %v3424_v59 = vld [vmem:[%s5779_s4 + $0x1b0] sm:$0xf0] }
  0x4a   : > { %3183 = vmatmul.msk.bf16.gmra.mxu0 %vm532_vm2, %v520_v7  ;;  %3191 = vmatmul.msk.bf16.gmra.mxu1 %vm532_vm2, %v520_v7 }
  0x4b   : > { %3199 = vmatmul.msk.bf16.gmra.mxu2 %vm532_vm2, %v520_v7 }
  0x4c   : > { %3207 = vmatmul.msk.bf16.gmra.mxu3 %vm532_vm2, %v520_v7  ;;  %v3884_v7 = vld [vmem:[%s5779_s4 + $0xe4] sm:$0xf] }
  0x4d   : > { %v3331_v10 = vor.u32 %v3884_v7, %v3328_v8 }
  0x4f   : > { %1899 = vmatpush.bf16.msra.mxu0 %v3331_v10 }
  0x53   : > { %1900 = vmatpush.bf16.msra.mxu0 %v3315_v54 }
  0x57   : > { %1901 = vmatpush.bf16.msra.mxu0 %v3299_v50  ;;  %v3283_v50 = vor.u32 %v3872_v46, %v3280_v47  ;;  %v409_v46 = vld [vmem:[%s5776_s1 + $0xf0] sm:$0xff]  ;;  %v410_v47 = vld [vmem:[%s5776_s1 + $0xf8] sm:$0xff] }
  0x5a   : > { %3184 = vmatmul.msk.bf16.gmra.mxu0 %vm532_vm2, %v521_v22  ;;  %3192 = vmatmul.msk.bf16.gmra.mxu1 %vm532_vm2, %v521_v22 }
  0x5b   : > { %3200 = vmatmul.msk.bf16.gmra.mxu2 %vm532_vm2, %v521_v22  ;;  %1902 = vmatpush.bf16.msra.mxu0 %v3283_v50  ;;  %v3868_v50 = vld [vmem:[%s5779_s4 + $0x64] sm:$0xf] }
  0x5c   : > { %3208 = vmatmul.msk.bf16.gmra.mxu3 %vm532_vm2, %v521_v22 }
  0x6a   : > { %3185 = vmatmul.msk.bf16.gmra.mxu0 %vm532_vm2, %v522_v37  ;;  %3193 = vmatmul.msk.bf16.gmra.mxu1 %vm532_vm2, %v522_v37 }
  0x6b   : > { %3201 = vmatmul.msk.bf16.gmra.mxu2 %vm532_vm2, %v522_v37 }
  0x6c   : > { %3209 = vmatmul.msk.bf16.gmra.mxu3 %vm532_vm2, %v522_v37  ;;  %v382_v37 = vld [vmem:[%s5776_s1 + $0x18] sm:$0xff] }
  0x6d   : > { %v456_v49 = vadd.f32 %v4450_v32, %v382_v37 }
  0x7a   : > { %3186 = vmatmul.msk.bf16.gmra.mxu0 %vm532_vm2, %v523_v52  ;;  %3194 = vmatmul.msk.bf16.gmra.mxu1 %vm532_vm2, %v523_v52 }
  0x7b   : > { %3202 = vmatmul.msk.bf16.gmra.mxu2 %vm532_vm2, %v523_v52 }
  0x7c   : > { %3210 = vmatmul.msk.bf16.gmra.mxu3 %vm532_vm2, %v523_v52 }
  0x8a   : > { %3187 = vmatmul.msk.bf16.gmra.mxu0 %vm532_vm2, %v524_v3  ;;  %3195 = vmatmul.msk.bf16.gmra.mxu1 %vm532_vm2, %v524_v3 }
  0x8b   : > { %3203 = vmatmul.msk.bf16.gmra.mxu2 %vm532_vm2, %v524_v3 }
  0x8c   : > { %3211 = vmatmul.msk.bf16.gmra.mxu3 %vm532_vm2, %v524_v3  ;;  %v388_v3 = vld [vmem:[%s5776_s1 + $0x48] sm:$0xff] }
  0x8d   : > { %v462_v12 = vadd.f32 %v4424_v15, %v388_v3 }
  0x97   : > { %v578_v21 = vpop.f32.mrf.mxu0  ;;  %v627_v22 = vpop.f32.mrf.mxu1 }
  0x98   : > { %v765_v27 = vadd.f32 %v578_v21, %v453_v23  ;;  %v766_v28 = vadd.f32 %v627_v22, %v454_v24 }
  0x9a   : > { %v829_v42 = vmax.f32 %v765_v27, 0.0  ;;  %v830_v43 = vmax.f32 %v766_v28, 0.0  ;;  %v3940_v27 = vld [vmem:[%s5779_s4 + $0x2a4] sm:$0xf]  ;;  %v3552_v28 = vld [vmem:[%s5779_s4 + $0x2b0] sm:$0xf0] }
  0x9b   : > { %v3555_v35 = vor.u32 %v3940_v27, %v3552_v28  ;;  %v3936_v27 = vld [vmem:[%s5779_s4 + $0x284] sm:$0xf]  ;;  %v3536_v28 = vld [vmem:[%s5779_s4 + $0x290] sm:$0xf0] }
  0x9d   : > { %1999 = vmatpush.bf16.msra.mxu2 %v3555_v35  ;;  %v3539_v35 = vor.u32 %v3936_v27, %v3536_v28 }
  0x9e   : > { %v676_v36 = vpop.f32.mrf.mxu2 }
  0x9f   : > { %v725_v38 = vpop.f32.mrf.mxu3  ;;  %v580_v40 = vpop.f32.mrf.mxu0  ;;  %v767_v0 = vadd.f32 %v676_v36, %v455_v48 }
  0xa0   : > { %v629_v41 = vpop.f32.mrf.mxu1  ;;  %v769_v44 = vadd.f32 %v580_v40, %v457_v29  ;;  %v768_v1 = vadd.f32 %v725_v38, %v456_v49  ;;  %v389_v29 = vld [vmem:[%s5776_s1 + $0x50] sm:$0xff] }
  0xa1   : > { %v770_v45 = vadd.f32 %v629_v41, %v458_v30  ;;  %v831_v13 = vmax.f32 %v767_v0, 0.0  ;;  %v395_v0 = vld [vmem:[%s5776_s1 + $0x80] sm:$0xff]  ;;  %2000 = vmatpush.bf16.msra.mxu2 %v3539_v35  ;;  %v405_v35 = vld [vmem:[%s5776_s1 + $0xd0] sm:$0xff] }
  0xa2   : > { %v833_v52 = vmax.f32 %v769_v44, 0.0  ;;  %v832_v16 = vmax.f32 %v768_v1, 0.0  ;;  %v463_v44 = vadd.f32 %v4448_v31, %v389_v29  ;;  %v396_v1 = vld [vmem:[%s5776_s1 + $0x88] sm:$0xff]  ;;  %v397_v29 = vld [vmem:[%s5776_s1 + $0x90] sm:$0xff] }
  0xa3   : > { %v834_v53 = vmax.f32 %v770_v45, 0.0  ;;  %v464_v45 = vadd.f32 %v4450_v32, %v390_v33  ;;  %v398_v33 = vld [vmem:[%s5776_s1 + $0x98] sm:$0xff] }
  0xa4   : > { %v4486_v60 = vpack.c.bf16 %v833_v52, %v829_v42  ;;  %v393_v42 = vld [vmem:[%s5776_s1 + $0x70] sm:$0xff] }
  0xa5   : > { %v4488_v61 = vpack.c.bf16 %v834_v53, %v830_v43  ;;  %v394_v43 = vld [vmem:[%s5776_s1 + $0x78] sm:$0xff]  ;;  %v3680_v52 = vld [vmem:[%s5779_s4 + $0x3b0] sm:$0xf0]  ;;  %v467_v53 = vadd.f32 %v4448_v31, %v393_v42 }
  0xa6   : > { %v678_v5 = vpop.f32.mrf.mxu2  ;;  %1711 = vmatmul.bf16.vlgmr.msrb.gmra.mxu0 %v4486_v60  ;;  %v468_v54 = vadd.f32 %v4450_v32, %v394_v43  ;;  %v3683_v55 = vor.u32 %v3972_v51, %v3680_v52  ;;  %v401_v42 = vld [vmem:[%s5776_s1 + $0xb0] sm:$0xff]  ;;  %v402_v43 = vld [vmem:[%s5776_s1 + $0xb8] sm:$0xff]  ;;  %v3968_v51 = vld [vmem:[%s5779_s4 + $0x384] sm:$0xf] }
  0xa7   : > { %v727_v6 = vpop.f32.mrf.mxu3  ;;  %1760 = vmatmul.bf16.vlgmr.msrb.gmra.mxu1 %v4488_v61  ;;  %v771_v7 = vadd.f32 %v678_v5, %v459_v57  ;;  %v583_v9 = vpop.f32.mrf.mxu0  ;;  %v3664_v52 = vld [vmem:[%s5779_s4 + $0x390] sm:$0xf0] }
  0xa8   : > { %v772_v8 = vadd.f32 %v727_v6, %v460_v58  ;;  %v632_v10 = vpop.f32.mrf.mxu1  ;;  %v773_v23 = vadd.f32 %v583_v9, %v461_v11  ;;  %v3908_v58 = vld [vmem:[%s5779_s4 + $0x1a4] sm:$0xf]  ;;  %2048 = vmatpush.bf16.msra.mxu3 %v3683_v55  ;;  %v469_v9 = vadd.f32 %v4422_v14, %v395_v0  ;;  %v3667_v55 = vor.u32 %v3968_v51, %v3664_v52  ;;  %v3264_v51 = vld [vmem:[%s5779_s4 + $0x70] sm:$0xf0] }
  0xa9   : > { %v835_v17 = vmax.f32 %v771_v7, 0.0  ;;  %v774_v24 = vadd.f32 %v632_v10, %v462_v12  ;;  %v3427_v2 = vor.u32 %v3908_v58, %v3424_v59  ;;  %v470_v10 = vadd.f32 %v4424_v15, %v396_v1 }
  0xaa   : > { %v836_v18 = vmax.f32 %v772_v8, 0.0  ;;  %v837_v38 = vmax.f32 %v773_v23, 0.0 }
  0xab   : > { %v4512_v21 = vpack.c.bf16 %v835_v17, %v831_v13  ;;  %v838_v39 = vmax.f32 %v774_v24, 0.0  ;;  %1950 = vmatpush.bf16.msra.mxu1 %v3427_v2  ;;  %v399_v17 = vld [vmem:[%s5776_s1 + $0xa0] sm:$0xff] }
  0xac   : > { %v4514_v22 = vpack.c.bf16 %v836_v18, %v832_v16  ;;  %v400_v18 = vld [vmem:[%s5776_s1 + $0xa8] sm:$0xff]  ;;  %v403_v2 = vld [vmem:[%s5776_s1 + $0xc0] sm:$0xff]  ;;  %2049 = vmatpush.bf16.msra.mxu3 %v3667_v55 }
  0xad   : > { %1809 = vmatmul.bf16.vlgmr.msrb.gmra.mxu2 %v4512_v21  ;;  %v3964_v55 = vld [vmem:[%s5779_s4 + $0x364] sm:$0xf] }
  0xae   : > { %1858 = vmatmul.bf16.vlgmr.msrb.gmra.mxu3 %v4514_v22  ;;  %v681_v30 = vpop.f32.mrf.mxu2 }
  0xaf   : > { %v730_v34 = vpop.f32.mrf.mxu3  ;;  %v585_v36 = vpop.f32.mrf.mxu0  ;;  %v775_v62 = vadd.f32 %v681_v30, %v463_v44  ;;  %v471_v44 = vadd.f32 %v4448_v31, %v397_v29 }
  0xb0   : > { %v634_v37 = vpop.f32.mrf.mxu1  ;;  %v777_v40 = vadd.f32 %v585_v36, %v465_v25  ;;  %v776_v63 = vadd.f32 %v730_v34, %v464_v45  ;;  %v473_v25 = vadd.f32 %v4422_v14, %v399_v17  ;;  %v472_v45 = vadd.f32 %v4450_v32, %v398_v33  ;;  %v3932_v33 = vld [vmem:[%s5779_s4 + $0x264] sm:$0xf] }
  0xb1   : > { %v778_v41 = vadd.f32 %v634_v37, %v466_v26  ;;  %v839_v11 = vmax.f32 %v775_v62, 0.0  ;;  %v474_v26 = vadd.f32 %v4424_v15, %v400_v18  ;;  %v3904_v62 = vld [vmem:[%s5779_s4 + $0x184] sm:$0xf] }
  0xb2   : > { %v841_v48 = vmax.f32 %v777_v40, 0.0  ;;  %v840_v12 = vmax.f32 %v776_v63, 0.0  ;;  %v3408_v63 = vld [vmem:[%s5779_s4 + $0x190] sm:$0xf0] }
  0xb3   : > { %v842_v49 = vmax.f32 %v778_v41, 0.0 }
  0xb4   : > { %v4554_v56 = vpack.c.bf16 %v841_v48, %v837_v38 }
  0xb5   : > { %v4556_v57 = vpack.c.bf16 %v842_v49, %v838_v39 }
  0xb6   : > { %v683_v3 = vpop.f32.mrf.mxu2  ;;  %1716 = vmatmul.bf16.gmra.mxu0 %v4554_v56 }
  0xb7   : > { %v732_v4 = vpop.f32.mrf.mxu3  ;;  %1765 = vmatmul.bf16.gmra.mxu1 %v4556_v57  ;;  %v779_v5 = vadd.f32 %v683_v3, %v467_v53  ;;  %v588_v7 = vpop.f32.mrf.mxu0  ;;  %v475_v53 = vadd.f32 %v4448_v31, %v401_v42  ;;  %v404_v3 = vld [vmem:[%s5776_s1 + $0xc8] sm:$0xff] }
  0xb8   : > { %v780_v6 = vadd.f32 %v732_v4, %v468_v54  ;;  %v637_v8 = vpop.f32.mrf.mxu1  ;;  %v781_v23 = vadd.f32 %v588_v7, %v469_v9  ;;  %v476_v54 = vadd.f32 %v4450_v32, %v402_v43  ;;  %v3411_v4 = vor.u32 %v3904_v62, %v3408_v63  ;;  %v3648_v62 = vld [vmem:[%s5779_s4 + $0x370] sm:$0xf0] }
  0xb9   : > { %v843_v13 = vmax.f32 %v779_v5, 0.0  ;;  %v782_v24 = vadd.f32 %v637_v8, %v470_v10  ;;  %v483_v63 = vadd.f32 %v4448_v31, %v409_v46 }
  0xba   : > { %v844_v16 = vmax.f32 %v780_v6, 0.0  ;;  %v845_v38 = vmax.f32 %v781_v23, 0.0  ;;  %1951 = vmatpush.bf16.msra.mxu1 %v3411_v4  ;;  %v407_v23 = vld [vmem:[%s5776_s1 + $0xe0] sm:$0xff] }
  0xbb   : > { %v4580_v19 = vpack.c.bf16 %v843_v13, %v839_v11  ;;  %v846_v39 = vmax.f32 %v782_v24, 0.0  ;;  %v477_v11 = vadd.f32 %v4422_v14, %v403_v2  ;;  %v408_v24 = vld [vmem:[%s5776_s1 + $0xe8] sm:$0xff]  ;;  %v481_v29 = vadd.f32 %v4422_v14, %v407_v23  ;;  %v3900_v4 = vld [vmem:[%s5779_s4 + $0x164] sm:$0xf] }
  0xbc   : > { %v4582_v20 = vpack.c.bf16 %v844_v16, %v840_v12  ;;  %v478_v12 = vadd.f32 %v4424_v15, %v404_v3 }
  0xbd   : > { %1814 = vmatmul.bf16.gmra.mxu2 %v4580_v19 }
  0xbe   : > { %1863 = vmatmul.bf16.gmra.mxu3 %v4582_v20  ;;  %v686_v30 = vpop.f32.mrf.mxu2 }
  0xbf   : > { %v735_v34 = vpop.f32.mrf.mxu3  ;;  %v590_v36 = vpop.f32.mrf.mxu0  ;;  %v783_v0 = vadd.f32 %v686_v30, %v471_v44  ;;  %v482_v30 = vadd.f32 %v4424_v15, %v408_v24 }
  0xc0   : > { %v639_v37 = vpop.f32.mrf.mxu1  ;;  %v785_v40 = vadd.f32 %v590_v36, %v473_v25  ;;  %v784_v1 = vadd.f32 %v735_v34, %v472_v45  ;;  %v3520_v34 = vld [vmem:[%s5779_s4 + $0x270] sm:$0xf0] }
  0xc1   : > { %v786_v41 = vadd.f32 %v639_v37, %v474_v26  ;;  %v847_v13 = vmax.f32 %v783_v0, 0.0  ;;  %v406_v37 = vld [vmem:[%s5776_s1 + $0xd8] sm:$0xff]  ;;  %v484_v0 = vadd.f32 %v4450_v32, %v410_v47 }
  0xc2   : > { %v849_v48 = vmax.f32 %v785_v40, 0.0  ;;  %v848_v16 = vmax.f32 %v784_v1, 0.0  ;;  %v3651_v1 = vor.u32 %v3964_v55, %v3648_v62  ;;  %v418_v55 = vld [vmem:[%s5776_s1 + $0x138] sm:$0xff] }
  0xc3   : > { %v850_v49 = vmax.f32 %v786_v41, 0.0 }
  0xc4   : > { %v4622_v58 = vpack.c.bf16 %v849_v48, %v845_v38  ;;  %v479_v48 = vadd.f32 %v4448_v31, %v405_v35  ;;  %2050 = vmatpush.bf16.msra.mxu3 %v3651_v1  ;;  %v3248_v1 = vld [vmem:[%s5779_s4 + $0x50] sm:$0xf0] }
  0xc5   : > { %v4624_v59 = vpack.c.bf16 %v850_v49, %v846_v39  ;;  %v3523_v39 = vor.u32 %v3932_v33, %v3520_v34  ;;  %v480_v49 = vadd.f32 %v4450_v32, %v406_v37  ;;  %v415_v33 = vld [vmem:[%s5776_s1 + $0x120] sm:$0xff]  ;;  %v416_v34 = vld [vmem:[%s5776_s1 + $0x128] sm:$0xff] }
  0xc6   : > { %v688_v5 = vpop.f32.mrf.mxu2  ;;  %1721 = vmatmul.bf16.gmra.mxu0 %v4622_v58 }
  0xc7   : > { %v737_v6 = vpop.f32.mrf.mxu3  ;;  %1770 = vmatmul.bf16.gmra.mxu1 %v4624_v59  ;;  %v787_v7 = vadd.f32 %v688_v5, %v475_v53  ;;  %v593_v9 = vpop.f32.mrf.mxu0  ;;  %2001 = vmatpush.bf16.msra.mxu2 %v3523_v39  ;;  %v3392_v5 = vld [vmem:[%s5779_s4 + $0x170] sm:$0xf0]  ;;  %v489_v39 = vadd.f32 %v4422_v14, %v415_v33 }
  0xc8   : > { %v788_v8 = vadd.f32 %v737_v6, %v476_v54  ;;  %v642_v10 = vpop.f32.mrf.mxu1  ;;  %v789_v27 = vadd.f32 %v593_v9, %v477_v11  ;;  %v3267_v54 = vor.u32 %v3868_v50, %v3264_v51  ;;  %v412_v9 = vld [vmem:[%s5776_s1 + $0x108] sm:$0xff] }
  0xc9   : > { %v851_v17 = vmax.f32 %v787_v7, 0.0  ;;  %v790_v28 = vadd.f32 %v642_v10, %v478_v12  ;;  %v3395_v10 = vor.u32 %v3900_v4, %v3392_v5  ;;  %v486_v24 = vadd.f32 %v4424_v15, %v412_v9 }
  0xca   : > { %v852_v18 = vmax.f32 %v788_v8, 0.0  ;;  %v853_v42 = vmax.f32 %v789_v27, 0.0  ;;  %1903 = vmatpush.bf16.msra.mxu0 %v3267_v54  ;;  %v411_v8 = vld [vmem:[%s5776_s1 + $0x100] sm:$0xff]  ;;  %v417_v54 = vld [vmem:[%s5776_s1 + $0x130] sm:$0xff] }
  0xcb   : > { %v4648_v25 = vpack.c.bf16 %v851_v17, %v847_v13  ;;  %v854_v43 = vmax.f32 %v790_v28, 0.0  ;;  %1952 = vmatpush.bf16.msra.mxu1 %v3395_v10  ;;  %v485_v23 = vadd.f32 %v4422_v14, %v411_v8  ;;  %v3632_v8 = vld [vmem:[%s5779_s4 + $0x350] sm:$0xf0]  ;;  %v491_v9 = vadd.f32 %v4448_v31, %v417_v54 }
  0xcc   : > { %v4650_v26 = vpack.c.bf16 %v852_v18, %v848_v16  ;;  %v492_v10 = vadd.f32 %v4450_v32, %v418_v55  ;;  %v3488_v54 = vld [vmem:[%s5779_s4 + $0x230] sm:$0xf0] }
  0xcd   : > { %1819 = vmatmul.bf16.gmra.mxu2 %v4648_v25  ;;  %v421_v55 = vld [vmem:[%s5776_s1 + $0x150] sm:$0xff] }
  0xce   : > { %1868 = vmatmul.bf16.gmra.mxu3 %v4650_v26  ;;  %v691_v36 = vpop.f32.mrf.mxu2 }
  0xcf   : > { %v740_v38 = vpop.f32.mrf.mxu3  ;;  %v595_v40 = vpop.f32.mrf.mxu0  ;;  %v791_v6 = vadd.f32 %v691_v36, %v479_v48 }
  0xd0   : > { %v644_v41 = vpop.f32.mrf.mxu1  ;;  %v793_v44 = vadd.f32 %v595_v40, %v481_v29  ;;  %v792_v7 = vadd.f32 %v740_v38, %v480_v49  ;;  %v490_v40 = vadd.f32 %v4424_v15, %v416_v34 }
  0xd1   : > { %v794_v45 = vadd.f32 %v644_v41, %v482_v30  ;;  %v855_v27 = vmax.f32 %v791_v6, 0.0  ;;  %v3928_v41 = vld [vmem:[%s5779_s4 + $0x244] sm:$0xf] }
  0xd2   : > { %v857_v52 = vmax.f32 %v793_v44, 0.0  ;;  %v856_v28 = vmax.f32 %v792_v7, 0.0  ;;  %v3960_v7 = vld [vmem:[%s5779_s4 + $0x344] sm:$0xf] }
  0xd3   : > { %v858_v53 = vmax.f32 %v794_v45, 0.0  ;;  %v414_v45 = vld [vmem:[%s5776_s1 + $0x118] sm:$0xff] }
  0xd4   : > { %v4690_v2 = vpack.c.bf16 %v857_v52, %v853_v42  ;;  %v3504_v42 = vld [vmem:[%s5779_s4 + $0x250] sm:$0xf0] }
  0xd5   : > { %v4692_v3 = vpack.c.bf16 %v858_v53, %v854_v43  ;;  %v413_v43 = vld [vmem:[%s5776_s1 + $0x110] sm:$0xff]  ;;  %v3507_v47 = vor.u32 %v3928_v41, %v3504_v42 }
  0xd6   : > { %v693_v11 = vpop.f32.mrf.mxu2  ;;  %1726 = vmatmul.bf16.gmra.mxu0 %v4690_v2  ;;  %v487_v62 = vadd.f32 %v4448_v31, %v413_v43 }
  0xd7   : > { %v742_v12 = vpop.f32.mrf.mxu3  ;;  %1775 = vmatmul.bf16.gmra.mxu1 %v4692_v3  ;;  %v795_v13 = vadd.f32 %v693_v11, %v483_v63  ;;  %v598_v17 = vpop.f32.mrf.mxu0  ;;  %2002 = vmatpush.bf16.msra.mxu2 %v3507_v47  ;;  %v488_v63 = vadd.f32 %v4450_v32, %v414_v45  ;;  %v3635_v11 = vor.u32 %v3960_v7, %v3632_v8  ;;  %v423_v45 = vld [vmem:[%s5776_s1 + $0x160] sm:$0xff] }
  0xd8   : > { %v796_v16 = vadd.f32 %v742_v12, %v484_v0  ;;  %v647_v18 = vpop.f32.mrf.mxu1  ;;  %v797_v37 = vadd.f32 %v598_v17, %v485_v23  ;;  %v3864_v0 = vld [vmem:[%s5779_s4 + $0x44] sm:$0xf]  ;;  %v3376_v17 = vld [vmem:[%s5779_s4 + $0x150] sm:$0xf0] }
  0xd9   : > { %v859_v29 = vmax.f32 %v795_v13, 0.0  ;;  %v798_v38 = vadd.f32 %v647_v18, %v486_v24  ;;  %v3251_v6 = vor.u32 %v3864_v0, %v3248_v1  ;;  %v419_v24 = vld [vmem:[%s5776_s1 + $0x140] sm:$0xff]  ;;  %2051 = vmatpush.bf16.msra.mxu3 %v3635_v11  ;;  %v426_v11 = vld [vmem:[%s5776_s1 + $0x178] sm:$0xff] }
  0xda   : > { %v860_v30 = vmax.f32 %v796_v16, 0.0  ;;  %v861_v50 = vmax.f32 %v797_v37, 0.0  ;;  %v3896_v16 = vld [vmem:[%s5779_s4 + $0x144] sm:$0xf] }
  0xdb   : > { %v4716_v35 = vpack.c.bf16 %v859_v29, %v855_v27  ;;  %v862_v51 = vmax.f32 %v798_v38, 0.0  ;;  %1904 = vmatpush.bf16.msra.mxu0 %v3251_v6  ;;  %v420_v27 = vld [vmem:[%s5776_s1 + $0x148] sm:$0xff] }
  0xdc   : > { %v4718_v36 = vpack.c.bf16 %v860_v30, %v856_v28  ;;  %v3379_v28 = vor.u32 %v3896_v16, %v3376_v17  ;;  %v495_v16 = vadd.f32 %v4448_v31, %v421_v55 }
  0xdd   : > { %1824 = vmatmul.bf16.gmra.mxu2 %v4716_v35 }
  0xde   : > { %1873 = vmatmul.bf16.gmra.mxu3 %v4718_v36  ;;  %v696_v44 = vpop.f32.mrf.mxu2  ;;  %1953 = vmatpush.bf16.msra.mxu1 %v3379_v28 }
  0xdf   : > { %v745_v46 = vpop.f32.mrf.mxu3  ;;  %v600_v48 = vpop.f32.mrf.mxu0  ;;  %v799_v18 = vadd.f32 %v696_v44, %v487_v62 }
  0xe0   : > { %v649_v49 = vpop.f32.mrf.mxu1  ;;  %v801_v52 = vadd.f32 %v600_v48, %v489_v39  ;;  %v800_v23 = vadd.f32 %v745_v46, %v488_v63  ;;  %v493_v39 = vadd.f32 %v4422_v14, %v419_v24  ;;  %v424_v46 = vld [vmem:[%s5776_s1 + $0x168] sm:$0xff]  ;;  %v422_v63 = vld [vmem:[%s5776_s1 + $0x158] sm:$0xff] }
  0xe1   : > { %v802_v53 = vadd.f32 %v649_v49, %v490_v40  ;;  %v494_v40 = vadd.f32 %v4424_v15, %v420_v27  ;;  %v863_v41 = vmax.f32 %v799_v18, 0.0  ;;  %v496_v17 = vadd.f32 %v4450_v32, %v422_v63  ;;  %v3860_v18 = vld [vmem:[%s5779_s4 + $0x24] sm:$0xf] }
  0xe2   : > { %v865_v4 = vmax.f32 %v801_v52, 0.0  ;;  %v864_v42 = vmax.f32 %v800_v23, 0.0  ;;  %v498_v52 = vadd.f32 %v4424_v15, %v424_v46  ;;  %v3232_v23 = vld [vmem:[%s5779_s4 + $0x30] sm:$0xf0] }
  0xe3   : > { %v866_v5 = vmax.f32 %v802_v53, 0.0  ;;  %v3924_v53 = vld [vmem:[%s5779_s4 + $0x224] sm:$0xf]  ;;  %v3235_v28 = vor.u32 %v3860_v18, %v3232_v23 }
  0xe4   : > { %v4758_v12 = vpack.c.bf16 %v865_v4, %v861_v50  ;;  %v3491_v1 = vor.u32 %v3924_v53, %v3488_v54  ;;  %v3920_v23 = vld [vmem:[%s5779_s4 + $0x204] sm:$0xf] }
  0xe5   : > { %v4760_v13 = vpack.c.bf16 %v866_v5, %v862_v51  ;;  %v497_v51 = vadd.f32 %v4422_v14, %v423_v45  ;;  %1905 = vmatpush.bf16.msra.mxu0 %v3235_v28  ;;  %v428_v45 = vld [vmem:[%s5776_s1 + $0x188] sm:$0xff] }
  0xe6   : > { %v698_v29 = vpop.f32.mrf.mxu2  ;;  %1731 = vmatmul.bf16.gmra.mxu0 %v4758_v12  ;;  %2003 = vmatpush.bf16.msra.mxu2 %v3491_v1 }
  0xe7   : > { %v747_v30 = vpop.f32.mrf.mxu3  ;;  %1780 = vmatmul.bf16.gmra.mxu1 %v4760_v13  ;;  %v803_v33 = vadd.f32 %v698_v29, %v491_v9  ;;  %v603_v37 = vpop.f32.mrf.mxu0  ;;  %v3956_v29 = vld [vmem:[%s5779_s4 + $0x324] sm:$0xf] }
  0xe8   : > { %v804_v34 = vadd.f32 %v747_v30, %v492_v10  ;;  %v652_v38 = vpop.f32.mrf.mxu1  ;;  %v805_v49 = vadd.f32 %v603_v37, %v493_v39  ;;  %v425_v10 = vld [vmem:[%s5776_s1 + $0x170] sm:$0xff] }
  0xe9   : > { %v867_v43 = vmax.f32 %v803_v33, 0.0  ;;  %v806_v50 = vadd.f32 %v652_v38, %v494_v40  ;;  %v3616_v30 = vld [vmem:[%s5779_s4 + $0x330] sm:$0xf0]  ;;  %v499_v33 = vadd.f32 %v4448_v31, %v425_v10  ;;  %v427_v40 = vld [vmem:[%s5776_s1 + $0x180] sm:$0xff] }
  0xea   : > { %v868_v44 = vmax.f32 %v804_v34, 0.0  ;;  %v869_v6 = vmax.f32 %v805_v49, 0.0  ;;  %v500_v34 = vadd.f32 %v4450_v32, %v426_v11  ;;  %v3619_v37 = vor.u32 %v3956_v29, %v3616_v30  ;;  %v429_v10 = vld [vmem:[%s5776_s1 + $0x190] sm:$0xff] }
  0xeb   : > { %v4784_v47 = vpack.c.bf16 %v867_v43, %v863_v41  ;;  %v870_v7 = vmax.f32 %v806_v50, 0.0  ;;  %v3892_v41 = vld [vmem:[%s5779_s4 + $0x124] sm:$0xf]  ;;  %v501_v53 = vadd.f32 %v4422_v14, %v427_v40  ;;  %v503_v28 = vadd.f32 %v4448_v31, %v429_v10  ;;  %v3600_v40 = vld [vmem:[%s5779_s4 + $0x310] sm:$0xf0] }
  0xec   : > { %v4786_v48 = vpack.c.bf16 %v868_v44, %v864_v42  ;;  %v3360_v42 = vld [vmem:[%s5779_s4 + $0x130] sm:$0xf0]  ;;  %2052 = vmatpush.bf16.msra.mxu3 %v3619_v37  ;;  %v3952_v37 = vld [vmem:[%s5779_s4 + $0x304] sm:$0xf] }
  0xed   : > { %1829 = vmatmul.bf16.gmra.mxu2 %v4784_v47  ;;  %v3363_v46 = vor.u32 %v3892_v41, %v3360_v42 }
  0xee   : > { %1878 = vmatmul.bf16.gmra.mxu3 %v4786_v48  ;;  %v701_v62 = vpop.f32.mrf.mxu2 }
  0xef   : > { %v750_v0 = vpop.f32.mrf.mxu3  ;;  %v605_v4 = vpop.f32.mrf.mxu0  ;;  %v807_v43 = vadd.f32 %v701_v62, %v495_v16  ;;  %1954 = vmatpush.bf16.msra.mxu1 %v3363_v46  ;;  %v502_v62 = vadd.f32 %v4424_v15, %v428_v45  ;;  %v430_v16 = vld [vmem:[%s5776_s1 + $0x198] sm:$0xff]  ;;  %v3603_v46 = vor.u32 %v3952_v37, %v3600_v40 }
  0xf0   : > { %v654_v5 = vpop.f32.mrf.mxu1  ;;  %v809_v8 = vadd.f32 %v605_v4, %v497_v51  ;;  %v808_v44 = vadd.f32 %v750_v0, %v496_v17  ;;  %v504_v42 = vadd.f32 %v4450_v32, %v430_v16 }
  0xf1   : > { %v810_v9 = vadd.f32 %v654_v5, %v498_v52  ;;  %v871_v63 = vmax.f32 %v807_v43, 0.0  ;;  %v431_v5 = vld [vmem:[%s5776_s1 + $0x1a0] sm:$0xff]  ;;  %2053 = vmatpush.bf16.msra.mxu3 %v3603_v46 }
  0xf2   : > { %v873_v24 = vmax.f32 %v809_v8, 0.0  ;;  %v872_v0 = vmax.f32 %v808_v44, 0.0  ;;  %v505_v17 = vadd.f32 %v4422_v14, %v431_v5 }
  0xf3   : > { %v874_v27 = vmax.f32 %v810_v9, 0.0 }
  0xf4   : > { %v4826_v38 = vpack.c.bf16 %v873_v24, %v869_v6  ;;  %v432_v6 = vld [vmem:[%s5776_s1 + $0x1a8] sm:$0xff]  ;;  %v3472_v24 = vld [vmem:[%s5779_s4 + $0x210] sm:$0xf0] }
  0xf5   : > { %v4828_v39 = vpack.c.bf16 %v874_v27, %v870_v7  ;;  %v506_v18 = vadd.f32 %v4424_v15, %v432_v6  ;;  %v3856_v27 = vld [vmem:[%s5779_s4 + $0x4] sm:$0xf] }
  0xf6   : > { %v703_v49 = vpop.f32.mrf.mxu2  ;;  %1736 = vmatmul.bf16.gmra.mxu0 %v4826_v38 }
  0xf7   : > { %v752_v50 = vpop.f32.mrf.mxu3  ;;  %1785 = vmatmul.bf16.gmra.mxu1 %v4828_v39  ;;  %v811_v51 = vadd.f32 %v703_v49, %v499_v33  ;;  %v608_v54 = vpop.f32.mrf.mxu0  ;;  %v3475_v33 = vor.u32 %v3920_v23, %v3472_v24  ;;  %v3888_v49 = vld [vmem:[%s5779_s4 + $0x104] sm:$0xf] }
  0xf8   : > { %v812_v52 = vadd.f32 %v752_v50, %v500_v34  ;;  %v657_v55 = vpop.f32.mrf.mxu1  ;;  %v813_v9 = vadd.f32 %v608_v54, %v501_v53  ;;  %v3216_v34 = vld [vmem:[%s5779_s4 + $0x10] sm:$0xf0] }
  0xf9   : > { %v875_v1 = vmax.f32 %v811_v51, 0.0  ;;  %v814_v11 = vadd.f32 %v657_v55, %v502_v62  ;;  %v3219_v45 = vor.u32 %v3856_v27, %v3216_v34  ;;  %v3344_v50 = vld [vmem:[%s5779_s4 + $0x110] sm:$0xf0]  ;;  %v434_v55 = vld [vmem:[%s5776_s1 + $0x1b8] sm:$0xff]  ;;  %2004 = vmatpush.bf16.msra.mxu2 %v3475_v33 }
  0xfa   : > { %v876_v4 = vmax.f32 %v812_v52, 0.0  ;;  %v877_v41 = vmax.f32 %v813_v9, 0.0  ;;  %v433_v54 = vld [vmem:[%s5776_s1 + $0x1b0] sm:$0xff]  ;;  %v3347_v62 = vor.u32 %v3888_v49, %v3344_v50  ;;  %v508_v6 = vadd.f32 %v4450_v32, %v434_v55 }
  0xfb   : > { %v4852_v7 = vpack.c.bf16 %v875_v1, %v871_v63  ;;  %v878_v51 = vmax.f32 %v814_v11, 0.0  ;;  %1906 = vmatpush.bf16.msra.mxu0 %v3219_v45  ;;  %v435_v1 = vld [vmem:[%s5776_s1 + $0x1c0] sm:$0xff]  ;;  %v507_v5 = vadd.f32 %v4448_v31, %v433_v54  ;;  %v438_v54 = vld [vmem:[%s5776_s1 + $0x1d8] sm:$0xff] }
  0xfc   : > { %v4854_v8 = vpack.c.bf16 %v876_v4, %v872_v0  ;;  %v436_v4 = vld [vmem:[%s5776_s1 + $0x1c8] sm:$0xff]  ;;  %1955 = vmatpush.bf16.msra.mxu1 %v3347_v62 }
  0xfd   : > { %1834 = vmatmul.bf16.gmra.mxu2 %v4852_v7 }
  0xfe   : > { %1883 = vmatmul.bf16.gmra.mxu3 %v4854_v8  ;;  %v706_v29 = vpop.f32.mrf.mxu2 }
  0xff   : > { %v755_v30 = vpop.f32.mrf.mxu3  ;;  %v610_v43 = vpop.f32.mrf.mxu0  ;;  %v815_v9 = vadd.f32 %v706_v29, %v503_v28 }
 0x100   : > { %v659_v44 = vpop.f32.mrf.mxu1  ;;  %v817_v52 = vadd.f32 %v610_v43, %v505_v17  ;;  %v816_v10 = vadd.f32 %v755_v30, %v504_v42  ;;  %v509_v17 = vadd.f32 %v4422_v14, %v435_v1  ;;  %v439_v43 = vld [vmem:[%s5776_s1 + $0x1e0] sm:$0xff] }
 0x101   : > { %v818_v53 = vadd.f32 %v659_v44, %v506_v18  ;;  %v510_v18 = vadd.f32 %v4424_v15, %v436_v4  ;;  %v879_v28 = vmax.f32 %v815_v9, 0.0  ;;  %v440_v44 = vld [vmem:[%s5776_s1 + $0x1e8] sm:$0xff]  ;;  %v513_v49 = vadd.f32 %v4422_v14, %v439_v43  ;;  %v3983_v9 = vld [vmem:[%s5779_s4 + $0x3f4] sm:$0xf0] }
 0x102   : > { %v881_v63 = vmax.f32 %v817_v52, 0.0  ;;  %v880_v29 = vmax.f32 %v816_v10, 0.0  ;;  %v514_v50 = vadd.f32 %v4424_v15, %v440_v44  ;;  %v3590_v14 = vld [vmem:[%s5779_s4 + $0x2e8] sm:$0xf]  ;;  %v3951_v15 = vld [vmem:[%s5779_s4 + $0x2f4] sm:$0xf0] }
 0x103   : > { %v882_v0 = vmax.f32 %v818_v53, 0.0  ;;  %v437_v53 = vld [vmem:[%s5776_s1 + $0x1d0] sm:$0xff]  ;;  %v3591_v4 = vor.u32 %v3951_v15, %v3590_v14  ;;  %v3462_v44 = vld [vmem:[%s5779_s4 + $0x1e8] sm:$0xf] }
 0x104   : > { %v4906_v11 = vpack.c.bf16 %v881_v63, %v877_v41  ;;  %v3334_v63 = vld [vmem:[%s5779_s4 + $0xe8] sm:$0xf] }
 0x105   : > { %v4908_v16 = vpack.c.bf16 %v882_v0, %v878_v51  ;;  %2193 = vmatpush.bf16.msrb.mxu2 %v3591_v4  ;;  %v3947_v4 = vld [vmem:[%s5779_s4 + $0x2d4] sm:$0xf0] }
 0x106   : > { %v708_v23 = vpop.f32.mrf.mxu2  ;;  %1741 = vmatmul.bf16.gmra.mxu0 %v4906_v11 }
 0x107   : > { %v757_v24 = vpop.f32.mrf.mxu3  ;;  %1790 = vmatmul.bf16.gmra.mxu1 %v4908_v16  ;;  %v819_v27 = vadd.f32 %v708_v23, %v507_v5  ;;  %v613_v34 = vpop.f32.mrf.mxu0  ;;  %v3887_v5 = vld [vmem:[%s5779_s4 + $0xf4] sm:$0xf0] }
 0x108   : > { %v820_v33 = vadd.f32 %v757_v24, %v508_v6  ;;  %v662_v37 = vpop.f32.mrf.mxu1  ;;  %v821_v41 = vadd.f32 %v613_v34, %v509_v17  ;;  %v3718_v6 = vld [vmem:[%s5779_s4 + $0x3e8] sm:$0xf]  ;;  %v442_v23 = vld [vmem:[%s5776_s1 + $0x1f8] sm:$0xff]  ;;  %v3335_v24 = vor.u32 %v3887_v5, %v3334_v63  ;;  %v512_v34 = vadd.f32 %v4450_v32, %v438_v54  ;;  %v4981_v63 = vld [vmem:[%s5780_s5] sm:$0xf] }
 0x109   : > { %v883_v30 = vmax.f32 %v819_v27, 0.0  ;;  %v822_v42 = vadd.f32 %v662_v37, %v510_v18  ;;  %v441_v18 = vld [vmem:[%s5776_s1 + $0x1f0] sm:$0xff]  ;;  %v3719_v27 = vor.u32 %v3983_v9, %v3718_v6  ;;  %v3318_v5 = vld [vmem:[%s5779_s4 + $0xc8] sm:$0xf]  ;;  %v3883_v9 = vld [vmem:[%s5779_s4 + $0xd4] sm:$0xf0] }
 0x10a   : > { %v884_v40 = vmax.f32 %v820_v33, 0.0  ;;  %v885_v51 = vmax.f32 %v821_v41, 0.0  ;;  %v511_v33 = vadd.f32 %v4448_v31, %v437_v53  ;;  %2095 = vmatpush.bf16.msrb.mxu0 %v3335_v24 }
 0x10b   : > { %v4920_v45 = vpack.c.bf16 %v883_v30, %v879_v28  ;;  %v886_v52 = vmax.f32 %v822_v42, 0.0  ;;  %2242 = vmatpush.bf16.msrb.mxu3 %v3719_v27  ;;  %v516_v30 = vadd.f32 %v4450_v32, %v442_v23 }
 0x10c   : > { %v4922_v46 = vpack.c.bf16 %v884_v40, %v880_v29  ;;  %v515_v29 = vadd.f32 %v4448_v31, %v441_v18  ;;  %v3319_v18 = vor.u32 %v3883_v9, %v3318_v5 }
 0x10d   : > { %1839 = vmatmul.bf16.gmra.mxu2 %v4920_v45 }
 0x10e   : > { %1888 = vmatmul.bf16.gmra.mxu3 %v4922_v46  ;;  %v711_v55 = vpop.f32.mrf.mxu2  ;;  %2096 = vmatpush.bf16.msrb.mxu0 %v3319_v18  ;;  %v3911_v18 = vld [vmem:[%s5779_s4 + $0x1b4] sm:$0xf0] }
 0x10f   : > { %v760_v62 = vpop.f32.mrf.mxu3  ;;  %v615_v0 = vpop.f32.mrf.mxu0  ;;  %v823_v42 = vadd.f32 %v711_v55, %v511_v33 }
 0x110   : > { %v664_v1 = vpop.f32.mrf.mxu1  ;;  %v825_v10 = vadd.f32 %v615_v0, %v513_v49  ;;  %v824_v43 = vadd.f32 %v760_v62, %v512_v34  ;;  %v3919_v49 = vld [vmem:[%s5779_s4 + $0x1f4] sm:$0xf0]  ;;  %v4986_v0 = vperm.slane %v4981_v63, 0  ;;  %v3446_v34 = vld [vmem:[%s5779_s4 + $0x1c8] sm:$0xf] }
 0x111   : > { %v826_v17 = vadd.f32 %v664_v1, %v514_v50  ;;  %v3463_v31 = vor.u32 %v3919_v49, %v3462_v44  ;;  %v3574_v1 = vld [vmem:[%s5779_s4 + $0x2c8] sm:$0xf] }
 0x112   : > { %v889_v37 = vmax.f32 %v825_v10, 0.0  ;;  %v888_v54 = vmax.f32 %v824_v43, 0.0  ;;  %v3575_v6 = vor.u32 %v3947_v4, %v3574_v1  ;;  %v3702_v10 = vld [vmem:[%s5779_s4 + $0x3c8] sm:$0xf] }
 0x113   : > { %v890_v28 = vmax.f32 %v826_v17, 0.0  ;;  %2144 = vmatpush.bf16.msrb.mxu1 %v3463_v31  ;;  %v3979_v17 = vld [vmem:[%s5779_s4 + $0x3d4] sm:$0xf0]  ;;  %v3558_v49 = vld [vmem:[%s5779_s4 + $0x2a8] sm:$0xf] }
 0x114   : > { %v4962_v40 = vpack.c.bf16 %v889_v37, %v885_v51  ;;  %v3703_v23 = vor.u32 %v3979_v17, %v3702_v10  ;;  %2194 = vmatpush.bf16.msrb.mxu2 %v3575_v6  ;;  %v3915_v37 = vld [vmem:[%s5779_s4 + $0x1d4] sm:$0xf0]  ;;  %v3430_v17 = vld [vmem:[%s5779_s4 + $0x1a8] sm:$0xf] }
 0x115   : > { %v4964_v41 = vpack.c.bf16 %v890_v28, %v886_v52  ;;  %v887_v52 = vmax.f32 %v823_v42, 0.0 }
 0x116   : > { %v713_v50 = vpop.f32.mrf.mxu2  ;;  %1746 = vmatmul.bf16.gmra.mxu0 %v4962_v40  ;;  %2243 = vmatpush.bf16.msrb.mxu3 %v3703_v23 }
 0x117   : > { %v762_v53 = vpop.f32.mrf.mxu3  ;;  %1795 = vmatmul.bf16.gmra.mxu1 %v4964_v41  ;;  %v827_v32 = vadd.f32 %v713_v50, %v515_v29  ;;  %v3447_v29 = vor.u32 %v3915_v37, %v3446_v34  ;;  %v3943_v50 = vld [vmem:[%s5779_s4 + $0x2b4] sm:$0xf0] }
 0x118   : > { %v828_v51 = vadd.f32 %v762_v53, %v516_v30  ;;  %v3302_v53 = vld [vmem:[%s5779_s4 + $0xa8] sm:$0xf]  ;;  %v3559_v31 = vor.u32 %v3943_v50, %v3558_v49 }
 0x119   : > { %v891_v55 = vmax.f32 %v827_v32, 0.0  ;;  %2145 = vmatpush.bf16.msrb.mxu1 %v3447_v29  ;;  %v3879_v32 = vld [vmem:[%s5779_s4 + $0xb4] sm:$0xf0]  ;;  %v3542_v50 = vld [vmem:[%s5779_s4 + $0x288] sm:$0xf] }
 0x11a   : > { %v892_v62 = vmax.f32 %v828_v51, 0.0  ;;  %v3686_v51 = vld [vmem:[%s5779_s4 + $0x3a8] sm:$0xf]  ;;  %2195 = vmatpush.bf16.msrb.mxu2 %v3559_v31 }
 0x11b   : > { %v4974_v14 = vpack.c.bf16 %v891_v55, %v887_v52  ;;  %v3975_v52 = vld [vmem:[%s5779_s4 + $0x3b4] sm:$0xf0] }
 0x11c   : > { %v4976_v15 = vpack.c.bf16 %v892_v62, %v888_v54  ;;  %v3303_v62 = vor.u32 %v3879_v32, %v3302_v53  ;;  %v3687_v1 = vor.u32 %v3975_v52, %v3686_v51  ;;  %v3286_v53 = vld [vmem:[%s5779_s4 + $0x88] sm:$0xf]  ;;  %v3875_v51 = vld [vmem:[%s5779_s4 + $0x94] sm:$0xf0] }
 0x11d   : > { %1844 = vmatmul.bf16.gmra.mxu2 %v4974_v14  ;;  %v3670_v52 = vld [vmem:[%s5779_s4 + $0x388] sm:$0xf] }
 0x11e   : > { %1893 = vmatmul.bf16.gmra.mxu3 %v4976_v15  ;;  %2097 = vmatpush.bf16.msrb.mxu0 %v3303_v62 }
 0x11f   : > { %2244 = vmatpush.bf16.msrb.mxu3 %v3687_v1  ;;  %v3287_v1 = vor.u32 %v3875_v51, %v3286_v53  ;;  %v3526_v53 = vld [vmem:[%s5779_s4 + $0x268] sm:$0xf] }
 0x122   : > { %2098 = vmatpush.bf16.msrb.mxu0 %v3287_v1 }
 0x123   : > { %v1712_v24 = vpop.f32.mrf.mxu0 }
 0x124   : > { %v1761_v27 = vpop.f32.mrf.mxu1  ;;  %v1713_v33 = vadd.f32 %v1712_v24, %v4986_v0  ;;  %v3431_v24 = vor.u32 %v3911_v18, %v3430_v17  ;;  %v3414_v18 = vld [vmem:[%s5779_s4 + $0x188] sm:$0xf] }
 0x126   : > { %v1762_v28 = vadd.f32 %v1761_v27, %v1713_v33  ;;  %1907 = vmatmul.bf16.vlgmr.msra.gmra.mxu0 %v4486_v60  ;;  %2146 = vmatpush.bf16.msrb.mxu1 %v3431_v24  ;;  %v3907_v24 = vld [vmem:[%s5779_s4 + $0x194] sm:$0xf0] }
 0x127   : > { %1956 = vmatmul.bf16.vlgmr.msra.gmra.mxu1 %v4488_v61 }
 0x12b   : > { %v1714_v30 = vpop.f32.mrf.mxu0 }
 0x12c   : > { %v1763_v42 = vpop.f32.mrf.mxu1  ;;  %v1715_v43 = vadd.f32 %v1714_v30, %v4986_v0 }
 0x12d   : > { %2005 = vmatmul.bf16.vlgmr.msra.gmra.mxu2 %v4512_v21 }
 0x12e   : > { %2054 = vmatmul.bf16.vlgmr.msra.gmra.mxu3 %v4514_v22  ;;  %v1764_v44 = vadd.f32 %v1763_v42, %v1715_v43 }
 0x130   : > { %v1810_v54 = vpop.f32.mrf.mxu2 }
 0x131   : > { %v1859_v55 = vpop.f32.mrf.mxu3  ;;  %v1811_v4 = vadd.f32 %v1810_v54, %v1762_v28  ;;  %v3971_v54 = vld [vmem:[%s5779_s4 + $0x394] sm:$0xf0] }
 0x133   : > { %v1860_v5 = vadd.f32 %v1859_v55, %v1811_v4  ;;  %v1717_v6 = vpop.f32.mrf.mxu0  ;;  %v3671_v4 = vor.u32 %v3971_v54, %v3670_v52  ;;  %v3871_v52 = vld [vmem:[%s5779_s4 + $0x74] sm:$0xf0]  ;;  %v3654_v54 = vld [vmem:[%s5779_s4 + $0x368] sm:$0xf] }
 0x134   : > { %v1766_v9 = vpop.f32.mrf.mxu1  ;;  %v1718_v10 = vadd.f32 %v1717_v6, %v4986_v0 }
 0x135   : > { %v2487_v42 = vmax.f32 %v1860_v5, 0.0  ;;  %2245 = vmatpush.bf16.msrb.mxu3 %v3671_v4 }
 0x136   : > { %v1767_v23 = vadd.f32 %v1766_v9, %v1718_v10  ;;  %1912 = vmatmul.bf16.gmra.mxu0 %v4554_v56 }
 0x137   : > { %1961 = vmatmul.bf16.gmra.mxu1 %v4556_v57 }
 0x138   : > { %v1812_v27 = vpop.f32.mrf.mxu2 }
 0x139   : > { %v1861_v33 = vpop.f32.mrf.mxu3  ;;  %v1813_v34 = vadd.f32 %v1812_v27, %v1764_v44  ;;  %v3939_v44 = vld [vmem:[%s5779_s4 + $0x294] sm:$0xf0] }
 0x13a   : > { %v3543_v32 = vor.u32 %v3939_v44, %v3542_v50 }
 0x13b   : > { %v1862_v37 = vadd.f32 %v1861_v33, %v1813_v34  ;;  %v1719_v28 = vpop.f32.mrf.mxu0 }
 0x13c   : > { %v1768_v29 = vpop.f32.mrf.mxu1  ;;  %v1720_v30 = vadd.f32 %v1719_v28, %v4986_v0  ;;  %2196 = vmatpush.bf16.msrb.mxu2 %v3543_v32  ;;  %v3270_v32 = vld [vmem:[%s5779_s4 + $0x68] sm:$0xf] }
 0x13d   : > { %v2491_v43 = vmax.f32 %v1862_v37, 0.0  ;;  %2010 = vmatmul.bf16.gmra.mxu2 %v4580_v19 }
 0x13e   : > { %2059 = vmatmul.bf16.gmra.mxu3 %v4582_v20  ;;  %v1769_v49 = vadd.f32 %v1768_v29, %v1720_v30 }
 0x13f   : > { %v5057_v31 = vpack.c.bf16 %v2491_v43, %v2487_v42 }
 0x140   : > { %v1815_v55 = vpop.f32.mrf.mxu2 }
 0x141   : > { %v1864_v62 = vpop.f32.mrf.mxu3  ;;  %v1816_v5 = vadd.f32 %v1815_v55, %v1767_v23  ;;  %v3415_v23 = vor.u32 %v3907_v24, %v3414_v18  ;;  %v3967_v55 = vld [vmem:[%s5779_s4 + $0x374] sm:$0xf0] }
 0x143   : > { %v1865_v6 = vadd.f32 %v1864_v62, %v1816_v5  ;;  %v1722_v9 = vpop.f32.mrf.mxu0  ;;  %2147 = vmatpush.bf16.msrb.mxu1 %v3415_v23  ;;  %v3271_v5 = vor.u32 %v3871_v52, %v3270_v32  ;;  %v3398_v23 = vld [vmem:[%s5779_s4 + $0x168] sm:$0xf] }
 0x144   : > { %v1771_v10 = vpop.f32.mrf.mxu1  ;;  %v1723_v17 = vadd.f32 %v1722_v9, %v4986_v0  ;;  %v3254_v52 = vld [vmem:[%s5779_s4 + $0x48] sm:$0xf] }
 0x145   : > { %v2495_v43 = vmax.f32 %v1865_v6, 0.0  ;;  %v3655_v6 = vor.u32 %v3967_v55, %v3654_v54  ;;  %2099 = vmatpush.bf16.msrb.mxu0 %v3271_v5  ;;  %v3867_v55 = vld [vmem:[%s5779_s4 + $0x54] sm:$0xf0] }
 0x146   : > { %v1772_v27 = vadd.f32 %v1771_v10, %v1723_v17  ;;  %1917 = vmatmul.bf16.gmra.mxu0 %v4622_v58 }
 0x147   : > { %1966 = vmatmul.bf16.gmra.mxu1 %v4624_v59  ;;  %2246 = vmatpush.bf16.msrb.mxu3 %v3655_v6 }
 0x148   : > { %v1817_v33 = vpop.f32.mrf.mxu2 }
 0x149   : > { %v1866_v34 = vpop.f32.mrf.mxu3  ;;  %v1818_v37 = vadd.f32 %v1817_v33, %v1769_v49  ;;  %v3935_v49 = vld [vmem:[%s5779_s4 + $0x274] sm:$0xf0] }
 0x14a   : > { %v3527_v51 = vor.u32 %v3935_v49, %v3526_v53  ;;  %v3903_v33 = vld [vmem:[%s5779_s4 + $0x174] sm:$0xf0] }
 0x14b   : > { %v1867_v28 = vadd.f32 %v1866_v34, %v1818_v37  ;;  %v1724_v29 = vpop.f32.mrf.mxu0 }
 0x14c   : > { %v1773_v30 = vpop.f32.mrf.mxu1  ;;  %v1725_v42 = vadd.f32 %v1724_v29, %v4986_v0  ;;  %2197 = vmatpush.bf16.msrb.mxu2 %v3527_v51  ;;  %v3510_v51 = vld [vmem:[%s5779_s4 + $0x248] sm:$0xf] }
 0x14d   : > { %v2499_v50 = vmax.f32 %v1867_v28, 0.0  ;;  %2015 = vmatmul.bf16.gmra.mxu2 %v4648_v25 }
 0x14e   : > { %2064 = vmatmul.bf16.gmra.mxu3 %v4650_v26  ;;  %v1774_v44 = vadd.f32 %v1773_v30, %v1725_v42 }
 0x14f   : > { %v5098_v62 = vpack.c.bf16 %v2499_v50, %v2495_v43 }
 0x150   : > { %v1820_v1 = vpop.f32.mrf.mxu2 }
 0x151   : > { %v1869_v4 = vpop.f32.mrf.mxu3  ;;  %v1821_v9 = vadd.f32 %v1820_v1, %v1772_v27  ;;  %v3399_v27 = vor.u32 %v3903_v33, %v3398_v23  ;;  %v3638_v1 = vld [vmem:[%s5779_s4 + $0x348] sm:$0xf] }
 0x153   : > { %v1870_v10 = vadd.f32 %v1869_v4, %v1821_v9  ;;  %v1727_v17 = vpop.f32.mrf.mxu0  ;;  %2148 = vmatpush.bf16.msrb.mxu1 %v3399_v27  ;;  %v3963_v4 = vld [vmem:[%s5779_s4 + $0x354] sm:$0xf0] }
 0x154   : > { %v1776_v18 = vpop.f32.mrf.mxu1  ;;  %v1728_v24 = vadd.f32 %v1727_v17, %v4986_v0  ;;  %v3639_v17 = vor.u32 %v3963_v4, %v3638_v1  ;;  %v3238_v1 = vld [vmem:[%s5779_s4 + $0x28] sm:$0xf] }
 0x155   : > { %v2503_v53 = vmax.f32 %v1870_v10, 0.0  ;;  %v3255_v10 = vor.u32 %v3867_v55, %v3254_v52  ;;  %v3494_v55 = vld [vmem:[%s5779_s4 + $0x228] sm:$0xf] }
 0x156   : > { %v1777_v34 = vadd.f32 %v1776_v18, %v1728_v24  ;;  %1922 = vmatmul.bf16.gmra.mxu0 %v4690_v2  ;;  %2247 = vmatpush.bf16.msrb.mxu3 %v3639_v17 }
 0x157   : > { %1971 = vmatmul.bf16.gmra.mxu1 %v4692_v3  ;;  %2100 = vmatpush.bf16.msrb.mxu0 %v3255_v10  ;;  %v3959_v10 = vld [vmem:[%s5779_s4 + $0x334] sm:$0xf0] }
 0x158   : > { %v1822_v37 = vpop.f32.mrf.mxu2 }
 0x159   : > { %v1871_v28 = vpop.f32.mrf.mxu3  ;;  %v1823_v29 = vadd.f32 %v1822_v37, %v1774_v44  ;;  %v3931_v44 = vld [vmem:[%s5779_s4 + $0x254] sm:$0xf0]  ;;  %v3382_v37 = vld [vmem:[%s5779_s4 + $0x148] sm:$0xf] }
 0x15a   : > { %v3511_v54 = vor.u32 %v3931_v44, %v3510_v51 }
 0x15b   : > { %v1872_v30 = vadd.f32 %v1871_v28, %v1823_v29  ;;  %v1729_v42 = vpop.f32.mrf.mxu0  ;;  %v3899_v28 = vld [vmem:[%s5779_s4 + $0x154] sm:$0xf0] }
 0x15c   : > { %v1778_v43 = vpop.f32.mrf.mxu1  ;;  %v1730_v50 = vadd.f32 %v1729_v42, %v4986_v0  ;;  %2198 = vmatpush.bf16.msrb.mxu2 %v3511_v54 }
 0x15d   : > { %v2507_v49 = vmax.f32 %v1872_v30, 0.0  ;;  %2020 = vmatmul.bf16.gmra.mxu2 %v4716_v35 }
 0x15e   : > { %2069 = vmatmul.bf16.gmra.mxu3 %v4718_v36  ;;  %v1779_v32 = vadd.f32 %v1778_v43, %v1730_v50 }
 0x15f   : > { %v5130_v5 = vpack.c.bf16 %v2507_v49, %v2503_v53 }
 0x160   : > { %v1825_v6 = vpop.f32.mrf.mxu2 }
 0x161   : > { %v1874_v9 = vpop.f32.mrf.mxu3  ;;  %v1826_v18 = vadd.f32 %v1825_v6, %v1777_v34  ;;  %v3383_v34 = vor.u32 %v3899_v28, %v3382_v37  ;;  %v3863_v6 = vld [vmem:[%s5779_s4 + $0x34] sm:$0xf0] }
 0x163   : > { %v1875_v24 = vadd.f32 %v1874_v9, %v1826_v18  ;;  %v1732_v23 = vpop.f32.mrf.mxu0  ;;  %2149 = vmatpush.bf16.msrb.mxu1 %v3383_v34  ;;  %v3622_v9 = vld [vmem:[%s5779_s4 + $0x328] sm:$0xf] }
 0x164   : > { %v1781_v33 = vpop.f32.mrf.mxu1  ;;  %v1733_v27 = vadd.f32 %v1732_v23, %v4986_v0  ;;  %v3239_v23 = vor.u32 %v3863_v6, %v3238_v1 }
 0x165   : > { %v2511_v44 = vmax.f32 %v1875_v24, 0.0 }
 0x166   : > { %v1782_v29 = vadd.f32 %v1781_v33, %v1733_v27  ;;  %1927 = vmatmul.bf16.gmra.mxu0 %v4758_v12  ;;  %v3623_v33 = vor.u32 %v3959_v10, %v3622_v9  ;;  %v3478_v9 = vld [vmem:[%s5779_s4 + $0x208] sm:$0xf] }
 0x167   : > { %1976 = vmatmul.bf16.gmra.mxu1 %v4760_v13  ;;  %2101 = vmatpush.bf16.msrb.mxu0 %v3239_v23  ;;  %v3222_v10 = vld [vmem:[%s5779_s4 + $0x8] sm:$0xf] }
 0x168   : > { %v1827_v30 = vpop.f32.mrf.mxu2  ;;  %2248 = vmatpush.bf16.msrb.mxu3 %v3623_v33  ;;  %v3606_v23 = vld [vmem:[%s5779_s4 + $0x308] sm:$0xf]  ;;  %v3955_v33 = vld [vmem:[%s5779_s4 + $0x314] sm:$0xf0] }
 0x169   : > { %v1876_v42 = vpop.f32.mrf.mxu3  ;;  %v1828_v43 = vadd.f32 %v1827_v30, %v1779_v32  ;;  %v3927_v32 = vld [vmem:[%s5779_s4 + $0x234] sm:$0xf0] }
 0x16a   : > { %v3495_v4 = vor.u32 %v3927_v32, %v3494_v55 }
 0x16b   : > { %v1877_v50 = vadd.f32 %v1876_v42, %v1828_v43  ;;  %v1734_v53 = vpop.f32.mrf.mxu0  ;;  %v3366_v42 = vld [vmem:[%s5779_s4 + $0x128] sm:$0xf]  ;;  %v3895_v43 = vld [vmem:[%s5779_s4 + $0x134] sm:$0xf0] }
 0x16c   : > { %v1783_v49 = vpop.f32.mrf.mxu1  ;;  %v1735_v51 = vadd.f32 %v1734_v53, %v4986_v0  ;;  %2199 = vmatpush.bf16.msrb.mxu2 %v3495_v4 }
 0x16d   : > { %v2515_v52 = vmax.f32 %v1877_v50, 0.0  ;;  %2025 = vmatmul.bf16.gmra.mxu2 %v4784_v47 }
 0x16e   : > { %2074 = vmatmul.bf16.gmra.mxu3 %v4786_v48  ;;  %v1784_v54 = vadd.f32 %v1783_v49, %v1735_v51 }
 0x16f   : > { %v5162_v17 = vpack.c.bf16 %v2515_v52, %v2511_v44 }
 0x170   : > { %v1830_v18 = vpop.f32.mrf.mxu2 }
 0x171   : > { %v1879_v24 = vpop.f32.mrf.mxu3  ;;  %v1831_v27 = vadd.f32 %v1830_v18, %v1782_v29  ;;  %v3367_v29 = vor.u32 %v3895_v43, %v3366_v42  ;;  %v3350_v43 = vld [vmem:[%s5779_s4 + $0x108] sm:$0xf] }
 0x173   : > { %v1880_v37 = vadd.f32 %v1879_v24, %v1831_v27  ;;  %v1737_v28 = vpop.f32.mrf.mxu0  ;;  %2150 = vmatpush.bf16.msrb.mxu1 %v3367_v29  ;;  %v3859_v24 = vld [vmem:[%s5779_s4 + $0x14] sm:$0xf0] }
 0x174   : > { %v1786_v34 = vpop.f32.mrf.mxu1  ;;  %v1738_v30 = vadd.f32 %v1737_v28, %v4986_v0  ;;  %v3891_v29 = vld [vmem:[%s5779_s4 + $0x114] sm:$0xf0] }
 0x175   : > { %v2519_v1 = vmax.f32 %v1880_v37, 0.0 }
 0x176   : > { %v1787_v50 = vadd.f32 %v1786_v34, %v1738_v30  ;;  %1932 = vmatmul.bf16.gmra.mxu0 %v4826_v38  ;;  %v3223_v34 = vor.u32 %v3859_v24, %v3222_v10  ;;  %v3607_v30 = vor.u32 %v3955_v33, %v3606_v23  ;;  %v3949_v33 = vld [vmem:[%s5779_s4 + $0x2ec] sm:$0xf] }
 0x177   : > { %1981 = vmatmul.bf16.gmra.mxu1 %v4828_v39 }
 0x178   : > { %v1832_v53 = vpop.f32.mrf.mxu2  ;;  %2102 = vmatpush.bf16.msrb.mxu0 %v3223_v34  ;;  %2249 = vmatpush.bf16.msrb.mxu3 %v3607_v30  ;;  %v3336_v34 = vld [vmem:[%s5779_s4 + $0xf8] sm:$0xf0]  ;;  %v3981_v30 = vld [vmem:[%s5779_s4 + $0x3ec] sm:$0xf] }
 0x179   : > { %v1881_v49 = vpop.f32.mrf.mxu3  ;;  %v1833_v51 = vadd.f32 %v1832_v53, %v1784_v54  ;;  %v3923_v54 = vld [vmem:[%s5779_s4 + $0x214] sm:$0xf0]  ;;  %v3351_v53 = vor.u32 %v3891_v29, %v3350_v43 }
 0x17a   : > { %v3479_v18 = vor.u32 %v3923_v54, %v3478_v9 }
 0x17b   : > { %v1882_v44 = vadd.f32 %v1881_v49, %v1833_v51  ;;  %v1739_v52 = vpop.f32.mrf.mxu0  ;;  %2151 = vmatpush.bf16.msrb.mxu1 %v3351_v53 }
 0x17c   : > { %v1788_v55 = vpop.f32.mrf.mxu1  ;;  %v1740_v32 = vadd.f32 %v1739_v52, %v4986_v0  ;;  %2200 = vmatpush.bf16.msrb.mxu2 %v3479_v18 }
 0x17d   : > { %v2523_v4 = vmax.f32 %v1882_v44, 0.0  ;;  %2030 = vmatmul.bf16.gmra.mxu2 %v4852_v7 }
 0x17e   : > { %2079 = vmatmul.bf16.gmra.mxu3 %v4854_v8  ;;  %v1789_v6 = vadd.f32 %v1788_v55, %v1740_v32 }
 0x17f   : > { %v5194_v27 = vpack.c.bf16 %v2523_v4, %v2519_v1 }
 0x180   : > { %v1835_v37 = vpop.f32.mrf.mxu2 }
 0x181   : > { %v1884_v28 = vpop.f32.mrf.mxu3  ;;  %v1836_v42 = vadd.f32 %v1835_v37, %v1787_v50  ;;  %v3885_v37 = vld [vmem:[%s5779_s4 + $0xec] sm:$0xf] }
 0x183   : > { %v1885_v49 = vadd.f32 %v1884_v28, %v1836_v42  ;;  %v1742_v51 = vpop.f32.mrf.mxu0  ;;  %v3720_v42 = vld [vmem:[%s5779_s4 + $0x3f8] sm:$0xf0] }
 0x184   : > { %v1791_v44 = vpop.f32.mrf.mxu1  ;;  %v1743_v52 = vadd.f32 %v1742_v51, %v4986_v0  ;;  %v3723_v51 = vor.u32 %v3981_v30, %v3720_v42 }
 0x185   : > { %v2527_v18 = vmax.f32 %v1885_v49, 0.0  ;;  %v3339_v49 = vor.u32 %v3885_v37, %v3336_v34 }
 0x186   : > { %v1792_v55 = vadd.f32 %v1791_v44, %v1743_v52  ;;  %1937 = vmatmul.bf16.gmra.mxu0 %v4906_v11  ;;  %2438 = vmatpush.bf16.msra.mxu3 %v3723_v51 }
 0x187   : > { %1986 = vmatmul.bf16.gmra.mxu1 %v4908_v16  ;;  %2291 = vmatpush.bf16.msra.mxu0 %v3339_v49 }
 0x188   : > { %v1837_v50 = vpop.f32.mrf.mxu2 }
 0x189   : > { %v1886_v32 = vpop.f32.mrf.mxu3  ;;  %v1838_v1 = vadd.f32 %v1837_v50, %v1789_v6  ;;  %v3592_v6 = vld [vmem:[%s5779_s4 + $0x2f8] sm:$0xf0] }
 0x18a   : > { %v3595_v28 = vor.u32 %v3949_v33, %v3592_v6 }
 0x18b   : > { %v1887_v4 = vadd.f32 %v1886_v32, %v1838_v1  ;;  %v1744_v9 = vpop.f32.mrf.mxu0 }
 0x18c   : > { %v1793_v54 = vpop.f32.mrf.mxu1  ;;  %v1745_v10 = vadd.f32 %v1744_v9, %v4986_v0  ;;  %2389 = vmatpush.bf16.msra.mxu2 %v3595_v28  ;;  %v3464_v9 = vld [vmem:[%s5779_s4 + $0x1f8] sm:$0xf0] }
 0x18d   : > { %v2531_v24 = vmax.f32 %v1887_v4, 0.0  ;;  %2035 = vmatmul.bf16.gmra.mxu2 %v4920_v45  ;;  %v3917_v4 = vld [vmem:[%s5779_s4 + $0x1ec] sm:$0xf] }
 0x18e   : > { %2084 = vmatmul.bf16.gmra.mxu3 %v4922_v46  ;;  %v1794_v23 = vadd.f32 %v1793_v54, %v1745_v10 }
 0x18f   : > { %v5226_v43 = vpack.c.bf16 %v2531_v24, %v2527_v18 }
 0x190   : > { %v1840_v29 = vpop.f32.mrf.mxu2 }
 0x191   : > { %v1889_v53 = vpop.f32.mrf.mxu3  ;;  %v1841_v44 = vadd.f32 %v1840_v29, %v1792_v55  ;;  %v3467_v55 = vor.u32 %v3917_v4, %v3464_v9  ;;  %v5241_v29 = vperm.slane %v4981_v63, 1  ;;  %v3320_v63 = vld [vmem:[%s5779_s4 + $0xd8] sm:$0xf0] }
 0x193   : > { %v1890_v52 = vadd.f32 %v1889_v53, %v1841_v44  ;;  %v1747_v50 = vpop.f32.mrf.mxu0  ;;  %2340 = vmatpush.bf16.msra.mxu1 %v3467_v55  ;;  %v3945_v53 = vld [vmem:[%s5779_s4 + $0x2cc] sm:$0xf] }
 0x194   : > { %v1796_v32 = vpop.f32.mrf.mxu1  ;;  %v1748_v1 = vadd.f32 %v1747_v50, %v4986_v0  ;;  %v3977_v50 = vld [vmem:[%s5779_s4 + $0x3cc] sm:$0xf] }
 0x195   : > { %v2535_v34 = vmax.f32 %v1890_v52, 0.0 }
 0x196   : > { %v1797_v54 = vadd.f32 %v1796_v32, %v1748_v1  ;;  %1942 = vmatmul.bf16.gmra.mxu0 %v4962_v40  ;;  %v3704_v32 = vld [vmem:[%s5779_s4 + $0x3d8] sm:$0xf0] }
 0x197   : > { %1991 = vmatmul.bf16.gmra.mxu1 %v4964_v41  ;;  %v3707_v9 = vor.u32 %v3977_v50, %v3704_v32  ;;  %v3941_v50 = vld [vmem:[%s5779_s4 + $0x2ac] sm:$0xf] }
 0x198   : > { %v1842_v10 = vpop.f32.mrf.mxu2  ;;  %v3877_v32 = vld [vmem:[%s5779_s4 + $0xac] sm:$0xf] }
 0x199   : > { %v1891_v18 = vpop.f32.mrf.mxu3  ;;  %v1843_v24 = vadd.f32 %v1842_v10, %v1794_v23  ;;  %v3576_v23 = vld [vmem:[%s5779_s4 + $0x2d8] sm:$0xf0]  ;;  %2439 = vmatpush.bf16.msra.mxu3 %v3707_v9  ;;  %v3973_v9 = vld [vmem:[%s5779_s4 + $0x3ac] sm:$0xf] }
 0x19a   : > { %v3579_v52 = vor.u32 %v3945_v53, %v3576_v23 }
 0x19b   : > { %v1892_v33 = vadd.f32 %v1891_v18, %v1843_v24  ;;  %v1749_v6 = vpop.f32.mrf.mxu0 }
 0x19c   : > { %v1798_v37 = vpop.f32.mrf.mxu1  ;;  %v1750_v28 = vadd.f32 %v1749_v6, %v4986_v0  ;;  %v3881_v0 = vld [vmem:[%s5779_s4 + $0xcc] sm:$0xf]  ;;  %2390 = vmatpush.bf16.msra.mxu2 %v3579_v52  ;;  %v3448_v6 = vld [vmem:[%s5779_s4 + $0x1d8] sm:$0xf0] }
 0x19d   : > { %v2539_v30 = vmax.f32 %v1892_v33, 0.0  ;;  %2040 = vmatmul.bf16.gmra.mxu2 %v4974_v14  ;;  %v3323_v4 = vor.u32 %v3881_v0, %v3320_v63  ;;  %v3913_v33 = vld [vmem:[%s5779_s4 + $0x1cc] sm:$0xf] }
 0x19e   : > { %2089 = vmatmul.bf16.gmra.mxu3 %v4976_v15  ;;  %v1799_v42 = vadd.f32 %v1798_v37, %v1750_v28 }
 0x19f   : > { %v5252_v49 = vpack.c.bf16 %v2539_v30, %v2535_v34  ;;  %2292 = vmatpush.bf16.msra.mxu0 %v3323_v4  ;;  %v3304_v4 = vld [vmem:[%s5779_s4 + $0xb8] sm:$0xf0] }
 0x1a0   : > { %v1845_v51 = vpop.f32.mrf.mxu2 }
 0x1a1   : > { %v1894_v44 = vpop.f32.mrf.mxu3  ;;  %v1846_v1 = vadd.f32 %v1845_v51, %v1797_v54  ;;  %v3451_v54 = vor.u32 %v3913_v33, %v3448_v6  ;;  %v3307_v33 = vor.u32 %v3877_v32, %v3304_v4 }
 0x1a3   : > { %v1895_v55 = vadd.f32 %v1894_v44, %v1846_v1  ;;  %v1908_v10 = vpop.f32.mrf.mxu0  ;;  %2341 = vmatpush.bf16.msra.mxu1 %v3451_v54  ;;  %2293 = vmatpush.bf16.msra.mxu0 %v3307_v33  ;;  %v3873_v33 = vld [vmem:[%s5779_s4 + $0x8c] sm:$0xf] }
 0x1a4   : > { %v1957_v18 = vpop.f32.mrf.mxu1  ;;  %v1909_v24 = vadd.f32 %v1908_v10, %v5241_v29 }
 0x1a5   : > { %v2543_v44 = vmax.f32 %v1895_v55, 0.0  ;;  %v3688_v55 = vld [vmem:[%s5779_s4 + $0x3b8] sm:$0xf0] }
 0x1a6   : > { %v1958_v37 = vadd.f32 %v1957_v18, %v1909_v24  ;;  %2103 = vmatmul.bf16.vlgmr.msrb.gmra.mxu0 %v4486_v60  ;;  %v3691_v6 = vor.u32 %v3973_v9, %v3688_v55 }
 0x1a7   : > { %2152 = vmatmul.bf16.vlgmr.msrb.gmra.mxu1 %v4488_v61 }
 0x1a8   : > { %v1847_v28 = vpop.f32.mrf.mxu2  ;;  %2440 = vmatpush.bf16.msra.mxu3 %v3691_v6 }
 0x1a9   : > { %v1896_v34 = vpop.f32.mrf.mxu3  ;;  %v1848_v30 = vadd.f32 %v1847_v28, %v1799_v42  ;;  %v3560_v42 = vld [vmem:[%s5779_s4 + $0x2b8] sm:$0xf0] }
 0x1aa   : > { %v3563_v1 = vor.u32 %v3941_v50, %v3560_v42 }
 0x1ab   : > { %v1897_v53 = vadd.f32 %v1896_v34, %v1848_v30  ;;  %v1910_v23 = vpop.f32.mrf.mxu0 }
 0x1ac   : > { %v1959_v0 = vpop.f32.mrf.mxu1  ;;  %v1911_v51 = vadd.f32 %v1910_v23, %v5241_v29  ;;  %2391 = vmatpush.bf16.msra.mxu2 %v3563_v1  ;;  %v3909_v23 = vld [vmem:[%s5779_s4 + $0x1ac] sm:$0xf] }
 0x1ad   : > { %v2547_v52 = vmax.f32 %v1897_v53, 0.0  ;;  %2201 = vmatmul.bf16.vlgmr.msrb.gmra.mxu2 %v4512_v21 }
 0x1ae   : > { %2250 = vmatmul.bf16.vlgmr.msrb.gmra.mxu3 %v4514_v22  ;;  %v1960_v63 = vadd.f32 %v1959_v0, %v1911_v51  ;;  %v3432_v0 = vld [vmem:[%s5779_s4 + $0x1b8] sm:$0xf0] }
 0x1af   : > { %v5293_v10 = vpack.c.bf16 %v2547_v52, %v2543_v44 }
 0x1b0   : > { %v2006_v18 = vpop.f32.mrf.mxu2 }
 0x1b1   : > { %5784 = vst [vmem:[#allocation2_spill] sm:$0xff] %v5293_v10  ;;  %v2055_v24 = vpop.f32.mrf.mxu3  ;;  %v2007_v54 = vadd.f32 %v2006_v18, %v1958_v37  ;;  %v3435_v37 = vor.u32 %v3909_v23, %v3432_v0 }
 0x1b3   : > { %v2056_v28 = vadd.f32 %v2055_v24, %v2007_v54  ;;  %v1913_v34 = vpop.f32.mrf.mxu0  ;;  %2342 = vmatpush.bf16.msra.mxu1 %v3435_v37  ;;  %v3937_v24 = vld [vmem:[%s5779_s4 + $0x28c] sm:$0xf] }
 0x1b4   : > { %v1962_v30 = vpop.f32.mrf.mxu1  ;;  %v1914_v53 = vadd.f32 %v1913_v34, %v5241_v29  ;;  %v3969_v34 = vld [vmem:[%s5779_s4 + $0x38c] sm:$0xf] }
 0x1b5   : > { %v2488_v9 = vmax.f32 %v2056_v28, 0.0  ;;  %v3288_v28 = vld [vmem:[%s5779_s4 + $0x98] sm:$0xf0] }
 0x1b6   : > { %v1963_v51 = vadd.f32 %v1962_v30, %v1914_v53  ;;  %2108 = vmatmul.bf16.gmra.mxu0 %v4554_v56  ;;  %v3672_v30 = vld [vmem:[%s5779_s4 + $0x398] sm:$0xf0]  ;;  %v3291_v0 = vor.u32 %v3873_v33, %v3288_v28 }
 0x1b7   : > { %2157 = vmatmul.bf16.gmra.mxu1 %v4556_v57  ;;  %v3675_v37 = vor.u32 %v3969_v34, %v3672_v30 }
 0x1b8   : > { %v2008_v44 = vpop.f32.mrf.mxu2  ;;  %2294 = vmatpush.bf16.msra.mxu0 %v3291_v0  ;;  %v3933_v0 = vld [vmem:[%s5779_s4 + $0x26c] sm:$0xf] }
 0x1b9   : > { %v2057_v52 = vpop.f32.mrf.mxu3  ;;  %v2009_v50 = vadd.f32 %v2008_v44, %v1960_v63  ;;  %v3544_v63 = vld [vmem:[%s5779_s4 + $0x298] sm:$0xf0]  ;;  %2441 = vmatpush.bf16.msra.mxu3 %v3675_v37  ;;  %v3869_v37 = vld [vmem:[%s5779_s4 + $0x6c] sm:$0xf] }
 0x1ba   : > { %v3547_v54 = vor.u32 %v3937_v24, %v3544_v63 }
 0x1bb   : > { %v2058_v42 = vadd.f32 %v2057_v52, %v2009_v50  ;;  %v1915_v32 = vpop.f32.mrf.mxu0 }
 0x1bc   : > { %v1964_v1 = vpop.f32.mrf.mxu1  ;;  %v1916_v4 = vadd.f32 %v1915_v32, %v5241_v29  ;;  %2392 = vmatpush.bf16.msra.mxu2 %v3547_v54 }
 0x1bd   : > { %v2492_v55 = vmax.f32 %v2058_v42, 0.0  ;;  %2206 = vmatmul.bf16.gmra.mxu2 %v4580_v19 }
 0x1be   : > { %2255 = vmatmul.bf16.gmra.mxu3 %v4582_v20  ;;  %v1965_v18 = vadd.f32 %v1964_v1, %v1916_v4  ;;  %v3905_v1 = vld [vmem:[%s5779_s4 + $0x18c] sm:$0xf]  ;;  %v3416_v4 = vld [vmem:[%s5779_s4 + $0x198] sm:$0xf0] }
 0x1bf   : > { %v5316_v6 = vpack.c.bf16 %v2492_v55, %v2488_v9 }
 0x1c0   : > { %v2011_v53 = vpop.f32.mrf.mxu2 }
 0x1c1   : > { %v2060_v23 = vpop.f32.mrf.mxu3  ;;  %v2012_v44 = vadd.f32 %v2011_v53, %v1963_v51  ;;  %v3419_v51 = vor.u32 %v3905_v1, %v3416_v4 }
 0x1c3   : > { %v2061_v52 = vadd.f32 %v2060_v23, %v2012_v44  ;;  %v1918_v50 = vpop.f32.mrf.mxu0  ;;  %2343 = vmatpush.bf16.msra.mxu1 %v3419_v51 }
 0x1c4   : > { %v1967_v42 = vpop.f32.mrf.mxu1  ;;  %v1919_v32 = vadd.f32 %v1918_v50, %v5241_v29  ;;  %v3965_v50 = vld [vmem:[%s5779_s4 + $0x36c] sm:$0xf] }
 0x1c5   : > { %v2496_v30 = vmax.f32 %v2061_v52, 0.0  ;;  %v3272_v52 = vld [vmem:[%s5779_s4 + $0x78] sm:$0xf0] }
 0x1c6   : > { %v1968_v9 = vadd.f32 %v1967_v42, %v1919_v32  ;;  %2113 = vmatmul.bf16.gmra.mxu0 %v4622_v58  ;;  %v3656_v42 = vld [vmem:[%s5779_s4 + $0x378] sm:$0xf0]  ;;  %v3275_v51 = vor.u32 %v3869_v37, %v3272_v52 }
 0x1c7   : > { %2162 = vmatmul.bf16.gmra.mxu1 %v4624_v59 }
 0x1c8   : > { %v2013_v55 = vpop.f32.mrf.mxu2  ;;  %2295 = vmatpush.bf16.msra.mxu0 %v3275_v51 }
 0x1c9   : > { %v2062_v24 = vpop.f32.mrf.mxu3  ;;  %v2014_v63 = vadd.f32 %v2013_v55, %v1965_v18  ;;  %v3528_v18 = vld [vmem:[%s5779_s4 + $0x278] sm:$0xf0]  ;;  %v3659_v55 = vor.u32 %v3965_v50, %v3656_v42 }
 0x1ca   : > { %v3531_v44 = vor.u32 %v3933_v0, %v3528_v18 }
 0x1cb   : > { %v2063_v33 = vadd.f32 %v2062_v24, %v2014_v63  ;;  %v1920_v54 = vpop.f32.mrf.mxu0  ;;  %2442 = vmatpush.bf16.msra.mxu3 %v3659_v55  ;;  %v3929_v55 = vld [vmem:[%s5779_s4 + $0x24c] sm:$0xf] }
 0x1cc   : > { %v1969_v28 = vpop.f32.mrf.mxu1  ;;  %v1921_v34 = vadd.f32 %v1920_v54, %v5241_v29  ;;  %2393 = vmatpush.bf16.msra.mxu2 %v3531_v44 }
 0x1cd   : > { %v2500_v53 = vmax.f32 %v2063_v33, 0.0  ;;  %2211 = vmatmul.bf16.gmra.mxu2 %v4648_v25 }
 0x1ce   : > { %2260 = vmatmul.bf16.gmra.mxu3 %v4650_v26  ;;  %v1970_v23 = vadd.f32 %v1969_v28, %v1921_v34  ;;  %v3901_v34 = vld [vmem:[%s5779_s4 + $0x16c] sm:$0xf] }
 0x1cf   : > { %v5357_v32 = vpack.c.bf16 %v2500_v53, %v2496_v30  ;;  %v3400_v30 = vld [vmem:[%s5779_s4 + $0x178] sm:$0xf0] }
 0x1d0   : > { %v2016_v1 = vpop.f32.mrf.mxu2 }
 0x1d1   : > { %v2065_v4 = vpop.f32.mrf.mxu3  ;;  %v2017_v24 = vadd.f32 %v2016_v1, %v1968_v9  ;;  %v3403_v9 = vor.u32 %v3901_v34, %v3400_v30 }
 0x1d3   : > { %v2066_v63 = vadd.f32 %v2065_v4, %v2017_v24  ;;  %v1923_v33 = vpop.f32.mrf.mxu0  ;;  %2344 = vmatpush.bf16.msra.mxu1 %v3403_v9  ;;  %v3865_v24 = vld [vmem:[%s5779_s4 + $0x4c] sm:$0xf] }
 0x1d4   : > { %v1972_v54 = vpop.f32.mrf.mxu1  ;;  %v1924_v28 = vadd.f32 %v1923_v33, %v5241_v29 }
 0x1d5   : > { %v2504_v1 = vmax.f32 %v2066_v63, 0.0  ;;  %v3256_v63 = vld [vmem:[%s5779_s4 + $0x58] sm:$0xf0] }
 0x1d6   : > { %v1973_v53 = vadd.f32 %v1972_v54, %v1924_v28  ;;  %2118 = vmatmul.bf16.gmra.mxu0 %v4690_v2  ;;  %v3961_v54 = vld [vmem:[%s5779_s4 + $0x34c] sm:$0xf]  ;;  %v3640_v28 = vld [vmem:[%s5779_s4 + $0x358] sm:$0xf0] }
 0x1d7   : > { %2167 = vmatmul.bf16.gmra.mxu1 %v4692_v3 }
 0x1d8   : > { %v2018_v0 = vpop.f32.mrf.mxu2 }
 0x1d9   : > { %v2067_v18 = vpop.f32.mrf.mxu3  ;;  %v2019_v37 = vadd.f32 %v2018_v0, %v1970_v23  ;;  %v3512_v23 = vld [vmem:[%s5779_s4 + $0x258] sm:$0xf0]  ;;  %v3259_v0 = vor.u32 %v3865_v24, %v3256_v63 }
 0x1da   : > { %v3515_v33 = vor.u32 %v3929_v55, %v3512_v23  ;;  %v3897_v55 = vld [vmem:[%s5779_s4 + $0x14c] sm:$0xf] }
 0x1db   : > { %v2068_v44 = vadd.f32 %v2067_v18, %v2019_v37  ;;  %v1925_v52 = vpop.f32.mrf.mxu0  ;;  %v3643_v18 = vor.u32 %v3961_v54, %v3640_v28  ;;  %2296 = vmatpush.bf16.msra.mxu0 %v3259_v0 }
 0x1dc   : > { %v1974_v50 = vpop.f32.mrf.mxu1  ;;  %v1926_v42 = vadd.f32 %v1925_v52, %v5241_v29  ;;  %2394 = vmatpush.bf16.msra.mxu2 %v3515_v33 }
 0x1dd   : > { %v2508_v4 = vmax.f32 %v2068_v44, 0.0  ;;  %2216 = vmatmul.bf16.gmra.mxu2 %v4716_v35  ;;  %2443 = vmatpush.bf16.msra.mxu3 %v3643_v18 }
 0x1de   : > { %2265 = vmatmul.bf16.gmra.mxu3 %v4718_v36  ;;  %v1975_v51 = vadd.f32 %v1974_v50, %v1926_v42 }
 0x1df   : > { %v5389_v34 = vpack.c.bf16 %v2508_v4, %v2504_v1  ;;  %v3384_v1 = vld [vmem:[%s5779_s4 + $0x158] sm:$0xf0] }
 0x1e0   : > { %v2021_v30 = vpop.f32.mrf.mxu2 }
 0x1e1   : > { %v2070_v9 = vpop.f32.mrf.mxu3  ;;  %v2022_v37 = vadd.f32 %v2021_v30, %v1973_v53  ;;  %v3387_v53 = vor.u32 %v3897_v55, %v3384_v1  ;;  %v3624_v55 = vld [vmem:[%s5779_s4 + $0x338] sm:$0xf0] }
 0x1e3   : > { %v2071_v44 = vadd.f32 %v2070_v9, %v2022_v37  ;;  %v1928_v52 = vpop.f32.mrf.mxu0  ;;  %2345 = vmatpush.bf16.msra.mxu1 %v3387_v53  ;;  %v3925_v37 = vld [vmem:[%s5779_s4 + $0x22c] sm:$0xf] }
 0x1e4   : > { %v1977_v50 = vpop.f32.mrf.mxu1  ;;  %v1929_v42 = vadd.f32 %v1928_v52, %v5241_v29  ;;  %v3861_v52 = vld [vmem:[%s5779_s4 + $0x2c] sm:$0xf] }
 0x1e5   : > { %v2512_v9 = vmax.f32 %v2071_v44, 0.0  ;;  %v3240_v44 = vld [vmem:[%s5779_s4 + $0x38] sm:$0xf0] }
 0x1e6   : > { %v1978_v4 = vadd.f32 %v1977_v50, %v1929_v42  ;;  %2123 = vmatmul.bf16.gmra.mxu0 %v4758_v12  ;;  %v3957_v42 = vld [vmem:[%s5779_s4 + $0x32c] sm:$0xf] }
 0x1e7   : > { %2172 = vmatmul.bf16.gmra.mxu1 %v4760_v13 }
 0x1e8   : > { %v2023_v23 = vpop.f32.mrf.mxu2 }
 0x1e9   : > { %v2072_v24 = vpop.f32.mrf.mxu3  ;;  %v2024_v33 = vadd.f32 %v2023_v23, %v1975_v51  ;;  %v3496_v51 = vld [vmem:[%s5779_s4 + $0x238] sm:$0xf0] }
 0x1ea   : > { %v3499_v50 = vor.u32 %v3925_v37, %v3496_v51  ;;  %v3893_v51 = vld [vmem:[%s5779_s4 + $0x12c] sm:$0xf] }
 0x1eb   : > { %v2073_v63 = vadd.f32 %v2072_v24, %v2024_v33  ;;  %v1930_v54 = vpop.f32.mrf.mxu0  ;;  %v3243_v24 = vor.u32 %v3861_v52, %v3240_v44  ;;  %v3627_v33 = vor.u32 %v3957_v42, %v3624_v55 }
 0x1ec   : > { %v1979_v28 = vpop.f32.mrf.mxu1  ;;  %v1931_v30 = vadd.f32 %v1930_v54, %v5241_v29  ;;  %2395 = vmatpush.bf16.msra.mxu2 %v3499_v50 }
 0x1ed   : > { %v2516_v0 = vmax.f32 %v2073_v63, 0.0  ;;  %2221 = vmatmul.bf16.gmra.mxu2 %v4784_v47  ;;  %2297 = vmatpush.bf16.msra.mxu0 %v3243_v24 }
 0x1ee   : > { %2270 = vmatmul.bf16.gmra.mxu3 %v4786_v48  ;;  %v1980_v18 = vadd.f32 %v1979_v28, %v1931_v30 }
 0x1ef   : > { %v5421_v1 = vpack.c.bf16 %v2516_v0, %v2512_v9  ;;  %2444 = vmatpush.bf16.msra.mxu3 %v3627_v33  ;;  %v3368_v9 = vld [vmem:[%s5779_s4 + $0x138] sm:$0xf0] }
 0x1f0   : > { %v2026_v53 = vpop.f32.mrf.mxu2 }
 0x1f1   : > { %v2075_v23 = vpop.f32.mrf.mxu3  ;;  %v2027_v63 = vadd.f32 %v2026_v53, %v1978_v4  ;;  %v3371_v4 = vor.u32 %v3893_v51, %v3368_v9  ;;  %v3953_v51 = vld [vmem:[%s5779_s4 + $0x30c] sm:$0xf]  ;;  %v3608_v9 = vld [vmem:[%s5779_s4 + $0x318] sm:$0xf0] }
 0x1f3   : > { %v2076_v54 = vadd.f32 %v2075_v23, %v2027_v63  ;;  %v1933_v28 = vpop.f32.mrf.mxu0  ;;  %2346 = vmatpush.bf16.msra.mxu1 %v3371_v4 }
 0x1f4   : > { %v1982_v30 = vpop.f32.mrf.mxu1  ;;  %v1934_v37 = vadd.f32 %v1933_v28, %v5241_v29  ;;  %v3921_v28 = vld [vmem:[%s5779_s4 + $0x20c] sm:$0xf] }
 0x1f5   : > { %v2520_v24 = vmax.f32 %v2076_v54, 0.0  ;;  %v3224_v54 = vld [vmem:[%s5779_s4 + $0x18] sm:$0xf0] }
 0x1f6   : > { %v1983_v0 = vadd.f32 %v1982_v30, %v1934_v37  ;;  %2128 = vmatmul.bf16.gmra.mxu0 %v4826_v38  ;;  %v3857_v30 = vld [vmem:[%s5779_s4 + $0xc] sm:$0xf] }
 0x1f7   : > { %2177 = vmatmul.bf16.gmra.mxu1 %v4828_v39 }
 0x1f8   : > { %v2028_v52 = vpop.f32.mrf.mxu2 }
 0x1f9   : > { %v2077_v50 = vpop.f32.mrf.mxu3  ;;  %v2029_v44 = vadd.f32 %v2028_v52, %v1980_v18  ;;  %v3480_v18 = vld [vmem:[%s5779_s4 + $0x218] sm:$0xf0] }
 0x1fa   : > { %v3483_v37 = vor.u32 %v3921_v28, %v3480_v18 }
 0x1fb   : > { %v2078_v42 = vadd.f32 %v2077_v50, %v2029_v44  ;;  %v1935_v55 = vpop.f32.mrf.mxu0  ;;  %v3227_v44 = vor.u32 %v3857_v30, %v3224_v54 }
 0x1fc   : > { %v1984_v53 = vpop.f32.mrf.mxu1  ;;  %v1936_v23 = vadd.f32 %v1935_v55, %v5241_v29  ;;  %2396 = vmatpush.bf16.msra.mxu2 %v3483_v37 }
 0x1fd   : > { %v2524_v33 = vmax.f32 %v2078_v42, 0.0  ;;  %2226 = vmatmul.bf16.gmra.mxu2 %v4852_v7  ;;  %v3611_v42 = vor.u32 %v3953_v51, %v3608_v9  ;;  %2298 = vmatpush.bf16.msra.mxu0 %v3227_v44 }
 0x1fe   : > { %2275 = vmatmul.bf16.gmra.mxu3 %v4854_v8  ;;  %v1985_v63 = vadd.f32 %v1984_v53, %v1936_v23  ;;  %v3889_v53 = vld [vmem:[%s5779_s4 + $0x10c] sm:$0xf]  ;;  %v3352_v23 = vld [vmem:[%s5779_s4 + $0x118] sm:$0xf0] }
 0x1ff   : > { %v5453_v4 = vpack.c.bf16 %v2524_v33, %v2520_v24  ;;  %2445 = vmatpush.bf16.msra.mxu3 %v3611_v42  ;;  %v3355_v28 = vor.u32 %v3889_v53, %v3352_v23 }
 0x200   : > { %v2031_v52 = vpop.f32.mrf.mxu2 }
 0x201   : > { %v2080_v50 = vpop.f32.mrf.mxu3  ;;  %v2032_v55 = vadd.f32 %v2031_v52, %v1983_v0  ;;  %2347 = vmatpush.bf16.msra.mxu1 %v3355_v28 }
 0x203   : > { %v2081_v18 = vadd.f32 %v2080_v50, %v2032_v55  ;;  %v1938_v24 = vpop.f32.mrf.mxu0 }
 0x204   : > { %v1987_v33 = vpop.f32.mrf.mxu1  ;;  %v1939_v10 = vadd.f32 %v1938_v24, %v5241_v29 }
 0x205   : > { %v2528_v42 = vmax.f32 %v2081_v18, 0.0 }
 0x206   : > { %v1988_v30 = vadd.f32 %v1987_v33, %v1939_v10  ;;  %2133 = vmatmul.bf16.gmra.mxu0 %v4906_v11 }
 0x207   : > { %2182 = vmatmul.bf16.gmra.mxu1 %v4908_v16 }
 0x208   : > { %v2033_v0 = vpop.f32.mrf.mxu2 }
 0x209   : > { %v2082_v37 = vpop.f32.mrf.mxu3  ;;  %v2034_v54 = vadd.f32 %v2033_v0, %v1985_v63 }
 0x20b   : > { %v2083_v51 = vadd.f32 %v2082_v37, %v2034_v54  ;;  %v1940_v9 = vpop.f32.mrf.mxu0 }
 0x20c   : > { %v1989_v52 = vpop.f32.mrf.mxu1  ;;  %v1941_v44 = vadd.f32 %v1940_v9, %v5241_v29 }
 0x20d   : > { %v2532_v50 = vmax.f32 %v2083_v51, 0.0  ;;  %2231 = vmatmul.bf16.gmra.mxu2 %v4920_v45 }
 0x20e   : > { %2280 = vmatmul.bf16.gmra.mxu3 %v4922_v46  ;;  %v1990_v55 = vadd.f32 %v1989_v52, %v1941_v44 }
 0x20f   : > { %v5467_v10 = vpack.c.bf16 %v2532_v50, %v2528_v42 }
 0x210   : > { %v2036_v53 = vpop.f32.mrf.mxu2 }
 0x211   : > { %v2085_v23 = vpop.f32.mrf.mxu3  ;;  %v2037_v28 = vadd.f32 %v2036_v53, %v1988_v30 }
 0x213   : > { %v2086_v24 = vadd.f32 %v2085_v23, %v2037_v28  ;;  %v1943_v33 = vpop.f32.mrf.mxu0  ;;  %v4007_v23 = vld [vmem:[%s5781_s6 + $0xb8] sm:$0xff] }
 0x214   : > { %v1992_v63 = vpop.f32.mrf.mxu1  ;;  %v1944_v0 = vadd.f32 %v1943_v33, %v5241_v29  ;;  %2941 = vmatpush.bf16.msrb.mxu2 %v4007_v23 }
 0x215   : > { %v2536_v50 = vmax.f32 %v2086_v24, 0.0 }
 0x216   : > { %v1993_v37 = vadd.f32 %v1992_v63, %v1944_v0  ;;  %2138 = vmatmul.bf16.gmra.mxu0 %v4962_v40  ;;  %v5483_v63 = vld [vmem:[%s5780_s5] sm:$0xf] }
 0x217   : > { %2187 = vmatmul.bf16.gmra.mxu1 %v4964_v41 }
 0x218   : > { %v2038_v18 = vpop.f32.mrf.mxu2 }
 0x219   : > { %v2087_v54 = vpop.f32.mrf.mxu3  ;;  %v2039_v51 = vadd.f32 %v2038_v18, %v1990_v55 }
 0x21b   : > { %v2088_v9 = vadd.f32 %v2087_v54, %v2039_v51  ;;  %v1945_v52 = vpop.f32.mrf.mxu0 }
 0x21c   : > { %v1994_v44 = vpop.f32.mrf.mxu1  ;;  %v1946_v42 = vadd.f32 %v1945_v52, %v5241_v29  ;;  %v5486_v29 = vperm.slane %v5483_v63, 2  ;;  %v4015_v52 = vld [vmem:[%s5781_s6 + $0xf8] sm:$0xff] }
 0x21d   : > { %v2540_v30 = vmax.f32 %v2088_v9, 0.0  ;;  %2236 = vmatmul.bf16.gmra.mxu2 %v4974_v14  ;;  %v3991_v9 = vld [vmem:[%s5781_s6 + $0x38] sm:$0xff]  ;;  %2990 = vmatpush.bf16.msrb.mxu3 %v4015_v52 }
 0x21e   : > { %2285 = vmatmul.bf16.gmra.mxu3 %v4976_v15  ;;  %v1995_v53 = vadd.f32 %v1994_v44, %v1946_v42  ;;  %v3999_v44 = vld [vmem:[%s5781_s6 + $0x78] sm:$0xff]  ;;  %2843 = vmatpush.bf16.msrb.mxu0 %v3991_v9 }
 0x21f   : > { %v5478_v28 = vpack.c.bf16 %v2540_v30, %v2536_v50  ;;  %2892 = vmatpush.bf16.msrb.mxu1 %v3999_v44 }
 0x220   : > { %v2041_v33 = vpop.f32.mrf.mxu2 }
 0x221   : > { %5785 = vst [vmem:[#allocation3_spill] sm:$0xff] %v5478_v28  ;;  %v2090_v55 = vpop.f32.mrf.mxu3  ;;  %v2042_v24 = vadd.f32 %v2041_v33, %v1993_v37 }
 0x223   : > { %v2091_v0 = vadd.f32 %v2090_v55, %v2042_v24  ;;  %v2104_v18 = vpop.f32.mrf.mxu0 }
 0x224   : > { %v2153_v54 = vpop.f32.mrf.mxu1  ;;  %v2105_v51 = vadd.f32 %v2104_v18, %v5486_v29 }
 0x225   : > { %v2544_v18 = vmax.f32 %v2091_v0, 0.0 }
 0x226   : > { %v2154_v42 = vadd.f32 %v2153_v54, %v2105_v51  ;;  %2299 = vmatmul.bf16.vlgmr.msra.gmra.mxu0 %v4486_v60 }
 0x227   : > { %2348 = vmatmul.bf16.vlgmr.msra.gmra.mxu1 %v4488_v61  ;;  %v4006_v61 = vld [vmem:[%s5781_s6 + $0xb0] sm:$0xff] }
 0x228   : > { %v2043_v37 = vpop.f32.mrf.mxu2  ;;  %2942 = vmatpush.bf16.msrb.mxu2 %v4006_v61 }
 0x229   : > { %v2092_v50 = vpop.f32.mrf.mxu3  ;;  %v2044_v30 = vadd.f32 %v2043_v37, %v1995_v53 }
 0x22b   : > { %v2093_v23 = vadd.f32 %v2092_v50, %v2044_v30  ;;  %v2106_v33 = vpop.f32.mrf.mxu0 }
 0x22c   : > { %v2155_v55 = vpop.f32.mrf.mxu1  ;;  %v2107_v24 = vadd.f32 %v2106_v33, %v5486_v29 }
 0x22d   : > { %v2548_v28 = vmax.f32 %v2093_v23, 0.0  ;;  %2397 = vmatmul.bf16.vlgmr.msra.gmra.mxu2 %v4512_v21  ;;  %v3990_v21 = vld [vmem:[%s5781_s6 + $0x30] sm:$0xff] }
 0x22e   : > { %2446 = vmatmul.bf16.vlgmr.msra.gmra.mxu3 %v4514_v22  ;;  %v2156_v60 = vadd.f32 %v2155_v55, %v2107_v24  ;;  %v4014_v22 = vld [vmem:[%s5781_s6 + $0xf0] sm:$0xff]  ;;  %2844 = vmatpush.bf16.msrb.mxu0 %v3990_v21 }
 0x22f   : > { %v5506_v54 = vpack.c.bf16 %v2548_v28, %v2544_v18  ;;  %v3998_v28 = vld [vmem:[%s5781_s6 + $0x70] sm:$0xff]  ;;  %2991 = vmatpush.bf16.msrb.mxu3 %v4014_v22  ;;  %v3997_v22 = vld [vmem:[%s5781_s6 + $0x68] sm:$0xff] }
 0x230   : > { %v2202_v51 = vpop.f32.mrf.mxu2  ;;  %2893 = vmatpush.bf16.msrb.mxu1 %v3998_v28 }
 0x231   : > { %v2251_v53 = vpop.f32.mrf.mxu3  ;;  %v2203_v9 = vadd.f32 %v2202_v51, %v2154_v42 }
 0x233   : > { %v2252_v52 = vadd.f32 %v2251_v53, %v2203_v9  ;;  %v2109_v44 = vpop.f32.mrf.mxu0 }
 0x234   : > { %v2158_v37 = vpop.f32.mrf.mxu1  ;;  %v2110_v0 = vadd.f32 %v2109_v44, %v5486_v29  ;;  %2894 = vmatpush.bf16.msrb.mxu1 %v3997_v22 }
 0x235   : > { %v2489_v61 = vmax.f32 %v2252_v52, 0.0 }
 0x236   : > { %v2159_v50 = vadd.f32 %v2158_v37, %v2110_v0  ;;  %2304 = vmatmul.bf16.gmra.mxu0 %v4554_v56 }
 0x237   : > { %2353 = vmatmul.bf16.gmra.mxu1 %v4556_v57  ;;  %v4005_v57 = vld [vmem:[%s5781_s6 + $0xa8] sm:$0xff] }
 0x238   : > { %v2204_v42 = vpop.f32.mrf.mxu2  ;;  %2943 = vmatpush.bf16.msrb.mxu2 %v4005_v57 }
 0x239   : > { %v2253_v30 = vpop.f32.mrf.mxu3  ;;  %v2205_v23 = vadd.f32 %v2204_v42, %v2156_v60 }
 0x23b   : > { %v2254_v33 = vadd.f32 %v2253_v30, %v2205_v23  ;;  %v2111_v55 = vpop.f32.mrf.mxu0 }
 0x23c   : > { %v2160_v24 = vpop.f32.mrf.mxu1  ;;  %v2112_v18 = vadd.f32 %v2111_v55, %v5486_v29 }
 0x23d   : > { %v2493_v51 = vmax.f32 %v2254_v33, 0.0  ;;  %2402 = vmatmul.bf16.gmra.mxu2 %v4580_v19  ;;  %v3989_v19 = vld [vmem:[%s5781_s6 + $0x28] sm:$0xff] }
 0x23e   : > { %2451 = vmatmul.bf16.gmra.mxu3 %v4582_v20  ;;  %v2161_v56 = vadd.f32 %v2160_v24, %v2112_v18  ;;  %v4013_v20 = vld [vmem:[%s5781_s6 + $0xe8] sm:$0xff]  ;;  %2845 = vmatpush.bf16.msrb.mxu0 %v3989_v19 }
 0x23f   : > { %v5526_v53 = vpack.c.bf16 %v2493_v51, %v2489_v61  ;;  %2992 = vmatpush.bf16.msrb.mxu3 %v4013_v20 }
 0x240   : > { %v2207_v9 = vpop.f32.mrf.mxu2 }
 0x241   : > { %v2256_v60 = vpop.f32.mrf.mxu3  ;;  %v2208_v44 = vadd.f32 %v2207_v9, %v2159_v50 }
 0x243   : > { %v2257_v37 = vadd.f32 %v2256_v60, %v2208_v44  ;;  %v2114_v0 = vpop.f32.mrf.mxu0 }
 0x244   : > { %v2163_v21 = vpop.f32.mrf.mxu1  ;;  %v2115_v52 = vadd.f32 %v2114_v0, %v5486_v29 }
 0x245   : > { %v2497_v18 = vmax.f32 %v2257_v37, 0.0 }
 0x246   : > { %v2164_v28 = vadd.f32 %v2163_v21, %v2115_v52  ;;  %2309 = vmatmul.bf16.gmra.mxu0 %v4622_v58  ;;  %v3996_v21 = vld [vmem:[%s5781_s6 + $0x60] sm:$0xff] }
 0x247   : > { %2358 = vmatmul.bf16.gmra.mxu1 %v4624_v59  ;;  %v4004_v59 = vld [vmem:[%s5781_s6 + $0xa0] sm:$0xff] }
 0x248   : > { %v2209_v50 = vpop.f32.mrf.mxu2  ;;  %2944 = vmatpush.bf16.msrb.mxu2 %v4004_v59  ;;  %2895 = vmatpush.bf16.msrb.mxu1 %v3996_v21 }
 0x249   : > { %v2258_v42 = vpop.f32.mrf.mxu3  ;;  %v2210_v30 = vadd.f32 %v2209_v50, %v2161_v56 }
 0x24b   : > { %v2259_v23 = vadd.f32 %v2258_v42, %v2210_v30  ;;  %v2116_v33 = vpop.f32.mrf.mxu0 }
 0x24c   : > { %v2165_v55 = vpop.f32.mrf.mxu1  ;;  %v2117_v24 = vadd.f32 %v2116_v33, %v5486_v29 }
 0x24d   : > { %v2501_v61 = vmax.f32 %v2259_v23, 0.0  ;;  %2407 = vmatmul.bf16.gmra.mxu2 %v4648_v25  ;;  %v3988_v25 = vld [vmem:[%s5781_s6 + $0x20] sm:$0xff] }
 0x24e   : > { %2456 = vmatmul.bf16.gmra.mxu3 %v4650_v26  ;;  %v2166_v58 = vadd.f32 %v2165_v55, %v2117_v24  ;;  %v4012_v26 = vld [vmem:[%s5781_s6 + $0xe0] sm:$0xff]  ;;  %2846 = vmatpush.bf16.msrb.mxu0 %v3988_v25 }
 0x24f   : > { %v5546_v51 = vpack.c.bf16 %v2501_v61, %v2497_v18  ;;  %2993 = vmatpush.bf16.msrb.mxu3 %v4012_v26 }
 0x250   : > { %v2212_v57 = vpop.f32.mrf.mxu2 }
 0x251   : > { %v2261_v56 = vpop.f32.mrf.mxu3  ;;  %v2213_v9 = vadd.f32 %v2212_v57, %v2164_v28 }
 0x253   : > { %v2262_v60 = vadd.f32 %v2261_v56, %v2213_v9  ;;  %v2119_v44 = vpop.f32.mrf.mxu0  ;;  %v3995_v9 = vld [vmem:[%s5781_s6 + $0x58] sm:$0xff] }
 0x254   : > { %v2168_v0 = vpop.f32.mrf.mxu1  ;;  %v2120_v37 = vadd.f32 %v2119_v44, %v5486_v29  ;;  %2896 = vmatpush.bf16.msrb.mxu1 %v3995_v9 }
 0x255   : > { %v2505_v23 = vmax.f32 %v2262_v60, 0.0 }
 0x256   : > { %v2169_v52 = vadd.f32 %v2168_v0, %v2120_v37  ;;  %2314 = vmatmul.bf16.gmra.mxu0 %v4690_v2 }
 0x257   : > { %2363 = vmatmul.bf16.gmra.mxu1 %v4692_v3  ;;  %v4003_v3 = vld [vmem:[%s5781_s6 + $0x98] sm:$0xff] }
 0x258   : > { %v2214_v19 = vpop.f32.mrf.mxu2  ;;  %2945 = vmatpush.bf16.msrb.mxu2 %v4003_v3  ;;  %v3994_v3 = vld [vmem:[%s5781_s6 + $0x50] sm:$0xff] }
 0x259   : > { %v2263_v20 = vpop.f32.mrf.mxu3  ;;  %v2215_v22 = vadd.f32 %v2214_v19, %v2166_v58  ;;  %2897 = vmatpush.bf16.msrb.mxu1 %v3994_v3 }
 0x25b   : > { %v2264_v28 = vadd.f32 %v2263_v20, %v2215_v22  ;;  %v2121_v50 = vpop.f32.mrf.mxu0 }
 0x25c   : > { %v2170_v42 = vpop.f32.mrf.mxu1  ;;  %v2122_v30 = vadd.f32 %v2121_v50, %v5486_v29 }
 0x25d   : > { %v2509_v33 = vmax.f32 %v2264_v28, 0.0  ;;  %2412 = vmatmul.bf16.gmra.mxu2 %v4716_v35  ;;  %v3987_v35 = vld [vmem:[%s5781_s6 + $0x18] sm:$0xff] }
 0x25e   : > { %2461 = vmatmul.bf16.gmra.mxu3 %v4718_v36  ;;  %v2171_v2 = vadd.f32 %v2170_v42, %v2122_v30  ;;  %v4011_v36 = vld [vmem:[%s5781_s6 + $0xd8] sm:$0xff]  ;;  %2847 = vmatpush.bf16.msrb.mxu0 %v3987_v35 }
 0x25f   : > { %v5566_v55 = vpack.c.bf16 %v2509_v33, %v2505_v23  ;;  %2994 = vmatpush.bf16.msrb.mxu3 %v4011_v36 }
 0x260   : > { %v2217_v24 = vpop.f32.mrf.mxu2 }
 0x261   : > { %v2266_v18 = vpop.f32.mrf.mxu3  ;;  %v2218_v61 = vadd.f32 %v2217_v24, %v2169_v52 }
 0x263   : > { %v2267_v58 = vadd.f32 %v2266_v18, %v2218_v61  ;;  %v2124_v59 = vpop.f32.mrf.mxu0 }
 0x264   : > { %v2173_v57 = vpop.f32.mrf.mxu1  ;;  %v2125_v56 = vadd.f32 %v2124_v59, %v5486_v29 }
 0x265   : > { %v2513_v19 = vmax.f32 %v2267_v58, 0.0 }
 0x266   : > { %v2174_v60 = vadd.f32 %v2173_v57, %v2125_v56  ;;  %2319 = vmatmul.bf16.gmra.mxu0 %v4758_v12 }
 0x267   : > { %2368 = vmatmul.bf16.gmra.mxu1 %v4760_v13  ;;  %v4002_v13 = vld [vmem:[%s5781_s6 + $0x90] sm:$0xff] }
 0x268   : > { %v2219_v44 = vpop.f32.mrf.mxu2  ;;  %2946 = vmatpush.bf16.msrb.mxu2 %v4002_v13 }
 0x269   : > { %v2268_v0 = vpop.f32.mrf.mxu3  ;;  %v2220_v37 = vadd.f32 %v2219_v44, %v2171_v2  ;;  %v3993_v44 = vld [vmem:[%s5781_s6 + $0x48] sm:$0xff] }
 0x26a   : > { %2898 = vmatpush.bf16.msrb.mxu1 %v3993_v44 }
 0x26b   : > { %v2269_v25 = vadd.f32 %v2268_v0, %v2220_v37  ;;  %v2126_v26 = vpop.f32.mrf.mxu0 }
 0x26c   : > { %v2175_v21 = vpop.f32.mrf.mxu1  ;;  %v2127_v52 = vadd.f32 %v2126_v26, %v5486_v29  ;;  %v3992_v26 = vld [vmem:[%s5781_s6 + $0x40] sm:$0xff] }
 0x26d   : > { %v2517_v20 = vmax.f32 %v2269_v25, 0.0  ;;  %2417 = vmatmul.bf16.gmra.mxu2 %v4784_v47  ;;  %v3986_v47 = vld [vmem:[%s5781_s6 + $0x10] sm:$0xff] }
 0x26e   : > { %2466 = vmatmul.bf16.gmra.mxu3 %v4786_v48  ;;  %v2176_v12 = vadd.f32 %v2175_v21, %v2127_v52  ;;  %v4010_v48 = vld [vmem:[%s5781_s6 + $0xd0] sm:$0xff]  ;;  %2848 = vmatpush.bf16.msrb.mxu0 %v3986_v47 }
 0x26f   : > { %v5586_v22 = vpack.c.bf16 %v2517_v20, %v2513_v19  ;;  %2995 = vmatpush.bf16.msrb.mxu3 %v4010_v48  ;;  %2899 = vmatpush.bf16.msrb.mxu1 %v3992_v26 }
 0x270   : > { %v2222_v28 = vpop.f32.mrf.mxu2 }
 0x271   : > { %v2271_v50 = vpop.f32.mrf.mxu3  ;;  %v2223_v42 = vadd.f32 %v2222_v28, %v2174_v60  ;;  %v3985_v60 = vld [vmem:[%s5781_s6 + $0x8] sm:$0xff] }
 0x272   : > { %2849 = vmatpush.bf16.msrb.mxu0 %v3985_v60 }
 0x273   : > { %v2272_v30 = vadd.f32 %v2271_v50, %v2223_v42  ;;  %v2129_v23 = vpop.f32.mrf.mxu0  ;;  %v4000_v42 = vld [vmem:[%s5781_s6 + $0x80] sm:$0xff] }
 0x274   : > { %v2178_v33 = vpop.f32.mrf.mxu1  ;;  %v2130_v2 = vadd.f32 %v2129_v23, %v5486_v29 }
 0x275   : > { %v2521_v36 = vmax.f32 %v2272_v30, 0.0 }
 0x276   : > { %v2179_v24 = vadd.f32 %v2178_v33, %v2130_v2  ;;  %2324 = vmatmul.bf16.gmra.mxu0 %v4826_v38 }
 0x277   : > { %2373 = vmatmul.bf16.gmra.mxu1 %v4828_v39  ;;  %v4001_v39 = vld [vmem:[%s5781_s6 + $0x88] sm:$0xff] }
 0x278   : > { %v2224_v18 = vpop.f32.mrf.mxu2  ;;  %2947 = vmatpush.bf16.msrb.mxu2 %v4001_v39 }
 0x279   : > { %v2273_v61 = vpop.f32.mrf.mxu3  ;;  %v2225_v58 = vadd.f32 %v2224_v18, %v2176_v12  ;;  %v4009_v12 = vld [vmem:[%s5781_s6 + $0xc8] sm:$0xff] }
 0x27a   : > { %2996 = vmatpush.bf16.msrb.mxu3 %v4009_v12 }
 0x27b   : > { %v2274_v59 = vadd.f32 %v2273_v61, %v2225_v58  ;;  %v2131_v57 = vpop.f32.mrf.mxu0 }
 0x27c   : > { %v2180_v56 = vpop.f32.mrf.mxu1  ;;  %v2132_v35 = vadd.f32 %v2131_v57, %v5486_v29  ;;  %2948 = vmatpush.bf16.msrb.mxu2 %v4000_v42 }
 0x27d   : > { %v2525_v9 = vmax.f32 %v2274_v59, 0.0  ;;  %2422 = vmatmul.bf16.gmra.mxu2 %v4852_v7 }
 0x27e   : > { %2471 = vmatmul.bf16.gmra.mxu3 %v4854_v8  ;;  %v2181_v38 = vadd.f32 %v2180_v56, %v2132_v35  ;;  %v3984_v8 = vld [vmem:[%s5781_s6] sm:$0xff] }
 0x27f   : > { %v5612_v0 = vpack.c.bf16 %v2525_v9, %v2521_v36  ;;  %2850 = vmatpush.bf16.msrb.mxu0 %v3984_v8  ;;  %v4008_v35 = vld [vmem:[%s5781_s6 + $0xc0] sm:$0xff] }
 0x280   : > { %v2227_v37 = vpop.f32.mrf.mxu2  ;;  %2997 = vmatpush.bf16.msrb.mxu3 %v4008_v35 }
 0x281   : > { %v2276_v25 = vpop.f32.mrf.mxu3  ;;  %v2228_v7 = vadd.f32 %v2227_v37, %v2179_v24 }
 0x283   : > { %v2277_v21 = vadd.f32 %v2276_v25, %v2228_v7  ;;  %v2134_v52 = vpop.f32.mrf.mxu0 }
 0x284   : > { %v2183_v19 = vpop.f32.mrf.mxu1  ;;  %v2135_v20 = vadd.f32 %v2134_v52, %v5486_v29 }
 0x285   : > { %v2529_v48 = vmax.f32 %v2277_v21, 0.0 }
 0x286   : > { %v2184_v13 = vadd.f32 %v2183_v19, %v2135_v20  ;;  %2329 = vmatmul.bf16.gmra.mxu0 %v4906_v11 }
 0x287   : > { %2378 = vmatmul.bf16.gmra.mxu1 %v4908_v16 }
 0x288   : > { %v2229_v28 = vpop.f32.mrf.mxu2 }
 0x289   : > { %v2278_v50 = vpop.f32.mrf.mxu3  ;;  %v2230_v30 = vadd.f32 %v2229_v28, %v2181_v38 }
 0x28b   : > { %v2279_v23 = vadd.f32 %v2278_v50, %v2230_v30  ;;  %v2136_v33 = vpop.f32.mrf.mxu0 }
 0x28c   : > { %v2185_v2 = vpop.f32.mrf.mxu1  ;;  %v2137_v47 = vadd.f32 %v2136_v33, %v5486_v29 }
 0x28d   : > { %v2533_v3 = vmax.f32 %v2279_v23, 0.0  ;;  %2427 = vmatmul.bf16.gmra.mxu2 %v4920_v45 }
 0x28e   : > { %2476 = vmatmul.bf16.gmra.mxu3 %v4922_v46  ;;  %v2186_v11 = vadd.f32 %v2185_v2, %v2137_v47 }
 0x28f   : > { %v5632_v16 = vpack.c.bf16 %v2533_v3, %v2529_v48 }
 0x290   : > { %v2232_v24 = vpop.f32.mrf.mxu2 }
 0x291   : > { %v2281_v18 = vpop.f32.mrf.mxu3  ;;  %v2233_v61 = vadd.f32 %v2232_v24, %v2184_v13 }
 0x293   : > { %v2282_v58 = vadd.f32 %v2281_v18, %v2233_v61  ;;  %v2139_v59 = vpop.f32.mrf.mxu0 }
 0x294   : > { %v2188_v57 = vpop.f32.mrf.mxu1  ;;  %v2140_v56 = vadd.f32 %v2139_v59, %v5486_v29 }
 0x295   : > { %v2537_v37 = vmax.f32 %v2282_v58, 0.0 }
 0x296   : > { %v2189_v36 = vadd.f32 %v2188_v57, %v2140_v56  ;;  %2334 = vmatmul.bf16.gmra.mxu0 %v4962_v40 }
 0x297   : > { %2383 = vmatmul.bf16.gmra.mxu1 %v4964_v41 }
 0x298   : > { %v2234_v45 = vpop.f32.mrf.mxu2 }
 0x299   : > { %v2283_v46 = vpop.f32.mrf.mxu3  ;;  %v2235_v9 = vadd.f32 %v2234_v45, %v2186_v11 }
 0x29b   : > { %v2284_v38 = vadd.f32 %v2283_v46, %v2235_v9  ;;  %v2141_v39 = vpop.f32.mrf.mxu0 }
 0x29c   : > { %v2190_v60 = vpop.f32.mrf.mxu1  ;;  %v2142_v44 = vadd.f32 %v2141_v39, %v5486_v29 }
 0x29d   : > { %v2541_v25 = vmax.f32 %v2284_v38, 0.0  ;;  %2432 = vmatmul.bf16.gmra.mxu2 %v4974_v14  ;;  %v5648_v14 = vperm.slane %v5483_v63, 3 }
 0x29e   : > { %2481 = vmatmul.bf16.gmra.mxu3 %v4976_v15  ;;  %v2191_v7 = vadd.f32 %v2190_v60, %v2142_v44 }
 0x29f   : > { %v5643_v8 = vpack.c.bf16 %v2541_v25, %v2537_v37 }
 0x2a0   : > { %v2237_v40 = vpop.f32.mrf.mxu2 }
 0x2a1   : > { %v2286_v41 = vpop.f32.mrf.mxu3  ;;  %v2238_v26 = vadd.f32 %v2237_v40, %v2189_v36 }
 0x2a3   : > { %v2287_v21 = vadd.f32 %v2286_v41, %v2238_v26  ;;  %v2300_v52 = vpop.f32.mrf.mxu0 }
 0x2a4   : > { %v2349_v19 = vpop.f32.mrf.mxu1  ;;  %v2301_v30 = vadd.f32 %v2300_v52, %v5648_v14 }
 0x2a5   : > { %v2545_v50 = vmax.f32 %v2287_v21, 0.0 }
 0x2a6   : > { %2851 = vmatmul.bf16.vlgmr.msrb.gmra.mxu0 %v5057_v31 }
 0x2a7   : > { %2900 = vmatmul.bf16.vlgmr.msrb.gmra.mxu1 %v5316_v6  ;;  %v2350_v6 = vadd.f32 %v2349_v19, %v2301_v30 }
 0x2a8   : > { %v2239_v29 = vpop.f32.mrf.mxu2 }
 0x2a9   : > { %v2288_v20 = vpop.f32.mrf.mxu3  ;;  %v2240_v12 = vadd.f32 %v2239_v29, %v2191_v7 }
 0x2ab   : > { %v2289_v15 = vadd.f32 %v2288_v20, %v2240_v12  ;;  %v2302_v13 = vpop.f32.mrf.mxu0 }
 0x2ac   : > { %v2351_v28 = vpop.f32.mrf.mxu1  ;;  %v2303_v2 = vadd.f32 %v2302_v13, %v5648_v14 }
 0x2ad   : > { %v2549_v42 = vmax.f32 %v2289_v15, 0.0  ;;  %2949 = vmatmul.bf16.vlgmr.msrb.gmra.mxu2 %v5526_v53 }
 0x2ae   : > { %v2352_v3 = vadd.f32 %v2351_v28, %v2303_v2 }
 0x2af   : > { %v5652_v23 = vpack.c.bf16 %v2549_v42, %v2545_v50 }
 0x2b0   : > { %v2398_v31 = vpop.f32.mrf.mxu2 }
 0x2b1   : > { %v2447_v33 = vpop.f32.mrf.mxu3  ;;  %v2399_v63 = vadd.f32 %v2398_v31, %v2350_v6 }
 0x2b3   : > { %v2305_v47 = vpop.f32.mrf.mxu0  ;;  %v2448_v53 = vadd.f32 %v2447_v33, %v2399_v63 }
 0x2b4   : > { %v2354_v48 = vpop.f32.mrf.mxu1  ;;  %v2306_v35 = vadd.f32 %v2305_v47, %v5648_v14 }
 0x2b5   : > { %v2490_v57 = vmax.f32 %v2448_v53, 0.0 }
 0x2b6   : > { %2856 = vmatmul.bf16.gmra.mxu0 %v5098_v62  ;;  %v2355_v62 = vadd.f32 %v2354_v48, %v2306_v35 }
 0x2b7   : > { %2905 = vmatmul.bf16.gmra.mxu1 %v5357_v32 }
 0x2b8   : > { %v2400_v11 = vpop.f32.mrf.mxu2 }
 0x2b9   : > { %v2449_v24 = vpop.f32.mrf.mxu3  ;;  %v2401_v18 = vadd.f32 %v2400_v11, %v2352_v3 }
 0x2bb   : > { %v2450_v61 = vadd.f32 %v2449_v24, %v2401_v18  ;;  %v2307_v58 = vpop.f32.mrf.mxu0 }
 0x2bc   : > { %v2356_v59 = vpop.f32.mrf.mxu1  ;;  %v2308_v32 = vadd.f32 %v2307_v58, %v5648_v14 }
 0x2bd   : > { %v2494_v56 = vmax.f32 %v2450_v61, 0.0  ;;  %2954 = vmatmul.bf16.gmra.mxu2 %v5546_v51 }
 0x2be   : > { %v2357_v60 = vadd.f32 %v2356_v59, %v2308_v32 }
 0x2bf   : > { %v2554_v36 = vpack.c.bf16 %v2494_v56, %v2490_v57 }
 0x2c0   : > { %v2403_v45 = vpop.f32.mrf.mxu2 }
 0x2c1   : > { %v2452_v46 = vpop.f32.mrf.mxu3  ;;  %2998 = vmatmul.bf16.vlgmr.msrb.gmra.mxu3 %v2554_v36  ;;  %v2404_v39 = vadd.f32 %v2403_v45, %v2355_v62 }
 0x2c3   : > { %v2310_v9 = vpop.f32.mrf.mxu0  ;;  %v2453_v51 = vadd.f32 %v2452_v46, %v2404_v39 }
 0x2c4   : > { %v2359_v38 = vpop.f32.mrf.mxu1  ;;  %v2311_v52 = vadd.f32 %v2310_v9, %v5648_v14 }
 0x2c5   : > { %v2498_v26 = vmax.f32 %v2453_v51, 0.0 }
 0x2c6   : > { %2861 = vmatmul.bf16.gmra.mxu0 %v5130_v5  ;;  %v2360_v5 = vadd.f32 %v2359_v38, %v2311_v52 }
 0x2c7   : > { %2910 = vmatmul.bf16.gmra.mxu1 %v5389_v34 }
 0x2c8   : > { %v2405_v44 = vpop.f32.mrf.mxu2 }
 0x2c9   : > { %v2454_v37 = vpop.f32.mrf.mxu3  ;;  %v2406_v25 = vadd.f32 %v2405_v44, %v2357_v60 }
 0x2cb   : > { %v2455_v7 = vadd.f32 %v2454_v37, %v2406_v25  ;;  %v2312_v40 = vpop.f32.mrf.mxu0 }
 0x2cc   : > { %v2361_v41 = vpop.f32.mrf.mxu1  ;;  %v2313_v34 = vadd.f32 %v2312_v40, %v5648_v14 }
 0x2cd   : > { %v2502_v21 = vmax.f32 %v2455_v7, 0.0  ;;  %2959 = vmatmul.bf16.gmra.mxu2 %v5566_v55 }
 0x2ce   : > { %v2362_v28 = vadd.f32 %v2361_v41, %v2313_v34 }
 0x2cf   : > { %v2558_v19 = vpack.c.bf16 %v2502_v21, %v2498_v26 }
 0x2d0   : > { %v2408_v29 = vpop.f32.mrf.mxu2 }
 0x2d1   : > { %v2457_v20 = vpop.f32.mrf.mxu3  ;;  %3003 = vmatmul.bf16.gmra.mxu3 %v2558_v19  ;;  %v2409_v13 = vadd.f32 %v2408_v29, %v2360_v5 }
 0x2d3   : > { %v2315_v12 = vpop.f32.mrf.mxu0  ;;  %v2458_v55 = vadd.f32 %v2457_v20, %v2409_v13  ;;  %v5786_v13 = vld [vmem:[#allocation3_spill] sm:$0xff] }
 0x2d4   : > { %v2364_v15 = vpop.f32.mrf.mxu1  ;;  %v2316_v48 = vadd.f32 %v2315_v12, %v5648_v14 }
 0x2d5   : > { %v2506_v2 = vmax.f32 %v2458_v55, 0.0 }
 0x2d6   : > { %2866 = vmatmul.bf16.gmra.mxu0 %v5162_v17  ;;  %v2365_v17 = vadd.f32 %v2364_v15, %v2316_v48 }
 0x2d7   : > { %2915 = vmatmul.bf16.gmra.mxu1 %v5421_v1 }
 0x2d8   : > { %v2410_v50 = vpop.f32.mrf.mxu2 }
 0x2d9   : > { %v2459_v42 = vpop.f32.mrf.mxu3  ;;  %v2411_v30 = vadd.f32 %v2410_v50, %v2362_v28 }
 0x2db   : > { %v2460_v31 = vadd.f32 %v2459_v42, %v2411_v30  ;;  %v2317_v33 = vpop.f32.mrf.mxu0 }
 0x2dc   : > { %v2366_v6 = vpop.f32.mrf.mxu1  ;;  %v2318_v1 = vadd.f32 %v2317_v33, %v5648_v14 }
 0x2dd   : > { %v2510_v47 = vmax.f32 %v2460_v31, 0.0  ;;  %2964 = vmatmul.bf16.gmra.mxu2 %v5586_v22 }
 0x2de   : > { %v2367_v61 = vadd.f32 %v2366_v6, %v2318_v1 }
 0x2df   : > { %v2562_v63 = vpack.c.bf16 %v2510_v47, %v2506_v2 }
 0x2e0   : > { %v2413_v3 = vpop.f32.mrf.mxu2 }
 0x2e1   : > { %v2462_v11 = vpop.f32.mrf.mxu3  ;;  %3008 = vmatmul.bf16.gmra.mxu3 %v2562_v63  ;;  %v2414_v18 = vadd.f32 %v2413_v3, %v2365_v17 }
 0x2e3   : > { %v2320_v24 = vpop.f32.mrf.mxu0  ;;  %v2463_v22 = vadd.f32 %v2462_v11, %v2414_v18 }
 0x2e4   : > { %v2369_v53 = vpop.f32.mrf.mxu1  ;;  %v2321_v62 = vadd.f32 %v2320_v24, %v5648_v14 }
 0x2e5   : > { %v2514_v45 = vmax.f32 %v2463_v22, 0.0 }
 0x2e6   : > { %2871 = vmatmul.bf16.gmra.mxu0 %v5194_v27  ;;  %v2370_v27 = vadd.f32 %v2369_v53, %v2321_v62  ;;  %v5787_v53 = vld [vmem:[#allocation2_spill] sm:$0xff] }
 0x2e7   : > { %2920 = vmatmul.bf16.gmra.mxu1 %v5453_v4 }
 0x2e8   : > { %v2415_v58 = vpop.f32.mrf.mxu2 }
 0x2e9   : > { %v2464_v59 = vpop.f32.mrf.mxu3  ;;  %v2416_v57 = vadd.f32 %v2415_v58, %v2367_v61 }
 0x2eb   : > { %v2465_v56 = vadd.f32 %v2464_v59, %v2416_v57  ;;  %v2322_v35 = vpop.f32.mrf.mxu0 }
 0x2ec   : > { %v2371_v36 = vpop.f32.mrf.mxu1  ;;  %v2323_v4 = vadd.f32 %v2322_v35, %v5648_v14 }
 0x2ed   : > { %v2518_v46 = vmax.f32 %v2465_v56, 0.0  ;;  %2969 = vmatmul.bf16.gmra.mxu2 %v5612_v0 }
 0x2ee   : > { %v2372_v37 = vadd.f32 %v2371_v36, %v2323_v4 }
 0x2ef   : > { %v2566_v32 = vpack.c.bf16 %v2518_v46, %v2514_v45 }
 0x2f0   : > { %v2418_v9 = vpop.f32.mrf.mxu2 }
 0x2f1   : > { %v2467_v38 = vpop.f32.mrf.mxu3  ;;  %3013 = vmatmul.bf16.gmra.mxu3 %v2566_v32  ;;  %v2419_v44 = vadd.f32 %v2418_v9, %v2370_v27 }
 0x2f3   : > { %v2325_v39 = vpop.f32.mrf.mxu0  ;;  %v2468_v0 = vadd.f32 %v2467_v38, %v2419_v44 }
 0x2f4   : > { %v2374_v60 = vpop.f32.mrf.mxu1  ;;  %v2326_v19 = vadd.f32 %v2325_v39, %v5648_v14 }
 0x2f5   : > { %v2522_v21 = vmax.f32 %v2468_v0, 0.0 }
 0x2f6   : > { %2876 = vmatmul.bf16.gmra.mxu0 %v5226_v43  ;;  %v2375_v43 = vadd.f32 %v2374_v60, %v2326_v19  ;;  %v5693_v19 = vld [vmem:[%s5782_s7] ss:$0 sm:$0xff] }
 0x2f7   : > { %2925 = vmatmul.bf16.gmra.mxu1 %v5467_v10 }
 0x2f8   : > { %v2420_v51 = vpop.f32.mrf.mxu2 }
 0x2f9   : > { %v2469_v25 = vpop.f32.mrf.mxu3  ;;  %v2421_v7 = vadd.f32 %v2420_v51, %v2372_v37 }
 0x2fb   : > { %v2470_v40 = vadd.f32 %v2469_v25, %v2421_v7  ;;  %v2327_v41 = vpop.f32.mrf.mxu0 }
 0x2fc   : > { %v2376_v26 = vpop.f32.mrf.mxu1  ;;  %v2328_v10 = vadd.f32 %v2327_v41, %v5648_v14 }
 0x2fd   : > { %v2526_v52 = vmax.f32 %v2470_v40, 0.0  ;;  %2974 = vmatmul.bf16.gmra.mxu2 %v5632_v16 }
 0x2fe   : > { %v2377_v28 = vadd.f32 %v2376_v26, %v2328_v10 }
 0x2ff   : > { %v2570_v29 = vpack.c.bf16 %v2526_v52, %v2522_v21 }
 0x300   : > { %v2423_v20 = vpop.f32.mrf.mxu2 }
 0x301   : > { %v2472_v5 = vpop.f32.mrf.mxu3  ;;  %3018 = vmatmul.bf16.gmra.mxu3 %v2570_v29  ;;  %v2424_v15 = vadd.f32 %v2423_v20, %v2375_v43 }
 0x303   : > { %v2330_v34 = vpop.f32.mrf.mxu0  ;;  %v2473_v16 = vadd.f32 %v2472_v5, %v2424_v15 }
 0x304   : > { %v2379_v12 = vpop.f32.mrf.mxu1  ;;  %v2331_v47 = vadd.f32 %v2330_v34, %v5648_v14 }
 0x305   : > { %v2530_v6 = vmax.f32 %v2473_v16, 0.0 }
 0x306   : > { %2881 = vmatmul.bf16.gmra.mxu0 %v5252_v49  ;;  %v2380_v49 = vadd.f32 %v2379_v12, %v2331_v47 }
 0x307   : > { %2930 = vmatmul.bf16.gmra.mxu1 %v5786_v13 }
 0x308   : > { %v2425_v50 = vpop.f32.mrf.mxu2 }
 0x309   : > { %v2474_v42 = vpop.f32.mrf.mxu3  ;;  %v2426_v55 = vadd.f32 %v2425_v50, %v2377_v28  ;;  %v4043_v50 = vld [vmem:[%s4158_s14] sm:$0xff] }
 0x30b   : > { %v2475_v30 = vadd.f32 %v2474_v42, %v2426_v55  ;;  %v2332_v31 = vpop.f32.mrf.mxu0 }
 0x30c   : > { %v2381_v33 = vpop.f32.mrf.mxu1  ;;  %v2333_v11 = vadd.f32 %v2332_v31, %v5648_v14 }
 0x30d   : > { %v2534_v2 = vmax.f32 %v2475_v30, 0.0  ;;  %2979 = vmatmul.bf16.gmra.mxu2 %v5643_v8 }
 0x30e   : > { %v2382_v18 = vadd.f32 %v2381_v33, %v2333_v11 }
 0x30f   : > { %v2574_v48 = vpack.c.bf16 %v2534_v2, %v2530_v6 }
 0x310   : > { %v2428_v63 = vpop.f32.mrf.mxu2 }
 0x311   : > { %v2477_v3 = vpop.f32.mrf.mxu3  ;;  %3023 = vmatmul.bf16.gmra.mxu3 %v2574_v48  ;;  %v2429_v24 = vadd.f32 %v2428_v63, %v2380_v49  ;;  %v4044_v48 = vld [vmem:[%s4158_s14 + $0x8] sm:$0xff] }
 0x313   : > { %v2335_v17 = vpop.f32.mrf.mxu0  ;;  %v2478_v8 = vadd.f32 %v2477_v3, %v2429_v24 }
 0x314   : > { %v2384_v1 = vpop.f32.mrf.mxu1  ;;  %v2336_v45 = vadd.f32 %v2335_v17, %v5648_v14 }
 0x315   : > { %v2538_v35 = vmax.f32 %v2478_v8, 0.0 }
 0x316   : > { %2886 = vmatmul.bf16.gmra.mxu0 %v5787_v53  ;;  %v2385_v9 = vadd.f32 %v2384_v1, %v2336_v45  ;;  %v4046_v45 = vld [vmem:[%s4158_s14 + $0x18] sm:$0xff] }
 0x317   : > { %2935 = vmatmul.bf16.gmra.mxu1 %v5506_v54 }
 0x318   : > { %v2430_v61 = vpop.f32.mrf.mxu2 }
 0x319   : > { %v2479_v58 = vpop.f32.mrf.mxu3  ;;  %v2431_v59 = vadd.f32 %v2430_v61, %v2382_v18  ;;  %v4045_v18 = vld [vmem:[%s4158_s14 + $0x10] sm:$0xff] }
 0x31b   : > { %v2480_v22 = vadd.f32 %v2479_v58, %v2431_v59  ;;  %v2337_v57 = vpop.f32.mrf.mxu0 }
 0x31c   : > { %v2386_v56 = vpop.f32.mrf.mxu1  ;;  %v2338_v54 = vadd.f32 %v2337_v57, %v5648_v14 }
 0x31d   : > { %v2542_v36 = vmax.f32 %v2480_v22, 0.0  ;;  %2984 = vmatmul.bf16.gmra.mxu2 %v5652_v23 }
 0x31e   : > { %v2387_v39 = vadd.f32 %v2386_v56, %v2338_v54 }
 0x31f   : > { %v2578_v46 = vpack.c.bf16 %v2542_v36, %v2538_v35 }
 0x320   : > { %v2433_v62 = vpop.f32.mrf.mxu2 }
 0x321   : > { %v2482_v32 = vpop.f32.mrf.mxu3  ;;  %3028 = vmatmul.bf16.gmra.mxu3 %v2578_v46  ;;  %v2434_v4 = vadd.f32 %v2433_v62, %v2385_v9 }
 0x323   : > { %v2852_v38 = vpop.f32.mrf.mxu0  ;;  %v2483_v44 = vadd.f32 %v2482_v32, %v2434_v4 }
 0x324   : > { %v2901_v27 = vpop.f32.mrf.mxu1  ;;  %v2853_v20 = vadd.f32 %v5693_v19, %v2852_v38 }
 0x325   : > { %v2546_v7 = vmax.f32 %v2483_v44, 0.0 }
 0x326   : > { %v2902_v10 = vadd.f32 %v2901_v27, %v2853_v20 }
 0x328   : > { %v2435_v60 = vpop.f32.mrf.mxu2 }
 0x329   : > { %v2436_v37 = vadd.f32 %v2435_v60, %v2387_v39  ;;  %v2484_v51 = vpop.f32.mrf.mxu3  ;;  %v4047_v60 = vld [vmem:[%s4158_s14 + $0x20] sm:$0xff] }
 0x32b   : > { %v2485_v25 = vadd.f32 %v2484_v51, %v2436_v37  ;;  %v2854_v0 = vpop.f32.mrf.mxu0 }
 0x32c   : > { %v2903_v23 = vpop.f32.mrf.mxu1  ;;  %v2855_v13 = vadd.f32 %v5693_v19, %v2854_v0 }
 0x32d   : > { %v2550_v40 = vmax.f32 %v2485_v25, 0.0 }
 0x32e   : > { %v2904_v55 = vadd.f32 %v2903_v23, %v2855_v13 }
 0x32f   : > { %v2582_v41 = vpack.c.bf16 %v2550_v40, %v2546_v7 }
 0x330   : > { %v2950_v26 = vpop.f32.mrf.mxu2 }
 0x331   : > { %3033 = vmatmul.bf16.gmra.mxu3 %v2582_v41  ;;  %v2951_v34 = vadd.f32 %v2950_v26, %v2902_v10  ;;  %v4048_v41 = vld [vmem:[%s4158_s14 + $0x28] sm:$0xff] }
 0x333   : > { %v2857_v21 = vpop.f32.mrf.mxu0 }
 0x334   : > { %v2906_v14 = vpop.f32.mrf.mxu1  ;;  %v2858_v6 = vadd.f32 %v5693_v19, %v2857_v21 }
 0x336   : > { %v2907_v49 = vadd.f32 %v2906_v14, %v2858_v6 }
 0x338   : > { %v2952_v52 = vpop.f32.mrf.mxu2 }
 0x339   : > { %v2953_v31 = vadd.f32 %v2952_v52, %v2904_v55 }
 0x33b   : > { %v2859_v29 = vpop.f32.mrf.mxu0 }
 0x33c   : > { %v2908_v5 = vpop.f32.mrf.mxu1  ;;  %v2860_v24 = vadd.f32 %v5693_v19, %v2859_v29 }
 0x33e   : > { %v2909_v59 = vadd.f32 %v2908_v5, %v2860_v24 }
 0x340   : > { %v2955_v43 = vpop.f32.mrf.mxu2 }
 0x341   : > { %v2956_v11 = vadd.f32 %v2955_v43, %v2907_v49 }
 0x343   : > { %v2862_v12 = vpop.f32.mrf.mxu0 }
 0x344   : > { %v2999_v15 = vpop.f32.mrf.mxu3  ;;  %v2911_v30 = vpop.f32.mrf.mxu1  ;;  %v2863_v56 = vadd.f32 %v5693_v19, %v2862_v12 }
 0x345   : > { %v3000_v28 = vadd.f32 %v2999_v15, %v2951_v34  ;;  %v4049_v34 = vld [vmem:[%s4158_s14 + $0x30] sm:$0xff] }
 0x346   : > { %v2912_v32 = vadd.f32 %v2911_v30, %v2863_v56  ;;  %v4050_v30 = vld [vmem:[%s4158_s14 + $0x38] sm:$0xff] }
 0x347   : > { %v3039_v42 = vadd.f32 %v4043_v50, %v3000_v28 }
 0x348   : > { %v2957_v16 = vpop.f32.mrf.mxu2 }
 0x349   : > { %3055 = vst.msk [vmem:[%s5702_s9] sm:$0xff] %vm532_vm2, %v3039_v42  ;;  %v2958_v22 = vadd.f32 %v2957_v16, %v2909_v59  ;;  %v4052_v59 = vld [vmem:[%s4158_s14 + $0x48] sm:$0xff] }
 0x34b   : > { %v2864_v47 = vpop.f32.mrf.mxu0 }
 0x34c   : > { %v3001_v33 = vpop.f32.mrf.mxu3  ;;  %v2913_v17 = vpop.f32.mrf.mxu1  ;;  %v2865_v27 = vadd.f32 %v5693_v19, %v2864_v47 }
 0x34d   : > { %v3002_v2 = vadd.f32 %v3001_v33, %v2953_v31 }
 0x34e   : > { %v2914_v51 = vadd.f32 %v2913_v17, %v2865_v27 }
 0x34f   : > { %v3040_v63 = vadd.f32 %v4044_v48, %v3002_v2 }
 0x350   : > { %v2960_v3 = vpop.f32.mrf.mxu2 }
 0x351   : > { %3056 = vst.msk [vmem:[%s5702_s9 + $0x8] sm:$0xff] %vm532_vm2, %v3040_v63  ;;  %v2961_v54 = vadd.f32 %v2960_v3, %v2912_v32  ;;  %v4053_v32 = vld [vmem:[%s4158_s14 + $0x50] sm:$0xff] }
 0x353   : > { %v2867_v58 = vpop.f32.mrf.mxu0 }
 0x354   : > { %v3004_v1 = vpop.f32.mrf.mxu3  ;;  %v2916_v35 = vpop.f32.mrf.mxu1  ;;  %v2868_v7 = vadd.f32 %v5693_v19, %v2867_v58 }
 0x355   : > { %v3005_v53 = vadd.f32 %v3004_v1, %v2956_v11  ;;  %v4051_v11 = vld [vmem:[%s4158_s14 + $0x40] sm:$0xff] }
 0x356   : > { %v2917_v21 = vadd.f32 %v2916_v35, %v2868_v7 }
 0x357   : > { %v3041_v61 = vadd.f32 %v4045_v18, %v3005_v53 }
 0x358   : > { %v2962_v8 = vpop.f32.mrf.mxu2 }
 0x359   : > { %3057 = vst.msk [vmem:[%s5702_s9 + $0x10] sm:$0xff] %vm532_vm2, %v3041_v61  ;;  %v2963_v25 = vadd.f32 %v2962_v8, %v2914_v51  ;;  %v4054_v51 = vld [vmem:[%s4158_s14 + $0x58] sm:$0xff] }
 0x35b   : > { %v2869_v9 = vpop.f32.mrf.mxu0 }
 0x35c   : > { %v3006_v57 = vpop.f32.mrf.mxu3  ;;  %v2918_v39 = vpop.f32.mrf.mxu1  ;;  %v2870_v5 = vadd.f32 %v5693_v19, %v2869_v9 }
 0x35d   : > { %v3007_v36 = vadd.f32 %v3006_v57, %v2958_v22 }
 0x35e   : > { %v2919_v15 = vadd.f32 %v2918_v39, %v2870_v5 }
 0x35f   : > { %v3042_v46 = vadd.f32 %v4046_v45, %v3007_v36 }
 0x360   : > { %v2965_v62 = vpop.f32.mrf.mxu2 }
 0x361   : > { %3058 = vst.msk [vmem:[%s5702_s9 + $0x18] sm:$0xff] %vm532_vm2, %v3042_v46  ;;  %v2966_v29 = vadd.f32 %v2965_v62, %v2917_v21 }
 0x363   : > { %v2872_v0 = vpop.f32.mrf.mxu0 }
 0x364   : > { %v3009_v38 = vpop.f32.mrf.mxu3  ;;  %v2921_v14 = vpop.f32.mrf.mxu1  ;;  %v2873_v16 = vadd.f32 %v5693_v19, %v2872_v0 }
 0x365   : > { %v3010_v4 = vadd.f32 %v3009_v38, %v2961_v54 }
 0x366   : > { %v2922_v6 = vadd.f32 %v2921_v14, %v2873_v16  ;;  %v4055_v14 = vld [vmem:[%s4158_s14 + $0x60] sm:$0xff] }
 0x367   : > { %v3043_v44 = vadd.f32 %v4047_v60, %v3010_v4 }
 0x368   : > { %v2967_v37 = vpop.f32.mrf.mxu2 }
 0x369   : > { %3059 = vst.msk [vmem:[%s5702_s9 + $0x20] sm:$0xff] %vm532_vm2, %v3043_v44  ;;  %v2968_v13 = vadd.f32 %v2967_v37, %v2919_v15 }
 0x36b   : > { %v2874_v10 = vpop.f32.mrf.mxu0 }
 0x36c   : > { %v3011_v23 = vpop.f32.mrf.mxu3  ;;  %v2923_v28 = vpop.f32.mrf.mxu1  ;;  %v2875_v48 = vadd.f32 %v5693_v19, %v2874_v10 }
 0x36d   : > { %v3012_v40 = vadd.f32 %v3011_v23, %v2963_v25 }
 0x36e   : > { %v2924_v1 = vadd.f32 %v2923_v28, %v2875_v48 }
 0x36f   : > { %v3044_v26 = vadd.f32 %v4048_v41, %v3012_v40 }
 0x370   : > { %v2970_v52 = vpop.f32.mrf.mxu2 }
 0x371   : > { %3060 = vst.msk [vmem:[%s5702_s9 + $0x28] sm:$0xff] %vm532_vm2, %v3044_v26  ;;  %v2971_v2 = vadd.f32 %v2970_v52, %v2922_v6 }
 0x373   : > { %v2877_v33 = vpop.f32.mrf.mxu0 }
 0x374   : > { %v3014_v20 = vpop.f32.mrf.mxu3  ;;  %v2926_v63 = vpop.f32.mrf.mxu1  ;;  %v2878_v61 = vadd.f32 %v5693_v19, %v2877_v33  ;;  %v4057_v33 = vld [vmem:[%s4158_s14 + $0x70] sm:$0xff] }
 0x375   : > { %v3015_v43 = vadd.f32 %v3014_v20, %v2966_v29 }
 0x376   : > { %v2927_v56 = vadd.f32 %v2926_v63, %v2878_v61 }
 0x377   : > { %v3045_v12 = vadd.f32 %v4049_v34, %v3015_v43 }
 0x378   : > { %v2972_v50 = vpop.f32.mrf.mxu2 }
 0x379   : > { %3061 = vst.msk [vmem:[%s5702_s9 + $0x30] sm:$0xff] %vm532_vm2, %v3045_v12  ;;  %v2973_v53 = vadd.f32 %v2972_v50, %v2924_v1 }
 0x37b   : > { %v2879_v24 = vpop.f32.mrf.mxu0 }
 0x37c   : > { %v3016_v42 = vpop.f32.mrf.mxu3  ;;  %v2928_v8 = vpop.f32.mrf.mxu1  ;;  %v2880_v46 = vadd.f32 %v5693_v19, %v2879_v24 }
 0x37d   : > { %v3017_v55 = vadd.f32 %v3016_v42, %v2968_v13  ;;  %v4056_v13 = vld [vmem:[%s4158_s14 + $0x68] sm:$0xff] }
 0x37e   : > { %v2929_v54 = vadd.f32 %v2928_v8, %v2880_v46 }
 0x37f   : > { %v3046_v31 = vadd.f32 %v4050_v30, %v3017_v55 }
 0x380   : > { %v2975_v49 = vpop.f32.mrf.mxu2 }
 0x381   : > { %3062 = vst.msk [vmem:[%s5702_s9 + $0x38] sm:$0xff] %vm532_vm2, %v3046_v31  ;;  %v2976_v35 = vadd.f32 %v2975_v49, %v2927_v56 }
 0x383   : > { %v2882_v36 = vpop.f32.mrf.mxu0 }
 0x384   : > { %v3019_v47 = vpop.f32.mrf.mxu3  ;;  %v2931_v38 = vpop.f32.mrf.mxu1  ;;  %v2883_v60 = vadd.f32 %v5693_v19, %v2882_v36 }
 0x385   : > { %v3020_v3 = vadd.f32 %v3019_v47, %v2971_v2 }
 0x386   : > { %v2932_v0 = vadd.f32 %v2931_v38, %v2883_v60 }
 0x387   : > { %v3047_v17 = vadd.f32 %v4051_v11, %v3020_v3  ;;  %v4058_v11 = vld [vmem:[%s4158_s14 + $0x78] sm:$0xff] }
 0x388   : > { %v2977_v57 = vpop.f32.mrf.mxu2 }
 0x389   : > { %3063 = vst.msk [vmem:[%s5702_s9 + $0x40] sm:$0xff] %vm532_vm2, %v3047_v17  ;;  %v2978_v4 = vadd.f32 %v2977_v57, %v2929_v54 }
 0x38b   : > { %v2884_v37 = vpop.f32.mrf.mxu0 }
 0x38c   : > { %v3021_v18 = vpop.f32.mrf.mxu3  ;;  %v2933_v23 = vpop.f32.mrf.mxu1  ;;  %v2885_v26 = vadd.f32 %v5693_v19, %v2884_v37 }
 0x38d   : > { %v3022_v58 = vadd.f32 %v3021_v18, %v2973_v53 }
 0x38e   : > { %v2934_v20 = vadd.f32 %v2933_v23, %v2885_v26 }
 0x38f   : > { %v3048_v22 = vadd.f32 %v4052_v59, %v3022_v58 }
 0x390   : > { %v2980_v27 = vpop.f32.mrf.mxu2 }
 0x391   : > { %3064 = vst.msk [vmem:[%s5702_s9 + $0x48] sm:$0xff] %vm532_vm2, %v3048_v22  ;;  %v2981_v7 = vadd.f32 %v2980_v27, %v2932_v0 }
 0x393   : > { %v2887_v29 = vpop.f32.mrf.mxu0 }
 0x394   : > { %v3024_v45 = vpop.f32.mrf.mxu3  ;;  %v2888_v10 = vadd.f32 %v5693_v19, %v2887_v29  ;;  %v2936_v12 = vpop.f32.mrf.mxu1 }
 0x395   : > { %v3025_v62 = vadd.f32 %v3024_v45, %v2976_v35 }
 0x396   : > { %v2937_v50 = vadd.f32 %v2936_v12, %v2888_v10 }
 0x397   : > { %v3049_v9 = vadd.f32 %v4053_v32, %v3025_v62 }
 0x398   : > { %v2982_v40 = vpop.f32.mrf.mxu2 }
 0x399   : > { %3065 = vst.msk [vmem:[%s5702_s9 + $0x50] sm:$0xff] %vm532_vm2, %v3049_v9  ;;  %v2983_v5 = vadd.f32 %v2982_v40, %v2934_v20 }
 0x39b   : > { %v2889_v42 = vpop.f32.mrf.mxu0 }
 0x39c   : > { %v3026_v39 = vpop.f32.mrf.mxu3  ;;  %v2890_v30 = vadd.f32 %v5693_v19, %v2889_v42  ;;  %v2938_v2 = vpop.f32.mrf.mxu1 }
 0x39d   : > { %v3027_v44 = vadd.f32 %v3026_v39, %v2978_v4 }
 0x39e   : > { %v2939_v48 = vadd.f32 %v2938_v2, %v2890_v30 }
 0x39f   : > { %v3050_v25 = vadd.f32 %v4054_v51, %v3027_v44 }
 0x3a0   : > { %v2985_v15 = vpop.f32.mrf.mxu2 }
 0x3a1   : > { %3066 = vst.msk [vmem:[%s5702_s9 + $0x58] sm:$0xff] %vm532_vm2, %v3050_v25  ;;  %v2986_v16 = vadd.f32 %v2985_v15, %v2937_v50 }
 0x3a4   : > { %v3029_v41 = vpop.f32.mrf.mxu3 }
 0x3a5   : > { %v3030_v21 = vadd.f32 %v3029_v41, %v2981_v7 }
 0x3a7   : > { %v3051_v52 = vadd.f32 %v4055_v14, %v3030_v21 }
 0x3a8   : > { %v2987_v47 = vpop.f32.mrf.mxu2 }
 0x3a9   : > { %3067 = vst.msk [vmem:[%s5702_s9 + $0x60] sm:$0xff] %vm532_vm2, %v3051_v52  ;;  %v2988_v63 = vadd.f32 %v2987_v47, %v2939_v48 }
 0x3ac   : > { %v3031_v43 = vpop.f32.mrf.mxu3 }
 0x3ad   : > { %v3032_v34 = vadd.f32 %v3031_v43, %v2983_v5 }
 0x3af   : > { %v3052_v28 = vadd.f32 %v4056_v13, %v3032_v34 }
 0x3b1   : > { %3068 = vst.msk [vmem:[%s5702_s9 + $0x68] sm:$0xff] %vm532_vm2, %v3052_v28 }
 0x3b4   : > { %v3034_v55 = vpop.f32.mrf.mxu3 }
 0x3b5   : > { %v3035_v31 = vadd.f32 %v3034_v55, %v2986_v16 }
 0x3b7   : > { %v3053_v6 = vadd.f32 %v4057_v33, %v3035_v31 }
 0x3b9   : > { %3069 = vst.msk [vmem:[%s5702_s9 + $0x70] sm:$0xff] %vm532_vm2, %v3053_v6 }
 0x3bc   : > { %v3036_v3 = vpop.f32.mrf.mxu3 }
 0x3bd   : > { %v3037_v49 = vadd.f32 %v3036_v3, %v2988_v63 }
 0x3bf   : > { %v3054_v17 = vadd.f32 %v4058_v11, %v3037_v49 }
 0x3c1   : > { %3070 = vst.msk [vmem:[%s5702_s9 + $0x78] sm:$0xff] %vm532_vm2, %v3054_v17 }
 0x3c2 PF: > { %s18_s29 = sadd.s32 1, %s4081_s29   ;;  %s5788_s27 = smov %s4077_s28 }
 0x3c3   : > { %p15_p5 = scmp.ge.s32.totalorder %s18_s29, 6   ;;  %s5789_s28 = smov %s5791_s30 }
 0x3c5   :  { %17 = sbr.rel (!%p15_p5) target bundleno = 2 (0x2), region = 85 }

// kernel: decoder_forward.2
= control target key start
LH: loop header
LB: loop body
LE: loop exit
PB: predicated region body
PF: predicated region fallthrough
CT: control target
= control target key end

     0   :  { %vm151_vm0 = vcmask 261120   ;;  %vm4219_vm1 = vcmask 1041408   ;;  %vm4223_vm2 = vcmask 1045508   ;;  %vm4227_vm3 = vcmask 1043456   ;;  %s11698_s1 = inlined_call_operand.vmem [shape: bf16[32,1024], index: 1, kind: input, shape index: {}]   ;;  %s11699_s0 = inlined_call_operand.vmem [shape: bf16[4,32], index: 0, kind: input, shape index: {}]   ;;  %s11700_s3 = inlined_call_operand.vmem [shape: bf16[1024,1024], index: 3, kind: input, shape index: {}]   ;;  %s11701_s2 = inlined_call_operand.vmem [shape: f32[1,1024], index: 2, kind: input, shape index: {}]   ;;  %s11702_s4 = inlined_call_operand.vmem [shape: f32[1,1024], index: 4, kind: input, shape index: {}]   ;;  %s11703_s7 = inlined_call_operand.vmem [shape: bf16[32,512], index: 7, kind: input, shape index: {}]   ;;  %s11704_s5 = inlined_call_operand.vmem [shape: bf16[1024,128], index: 5, kind: input, shape index: {}]   ;;  %s11705_s6 = inlined_call_operand.vmem [shape: f32[1,128], index: 6, kind: input, shape index: {}]   ;;  %s11706_s9 = inlined_call_operand.vmem [shape: f32[4,512], index: 9, kind: output, shape index: {1}]   ;;  %s11707_s8 = inlined_call_operand.vmem [shape: f32[4,128], index: 8, kind: output, shape index: {0}]  }
   0x1   :  { %v5038_v0 = vld [vmem:[%s11698_s1 + $0x40] sm:$0xf]  ;;  %v7424_v2 = vld [vmem:[%s11698_s1 + $0x44] sm:$0xf]  ;;  %v5046_v5 = vld [vmem:[%s11698_s1 + $0x48] sm:$0xf] }
   0x2   :  { %v7428_v1 = vld [vmem:[%s11698_s1 + $0x5c] sm:$0xf0]  ;;  %v5040_v4 = vld [vmem:[%s11698_s1 + $0x60] sm:$0xf0]  ;;  %v7429_v6 = vld [vmem:[%s11698_s1 + $0x64] sm:$0xf0] }
   0x3   :  { %v5039_v3 = vor.u32 %v7428_v1, %v5038_v0  ;;  %v5043_v7 = vor.u32 %v7424_v2, %v5040_v4  ;;  %v5047_v8 = vor.u32 %v7429_v6, %v5046_v5  ;;  %v7425_v9 = vld [vmem:[%s11698_s1 + $0x4c] sm:$0xf]  ;;  %v5006_v11 = vld [vmem:[%s11698_s1] sm:$0xf]  ;;  %v7416_v14 = vld [vmem:[%s11698_s1 + $0x4] sm:$0xf] }
   0x4   :  { %v5048_v10 = vld [vmem:[%s11698_s1 + $0x68] sm:$0xf0]  ;;  %v7420_v13 = vld [vmem:[%s11698_s1 + $0x1c] sm:$0xf0]  ;;  %v5008_v15 = vld [vmem:[%s11698_s1 + $0x20] sm:$0xf0] }
   0x5   :  { %161 = vmatpush.bf16.msra.mxu0 %v5039_v3  ;;  %v5051_v12 = vor.u32 %v7425_v9, %v5048_v10  ;;  %174 = vmatpush.bf16.msra.mxu1 %v5043_v7  ;;  %v5007_v16 = vor.u32 %v7420_v13, %v5006_v11  ;;  %v5011_v17 = vor.u32 %v7416_v14, %v5008_v15  ;;  %v5014_v18 = vld [vmem:[%s11698_s1 + $0x8] sm:$0xf]  ;;  %v7417_v20 = vld [vmem:[%s11698_s1 + $0xc] sm:$0xf]  ;;  %v8121_v23 = vld [vmem:[%s11699_s0] sm:$0x3] }
   0x6   :  { %187 = vmatpush.bf16.msra.mxu2 %v5047_v8  ;;  %v7421_v19 = vld [vmem:[%s11698_s1 + $0x24] sm:$0xf0]  ;;  %v5016_v22 = vld [vmem:[%s11698_s1 + $0x28] sm:$0xf0]  ;;  %v5054_v24 = vld [vmem:[%s11698_s1 + $0x50] sm:$0xf] }
   0x7   :  { %200 = vmatpush.bf16.msra.mxu3 %v5051_v12  ;;  %v5015_v21 = vor.u32 %v7421_v19, %v5014_v18  ;;  %v5019_v25 = vor.u32 %v7417_v20, %v5016_v22  ;;  %v7430_v26 = vld [vmem:[%s11698_s1 + $0x6c] sm:$0xf0]  ;;  %v7426_v27 = vld [vmem:[%s11698_s1 + $0x54] sm:$0xf]  ;;  %v5062_v31 = vld [vmem:[%s11698_s1 + $0x58] sm:$0xf] }
   0x8   :  { %v5056_v28 = vld [vmem:[%s11698_s1 + $0x70] sm:$0xf0]  ;;  %v5055_v29 = vor.u32 %v7430_v26, %v5054_v24  ;;  %v7431_v32 = vld [vmem:[%s11698_s1 + $0x74] sm:$0xf0]  ;;  %v7427_v33 = vld [vmem:[%s11698_s1 + $0x5c] sm:$0xf] }
   0x9   :  { %162 = vmatpush.bf16.msra.mxu0 %v5007_v16  ;;  %v5059_v30 = vor.u32 %v7426_v27, %v5056_v28  ;;  %175 = vmatpush.bf16.msra.mxu1 %v5011_v17  ;;  %v5063_v34 = vor.u32 %v7431_v32, %v5062_v31  ;;  %v5064_v35 = vld [vmem:[%s11698_s1 + $0x78] sm:$0xf0]  ;;  %v5022_v36 = vld [vmem:[%s11698_s1 + $0x10] sm:$0xf]  ;;  %v7418_v40 = vld [vmem:[%s11698_s1 + $0x14] sm:$0xf] }
   0xa   :  { %188 = vmatpush.bf16.msra.mxu2 %v5015_v21  ;;  %v7422_v37 = vld [vmem:[%s11698_s1 + $0x2c] sm:$0xf0]  ;;  %v5067_v38 = vor.u32 %v7427_v33, %v5064_v35  ;;  %v5024_v41 = vld [vmem:[%s11698_s1 + $0x30] sm:$0xf0]  ;;  %v5030_v42 = vld [vmem:[%s11698_s1 + $0x18] sm:$0xf] }
   0xb   :  { %201 = vmatpush.bf16.msra.mxu3 %v5019_v25  ;;  %v5023_v39 = vor.u32 %v7422_v37, %v5022_v36  ;;  %v5027_v43 = vor.u32 %v7418_v40, %v5024_v41  ;;  %v7423_v44 = vld [vmem:[%s11698_s1 + $0x34] sm:$0xf0]  ;;  %v7419_v45 = vld [vmem:[%s11698_s1 + $0x1c] sm:$0xf]  ;;  %v5302_v47 = vld [vmem:[%s11700_s3 + $0x1c0] sm:$0xf] }
   0xc   :  { %5068 = vmatmul.msk.bf16.vlgmr.msra.gmra.mxu0 %vm151_vm0, %v8121_v23  ;;  %v5032_v46 = vld [vmem:[%s11698_s1 + $0x38] sm:$0xf0]  ;;  %5069 = vmatmul.msk.bf16.vlgmr.msra.gmra.mxu1 %vm151_vm0, %v8121_v23  ;;  %v7492_v48 = vld [vmem:[%s11700_s3 + $0x1dc] sm:$0xf0]  ;;  %v5031_v50 = vor.u32 %v7423_v44, %v5030_v42 }
   0xd   :  { %213 = vmatpush.bf16.msrb.mxu0 %v5055_v29  ;;  %226 = vmatpush.bf16.msrb.mxu1 %v5059_v30  ;;  %v5558_v49 = vld [vmem:[%s11700_s3 + $0x3c0] sm:$0xf]  ;;  %v5303_v51 = vor.u32 %v7492_v48, %v5302_v47  ;;  %v5035_v55 = vor.u32 %v7419_v45, %v5032_v46 }
   0xe   :  { %5070 = vmatmul.msk.bf16.vlgmr.msra.gmra.mxu2 %vm151_vm0, %v8121_v23  ;;  %5071 = vmatmul.msk.bf16.vlgmr.msra.gmra.mxu3 %vm151_vm0, %v8121_v23  ;;  %v7556_v52 = vld [vmem:[%s11700_s3 + $0x3dc] sm:$0xf0] }
   0xf   :  { %239 = vmatpush.bf16.msrb.mxu2 %v5063_v34  ;;  %v5270_v53 = vld [vmem:[%s11700_s3 + $0x180] sm:$0xf]  ;;  %252 = vmatpush.bf16.msrb.mxu3 %v5067_v38  ;;  %v5559_v56 = vor.u32 %v7556_v52, %v5558_v49 }
  0x10   :  { %v7484_v54 = vld [vmem:[%s11700_s3 + $0x19c] sm:$0xf0] }
  0x11   :  { %214 = vmatpush.bf16.msrb.mxu0 %v5023_v39  ;;  %v5526_v57 = vld [vmem:[%s11700_s3 + $0x380] sm:$0xf]  ;;  %227 = vmatpush.bf16.msrb.mxu1 %v5027_v43  ;;  %v5271_v60 = vor.u32 %v7484_v54, %v5270_v53 }
  0x12   :  { %v7548_v58 = vld [vmem:[%s11700_s3 + $0x39c] sm:$0xf0] }
  0x13   :  { %v5814_v59 = vld [vmem:[%s11700_s3 + $0x5c0] sm:$0xf]  ;;  %v5527_v0 = vor.u32 %v7548_v58, %v5526_v57  ;;  %240 = vmatpush.bf16.msrb.mxu2 %v5031_v50  ;;  %253 = vmatpush.bf16.msrb.mxu3 %v5035_v55 }
  0x14   :  { %v7620_v61 = vld [vmem:[%s11700_s3 + $0x5dc] sm:$0xf0] }
  0x15   :  { %3365 = vmatpush.bf16.msra.mxu0 %v5303_v51  ;;  %v6070_v62 = vld [vmem:[%s11700_s3 + $0x7c0] sm:$0xf]  ;;  %3378 = vmatpush.bf16.msra.mxu1 %v5559_v56  ;;  %v5815_v1 = vor.u32 %v7620_v61, %v5814_v59 }
  0x16   :  { %v7684_v63 = vld [vmem:[%s11700_s3 + $0x7dc] sm:$0xf0] }
  0x17   :  { %v6071_v2 = vor.u32 %v7684_v63, %v6070_v62  ;;  %v5238_v3 = vld [vmem:[%s11700_s3 + $0x140] sm:$0xf]  ;;  %3391 = vmatpush.bf16.msra.mxu2 %v5815_v1 }
  0x18   :  { %v7476_v4 = vld [vmem:[%s11700_s3 + $0x15c] sm:$0xf0] }
  0x19   :  { %v5494_v5 = vld [vmem:[%s11700_s3 + $0x340] sm:$0xf]  ;;  %3366 = vmatpush.bf16.msra.mxu0 %v5271_v60  ;;  %3404 = vmatpush.bf16.msra.mxu3 %v6071_v2  ;;  %v5239_v12 = vor.u32 %v7476_v4, %v5238_v3 }
  0x1a   :  { %v7540_v6 = vld [vmem:[%s11700_s3 + $0x35c] sm:$0xf0]  ;;  %3379 = vmatpush.bf16.msra.mxu1 %v5527_v0 }
  0x1b   :  { %v5782_v7 = vld [vmem:[%s11700_s3 + $0x580] sm:$0xf]  ;;  %v5495_v14 = vor.u32 %v7540_v6, %v5494_v5 }
  0x1c   :  { %v7612_v8 = vld [vmem:[%s11700_s3 + $0x59c] sm:$0xf0]  ;;  %5072 = vmatmul.msk.bf16.vlgmr.msrb.gmra.mxu0 %vm151_vm0, %v8121_v23  ;;  %5073 = vmatmul.msk.bf16.vlgmr.msrb.gmra.mxu1 %vm151_vm0, %v8121_v23 }
  0x1d   :  { %v5783_v9 = vor.u32 %v7612_v8, %v5782_v7  ;;  %v6038_v10 = vld [vmem:[%s11700_s3 + $0x780] sm:$0xf]  ;;  %3367 = vmatpush.bf16.msra.mxu0 %v5239_v12 }
  0x1e   :  { %v7676_v11 = vld [vmem:[%s11700_s3 + $0x79c] sm:$0xf0]  ;;  %3380 = vmatpush.bf16.msra.mxu1 %v5495_v14  ;;  %5074 = vmatmul.msk.bf16.vlgmr.msrb.gmra.mxu2 %vm151_vm0, %v8121_v23 }
  0x1f   :  { %v6039_v13 = vor.u32 %v7676_v11, %v6038_v10  ;;  %v5750_v15 = vld [vmem:[%s11700_s3 + $0x540] sm:$0xf]  ;;  %3392 = vmatpush.bf16.msra.mxu2 %v5783_v9  ;;  %5075 = vmatmul.msk.bf16.vlgmr.msrb.gmra.mxu3 %vm151_vm0, %v8121_v23 }
  0x20   :  { %v7604_v16 = vld [vmem:[%s11700_s3 + $0x55c] sm:$0xf0] }
  0x21   :  { %v6006_v17 = vld [vmem:[%s11700_s3 + $0x740] sm:$0xf]  ;;  %v5751_v22 = vor.u32 %v7604_v16, %v5750_v15  ;;  %3405 = vmatpush.bf16.msra.mxu3 %v6039_v13 }
  0x22   :  { %v7668_v18 = vld [vmem:[%s11700_s3 + $0x75c] sm:$0xf0] }
  0x23   :  { %v5206_v19 = vld [vmem:[%s11700_s3 + $0x100] sm:$0xf]  ;;  %v6007_v25 = vor.u32 %v7668_v18, %v6006_v17  ;;  %3393 = vmatpush.bf16.msra.mxu2 %v5751_v22 }
  0x24   :  { %v7468_v20 = vld [vmem:[%s11700_s3 + $0x11c] sm:$0xf0] }
  0x25   :  { %v5462_v21 = vld [vmem:[%s11700_s3 + $0x300] sm:$0xf]  ;;  %v5207_v30 = vor.u32 %v7468_v20, %v5206_v19  ;;  %3406 = vmatpush.bf16.msra.mxu3 %v6007_v25 }
  0x26   :  { %v7532_v24 = vld [vmem:[%s11700_s3 + $0x31c] sm:$0xf0] }
  0x27   :  { %v5718_v26 = vld [vmem:[%s11700_s3 + $0x500] sm:$0xf]  ;;  %v5463_v31 = vor.u32 %v7532_v24, %v5462_v21  ;;  %3368 = vmatpush.bf16.msra.mxu0 %v5207_v30 }
  0x28   :  { %v7596_v27 = vld [vmem:[%s11700_s3 + $0x51c] sm:$0xf0] }
  0x29   :  { %v5974_v28 = vld [vmem:[%s11700_s3 + $0x700] sm:$0xf]  ;;  %v5719_v35 = vor.u32 %v7596_v27, %v5718_v26  ;;  %3381 = vmatpush.bf16.msra.mxu1 %v5463_v31 }
  0x2a   :  { %v7660_v29 = vld [vmem:[%s11700_s3 + $0x71c] sm:$0xf0] }
  0x2b   :  { %v5174_v32 = vld [vmem:[%s11700_s3 + $0xc0] sm:$0xf]  ;;  %v5975_v37 = vor.u32 %v7660_v29, %v5974_v28  ;;  %3394 = vmatpush.bf16.msra.mxu2 %v5719_v35 }
  0x2c   :  { %v7460_v33 = vld [vmem:[%s11700_s3 + $0xdc] sm:$0xf0] }
  0x2d   :  { %v5430_v34 = vld [vmem:[%s11700_s3 + $0x2c0] sm:$0xf]  ;;  %v5175_v42 = vor.u32 %v7460_v33, %v5174_v32  ;;  %3407 = vmatpush.bf16.msra.mxu3 %v5975_v37 }
  0x2e   :  { %v7524_v36 = vld [vmem:[%s11700_s3 + $0x2dc] sm:$0xf0] }
  0x2f   :  { %v5686_v38 = vld [vmem:[%s11700_s3 + $0x4c0] sm:$0xf]  ;;  %v5431_v43 = vor.u32 %v7524_v36, %v5430_v34  ;;  %3369 = vmatpush.bf16.msra.mxu0 %v5175_v42 }
  0x30   :  { %v7588_v39 = vld [vmem:[%s11700_s3 + $0x4dc] sm:$0xf0] }
  0x31   :  { %v5942_v40 = vld [vmem:[%s11700_s3 + $0x6c0] sm:$0xf]  ;;  %v5687_v47 = vor.u32 %v7588_v39, %v5686_v38  ;;  %3382 = vmatpush.bf16.msra.mxu1 %v5431_v43 }
  0x32   :  { %v7652_v41 = vld [vmem:[%s11700_s3 + $0x6dc] sm:$0xf0] }
  0x33   :  { %v5142_v44 = vld [vmem:[%s11700_s3 + $0x80] sm:$0xf]  ;;  %v5943_v48 = vor.u32 %v7652_v41, %v5942_v40  ;;  %3395 = vmatpush.bf16.msra.mxu2 %v5687_v47 }
  0x34   :  { %v7452_v45 = vld [vmem:[%s11700_s3 + $0x9c] sm:$0xf0] }
  0x35   :  { %v5398_v46 = vld [vmem:[%s11700_s3 + $0x280] sm:$0xf]  ;;  %v5143_v53 = vor.u32 %v7452_v45, %v5142_v44  ;;  %3408 = vmatpush.bf16.msra.mxu3 %v5943_v48 }
  0x36   :  { %v7516_v23 = vld [vmem:[%s11700_s3 + $0x29c] sm:$0xf0] }
  0x37   :  { %v5654_v49 = vld [vmem:[%s11700_s3 + $0x480] sm:$0xf]  ;;  %v5399_v54 = vor.u32 %v7516_v23, %v5398_v46  ;;  %3370 = vmatpush.bf16.msra.mxu0 %v5143_v53 }
  0x38   :  { %v7580_v50 = vld [vmem:[%s11700_s3 + $0x49c] sm:$0xf0] }
  0x39   :  { %v5910_v51 = vld [vmem:[%s11700_s3 + $0x680] sm:$0xf]  ;;  %v5655_v58 = vor.u32 %v7580_v50, %v5654_v49  ;;  %3383 = vmatpush.bf16.msra.mxu1 %v5399_v54 }
  0x3a   :  { %v7644_v52 = vld [vmem:[%s11700_s3 + $0x69c] sm:$0xf0] }
  0x3b   :  { %v5110_v55 = vld [vmem:[%s11700_s3 + $0x40] sm:$0xf]  ;;  %v5911_v60 = vor.u32 %v7644_v52, %v5910_v51  ;;  %3396 = vmatpush.bf16.msra.mxu2 %v5655_v58 }
  0x3c   :  { %v7444_v56 = vld [vmem:[%s11700_s3 + $0x5c] sm:$0xf0] }
  0x3d   :  { %v5366_v57 = vld [vmem:[%s11700_s3 + $0x240] sm:$0xf]  ;;  %v5111_v1 = vor.u32 %v7444_v56, %v5110_v55  ;;  %3409 = vmatpush.bf16.msra.mxu3 %v5911_v60 }
  0x3e   :  { %v7508_v59 = vld [vmem:[%s11700_s3 + $0x25c] sm:$0xf0] }
  0x3f   :  { %v5622_v61 = vld [vmem:[%s11700_s3 + $0x440] sm:$0xf]  ;;  %v5367_v4 = vor.u32 %v7508_v59, %v5366_v57  ;;  %3371 = vmatpush.bf16.msra.mxu0 %v5111_v1 }
  0x40   :  { %v7572_v62 = vld [vmem:[%s11700_s3 + $0x45c] sm:$0xf0] }
  0x41   :  { %v5878_v63 = vld [vmem:[%s11700_s3 + $0x640] sm:$0xf]  ;;  %v5623_v8 = vor.u32 %v7572_v62, %v5622_v61  ;;  %3384 = vmatpush.bf16.msra.mxu1 %v5367_v4 }
  0x42   :  { %v7636_v0 = vld [vmem:[%s11700_s3 + $0x65c] sm:$0xf0] }
  0x43   :  { %v5078_v2 = vld [vmem:[%s11700_s3] sm:$0xf]  ;;  %v5879_v12 = vor.u32 %v7636_v0, %v5878_v63  ;;  %3397 = vmatpush.bf16.msra.mxu2 %v5623_v8 }
  0x44   :  { %v7436_v3 = vld [vmem:[%s11700_s3 + $0x1c] sm:$0xf0] }
  0x45   :  { %v5334_v5 = vld [vmem:[%s11700_s3 + $0x200] sm:$0xf]  ;;  %v5079_v16 = vor.u32 %v7436_v3, %v5078_v2  ;;  %3410 = vmatpush.bf16.msra.mxu3 %v5879_v12 }
  0x46   :  { %v7500_v6 = vld [vmem:[%s11700_s3 + $0x21c] sm:$0xf0] }
  0x47   :  { %v6326_v7 = vld [vmem:[%s11700_s3 + $0x9c0] sm:$0xf]  ;;  %v5335_v20 = vor.u32 %v7500_v6, %v5334_v5  ;;  %3372 = vmatpush.bf16.msra.mxu0 %v5079_v16 }
  0x48   :  { %v7748_v9 = vld [vmem:[%s11700_s3 + $0x9dc] sm:$0xf0] }
  0x49   :  { %v6582_v10 = vld [vmem:[%s11700_s3 + $0xbc0] sm:$0xf]  ;;  %v6327_v21 = vor.u32 %v7748_v9, %v6326_v7  ;;  %3385 = vmatpush.bf16.msra.mxu1 %v5335_v20 }
  0x4a   :  { %v7812_v11 = vld [vmem:[%s11700_s3 + $0xbdc] sm:$0xf0] }
  0x4b   :  { %v5590_v13 = vld [vmem:[%s11700_s3 + $0x400] sm:$0xf]  ;;  %v6583_v25 = vor.u32 %v7812_v11, %v6582_v10  ;;  %3417 = vmatpush.bf16.msrb.mxu0 %v6327_v21 }
  0x4c   :  { %v7564_v14 = vld [vmem:[%s11700_s3 + $0x41c] sm:$0xf0] }
  0x4d   :  { %v5846_v15 = vld [vmem:[%s11700_s3 + $0x600] sm:$0xf]  ;;  %v5591_v28 = vor.u32 %v7564_v14, %v5590_v13  ;;  %3430 = vmatpush.bf16.msrb.mxu1 %v6583_v25 }
  0x4e   :  { %v7628_v17 = vld [vmem:[%s11700_s3 + $0x61c] sm:$0xf0] }
  0x4f   :  { %v6838_v18 = vld [vmem:[%s11700_s3 + $0xdc0] sm:$0xf]  ;;  %v5847_v31 = vor.u32 %v7628_v17, %v5846_v15  ;;  %3398 = vmatpush.bf16.msra.mxu2 %v5591_v28 }
  0x50   :  { %v7876_v19 = vld [vmem:[%s11700_s3 + $0xddc] sm:$0xf0] }
  0x51   :  { %v7094_v22 = vld [vmem:[%s11700_s3 + $0xfc0] sm:$0xf]  ;;  %v6839_v32 = vor.u32 %v7876_v19, %v6838_v18  ;;  %3411 = vmatpush.bf16.msra.mxu3 %v5847_v31 }
  0x52   :  { %v7940_v24 = vld [vmem:[%s11700_s3 + $0xfdc] sm:$0xf0] }
  0x53   :  { %v6294_v26 = vld [vmem:[%s11700_s3 + $0x980] sm:$0xf]  ;;  %v7095_v33 = vor.u32 %v7940_v24, %v7094_v22  ;;  %3443 = vmatpush.bf16.msrb.mxu2 %v6839_v32 }
  0x54   :  { %v7740_v27 = vld [vmem:[%s11700_s3 + $0x99c] sm:$0xf0] }
  0x55   :  { %v6550_v29 = vld [vmem:[%s11700_s3 + $0xb80] sm:$0xf]  ;;  %v6295_v36 = vor.u32 %v7740_v27, %v6294_v26  ;;  %3456 = vmatpush.bf16.msrb.mxu3 %v7095_v33 }
  0x56   :  { %v7804_v30 = vld [vmem:[%s11700_s3 + $0xb9c] sm:$0xf0] }
  0x57   :  { %v6806_v34 = vld [vmem:[%s11700_s3 + $0xd80] sm:$0xf]  ;;  %v6551_v39 = vor.u32 %v7804_v30, %v6550_v29  ;;  %3418 = vmatpush.bf16.msrb.mxu0 %v6295_v36 }
  0x58   :  { %v7868_v35 = vld [vmem:[%s11700_s3 + $0xd9c] sm:$0xf0] }
  0x59   :  { %v7062_v37 = vld [vmem:[%s11700_s3 + $0xf80] sm:$0xf]  ;;  %v6807_v44 = vor.u32 %v7868_v35, %v6806_v34  ;;  %3431 = vmatpush.bf16.msrb.mxu1 %v6551_v39 }
  0x5a   :  { %v7932_v38 = vld [vmem:[%s11700_s3 + $0xf9c] sm:$0xf0] }
  0x5b   :  { %v6262_v40 = vld [vmem:[%s11700_s3 + $0x940] sm:$0xf]  ;;  %v7063_v45 = vor.u32 %v7932_v38, %v7062_v37  ;;  %3444 = vmatpush.bf16.msrb.mxu2 %v6807_v44 }
  0x5c   :  { %v7732_v41 = vld [vmem:[%s11700_s3 + $0x95c] sm:$0xf0] }
  0x5d   :  { %v6518_v42 = vld [vmem:[%s11700_s3 + $0xb40] sm:$0xf]  ;;  %v6263_v23 = vor.u32 %v7732_v41, %v6262_v40  ;;  %3457 = vmatpush.bf16.msrb.mxu3 %v7063_v45 }
  0x5e   :  { %v7796_v43 = vld [vmem:[%s11700_s3 + $0xb5c] sm:$0xf0] }
  0x5f   :  { %v6774_v46 = vld [vmem:[%s11700_s3 + $0xd40] sm:$0xf]  ;;  %v6519_v50 = vor.u32 %v7796_v43, %v6518_v42  ;;  %3419 = vmatpush.bf16.msrb.mxu0 %v6263_v23 }
  0x60   :  { %v7860_v47 = vld [vmem:[%s11700_s3 + $0xd5c] sm:$0xf0] }
  0x61   :  { %v7030_v48 = vld [vmem:[%s11700_s3 + $0xf40] sm:$0xf]  ;;  %v6775_v55 = vor.u32 %v7860_v47, %v6774_v46  ;;  %3432 = vmatpush.bf16.msrb.mxu1 %v6519_v50 }
  0x62   :  { %v7924_v49 = vld [vmem:[%s11700_s3 + $0xf5c] sm:$0xf0] }
  0x63   :  { %v6230_v51 = vld [vmem:[%s11700_s3 + $0x900] sm:$0xf]  ;;  %v7031_v56 = vor.u32 %v7924_v49, %v7030_v48  ;;  %3445 = vmatpush.bf16.msrb.mxu2 %v6775_v55  ;;  %v7488_v55 = vld [vmem:[%s11700_s3 + $0x1c4] sm:$0xf] }
  0x64   :  { %v7724_v52 = vld [vmem:[%s11700_s3 + $0x91c] sm:$0xf0] }
  0x65   :  { %v6486_v53 = vld [vmem:[%s11700_s3 + $0xb00] sm:$0xf]  ;;  %v6231_v59 = vor.u32 %v7724_v52, %v6230_v51  ;;  %3458 = vmatpush.bf16.msrb.mxu3 %v7031_v56  ;;  %v5304_v56 = vld [vmem:[%s11700_s3 + $0x1e0] sm:$0xf0] }
  0x66   :  { %v7788_v54 = vld [vmem:[%s11700_s3 + $0xb1c] sm:$0xf0] }
  0x67   :  { %v6742_v57 = vld [vmem:[%s11700_s3 + $0xd00] sm:$0xf]  ;;  %v6487_v62 = vor.u32 %v7788_v54, %v6486_v53  ;;  %3420 = vmatpush.bf16.msrb.mxu0 %v6231_v59  ;;  %v5560_v59 = vld [vmem:[%s11700_s3 + $0x3e0] sm:$0xf0] }
  0x68   :  { %v7852_v58 = vld [vmem:[%s11700_s3 + $0xd1c] sm:$0xf0] }
  0x69   :  { %v6998_v60 = vld [vmem:[%s11700_s3 + $0xf00] sm:$0xf]  ;;  %v6743_v3 = vor.u32 %v7852_v58, %v6742_v57  ;;  %3433 = vmatpush.bf16.msrb.mxu1 %v6487_v62  ;;  %v7552_v58 = vld [vmem:[%s11700_s3 + $0x3c4] sm:$0xf] }
  0x6a   :  { %v7916_v61 = vld [vmem:[%s11700_s3 + $0xf1c] sm:$0xf0] }
  0x6b   :  { %v6198_v63 = vld [vmem:[%s11700_s3 + $0x8c0] sm:$0xf]  ;;  %v6999_v4 = vor.u32 %v7916_v61, %v6998_v60  ;;  %3446 = vmatpush.bf16.msrb.mxu2 %v6743_v3  ;;  %v7480_v3 = vld [vmem:[%s11700_s3 + $0x184] sm:$0xf] }
  0x6c   :  { %v7716_v0 = vld [vmem:[%s11700_s3 + $0x8dc] sm:$0xf0] }
  0x6d   :  { %v6454_v1 = vld [vmem:[%s11700_s3 + $0xac0] sm:$0xf]  ;;  %v6199_v5 = vor.u32 %v7716_v0, %v6198_v63  ;;  %3459 = vmatpush.bf16.msrb.mxu3 %v6999_v4  ;;  %v5307_v63 = vor.u32 %v7488_v55, %v5304_v56  ;;  %v5272_v4 = vld [vmem:[%s11700_s3 + $0x1a0] sm:$0xf0] }
  0x6e   :  { %v7780_v2 = vld [vmem:[%s11700_s3 + $0xadc] sm:$0xf0]  ;;  %v6008_v55 = vld [vmem:[%s11700_s3 + $0x760] sm:$0xf0] }
  0x6f   :  { %v6455_v6 = vor.u32 %v7780_v2, %v6454_v1  ;;  %v6166_v7 = vld [vmem:[%s11700_s3 + $0x880] sm:$0xf]  ;;  %3421 = vmatpush.bf16.msrb.mxu0 %v6199_v5  ;;  %v5563_v2 = vor.u32 %v7552_v58, %v5560_v59  ;;  %v7456_v56 = vld [vmem:[%s11700_s3 + $0xc4] sm:$0xf] }
  0x70   :  { %v7708_v8 = vld [vmem:[%s11700_s3 + $0x89c] sm:$0xf0]  ;;  %v5176_v58 = vld [vmem:[%s11700_s3 + $0xe0] sm:$0xf0] }
  0x71   :  { %v6422_v9 = vld [vmem:[%s11700_s3 + $0xa80] sm:$0xf]  ;;  %v6167_v11 = vor.u32 %v7708_v8, %v6166_v7  ;;  %3434 = vmatpush.bf16.msrb.mxu1 %v6455_v6  ;;  %v7544_v6 = vld [vmem:[%s11700_s3 + $0x384] sm:$0xf] }
  0x72   :  { %v7772_v10 = vld [vmem:[%s11700_s3 + $0xa9c] sm:$0xf0]  ;;  %v5528_v7 = vld [vmem:[%s11700_s3 + $0x3a0] sm:$0xf0] }
  0x73   :  { %v6423_v12 = vor.u32 %v7772_v10, %v6422_v9  ;;  %3422 = vmatpush.bf16.msrb.mxu0 %v6167_v11  ;;  %v6710_v13 = vld [vmem:[%s11700_s3 + $0xcc0] sm:$0xf]  ;;  %v7520_v59 = vld [vmem:[%s11700_s3 + $0x2c4] sm:$0xf] }
  0x74   :  { %v7844_v14 = vld [vmem:[%s11700_s3 + $0xcdc] sm:$0xf0] }
  0x75   :  { %3435 = vmatpush.bf16.msrb.mxu1 %v6423_v12  ;;  %v6966_v15 = vld [vmem:[%s11700_s3 + $0xec0] sm:$0xf]  ;;  %v6711_v16 = vor.u32 %v7844_v14, %v6710_v13  ;;  %v5275_v12 = vor.u32 %v7480_v3, %v5272_v4  ;;  %v7616_v13 = vld [vmem:[%s11700_s3 + $0x5c4] sm:$0xf] }
  0x76   :  { %v7908_v17 = vld [vmem:[%s11700_s3 + $0xedc] sm:$0xf0]  ;;  %v5816_v14 = vld [vmem:[%s11700_s3 + $0x5e0] sm:$0xf0] }
  0x77   :  { %v6967_v18 = vor.u32 %v7908_v17, %v6966_v15  ;;  %v6134_v19 = vld [vmem:[%s11700_s3 + $0x840] sm:$0xf]  ;;  %3447 = vmatpush.bf16.msrb.mxu2 %v6711_v16  ;;  %v7680_v15 = vld [vmem:[%s11700_s3 + $0x7c4] sm:$0xf] }
  0x78   :  { %v7700_v20 = vld [vmem:[%s11700_s3 + $0x85c] sm:$0xf0]  ;;  %v7592_v4 = vld [vmem:[%s11700_s3 + $0x504] sm:$0xf] }
  0x79   :  { %v6135_v21 = vor.u32 %v7700_v20, %v6134_v19  ;;  %v6390_v22 = vld [vmem:[%s11700_s3 + $0xa40] sm:$0xf]  ;;  %3460 = vmatpush.bf16.msrb.mxu3 %v6967_v18  ;;  %v5531_v18 = vor.u32 %v7544_v6, %v5528_v7  ;;  %v6072_v19 = vld [vmem:[%s11700_s3 + $0x7e0] sm:$0xf0] }
  0x7a   :  { %v7764_v24 = vld [vmem:[%s11700_s3 + $0xa5c] sm:$0xf0]  ;;  %v7472_v20 = vld [vmem:[%s11700_s3 + $0x144] sm:$0xf] }
  0x7b   :  { %v6391_v25 = vor.u32 %v7764_v24, %v6390_v22  ;;  %v6678_v26 = vld [vmem:[%s11700_s3 + $0xc80] sm:$0xf]  ;;  %3423 = vmatpush.bf16.msrb.mxu0 %v6135_v21  ;;  %v5240_v21 = vld [vmem:[%s11700_s3 + $0x160] sm:$0xf0] }
  0x7c   :  { %v7836_v27 = vld [vmem:[%s11700_s3 + $0xc9c] sm:$0xf0]  ;;  %v7536_v24 = vld [vmem:[%s11700_s3 + $0x344] sm:$0xf] }
  0x7d   :  { %v6934_v28 = vld [vmem:[%s11700_s3 + $0xe80] sm:$0xf]  ;;  %v6679_v29 = vor.u32 %v7836_v27, %v6678_v26  ;;  %3436 = vmatpush.bf16.msrb.mxu1 %v6391_v25  ;;  %v5496_v25 = vld [vmem:[%s11700_s3 + $0x360] sm:$0xf0]  ;;  %v5819_v27 = vor.u32 %v7616_v13, %v5816_v14 }
  0x7e   :  { %v7900_v30 = vld [vmem:[%s11700_s3 + $0xe9c] sm:$0xf0]  ;;  %v5720_v6 = vld [vmem:[%s11700_s3 + $0x520] sm:$0xf0] }
  0x7f   :  { %v6935_v31 = vor.u32 %v7900_v30, %v6934_v28  ;;  %v6102_v32 = vld [vmem:[%s11700_s3 + $0x800] sm:$0xf]  ;;  %3448 = vmatpush.bf16.msrb.mxu2 %v6679_v29  ;;  %v6075_v30 = vor.u32 %v7680_v15, %v6072_v19  ;;  %v5144_v13 = vld [vmem:[%s11700_s3 + $0xa0] sm:$0xf0] }
  0x80   :  { %v7692_v33 = vld [vmem:[%s11700_s3 + $0x81c] sm:$0xf0]  ;;  %v7512_v14 = vld [vmem:[%s11700_s3 + $0x284] sm:$0xf] }
  0x81   :  { %v6358_v34 = vld [vmem:[%s11700_s3 + $0xa00] sm:$0xf]  ;;  %v6103_v35 = vor.u32 %v7692_v33, %v6102_v32  ;;  %3461 = vmatpush.bf16.msrb.mxu3 %v6935_v31  ;;  %v5243_v31 = vor.u32 %v7472_v20, %v5240_v21  ;;  %v7608_v32 = vld [vmem:[%s11700_s3 + $0x584] sm:$0xf] }
  0x82   :  { %v7756_v36 = vld [vmem:[%s11700_s3 + $0xa1c] sm:$0xf0]  ;;  %v5784_v33 = vld [vmem:[%s11700_s3 + $0x5a0] sm:$0xf0] }
  0x83   :  { %v6359_v37 = vor.u32 %v7756_v36, %v6358_v34  ;;  %3424 = vmatpush.bf16.msrb.mxu0 %v6103_v35  ;;  %v6646_v38 = vld [vmem:[%s11700_s3 + $0xc40] sm:$0xf]  ;;  %v7672_v34 = vld [vmem:[%s11700_s3 + $0x784] sm:$0xf]  ;;  %v5499_v36 = vor.u32 %v7536_v24, %v5496_v25 }
  0x84   :  { %v7828_v39 = vld [vmem:[%s11700_s3 + $0xc5c] sm:$0xf0]  ;;  %v5400_v15 = vld [vmem:[%s11700_s3 + $0x2a0] sm:$0xf0] }
  0x85   :  { %3437 = vmatpush.bf16.msrb.mxu1 %v6359_v37  ;;  %v6647_v40 = vor.u32 %v7828_v39, %v6646_v38  ;;  %v6902_v41 = vld [vmem:[%s11700_s3 + $0xe40] sm:$0xf]  ;;  %v6040_v37 = vld [vmem:[%s11700_s3 + $0x7a0] sm:$0xf0] }
  0x86   :  { %v7892_v42 = vld [vmem:[%s11700_s3 + $0xe5c] sm:$0xf0]  ;;  %v7464_v38 = vld [vmem:[%s11700_s3 + $0x104] sm:$0xf] }
  0x87   :  { %v6903_v43 = vor.u32 %v7892_v42, %v6902_v41  ;;  %3449 = vmatpush.bf16.msrb.mxu2 %v6647_v40  ;;  %v6614_v44 = vld [vmem:[%s11700_s3 + $0xc00] sm:$0xf]  ;;  %v5208_v39 = vld [vmem:[%s11700_s3 + $0x120] sm:$0xf0] }
  0x88   :  { %v7820_v45 = vld [vmem:[%s11700_s3 + $0xc1c] sm:$0xf0]  ;;  %v7528_v41 = vld [vmem:[%s11700_s3 + $0x304] sm:$0xf] }
  0x89   :  { %3462 = vmatpush.bf16.msrb.mxu3 %v6903_v43  ;;  %v6615_v46 = vor.u32 %v7820_v45, %v6614_v44  ;;  %v6870_v47 = vld [vmem:[%s11700_s3 + $0xe00] sm:$0xf]  ;;  %v164_v52 = vpop.f32.mrf.mxu0  ;;  %v177_v54 = vpop.f32.mrf.mxu1  ;;  %v5464_v42 = vld [vmem:[%s11700_s3 + $0x320] sm:$0xf0]  ;;  %v5787_v44 = vor.u32 %v7608_v32, %v5784_v33 }
  0x8a   :  { %v7884_v23 = vld [vmem:[%s11700_s3 + $0xe1c] sm:$0xf0]  ;;  %v7584_v21 = vld [vmem:[%s11700_s3 + $0x4c4] sm:$0xf] }
  0x8b   :  { %v6871_v48 = vor.u32 %v7884_v23, %v6870_v47  ;;  %3450 = vmatpush.bf16.msrb.mxu2 %v6615_v46  ;;  %v8574_v49 = vld [vmem:[%s11701_s2] sm:$0xff]  ;;  %v6043_v47 = vor.u32 %v7672_v34, %v6040_v37  ;;  %v5211_v23 = vor.u32 %v7464_v38, %v5208_v39 }
  0x8c   :  { %v55_v50 = vperm.slane %v8574_v49, 0  ;;  %v56_v51 = vperm.slane %v8574_v49, 1  ;;  %v57_v62 = vperm.slane %v8574_v49, 2  ;;  %v58_v1 = vperm.slane %v8574_v49, 3  ;;  %v7648_v24 = vld [vmem:[%s11700_s3 + $0x6c4] sm:$0xf] }
  0x8d   :  { %3463 = vmatpush.bf16.msrb.mxu3 %v6871_v48  ;;  %v59_v28 = vperm.slane %v8574_v49, 4  ;;  %v60_v40 = vperm.slane %v8574_v49, 5  ;;  %v7600_v48 = vld [vmem:[%s11700_s3 + $0x544] sm:$0xf]  ;;  %v62_v3 = vperm.slane %v8574_v49, 7 }
  0x8e   :  { %v165_v53 = vadd.f32 %v164_v52, %v55_v50  ;;  %v178_v57 = vadd.f32 %v177_v54, %v56_v51  ;;  %v5752_v50 = vld [vmem:[%s11700_s3 + $0x560] sm:$0xf0] }
  0x8f   :  { %v7664_v54 = vld [vmem:[%s11700_s3 + $0x744] sm:$0xf] }
  0x90   :  { %v259_v60 = vmax.f32 %v165_v53, 0.0  ;;  %v260_v61 = vmax.f32 %v178_v57, 0.0  ;;  %v5467_v53 = vor.u32 %v7528_v41, %v5464_v42  ;;  %v5112_v32 = vld [vmem:[%s11700_s3 + $0x60] sm:$0xf0] }
  0x91   :  { %v190_v8 = vpop.f32.mrf.mxu2  ;;  %v203_v10 = vpop.f32.mrf.mxu3  ;;  %v5368_v37 = vld [vmem:[%s11700_s3 + $0x260] sm:$0xf0] }
  0x92   :  { %v8591_v0 = vpack.c.bf16 %v259_v60, %v259_v60  ;;  %v8600_v5 = vpack.c.bf16 %v260_v61, %v260_v61  ;;  %v191_v9 = vadd.f32 %v190_v8, %v57_v62  ;;  %v166_v11 = vpop.f32.mrf.mxu0  ;;  %v204_v16 = vadd.f32 %v203_v10, %v58_v1  ;;  %v179_v17 = vpop.f32.mrf.mxu1  ;;  %v5432_v60 = vld [vmem:[%s11700_s3 + $0x2e0] sm:$0xf0] }
  0x93   :  { %v5755_v62 = vor.u32 %v7600_v48, %v5752_v50  ;;  %v5179_v8 = vor.u32 %v7456_v56, %v5176_v58  ;;  %v7656_v10 = vld [vmem:[%s11700_s3 + $0x704] sm:$0xf]  ;;  %v5723_v17 = vor.u32 %v7592_v4, %v5720_v6 }
  0x94   :  { %3373 = vmatmul.bf16.vlgmr.msra.gmra.mxu0 %v8591_v0  ;;  %3386 = vmatmul.bf16.vlgmr.msra.gmra.mxu1 %v8600_v5  ;;  %v261_v22 = vmax.f32 %v191_v9, 0.0  ;;  %v262_v26 = vmax.f32 %v204_v16, 0.0  ;;  %v5435_v9 = vor.u32 %v7520_v59, %v5432_v60  ;;  %v7448_v11 = vld [vmem:[%s11700_s3 + $0x84] sm:$0xf] }
  0x95   :  { %3469 = vmatpush.bf16.msra.mxu0 %v5307_v63  ;;  %3482 = vmatpush.bf16.msra.mxu1 %v5563_v2  ;;  %v61_v63 = vperm.slane %v8574_v49, 6  ;;  %v6011_v2 = vor.u32 %v7664_v54, %v6008_v55  ;;  %v5976_v49 = vld [vmem:[%s11700_s3 + $0x720] sm:$0xf0] }
  0x96   :  { %v8635_v29 = vpack.c.bf16 %v261_v22, %v261_v22  ;;  %v8646_v35 = vpack.c.bf16 %v262_v26, %v262_v26  ;;  %v5979_v20 = vor.u32 %v7656_v10, %v5976_v49  ;;  %v5688_v22 = vld [vmem:[%s11700_s3 + $0x4e0] sm:$0xf0] }
  0x97   :  { %v5691_v39 = vor.u32 %v7584_v21, %v5688_v22  ;;  %v7576_v42 = vld [vmem:[%s11700_s3 + $0x484] sm:$0xf] }
  0x98   :  { %3399 = vmatmul.bf16.vlgmr.msra.gmra.mxu2 %v8635_v29  ;;  %3412 = vmatmul.bf16.vlgmr.msra.gmra.mxu3 %v8646_v35  ;;  %v7432_v48 = vld [vmem:[%s11700_s3 + $0x4] sm:$0xf] }
  0x99   :  { %3470 = vmatpush.bf16.msra.mxu0 %v5275_v12  ;;  %3483 = vmatpush.bf16.msra.mxu1 %v5531_v18  ;;  %v192_v43 = vpop.f32.mrf.mxu2  ;;  %v205_v45 = vpop.f32.mrf.mxu3  ;;  %v5080_v50 = vld [vmem:[%s11700_s3 + $0x20] sm:$0xf0] }
  0x9a   :  { %3495 = vmatpush.bf16.msra.mxu2 %v5819_v27  ;;  %3508 = vmatpush.bf16.msra.mxu3 %v6075_v30  ;;  %v216_v46 = vpop.f32.mrf.mxu0  ;;  %v229_v52 = vpop.f32.mrf.mxu1  ;;  %v5147_v27 = vor.u32 %v7448_v11, %v5144_v13  ;;  %v5944_v30 = vld [vmem:[%s11700_s3 + $0x6e0] sm:$0xf0] }
  0x9b   :  { %v217_v51 = vadd.f32 %v216_v46, %v59_v28  ;;  %v230_v57 = vadd.f32 %v229_v52, %v60_v40  ;;  %v5403_v28 = vor.u32 %v7512_v14, %v5400_v15  ;;  %v5947_v41 = vor.u32 %v7648_v24, %v5944_v30  ;;  %v5656_v43 = vld [vmem:[%s11700_s3 + $0x4a0] sm:$0xf0] }
  0x9c   :  { %v5336_v52 = vld [vmem:[%s11700_s3 + $0x220] sm:$0xf0]  ;;  %v5659_v54 = vor.u32 %v7576_v42, %v5656_v43 }
  0x9d   :  { %3471 = vmatpush.bf16.msra.mxu0 %v5243_v31  ;;  %3484 = vmatpush.bf16.msra.mxu1 %v5499_v36  ;;  %v263_v61 = vmax.f32 %v217_v51, 0.0  ;;  %v264_v1 = vmax.f32 %v230_v57, 0.0  ;;  %v7440_v31 = vld [vmem:[%s11700_s3 + $0x44] sm:$0xf] }
  0x9e   :  { %3496 = vmatpush.bf16.msra.mxu2 %v5787_v44  ;;  %3509 = vmatpush.bf16.msra.mxu3 %v6043_v47  ;;  %v7504_v36 = vld [vmem:[%s11700_s3 + $0x244] sm:$0xf]  ;;  %v5115_v46 = vor.u32 %v7440_v31, %v5112_v32 }
  0x9f   :  { %v8698_v7 = vpack.c.bf16 %v263_v61, %v263_v61  ;;  %v8709_v12 = vpack.c.bf16 %v264_v1, %v264_v1  ;;  %v7640_v44 = vld [vmem:[%s11700_s3 + $0x684] sm:$0xf]  ;;  %v5371_v47 = vor.u32 %v7504_v36, %v5368_v37 }
  0xa0   :  { %v7496_v51 = vld [vmem:[%s11700_s3 + $0x204] sm:$0xf] }
  0xa1   :  { %3472 = vmatpush.bf16.msra.mxu0 %v5211_v23  ;;  %3485 = vmatpush.bf16.msra.mxu1 %v5467_v53  ;;  %v242_v16 = vpop.f32.mrf.mxu2  ;;  %v5912_v23 = vld [vmem:[%s11700_s3 + $0x6a0] sm:$0xf0]  ;;  %v5339_v1 = vor.u32 %v7496_v51, %v5336_v52 }
  0xa2   :  { %3497 = vmatpush.bf16.msra.mxu2 %v5755_v62  ;;  %3510 = vmatpush.bf16.msra.mxu3 %v6011_v2  ;;  %v243_v18 = vadd.f32 %v242_v16, %v61_v63  ;;  %v255_v19 = vpop.f32.mrf.mxu3  ;;  %v218_v25 = vpop.f32.mrf.mxu0  ;;  %v7744_v53 = vld [vmem:[%s11700_s3 + $0x9c4] sm:$0xf]  ;;  %v5915_v59 = vor.u32 %v7640_v44, %v5912_v23  ;;  %v5083_v63 = vor.u32 %v7432_v48, %v5080_v50 }
  0xa3   :  { %v256_v26 = vadd.f32 %v255_v19, %v62_v3  ;;  %v231_v33 = vpop.f32.mrf.mxu1  ;;  %v6328_v56 = vld [vmem:[%s11700_s3 + $0x9e0] sm:$0xf0] }
  0xa4   :  { %3425 = vmatmul.bf16.vlgmr.msrb.gmra.mxu0 %v8698_v7  ;;  %3438 = vmatmul.bf16.vlgmr.msrb.gmra.mxu1 %v8709_v12  ;;  %v265_v34 = vmax.f32 %v243_v18, 0.0  ;;  %v7808_v57 = vld [vmem:[%s11700_s3 + $0xbc4] sm:$0xf]  ;;  %v6331_v4 = vor.u32 %v7744_v53, %v6328_v56 }
  0xa5   :  { %3473 = vmatpush.bf16.msra.mxu0 %v5179_v8  ;;  %3486 = vmatpush.bf16.msra.mxu1 %v5435_v9  ;;  %v266_v38 = vmax.f32 %v256_v26, 0.0  ;;  %v6584_v58 = vld [vmem:[%s11700_s3 + $0xbe0] sm:$0xf0] }
  0xa6   :  { %3498 = vmatpush.bf16.msra.mxu2 %v5723_v17  ;;  %v8746_v40 = vpack.c.bf16 %v265_v34, %v265_v34  ;;  %3511 = vmatpush.bf16.msra.mxu3 %v5979_v20  ;;  %v7568_v61 = vld [vmem:[%s11700_s3 + $0x444] sm:$0xf]  ;;  %v6587_v6 = vor.u32 %v7808_v57, %v6584_v58 }
  0xa7   :  { %v8757_v45 = vpack.c.bf16 %v266_v38, %v266_v38  ;;  %v5624_v62 = vld [vmem:[%s11700_s3 + $0x460] sm:$0xf0] }
  0xa8   :  { %3451 = vmatmul.bf16.vlgmr.msrb.gmra.mxu2 %v8746_v40  ;;  %v7632_v2 = vld [vmem:[%s11700_s3 + $0x644] sm:$0xf]  ;;  %v5627_v9 = vor.u32 %v7568_v61, %v5624_v62 }
  0xa9   :  { %3474 = vmatpush.bf16.msra.mxu0 %v5147_v27  ;;  %3487 = vmatpush.bf16.msra.mxu1 %v5403_v28  ;;  %v244_v55 = vpop.f32.mrf.mxu2  ;;  %v5880_v3 = vld [vmem:[%s11700_s3 + $0x660] sm:$0xf0] }
  0xaa   :  { %3464 = vmatmul.bf16.vlgmr.msrb.gmra.mxu3 %v8757_v45  ;;  %3499 = vmatpush.bf16.msra.mxu2 %v5691_v39  ;;  %v257_v60 = vpop.f32.mrf.mxu3  ;;  %v7736_v8 = vld [vmem:[%s11700_s3 + $0x984] sm:$0xf]  ;;  %v5883_v13 = vor.u32 %v7632_v2, %v5880_v3 }
  0xab   :  { %3512 = vmatpush.bf16.msra.mxu3 %v5947_v41  ;;  %v6296_v10 = vld [vmem:[%s11700_s3 + $0x9a0] sm:$0xf0] }
  0xac   :  { %v7800_v49 = vld [vmem:[%s11700_s3 + $0xb84] sm:$0xf]  ;;  %v6299_v20 = vor.u32 %v7736_v8, %v6296_v10 }
  0xad   :  { %3475 = vmatpush.bf16.msra.mxu0 %v5115_v46  ;;  %3488 = vmatpush.bf16.msra.mxu1 %v5371_v47  ;;  %v6552_v11 = vld [vmem:[%s11700_s3 + $0xba0] sm:$0xf0] }
  0xae   :  { %3500 = vmatpush.bf16.msra.mxu2 %v5659_v54  ;;  %v7560_v14 = vld [vmem:[%s11700_s3 + $0x404] sm:$0xf]  ;;  %v6555_v21 = vor.u32 %v7800_v49, %v6552_v11 }
  0xaf   :  { %3513 = vmatpush.bf16.msra.mxu3 %v5915_v59  ;;  %v5592_v15 = vld [vmem:[%s11700_s3 + $0x420] sm:$0xf0] }
  0xb0   :  { %v7624_v16 = vld [vmem:[%s11700_s3 + $0x604] sm:$0xf]  ;;  %v5595_v26 = vor.u32 %v7560_v14, %v5592_v15 }
  0xb1   :  { %3476 = vmatpush.bf16.msra.mxu0 %v5083_v63  ;;  %3489 = vmatpush.bf16.msra.mxu1 %v5339_v1  ;;  %v5848_v17 = vld [vmem:[%s11700_s3 + $0x620] sm:$0xf0] }
  0xb2   :  { %v7872_v18 = vld [vmem:[%s11700_s3 + $0xdc4] sm:$0xf]  ;;  %3501 = vmatpush.bf16.msra.mxu2 %v5627_v9  ;;  %v5851_v31 = vor.u32 %v7624_v16, %v5848_v17 }
  0xb3   :  { %v6840_v19 = vld [vmem:[%s11700_s3 + $0xde0] sm:$0xf0]  ;;  %3514 = vmatpush.bf16.msra.mxu3 %v5883_v13 }
  0xb4   :  { %v7936_v22 = vld [vmem:[%s11700_s3 + $0xfc4] sm:$0xf]  ;;  %3477 = vmatmul.bf16.vlgmr.msra.gmra.mxu0 %v8591_v0  ;;  %v6843_v32 = vor.u32 %v7872_v18, %v6840_v19  ;;  %3490 = vmatmul.bf16.vlgmr.msra.gmra.mxu1 %v8600_v5 }
  0xb5   :  { %3521 = vmatpush.bf16.msrb.mxu0 %v6331_v4  ;;  %3534 = vmatpush.bf16.msrb.mxu1 %v6587_v6  ;;  %v7096_v24 = vld [vmem:[%s11700_s3 + $0xfe0] sm:$0xf0] }
  0xb6   :  { %v7728_v25 = vld [vmem:[%s11700_s3 + $0x944] sm:$0xf]  ;;  %v7099_v33 = vor.u32 %v7936_v22, %v7096_v24  ;;  %3502 = vmatpush.bf16.msra.mxu2 %v5595_v26 }
  0xb7   :  { %v6264_v27 = vld [vmem:[%s11700_s3 + $0x960] sm:$0xf0]  ;;  %3515 = vmatpush.bf16.msra.mxu3 %v5851_v31 }
  0xb8   :  { %v7792_v28 = vld [vmem:[%s11700_s3 + $0xb44] sm:$0xf]  ;;  %v6267_v37 = vor.u32 %v7728_v25, %v6264_v27 }
  0xb9   :  { %v6520_v30 = vld [vmem:[%s11700_s3 + $0xb60] sm:$0xf0]  ;;  %3522 = vmatpush.bf16.msrb.mxu0 %v6299_v20  ;;  %3535 = vmatpush.bf16.msrb.mxu1 %v6555_v21 }
  0xba   :  { %v7864_v34 = vld [vmem:[%s11700_s3 + $0xd84] sm:$0xf]  ;;  %v6523_v38 = vor.u32 %v7792_v28, %v6520_v30  ;;  %3547 = vmatpush.bf16.msrb.mxu2 %v6843_v32  ;;  %3516 = vmatmul.bf16.vlgmr.msra.gmra.mxu3 %v8646_v35 }
  0xbb   :  { %v6808_v36 = vld [vmem:[%s11700_s3 + $0xda0] sm:$0xf0]  ;;  %3560 = vmatpush.bf16.msrb.mxu3 %v7099_v33  ;;  %3503 = vmatmul.bf16.vlgmr.msra.gmra.mxu2 %v8635_v29 }
  0xbc   :  { %v7928_v39 = vld [vmem:[%s11700_s3 + $0xf84] sm:$0xf]  ;;  %v6811_v47 = vor.u32 %v7864_v34, %v6808_v36 }
  0xbd   :  { %v7064_v41 = vld [vmem:[%s11700_s3 + $0xfa0] sm:$0xf0]  ;;  %3523 = vmatpush.bf16.msrb.mxu0 %v6267_v37  ;;  %3536 = vmatpush.bf16.msrb.mxu1 %v6523_v38  ;;  %v5310_v37 = vld [vmem:[%s11700_s3 + $0x1c8] sm:$0xf] }
  0xbe   :  { %v7720_v42 = vld [vmem:[%s11700_s3 + $0x904] sm:$0xf]  ;;  %v7067_v23 = vor.u32 %v7928_v39, %v7064_v41  ;;  %3548 = vmatpush.bf16.msrb.mxu2 %v6811_v47  ;;  %v7493_v39 = vld [vmem:[%s11700_s3 + $0x1e4] sm:$0xf0] }
  0xbf   :  { %v6232_v43 = vld [vmem:[%s11700_s3 + $0x920] sm:$0xf0]  ;;  %v5566_v41 = vld [vmem:[%s11700_s3 + $0x3c8] sm:$0xf] }
  0xc0   :  { %v7784_v44 = vld [vmem:[%s11700_s3 + $0xb04] sm:$0xf]  ;;  %v6235_v51 = vor.u32 %v7720_v42, %v6232_v43  ;;  %3561 = vmatpush.bf16.msrb.mxu3 %v7067_v23  ;;  %v7557_v42 = vld [vmem:[%s11700_s3 + $0x3e4] sm:$0xf0] }
  0xc1   :  { %v6488_v46 = vld [vmem:[%s11700_s3 + $0xb20] sm:$0xf0] }
  0xc2   :  { %v7856_v48 = vld [vmem:[%s11700_s3 + $0xd44] sm:$0xf]  ;;  %v6491_v52 = vor.u32 %v7784_v44, %v6488_v46  ;;  %3524 = vmatpush.bf16.msrb.mxu0 %v6235_v51  ;;  %v5311_v51 = vor.u32 %v7493_v39, %v5310_v37  ;;  %v5182_v37 = vld [vmem:[%s11700_s3 + $0xc8] sm:$0xf] }
  0xc3   :  { %v6776_v50 = vld [vmem:[%s11700_s3 + $0xd60] sm:$0xf0] }
  0xc4   :  { %v7920_v53 = vld [vmem:[%s11700_s3 + $0xf44] sm:$0xf]  ;;  %v6779_v59 = vor.u32 %v7856_v48, %v6776_v50  ;;  %3537 = vmatpush.bf16.msrb.mxu1 %v6491_v52  ;;  %v5567_v52 = vor.u32 %v7557_v42, %v5566_v41  ;;  %v5438_v41 = vld [vmem:[%s11700_s3 + $0x2c8] sm:$0xf] }
  0xc5   :  { %v7032_v54 = vld [vmem:[%s11700_s3 + $0xf60] sm:$0xf0]  ;;  %v7525_v42 = vld [vmem:[%s11700_s3 + $0x2e4] sm:$0xf0] }
  0xc6   :  { %v7712_v55 = vld [vmem:[%s11700_s3 + $0x8c4] sm:$0xf]  ;;  %v7035_v60 = vor.u32 %v7920_v53, %v7032_v54  ;;  %3549 = vmatpush.bf16.msrb.mxu2 %v6779_v59  ;;  %v5278_v53 = vld [vmem:[%s11700_s3 + $0x188] sm:$0xf] }
  0xc7   :  { %v6200_v56 = vld [vmem:[%s11700_s3 + $0x8e0] sm:$0xf0] }
  0xc8   :  { %v7776_v57 = vld [vmem:[%s11700_s3 + $0xac4] sm:$0xf]  ;;  %v6203_v63 = vor.u32 %v7712_v55, %v6200_v56  ;;  %3562 = vmatpush.bf16.msrb.mxu3 %v7035_v60  ;;  %v7485_v55 = vld [vmem:[%s11700_s3 + $0x1a4] sm:$0xf0] }
  0xc9   :  { %v6456_v58 = vld [vmem:[%s11700_s3 + $0xae0] sm:$0xf0]  ;;  %v5534_v56 = vld [vmem:[%s11700_s3 + $0x388] sm:$0xf] }
  0xca   :  { %v7848_v61 = vld [vmem:[%s11700_s3 + $0xd04] sm:$0xf]  ;;  %v6459_v1 = vor.u32 %v7776_v57, %v6456_v58  ;;  %3525 = vmatpush.bf16.msrb.mxu0 %v6203_v63  ;;  %v7549_v57 = vld [vmem:[%s11700_s3 + $0x3a4] sm:$0xf0] }
  0xcb   :  { %v6744_v62 = vld [vmem:[%s11700_s3 + $0xd20] sm:$0xf0]  ;;  %v5822_v63 = vld [vmem:[%s11700_s3 + $0x5c8] sm:$0xf] }
  0xcc   :  { %v7912_v2 = vld [vmem:[%s11700_s3 + $0xf04] sm:$0xf]  ;;  %v6747_v10 = vor.u32 %v7848_v61, %v6744_v62  ;;  %3538 = vmatpush.bf16.msrb.mxu1 %v6459_v1  ;;  %v7621_v1 = vld [vmem:[%s11700_s3 + $0x5e4] sm:$0xf0] }
  0xcd   :  { %v7000_v3 = vld [vmem:[%s11700_s3 + $0xf20] sm:$0xf0] }
  0xce   :  { %v7704_v4 = vld [vmem:[%s11700_s3 + $0x884] sm:$0xf]  ;;  %v7003_v49 = vor.u32 %v7912_v2, %v7000_v3  ;;  %3550 = vmatpush.bf16.msrb.mxu2 %v6747_v10  ;;  %v5279_v2 = vor.u32 %v7485_v55, %v5278_v53  ;;  %v5535_v3 = vor.u32 %v7549_v57, %v5534_v56  ;;  %v7477_v10 = vld [vmem:[%s11700_s3 + $0x164] sm:$0xf0] }
  0xcf   :  { %v6168_v6 = vld [vmem:[%s11700_s3 + $0x8a0] sm:$0xf0]  ;;  %v7517_v55 = vld [vmem:[%s11700_s3 + $0x2a4] sm:$0xf0] }
  0xd0   :  { %v7768_v8 = vld [vmem:[%s11700_s3 + $0xa84] sm:$0xf]  ;;  %v6171_v14 = vor.u32 %v7704_v4, %v6168_v6  ;;  %3563 = vmatpush.bf16.msrb.mxu3 %v7003_v49  ;;  %v6078_v4 = vld [vmem:[%s11700_s3 + $0x7c8] sm:$0xf] }
  0xd1   :  { %v6424_v9 = vld [vmem:[%s11700_s3 + $0xaa0] sm:$0xf0]  ;;  %v7685_v6 = vld [vmem:[%s11700_s3 + $0x7e4] sm:$0xf0] }
  0xd2   :  { %v7840_v11 = vld [vmem:[%s11700_s3 + $0xcc4] sm:$0xf]  ;;  %v6427_v15 = vor.u32 %v7768_v8, %v6424_v9  ;;  %3526 = vmatpush.bf16.msrb.mxu0 %v6171_v14  ;;  %v5246_v9 = vld [vmem:[%s11700_s3 + $0x148] sm:$0xf] }
  0xd3   :  { %v6712_v13 = vld [vmem:[%s11700_s3 + $0xce0] sm:$0xf0]  ;;  %v7541_v14 = vld [vmem:[%s11700_s3 + $0x364] sm:$0xf0] }
  0xd4   :  { %v7904_v16 = vld [vmem:[%s11700_s3 + $0xec4] sm:$0xf]  ;;  %v6715_v22 = vor.u32 %v7840_v11, %v6712_v13  ;;  %3539 = vmatpush.bf16.msrb.mxu1 %v6427_v15  ;;  %v5823_v11 = vor.u32 %v7621_v1, %v5822_v63  ;;  %v5502_v13 = vld [vmem:[%s11700_s3 + $0x348] sm:$0xf]  ;;  %v6079_v15 = vor.u32 %v7685_v6, %v6078_v4 }
  0xd5   :  { %v6968_v17 = vld [vmem:[%s11700_s3 + $0xee0] sm:$0xf0]  ;;  %v5694_v57 = vld [vmem:[%s11700_s3 + $0x4c8] sm:$0xf] }
  0xd6   :  { %v7696_v18 = vld [vmem:[%s11700_s3 + $0x844] sm:$0xf]  ;;  %v6971_v24 = vor.u32 %v7904_v16, %v6968_v17  ;;  %3551 = vmatpush.bf16.msrb.mxu2 %v6715_v22  ;;  %v5790_v16 = vld [vmem:[%s11700_s3 + $0x588] sm:$0xf] }
  0xd7   :  { %v6136_v19 = vld [vmem:[%s11700_s3 + $0x860] sm:$0xf0]  ;;  %v7613_v17 = vld [vmem:[%s11700_s3 + $0x5a4] sm:$0xf0] }
  0xd8   :  { %v7760_v20 = vld [vmem:[%s11700_s3 + $0xa44] sm:$0xf]  ;;  %v6139_v28 = vor.u32 %v7696_v18, %v6136_v19  ;;  %3564 = vmatpush.bf16.msrb.mxu3 %v6971_v24  ;;  %v5247_v18 = vor.u32 %v7477_v10, %v5246_v9  ;;  %v6046_v19 = vld [vmem:[%s11700_s3 + $0x788] sm:$0xf] }
  0xd9   :  { %v6392_v21 = vld [vmem:[%s11700_s3 + $0xa60] sm:$0xf0]  ;;  %v5214_v22 = vld [vmem:[%s11700_s3 + $0x108] sm:$0xf] }
  0xda   :  { %v7832_v25 = vld [vmem:[%s11700_s3 + $0xc84] sm:$0xf]  ;;  %v6395_v30 = vor.u32 %v7760_v20, %v6392_v21  ;;  %3527 = vmatpush.bf16.msrb.mxu0 %v6139_v28  ;;  %v7677_v20 = vld [vmem:[%s11700_s3 + $0x7a4] sm:$0xf0]  ;;  %v5503_v21 = vor.u32 %v7541_v14, %v5502_v13 }
  0xdb   :  { %v6680_v26 = vld [vmem:[%s11700_s3 + $0xca0] sm:$0xf0]  ;;  %v7469_v24 = vld [vmem:[%s11700_s3 + $0x124] sm:$0xf0]  ;;  %v6047_v28 = vor.u32 %v7677_v20, %v6046_v19 }
  0xdc   :  { %v7896_v27 = vld [vmem:[%s11700_s3 + $0xe84] sm:$0xf]  ;;  %v6683_v38 = vor.u32 %v7832_v25, %v6680_v26  ;;  %3540 = vmatpush.bf16.msrb.mxu1 %v6395_v30  ;;  %v5791_v25 = vor.u32 %v7613_v17, %v5790_v16  ;;  %v5470_v26 = vld [vmem:[%s11700_s3 + $0x308] sm:$0xf] }
  0xdd   :  { %v6936_v31 = vld [vmem:[%s11700_s3 + $0xea0] sm:$0xf0]  ;;  %v5758_v30 = vld [vmem:[%s11700_s3 + $0x548] sm:$0xf] }
  0xde   :  { %v7688_v32 = vld [vmem:[%s11700_s3 + $0x804] sm:$0xf]  ;;  %v6939_v43 = vor.u32 %v7896_v27, %v6936_v31  ;;  %3552 = vmatpush.bf16.msrb.mxu2 %v6683_v38  ;;  %v7533_v27 = vld [vmem:[%s11700_s3 + $0x324] sm:$0xf0] }
  0xdf   :  { %v6104_v33 = vld [vmem:[%s11700_s3 + $0x820] sm:$0xf0]  ;;  %v7605_v31 = vld [vmem:[%s11700_s3 + $0x564] sm:$0xf0] }
  0xe0   :  { %v7752_v34 = vld [vmem:[%s11700_s3 + $0xa04] sm:$0xf]  ;;  %v6107_v47 = vor.u32 %v7688_v32, %v6104_v33  ;;  %3565 = vmatpush.bf16.msrb.mxu3 %v6939_v43  ;;  %v5215_v32 = vor.u32 %v7469_v24, %v5214_v22  ;;  %v6014_v33 = vld [vmem:[%s11700_s3 + $0x748] sm:$0xf]  ;;  %v5759_v39 = vor.u32 %v7605_v31, %v5758_v30 }
  0xe1   :  { %v6360_v36 = vld [vmem:[%s11700_s3 + $0xa20] sm:$0xf0]  ;;  %v7461_v38 = vld [vmem:[%s11700_s3 + $0xe4] sm:$0xf0] }
  0xe2   :  { %v7824_v44 = vld [vmem:[%s11700_s3 + $0xc44] sm:$0xf]  ;;  %v6363_v23 = vor.u32 %v7752_v34, %v6360_v36  ;;  %3528 = vmatpush.bf16.msrb.mxu0 %v6107_v47  ;;  %v7669_v34 = vld [vmem:[%s11700_s3 + $0x764] sm:$0xf0]  ;;  %v5471_v36 = vor.u32 %v7533_v27, %v5470_v26  ;;  %v5183_v47 = vor.u32 %v7461_v38, %v5182_v37 }
  0xe3   :  { %v6648_v46 = vld [vmem:[%s11700_s3 + $0xc60] sm:$0xf0]  ;;  %v6015_v43 = vor.u32 %v7669_v34, %v6014_v33  ;;  %v5118_v63 = vld [vmem:[%s11700_s3 + $0x48] sm:$0xf] }
  0xe4   :  { %v7888_v48 = vld [vmem:[%s11700_s3 + $0xe44] sm:$0xf]  ;;  %v6651_v54 = vor.u32 %v7824_v44, %v6648_v46  ;;  %3541 = vmatpush.bf16.msrb.mxu1 %v6363_v23  ;;  %v5726_v44 = vld [vmem:[%s11700_s3 + $0x508] sm:$0xf] }
  0xe5   :  { %v6904_v50 = vld [vmem:[%s11700_s3 + $0xe60] sm:$0xf0]  ;;  %3529 = vmatmul.bf16.vlgmr.msrb.gmra.mxu0 %v8698_v7  ;;  %v7597_v46 = vld [vmem:[%s11700_s3 + $0x524] sm:$0xf0] }
  0xe6   :  { %v6907_v58 = vor.u32 %v7888_v48, %v6904_v50  ;;  %v7816_v59 = vld [vmem:[%s11700_s3 + $0xc04] sm:$0xf]  ;;  %3573 = vmatpush.bf16.msra.mxu0 %v5311_v51  ;;  %3553 = vmatpush.bf16.msrb.mxu2 %v6651_v54  ;;  %v5982_v23 = vld [vmem:[%s11700_s3 + $0x708] sm:$0xf]  ;;  %v5439_v50 = vor.u32 %v7525_v42, %v5438_v41  ;;  %v5727_v53 = vor.u32 %v7597_v46, %v5726_v44 }
  0xe7   :  { %v6616_v60 = vld [vmem:[%s11700_s3 + $0xc20] sm:$0xf0]  ;;  %3542 = vmatmul.bf16.vlgmr.msrb.gmra.mxu1 %v8709_v12  ;;  %v7661_v48 = vld [vmem:[%s11700_s3 + $0x724] sm:$0xf0] }
  0xe8   :  { %v7880_v61 = vld [vmem:[%s11700_s3 + $0xe04] sm:$0xf]  ;;  %3586 = vmatpush.bf16.msra.mxu1 %v5567_v52  ;;  %v6619_v8 = vor.u32 %v7816_v59, %v6616_v60  ;;  %3566 = vmatpush.bf16.msrb.mxu3 %v6907_v58  ;;  %v5150_v51 = vld [vmem:[%s11700_s3 + $0x88] sm:$0xf]  ;;  %v5983_v56 = vor.u32 %v7661_v48, %v5982_v23 }
  0xe9   :  { %v6872_v62 = vld [vmem:[%s11700_s3 + $0xe20] sm:$0xf0]  ;;  %v7453_v52 = vld [vmem:[%s11700_s3 + $0xa4] sm:$0xf0] }
  0xea   :  { %v6875_v49 = vor.u32 %v7880_v61, %v6872_v62  ;;  %3574 = vmatpush.bf16.msra.mxu0 %v5279_v2  ;;  %3554 = vmatpush.bf16.msrb.mxu2 %v6619_v8  ;;  %v5406_v54 = vld [vmem:[%s11700_s3 + $0x288] sm:$0xf]  ;;  %v5151_v59 = vor.u32 %v7453_v52, %v5150_v51 }
  0xeb   :  { %v7589_v58 = vld [vmem:[%s11700_s3 + $0x4e4] sm:$0xf0]  ;;  %v5407_v62 = vor.u32 %v7517_v55, %v5406_v54 }
  0xec   :  { %3587 = vmatpush.bf16.msra.mxu1 %v5535_v3  ;;  %3567 = vmatpush.bf16.msrb.mxu3 %v6875_v49  ;;  %v5950_v60 = vld [vmem:[%s11700_s3 + $0x6c8] sm:$0xf]  ;;  %v5695_v2 = vor.u32 %v7589_v58, %v5694_v57 }
  0xed   :  { %3555 = vmatmul.bf16.vlgmr.msrb.gmra.mxu2 %v8746_v40  ;;  %v7653_v61 = vld [vmem:[%s11700_s3 + $0x6e4] sm:$0xf0] }
  0xee   :  { %3599 = vmatpush.bf16.msra.mxu2 %v5823_v11  ;;  %3575 = vmatpush.bf16.msra.mxu0 %v5247_v18  ;;  %v7445_v1 = vld [vmem:[%s11700_s3 + $0x64] sm:$0xf0]  ;;  %v5951_v6 = vor.u32 %v7653_v61, %v5950_v60 }
  0xef   :  { %3568 = vmatmul.bf16.vlgmr.msrb.gmra.mxu3 %v8757_v45  ;;  %v5374_v3 = vld [vmem:[%s11700_s3 + $0x248] sm:$0xf]  ;;  %v5119_v10 = vor.u32 %v7445_v1, %v5118_v63 }
  0xf0   :  { %3612 = vmatpush.bf16.msra.mxu3 %v6079_v15  ;;  %3588 = vmatpush.bf16.msra.mxu1 %v5503_v21  ;;  %v7509_v4 = vld [vmem:[%s11700_s3 + $0x264] sm:$0xf0] }
  0xf1   :  { %v5662_v8 = vld [vmem:[%s11700_s3 + $0x488] sm:$0xf]  ;;  %v5375_v14 = vor.u32 %v7509_v4, %v5374_v3 }
  0xf2   :  { %3600 = vmatpush.bf16.msra.mxu2 %v5791_v25  ;;  %3576 = vmatpush.bf16.msra.mxu0 %v5215_v32  ;;  %v7581_v9 = vld [vmem:[%s11700_s3 + $0x4a4] sm:$0xf0] }
  0xf3   :  { %v5918_v49 = vld [vmem:[%s11700_s3 + $0x688] sm:$0xf]  ;;  %v5663_v18 = vor.u32 %v7581_v9, %v5662_v8 }
  0xf4   :  { %3613 = vmatpush.bf16.msra.mxu3 %v6047_v28  ;;  %3589 = vmatpush.bf16.msra.mxu1 %v5471_v36  ;;  %v7645_v11 = vld [vmem:[%s11700_s3 + $0x6a4] sm:$0xf0] }
  0xf5   :  { %v5086_v13 = vld [vmem:[%s11700_s3 + $0x8] sm:$0xf]  ;;  %v5919_v22 = vor.u32 %v7645_v11, %v5918_v49 }
  0xf6   :  { %3601 = vmatpush.bf16.msra.mxu2 %v5759_v39  ;;  %3577 = vmatpush.bf16.msra.mxu0 %v5183_v47  ;;  %v7437_v15 = vld [vmem:[%s11700_s3 + $0x24] sm:$0xf0] }
  0xf7   :  { %v5342_v16 = vld [vmem:[%s11700_s3 + $0x208] sm:$0xf]  ;;  %v5087_v27 = vor.u32 %v7437_v15, %v5086_v13 }
  0xf8   :  { %3614 = vmatpush.bf16.msra.mxu3 %v6015_v43  ;;  %3590 = vmatpush.bf16.msra.mxu1 %v5439_v50  ;;  %v7501_v17 = vld [vmem:[%s11700_s3 + $0x224] sm:$0xf0] }
  0xf9   :  { %v6334_v19 = vld [vmem:[%s11700_s3 + $0x9c8] sm:$0xf]  ;;  %v5343_v31 = vor.u32 %v7501_v17, %v5342_v16 }
  0xfa   :  { %3602 = vmatpush.bf16.msra.mxu2 %v5727_v53  ;;  %3578 = vmatpush.bf16.msra.mxu0 %v5151_v59  ;;  %v7749_v20 = vld [vmem:[%s11700_s3 + $0x9e4] sm:$0xf0] }
  0xfb   :  { %v6590_v21 = vld [vmem:[%s11700_s3 + $0xbc8] sm:$0xf]  ;;  %v6335_v32 = vor.u32 %v7749_v20, %v6334_v19 }
  0xfc   :  { %3615 = vmatpush.bf16.msra.mxu3 %v5983_v56  ;;  %3591 = vmatpush.bf16.msra.mxu1 %v5407_v62  ;;  %v7813_v24 = vld [vmem:[%s11700_s3 + $0xbe4] sm:$0xf0] }
  0xfd   :  { %v5630_v25 = vld [vmem:[%s11700_s3 + $0x448] sm:$0xf]  ;;  %v6591_v34 = vor.u32 %v7813_v24, %v6590_v21 }
  0xfe   :  { %3603 = vmatpush.bf16.msra.mxu2 %v5695_v2  ;;  %v7573_v26 = vld [vmem:[%s11700_s3 + $0x464] sm:$0xf0]  ;;  %3579 = vmatpush.bf16.msra.mxu0 %v5119_v10 }
  0xff   :  { %v5886_v28 = vld [vmem:[%s11700_s3 + $0x648] sm:$0xf]  ;;  %v5631_v36 = vor.u32 %v7573_v26, %v5630_v25 }
 0x100   :  { %3616 = vmatpush.bf16.msra.mxu3 %v5951_v6  ;;  %v7637_v30 = vld [vmem:[%s11700_s3 + $0x664] sm:$0xf0]  ;;  %3592 = vmatpush.bf16.msra.mxu1 %v5375_v14 }
 0x101   :  { %v6302_v33 = vld [vmem:[%s11700_s3 + $0x988] sm:$0xf]  ;;  %v5887_v41 = vor.u32 %v7637_v30, %v5886_v28 }
 0x102   :  { %3604 = vmatpush.bf16.msra.mxu2 %v5663_v18  ;;  %v7741_v37 = vld [vmem:[%s11700_s3 + $0x9a4] sm:$0xf0]  ;;  %3580 = vmatpush.bf16.msra.mxu0 %v5087_v27 }
 0x103   :  { %v6558_v38 = vld [vmem:[%s11700_s3 + $0xb88] sm:$0xf]  ;;  %v6303_v48 = vor.u32 %v7741_v37, %v6302_v33 }
 0x104   :  { %v7805_v39 = vld [vmem:[%s11700_s3 + $0xba4] sm:$0xf0]  ;;  %3617 = vmatpush.bf16.msra.mxu3 %v5919_v22  ;;  %3593 = vmatpush.bf16.msra.mxu1 %v5343_v31 }
 0x105   :  { %v5598_v42 = vld [vmem:[%s11700_s3 + $0x408] sm:$0xf]  ;;  %v6559_v52 = vor.u32 %v7805_v39, %v6558_v38  ;;  %3581 = vmatmul.bf16.vlgmr.msra.gmra.mxu0 %v8591_v0 }
 0x106   :  { %v7565_v43 = vld [vmem:[%s11700_s3 + $0x424] sm:$0xf0]  ;;  %3625 = vmatpush.bf16.msrb.mxu0 %v6335_v32  ;;  %3605 = vmatpush.bf16.msra.mxu2 %v5631_v36 }
 0x107   :  { %v5854_v44 = vld [vmem:[%s11700_s3 + $0x608] sm:$0xf]  ;;  %v5599_v53 = vor.u32 %v7565_v43, %v5598_v42  ;;  %3594 = vmatmul.bf16.vlgmr.msra.gmra.mxu1 %v8600_v5 }
 0x108   :  { %v7629_v46 = vld [vmem:[%s11700_s3 + $0x624] sm:$0xf0]  ;;  %3638 = vmatpush.bf16.msrb.mxu1 %v6591_v34  ;;  %3618 = vmatpush.bf16.msra.mxu3 %v5887_v41 }
 0x109   :  { %v6846_v47 = vld [vmem:[%s11700_s3 + $0xdc8] sm:$0xf]  ;;  %v5855_v56 = vor.u32 %v7629_v46, %v5854_v44 }
 0x10a   :  { %v7877_v23 = vld [vmem:[%s11700_s3 + $0xde4] sm:$0xf0]  ;;  %3626 = vmatpush.bf16.msrb.mxu0 %v6303_v48  ;;  %3606 = vmatpush.bf16.msra.mxu2 %v5599_v53 }
 0x10b   :  { %v7102_v50 = vld [vmem:[%s11700_s3 + $0xfc8] sm:$0xf]  ;;  %v6847_v57 = vor.u32 %v7877_v23, %v6846_v47 }
 0x10c   :  { %v7941_v51 = vld [vmem:[%s11700_s3 + $0xfe4] sm:$0xf0]  ;;  %3639 = vmatpush.bf16.msrb.mxu1 %v6559_v52  ;;  %3619 = vmatpush.bf16.msra.mxu3 %v5855_v56 }
 0x10d   :  { %v6270_v54 = vld [vmem:[%s11700_s3 + $0x948] sm:$0xf]  ;;  %v7103_v60 = vor.u32 %v7941_v51, %v7102_v50  ;;  %3607 = vmatmul.bf16.vlgmr.msra.gmra.mxu2 %v8635_v29 }
 0x10e   :  { %v7733_v55 = vld [vmem:[%s11700_s3 + $0x964] sm:$0xf0]  ;;  %3651 = vmatpush.bf16.msrb.mxu2 %v6847_v57 }
 0x10f   :  { %v6526_v58 = vld [vmem:[%s11700_s3 + $0xb48] sm:$0xf]  ;;  %v6271_v63 = vor.u32 %v7733_v55, %v6270_v54  ;;  %3620 = vmatmul.bf16.vlgmr.msra.gmra.mxu3 %v8646_v35 }
 0x110   :  { %v7797_v59 = vld [vmem:[%s11700_s3 + $0xb64] sm:$0xf0]  ;;  %3664 = vmatpush.bf16.msrb.mxu3 %v7103_v60 }
 0x111   :  { %v6814_v61 = vld [vmem:[%s11700_s3 + $0xd88] sm:$0xf]  ;;  %v6527_v3 = vor.u32 %v7797_v59, %v6526_v58  ;;  %3627 = vmatpush.bf16.msrb.mxu0 %v6271_v63 }
 0x112   :  { %v7869_v62 = vld [vmem:[%s11700_s3 + $0xda4] sm:$0xf0] }
 0x113   :  { %v7070_v1 = vld [vmem:[%s11700_s3 + $0xf88] sm:$0xf]  ;;  %v6815_v8 = vor.u32 %v7869_v62, %v6814_v61  ;;  %3640 = vmatpush.bf16.msrb.mxu1 %v6527_v3  ;;  %v7553_v3 = vld [vmem:[%s11700_s3 + $0x3cc] sm:$0xf] }
 0x114   :  { %v7933_v2 = vld [vmem:[%s11700_s3 + $0xfa4] sm:$0xf0] }
 0x115   :  { %v6238_v4 = vld [vmem:[%s11700_s3 + $0x908] sm:$0xf]  ;;  %v7071_v49 = vor.u32 %v7933_v2, %v7070_v1  ;;  %3652 = vmatpush.bf16.msrb.mxu2 %v6815_v8  ;;  %v7489_v1 = vld [vmem:[%s11700_s3 + $0x1cc] sm:$0xf] }
 0x116   :  { %v7725_v6 = vld [vmem:[%s11700_s3 + $0x924] sm:$0xf0]  ;;  %v5312_v2 = vld [vmem:[%s11700_s3 + $0x1e8] sm:$0xf0] }
 0x117   :  { %v6494_v9 = vld [vmem:[%s11700_s3 + $0xb08] sm:$0xf]  ;;  %v6239_v14 = vor.u32 %v7725_v6, %v6238_v4  ;;  %3665 = vmatpush.bf16.msrb.mxu3 %v7071_v49  ;;  %v5568_v6 = vld [vmem:[%s11700_s3 + $0x3e8] sm:$0xf0] }
 0x118   :  { %v7789_v10 = vld [vmem:[%s11700_s3 + $0xb24] sm:$0xf0] }
 0x119   :  { %v6782_v11 = vld [vmem:[%s11700_s3 + $0xd48] sm:$0xf]  ;;  %v6495_v17 = vor.u32 %v7789_v10, %v6494_v9  ;;  %3628 = vmatpush.bf16.msrb.mxu0 %v6239_v14  ;;  %v5315_v14 = vor.u32 %v7489_v1, %v5312_v2  ;;  %v7665_v2 = vld [vmem:[%s11700_s3 + $0x74c] sm:$0xf] }
 0x11a   :  { %v7861_v13 = vld [vmem:[%s11700_s3 + $0xd64] sm:$0xf0] }
 0x11b   :  { %v7038_v15 = vld [vmem:[%s11700_s3 + $0xf48] sm:$0xf]  ;;  %v6783_v20 = vor.u32 %v7861_v13, %v6782_v11  ;;  %3641 = vmatpush.bf16.msrb.mxu1 %v6495_v17 }
 0x11c   :  { %v7925_v16 = vld [vmem:[%s11700_s3 + $0xf64] sm:$0xf0] }
 0x11d   :  { %v6206_v18 = vld [vmem:[%s11700_s3 + $0x8c8] sm:$0xf]  ;;  %v7039_v24 = vor.u32 %v7925_v16, %v7038_v15  ;;  %3653 = vmatpush.bf16.msrb.mxu2 %v6783_v20  ;;  %v7481_v15 = vld [vmem:[%s11700_s3 + $0x18c] sm:$0xf]  ;;  %v5571_v16 = vor.u32 %v7553_v3, %v5568_v6 }
 0x11e   :  { %v7717_v19 = vld [vmem:[%s11700_s3 + $0x8e4] sm:$0xf0]  ;;  %v5536_v20 = vld [vmem:[%s11700_s3 + $0x3a8] sm:$0xf0] }
 0x11f   :  { %v6462_v21 = vld [vmem:[%s11700_s3 + $0xac8] sm:$0xf]  ;;  %v6207_v27 = vor.u32 %v7717_v19, %v6206_v18  ;;  %3666 = vmatpush.bf16.msrb.mxu3 %v7039_v24  ;;  %v5280_v18 = vld [vmem:[%s11700_s3 + $0x1a8] sm:$0xf0] }
 0x120   :  { %v7781_v22 = vld [vmem:[%s11700_s3 + $0xae4] sm:$0xf0]  ;;  %v7545_v19 = vld [vmem:[%s11700_s3 + $0x38c] sm:$0xf] }
 0x121   :  { %v6750_v25 = vld [vmem:[%s11700_s3 + $0xd08] sm:$0xf]  ;;  %v6463_v31 = vor.u32 %v7781_v22, %v6462_v21  ;;  %3629 = vmatpush.bf16.msrb.mxu0 %v6207_v27  ;;  %v7617_v27 = vld [vmem:[%s11700_s3 + $0x5cc] sm:$0xf] }
 0x122   :  { %v7853_v26 = vld [vmem:[%s11700_s3 + $0xd24] sm:$0xf0]  ;;  %v6016_v3 = vld [vmem:[%s11700_s3 + $0x768] sm:$0xf0] }
 0x123   :  { %v7006_v28 = vld [vmem:[%s11700_s3 + $0xf08] sm:$0xf]  ;;  %v6751_v34 = vor.u32 %v7853_v26, %v6750_v25  ;;  %3642 = vmatpush.bf16.msrb.mxu1 %v6463_v31  ;;  %v7681_v31 = vld [vmem:[%s11700_s3 + $0x7cc] sm:$0xf] }
 0x124   :  { %v7917_v30 = vld [vmem:[%s11700_s3 + $0xf24] sm:$0xf0]  ;;  %v7457_v6 = vld [vmem:[%s11700_s3 + $0xcc] sm:$0xf] }
 0x125   :  { %v6174_v32 = vld [vmem:[%s11700_s3 + $0x888] sm:$0xf]  ;;  %v7007_v38 = vor.u32 %v7917_v30, %v7006_v28  ;;  %3654 = vmatpush.bf16.msrb.mxu2 %v6751_v34  ;;  %v5824_v28 = vld [vmem:[%s11700_s3 + $0x5e8] sm:$0xf0]  ;;  %v5283_v30 = vor.u32 %v7481_v15, %v5280_v18 }
 0x126   :  { %v7709_v33 = vld [vmem:[%s11700_s3 + $0x8a4] sm:$0xf0]  ;;  %v5728_v15 = vld [vmem:[%s11700_s3 + $0x528] sm:$0xf0] }
 0x127   :  { %v6430_v36 = vld [vmem:[%s11700_s3 + $0xa88] sm:$0xf]  ;;  %v6175_v42 = vor.u32 %v7709_v33, %v6174_v32  ;;  %3667 = vmatpush.bf16.msrb.mxu3 %v7007_v38  ;;  %v6080_v32 = vld [vmem:[%s11700_s3 + $0x7e8] sm:$0xf0]  ;;  %v5539_v33 = vor.u32 %v7545_v19, %v5536_v20  ;;  %v9433_v38 = vld [vmem:[%s11702_s4] sm:$0xff] }
 0x128   :  { %v7773_v37 = vld [vmem:[%s11700_s3 + $0xaa4] sm:$0xf0]  ;;  %v5984_v18 = vld [vmem:[%s11700_s3 + $0x728] sm:$0xf0] }
 0x129   :  { %v6718_v39 = vld [vmem:[%s11700_s3 + $0xcc8] sm:$0xf]  ;;  %v6431_v46 = vor.u32 %v7773_v37, %v6430_v36  ;;  %3630 = vmatpush.bf16.msrb.mxu0 %v6175_v42  ;;  %v7473_v36 = vld [vmem:[%s11700_s3 + $0x14c] sm:$0xf] }
 0x12a   :  { %v7845_v41 = vld [vmem:[%s11700_s3 + $0xce4] sm:$0xf0]  ;;  %v5248_v37 = vld [vmem:[%s11700_s3 + $0x168] sm:$0xf0] }
 0x12b   :  { %v6974_v43 = vld [vmem:[%s11700_s3 + $0xec8] sm:$0xf]  ;;  %v6719_v48 = vor.u32 %v7845_v41, %v6718_v39  ;;  %3643 = vmatpush.bf16.msrb.mxu1 %v6431_v46  ;;  %v5827_v41 = vor.u32 %v7617_v27, %v5824_v28  ;;  %v7537_v42 = vld [vmem:[%s11700_s3 + $0x34c] sm:$0xf] }
 0x12c   :  { %v7909_v44 = vld [vmem:[%s11700_s3 + $0xee4] sm:$0xf0]  ;;  %v7609_v46 = vld [vmem:[%s11700_s3 + $0x58c] sm:$0xf] }
 0x12d   :  { %v6142_v47 = vld [vmem:[%s11700_s3 + $0x848] sm:$0xf]  ;;  %v6975_v52 = vor.u32 %v7909_v44, %v6974_v43  ;;  %3655 = vmatpush.bf16.msrb.mxu2 %v6719_v48  ;;  %v5504_v43 = vld [vmem:[%s11700_s3 + $0x368] sm:$0xf0]  ;;  %v6083_v44 = vor.u32 %v7681_v31, %v6080_v32  ;;  %v789_v48 = vperm.slane %v9433_v38, 0 }
 0x12e   :  { %v7701_v23 = vld [vmem:[%s11700_s3 + $0x864] sm:$0xf0]  ;;  %v7449_v20 = vld [vmem:[%s11700_s3 + $0x8c] sm:$0xf] }
 0x12f   :  { %v6398_v50 = vld [vmem:[%s11700_s3 + $0xa48] sm:$0xf]  ;;  %v6143_v55 = vor.u32 %v7701_v23, %v6142_v47  ;;  %3668 = vmatpush.bf16.msrb.mxu3 %v6975_v52  ;;  %v5792_v47 = vld [vmem:[%s11700_s3 + $0x5a8] sm:$0xf0]  ;;  %v5251_v23 = vor.u32 %v7473_v36, %v5248_v37  ;;  %v5507_v52 = vor.u32 %v7537_v42, %v5504_v43 }
 0x130   :  { %v7765_v51 = vld [vmem:[%s11700_s3 + $0xa64] sm:$0xf0]  ;;  %v7585_v28 = vld [vmem:[%s11700_s3 + $0x4cc] sm:$0xf] }
 0x131   :  { %v6686_v53 = vld [vmem:[%s11700_s3 + $0xc88] sm:$0xf]  ;;  %v6399_v59 = vor.u32 %v7765_v51, %v6398_v50  ;;  %3631 = vmatpush.bf16.msrb.mxu0 %v6143_v55  ;;  %v7673_v50 = vld [vmem:[%s11700_s3 + $0x78c] sm:$0xf]  ;;  %v5795_v55 = vor.u32 %v7609_v46, %v5792_v47 }
 0x132   :  { %v7837_v54 = vld [vmem:[%s11700_s3 + $0xca4] sm:$0xf0]  ;;  %v6048_v51 = vld [vmem:[%s11700_s3 + $0x7a8] sm:$0xf0] }
 0x133   :  { %v6942_v56 = vld [vmem:[%s11700_s3 + $0xe88] sm:$0xf]  ;;  %v6687_v63 = vor.u32 %v7837_v54, %v6686_v53  ;;  %3644 = vmatpush.bf16.msrb.mxu1 %v6399_v59  ;;  %v7465_v53 = vld [vmem:[%s11700_s3 + $0x10c] sm:$0xf]  ;;  %v6051_v59 = vor.u32 %v7673_v50, %v6048_v51 }
 0x134   :  { %v7901_v57 = vld [vmem:[%s11700_s3 + $0xea4] sm:$0xf0]  ;;  %v5216_v54 = vld [vmem:[%s11700_s3 + $0x128] sm:$0xf0] }
 0x135   :  { %v6110_v58 = vld [vmem:[%s11700_s3 + $0x808] sm:$0xf]  ;;  %v6943_v4 = vor.u32 %v7901_v57, %v6942_v56  ;;  %3656 = vmatpush.bf16.msrb.mxu2 %v6687_v63  ;;  %v7529_v56 = vld [vmem:[%s11700_s3 + $0x30c] sm:$0xf]  ;;  %v3387_v63 = vpop.f32.mrf.mxu1  ;;  %v5219_v1 = vor.u32 %v7465_v53, %v5216_v54  ;;  %v3413_v54 = vpop.f32.mrf.mxu3 }
 0x136   :  { %v7693_v60 = vld [vmem:[%s11700_s3 + $0x824] sm:$0xf0]  ;;  %v5472_v57 = vld [vmem:[%s11700_s3 + $0x328] sm:$0xf0] }
 0x137   :  { %v6366_v61 = vld [vmem:[%s11700_s3 + $0xa08] sm:$0xf]  ;;  %v6111_v10 = vor.u32 %v7693_v60, %v6110_v58  ;;  %3669 = vmatpush.bf16.msrb.mxu3 %v6943_v4  ;;  %v3374_v58 = vpop.f32.mrf.mxu0  ;;  %v7601_v60 = vld [vmem:[%s11700_s3 + $0x54c] sm:$0xf]  ;;  %v5475_v4 = vor.u32 %v7529_v56, %v5472_v57 }
 0x138   :  { %v7757_v62 = vld [vmem:[%s11700_s3 + $0xa24] sm:$0xf0]  ;;  %v7441_v37 = vld [vmem:[%s11700_s3 + $0x4c] sm:$0xf] }
 0x139   :  { %v6654_v8 = vld [vmem:[%s11700_s3 + $0xc48] sm:$0xf]  ;;  %v6367_v13 = vor.u32 %v7757_v62, %v6366_v61  ;;  %3632 = vmatpush.bf16.msrb.mxu0 %v6111_v10  ;;  %v5760_v61 = vld [vmem:[%s11700_s3 + $0x568] sm:$0xf0]  ;;  %v3375_v62 = vadd.f32 %v3374_v58, %v789_v48 }
 0x13a   :  { %v7829_v9 = vld [vmem:[%s11700_s3 + $0xc64] sm:$0xf0]  ;;  %v5763_v10 = vor.u32 %v7601_v60, %v5760_v61  ;;  %v7505_v42 = vld [vmem:[%s11700_s3 + $0x24c] sm:$0xf] }
 0x13b   :  { %v6910_v49 = vld [vmem:[%s11700_s3 + $0xe48] sm:$0xf]  ;;  %v6655_v17 = vor.u32 %v7829_v9, %v6654_v8  ;;  %3645 = vmatpush.bf16.msrb.mxu1 %v6367_v13  ;;  %v5184_v8 = vld [vmem:[%s11700_s3 + $0xe8] sm:$0xf0]  ;;  %v3388_v9 = vadd.f32 %v3387_v63, %v3375_v62  ;;  %v6019_v13 = vor.u32 %v7665_v2, %v6016_v3 }
 0x13c   :  { %v7893_v11 = vld [vmem:[%s11700_s3 + $0xe64] sm:$0xf0]  ;;  %3633 = vmatmul.bf16.vlgmr.msrb.gmra.mxu0 %v8698_v7  ;;  %v5376_v43 = vld [vmem:[%s11700_s3 + $0x268] sm:$0xf0] }
 0x13d   :  { %v6911_v21 = vor.u32 %v7893_v11, %v6910_v49  ;;  %v6622_v22 = vld [vmem:[%s11700_s3 + $0xc08] sm:$0xf]  ;;  %3677 = vmatpush.bf16.msra.mxu0 %v5315_v14  ;;  %3657 = vmatpush.bf16.msrb.mxu2 %v6655_v17  ;;  %v7521_v49 = vld [vmem:[%s11700_s3 + $0x2cc] sm:$0xf]  ;;  %v3389_v31 = vpop.f32.mrf.mxu1 }
 0x13e   :  { %v7821_v24 = vld [vmem:[%s11700_s3 + $0xc24] sm:$0xf0]  ;;  %3646 = vmatmul.bf16.vlgmr.msrb.gmra.mxu1 %v8709_v12  ;;  %v5440_v11 = vld [vmem:[%s11700_s3 + $0x2e8] sm:$0xf0] }
 0x13f   :  { %v6878_v25 = vld [vmem:[%s11700_s3 + $0xe08] sm:$0xf]  ;;  %3690 = vmatpush.bf16.msra.mxu1 %v5571_v16  ;;  %v6623_v34 = vor.u32 %v7821_v24, %v6622_v22  ;;  %3670 = vmatpush.bf16.msrb.mxu3 %v6911_v21  ;;  %v7593_v14 = vld [vmem:[%s11700_s3 + $0x50c] sm:$0xf]  ;;  %v5187_v16 = vor.u32 %v7457_v6, %v5184_v8  ;;  %v5443_v19 = vor.u32 %v7521_v49, %v5440_v11 }
 0x140   :  { %v7885_v26 = vld [vmem:[%s11700_s3 + $0xe24] sm:$0xf0]  ;;  %v7657_v17 = vld [vmem:[%s11700_s3 + $0x70c] sm:$0xf]  ;;  %v5731_v22 = vor.u32 %v7593_v14, %v5728_v15 }
 0x141   :  { %v6879_v39 = vor.u32 %v7885_v26, %v6878_v25  ;;  %3678 = vmatpush.bf16.msra.mxu0 %v5283_v30  ;;  %3658 = vmatpush.bf16.msrb.mxu2 %v6623_v34  ;;  %v5152_v21 = vld [vmem:[%s11700_s3 + $0xa8] sm:$0xf0]  ;;  %v3376_v26 = vpop.f32.mrf.mxu0  ;;  %v5987_v27 = vor.u32 %v7657_v17, %v5984_v18 }
 0x142   :  { %v7513_v24 = vld [vmem:[%s11700_s3 + $0x28c] sm:$0xf]  ;;  %v5155_v32 = vor.u32 %v7449_v20, %v5152_v21 }
 0x143   :  { %3691 = vmatpush.bf16.msra.mxu1 %v5539_v33  ;;  %3671 = vmatpush.bf16.msrb.mxu3 %v6879_v39  ;;  %v5408_v25 = vld [vmem:[%s11700_s3 + $0x2a8] sm:$0xf0] }
 0x144   :  { %3659 = vmatmul.bf16.vlgmr.msrb.gmra.mxu2 %v8746_v40  ;;  %v5696_v30 = vld [vmem:[%s11700_s3 + $0x4e8] sm:$0xf0]  ;;  %v5411_v36 = vor.u32 %v7513_v24, %v5408_v25 }
 0x145   :  { %3703 = vmatpush.bf16.msra.mxu2 %v5827_v41  ;;  %3679 = vmatpush.bf16.msra.mxu0 %v5251_v23  ;;  %v7649_v33 = vld [vmem:[%s11700_s3 + $0x6cc] sm:$0xf]  ;;  %v5699_v41 = vor.u32 %v7585_v28, %v5696_v30  ;;  %v3400_v23 = vpop.f32.mrf.mxu2  ;;  %v3439_v8 = vpop.f32.mrf.mxu1 }
 0x146   :  { %3672 = vmatmul.bf16.vlgmr.msrb.gmra.mxu3 %v8757_v45  ;;  %v5952_v34 = vld [vmem:[%s11700_s3 + $0x6e8] sm:$0xf0]  ;;  %v3401_v53 = vadd.f32 %v3400_v23, %v3388_v9 }
 0x147   :  { %3716 = vmatpush.bf16.msra.mxu3 %v6083_v44  ;;  %3692 = vmatpush.bf16.msra.mxu1 %v5507_v52  ;;  %v5120_v39 = vld [vmem:[%s11700_s3 + $0x68] sm:$0xf0]  ;;  %v5955_v44 = vor.u32 %v7649_v33, %v5952_v34 }
 0x148   :  { %v7577_v46 = vld [vmem:[%s11700_s3 + $0x48c] sm:$0xf]  ;;  %v5123_v48 = vor.u32 %v7441_v37, %v5120_v39  ;;  %v3414_v63 = vadd.f32 %v3413_v54, %v3401_v53 }
 0x149   :  { %3704 = vmatpush.bf16.msra.mxu2 %v5795_v55  ;;  %3680 = vmatpush.bf16.msra.mxu0 %v5219_v1  ;;  %v5664_v47 = vld [vmem:[%s11700_s3 + $0x4a8] sm:$0xf0]  ;;  %v5379_v55 = vor.u32 %v7505_v42, %v5376_v43  ;;  %v3426_v1 = vpop.f32.mrf.mxu0 }
 0x14a   :  { %v7641_v50 = vld [vmem:[%s11700_s3 + $0x68c] sm:$0xf]  ;;  %v3427_v11 = vadd.f32 %v3426_v1, %v3414_v63 }
 0x14b   :  { %3717 = vmatpush.bf16.msra.mxu3 %v6051_v59  ;;  %3693 = vmatpush.bf16.msra.mxu1 %v5475_v4  ;;  %v5920_v51 = vld [vmem:[%s11700_s3 + $0x6a8] sm:$0xf0]  ;;  %v5667_v59 = vor.u32 %v7577_v46, %v5664_v47 }
 0x14c   :  { %v7433_v52 = vld [vmem:[%s11700_s3 + $0xc] sm:$0xf]  ;;  %v5923_v2 = vor.u32 %v7641_v50, %v5920_v51  ;;  %v3440_v21 = vadd.f32 %v3439_v8, %v3427_v11 }
 0x14d   :  { %3705 = vmatpush.bf16.msra.mxu2 %v5763_v10  ;;  %3681 = vmatpush.bf16.msra.mxu0 %v5187_v16  ;;  %v5088_v56 = vld [vmem:[%s11700_s3 + $0x28] sm:$0xf0] }
 0x14e   :  { %v7497_v57 = vld [vmem:[%s11700_s3 + $0x20c] sm:$0xf]  ;;  %v5091_v9 = vor.u32 %v7433_v52, %v5088_v56 }
 0x14f   :  { %3718 = vmatpush.bf16.msra.mxu3 %v6019_v13  ;;  %3694 = vmatpush.bf16.msra.mxu1 %v5443_v19  ;;  %v5344_v58 = vld [vmem:[%s11700_s3 + $0x228] sm:$0xf0] }
 0x150   :  { %v7745_v60 = vld [vmem:[%s11700_s3 + $0x9cc] sm:$0xf]  ;;  %v5347_v13 = vor.u32 %v7497_v57, %v5344_v58 }
 0x151   :  { %3706 = vmatpush.bf16.msra.mxu2 %v5731_v22  ;;  %3682 = vmatpush.bf16.msra.mxu0 %v5155_v32  ;;  %v6336_v61 = vld [vmem:[%s11700_s3 + $0x9e8] sm:$0xf0]  ;;  %v3415_v32 = vpop.f32.mrf.mxu3  ;;  %v3428_v43 = vpop.f32.mrf.mxu0 }
 0x152   :  { %v7809_v62 = vld [vmem:[%s11700_s3 + $0xbcc] sm:$0xf]  ;;  %v6339_v14 = vor.u32 %v7745_v60, %v6336_v61 }
 0x153   :  { %3719 = vmatpush.bf16.msra.mxu3 %v5987_v27  ;;  %3695 = vmatpush.bf16.msra.mxu1 %v5411_v36  ;;  %v6592_v3 = vld [vmem:[%s11700_s3 + $0xbe8] sm:$0xf0]  ;;  %v3402_v27 = vpop.f32.mrf.mxu2 }
 0x154   :  { %v7569_v4 = vld [vmem:[%s11700_s3 + $0x44c] sm:$0xf]  ;;  %v6595_v16 = vor.u32 %v7809_v62, %v6592_v3 }
 0x155   :  { %3707 = vmatpush.bf16.msra.mxu2 %v5699_v41  ;;  %v5632_v6 = vld [vmem:[%s11700_s3 + $0x468] sm:$0xf0]  ;;  %3683 = vmatpush.bf16.msra.mxu0 %v5123_v48  ;;  %v3441_v48 = vpop.f32.mrf.mxu1 }
 0x156   :  { %v7633_v10 = vld [vmem:[%s11700_s3 + $0x64c] sm:$0xf]  ;;  %v5635_v17 = vor.u32 %v7569_v4, %v5632_v6  ;;  %v790_v6 = vperm.slane %v9433_v38, 1 }
 0x157   :  { %3720 = vmatpush.bf16.msra.mxu3 %v5955_v44  ;;  %v5888_v49 = vld [vmem:[%s11700_s3 + $0x668] sm:$0xf0]  ;;  %3696 = vmatpush.bf16.msra.mxu1 %v5379_v55 }
 0x158   :  { %v7737_v15 = vld [vmem:[%s11700_s3 + $0x98c] sm:$0xf]  ;;  %v5891_v22 = vor.u32 %v7633_v10, %v5888_v49 }
 0x159   :  { %3708 = vmatpush.bf16.msra.mxu2 %v5667_v59  ;;  %v6304_v18 = vld [vmem:[%s11700_s3 + $0x9a8] sm:$0xf0]  ;;  %3684 = vmatpush.bf16.msra.mxu0 %v5091_v9  ;;  %v3465_v4 = vpop.f32.mrf.mxu3 }
 0x15a   :  { %v7801_v19 = vld [vmem:[%s11700_s3 + $0xb8c] sm:$0xf]  ;;  %v6307_v33 = vor.u32 %v7737_v15, %v6304_v18  ;;  %v3478_v18 = vpop.f32.mrf.mxu0 }
 0x15b   :  { %v6560_v20 = vld [vmem:[%s11700_s3 + $0xba8] sm:$0xf0]  ;;  %3721 = vmatpush.bf16.msra.mxu3 %v5923_v2  ;;  %3697 = vmatpush.bf16.msra.mxu1 %v5347_v13  ;;  %v3452_v62 = vpop.f32.mrf.mxu2 }
 0x15c   :  { %v7561_v24 = vld [vmem:[%s11700_s3 + $0x40c] sm:$0xf]  ;;  %v6563_v37 = vor.u32 %v7801_v19, %v6560_v20  ;;  %3685 = vmatmul.bf16.vlgmr.msra.gmra.mxu0 %v8591_v0  ;;  %v3453_v3 = vadd.f32 %v3452_v62, %v3440_v21 }
 0x15d   :  { %v5600_v25 = vld [vmem:[%s11700_s3 + $0x428] sm:$0xf0]  ;;  %3729 = vmatpush.bf16.msrb.mxu0 %v6339_v14  ;;  %3709 = vmatpush.bf16.msra.mxu2 %v5635_v17 }
 0x15e   :  { %v7625_v26 = vld [vmem:[%s11700_s3 + $0x60c] sm:$0xf]  ;;  %v5603_v39 = vor.u32 %v7561_v24, %v5600_v25  ;;  %3698 = vmatmul.bf16.vlgmr.msra.gmra.mxu1 %v8600_v5  ;;  %v9685_v14 = vadd.f32 %v3465_v4, %v3453_v3  ;;  %v3491_v24 = vpop.f32.mrf.mxu1 }
 0x15f   :  { %v5856_v28 = vld [vmem:[%s11700_s3 + $0x628] sm:$0xf0]  ;;  %3742 = vmatpush.bf16.msrb.mxu1 %v6595_v16  ;;  %3722 = vmatpush.bf16.msra.mxu3 %v5891_v22  ;;  %v3479_v22 = vadd.f32 %v3478_v18, %v790_v6  ;;  %v5318_v6 = vld [vmem:[%s11700_s3 + $0x1d0] sm:$0xf] }
 0x160   :  { %v7873_v30 = vld [vmem:[%s11700_s3 + $0xdcc] sm:$0xf]  ;;  %v5859_v44 = vor.u32 %v7625_v26, %v5856_v28 }
 0x161   :  { %v6848_v31 = vld [vmem:[%s11700_s3 + $0xde8] sm:$0xf0]  ;;  %3730 = vmatpush.bf16.msrb.mxu0 %v6307_v33  ;;  %3710 = vmatpush.bf16.msra.mxu2 %v5603_v39  ;;  %v3492_v32 = vadd.f32 %v3491_v24, %v3479_v22  ;;  %v3467_v43 = vpop.f32.mrf.mxu3  ;;  %v5286_v24 = vld [vmem:[%s11700_s3 + $0x190] sm:$0xf] }
 0x162   :  { %v7937_v34 = vld [vmem:[%s11700_s3 + $0xfcc] sm:$0xf]  ;;  %v6851_v46 = vor.u32 %v7873_v30, %v6848_v31  ;;  %v6086_v43 = vld [vmem:[%s11700_s3 + $0x7d0] sm:$0xf] }
 0x163   :  { %v7104_v36 = vld [vmem:[%s11700_s3 + $0xfe8] sm:$0xf0]  ;;  %3743 = vmatpush.bf16.msrb.mxu1 %v6563_v37  ;;  %3723 = vmatpush.bf16.msra.mxu3 %v5859_v44  ;;  %v3454_v37 = vpop.f32.mrf.mxu2 }
 0x164   :  { %v7729_v41 = vld [vmem:[%s11700_s3 + $0x94c] sm:$0xf]  ;;  %v7107_v50 = vor.u32 %v7937_v34, %v7104_v36  ;;  %3711 = vmatmul.bf16.vlgmr.msra.gmra.mxu2 %v8635_v29 }
 0x165   :  { %v6272_v42 = vld [vmem:[%s11700_s3 + $0x968] sm:$0xf0]  ;;  %3755 = vmatpush.bf16.msrb.mxu2 %v6851_v46 }
 0x166   :  { %v7793_v47 = vld [vmem:[%s11700_s3 + $0xb4c] sm:$0xf]  ;;  %v6275_v53 = vor.u32 %v7729_v41, %v6272_v42  ;;  %3724 = vmatmul.bf16.vlgmr.msra.gmra.mxu3 %v8646_v35 }
 0x167   :  { %v6528_v23 = vld [vmem:[%s11700_s3 + $0xb68] sm:$0xf0]  ;;  %3768 = vmatpush.bf16.msrb.mxu3 %v7107_v50 }
 0x168   :  { %v7865_v51 = vld [vmem:[%s11700_s3 + $0xd8c] sm:$0xf]  ;;  %v6531_v56 = vor.u32 %v7793_v47, %v6528_v23  ;;  %3731 = vmatpush.bf16.msrb.mxu0 %v6275_v53 }
 0x169   :  { %v6816_v52 = vld [vmem:[%s11700_s3 + $0xda8] sm:$0xf0] }
 0x16a   :  { %v7929_v54 = vld [vmem:[%s11700_s3 + $0xf8c] sm:$0xf]  ;;  %v6819_v59 = vor.u32 %v7865_v51, %v6816_v52  ;;  %3744 = vmatpush.bf16.msrb.mxu1 %v6531_v56 }
 0x16b   :  { %v7072_v55 = vld [vmem:[%s11700_s3 + $0xfa8] sm:$0xf0] }
 0x16c   :  { %v7721_v57 = vld [vmem:[%s11700_s3 + $0x90c] sm:$0xf]  ;;  %v7075_v63 = vor.u32 %v7929_v54, %v7072_v55  ;;  %3756 = vmatpush.bf16.msrb.mxu2 %v6819_v59  ;;  %v3480_v54 = vpop.f32.mrf.mxu0 }
 0x16d   :  { %v6240_v58 = vld [vmem:[%s11700_s3 + $0x928] sm:$0xf0] }
 0x16e   :  { %v7785_v60 = vld [vmem:[%s11700_s3 + $0xb0c] sm:$0xf]  ;;  %v6243_v8 = vor.u32 %v7721_v57, %v6240_v58  ;;  %3769 = vmatpush.bf16.msrb.mxu3 %v7075_v63  ;;  %v3493_v58 = vpop.f32.mrf.mxu1 }
 0x16f   :  { %v6496_v61 = vld [vmem:[%s11700_s3 + $0xb28] sm:$0xf0]  ;;  %v7614_v58 = vld [vmem:[%s11700_s3 + $0x5ac] sm:$0xf0] }
 0x170   :  { %v7857_v1 = vld [vmem:[%s11700_s3 + $0xd4c] sm:$0xf]  ;;  %v6499_v49 = vor.u32 %v7785_v60, %v6496_v61  ;;  %3732 = vmatpush.bf16.msrb.mxu0 %v6243_v8  ;;  %v7494_v8 = vld [vmem:[%s11700_s3 + $0x1ec] sm:$0xf0] }
 0x171   :  { %v6784_v2 = vld [vmem:[%s11700_s3 + $0xd68] sm:$0xf0]  ;;  %v5319_v22 = vor.u32 %v7494_v8, %v5318_v6  ;;  %v5766_v8 = vld [vmem:[%s11700_s3 + $0x550] sm:$0xf] }
 0x172   :  { %v7921_v9 = vld [vmem:[%s11700_s3 + $0xf4c] sm:$0xf]  ;;  %v6787_v15 = vor.u32 %v7857_v1, %v6784_v2  ;;  %3745 = vmatpush.bf16.msrb.mxu1 %v6499_v49  ;;  %v7558_v49 = vld [vmem:[%s11700_s3 + $0x3ec] sm:$0xf0] }
 0x173   :  { %v7040_v10 = vld [vmem:[%s11700_s3 + $0xf68] sm:$0xf0] }
 0x174   :  { %v7713_v11 = vld [vmem:[%s11700_s3 + $0x8cc] sm:$0xf]  ;;  %v7043_v19 = vor.u32 %v7921_v9, %v7040_v10  ;;  %3757 = vmatpush.bf16.msrb.mxu2 %v6787_v15  ;;  %v5574_v9 = vld [vmem:[%s11700_s3 + $0x3d0] sm:$0xf]  ;;  %v3504_v15 = vpop.f32.mrf.mxu2 }
 0x175   :  { %v6208_v13 = vld [vmem:[%s11700_s3 + $0x8e8] sm:$0xf0] }
 0x176   :  { %v7777_v16 = vld [vmem:[%s11700_s3 + $0xacc] sm:$0xf]  ;;  %v6211_v25 = vor.u32 %v7713_v11, %v6208_v13  ;;  %3770 = vmatpush.bf16.msrb.mxu3 %v7043_v19 }
 0x177   :  { %v6464_v17 = vld [vmem:[%s11700_s3 + $0xae8] sm:$0xf0] }
 0x178   :  { %v7849_v20 = vld [vmem:[%s11700_s3 + $0xd0c] sm:$0xf]  ;;  %v6467_v28 = vor.u32 %v7777_v16, %v6464_v17  ;;  %3733 = vmatpush.bf16.msrb.mxu0 %v6211_v25  ;;  %v3517_v16 = vpop.f32.mrf.mxu3  ;;  %v5575_v25 = vor.u32 %v7558_v49, %v5574_v9  ;;  %v7606_v9 = vld [vmem:[%s11700_s3 + $0x56c] sm:$0xf0] }
 0x179   :  { %v6752_v21 = vld [vmem:[%s11700_s3 + $0xd28] sm:$0xf0]  ;;  %v6022_v49 = vld [vmem:[%s11700_s3 + $0x750] sm:$0xf] }
 0x17a   :  { %v7913_v26 = vld [vmem:[%s11700_s3 + $0xf0c] sm:$0xf]  ;;  %v6755_v33 = vor.u32 %v7849_v20, %v6752_v21  ;;  %3746 = vmatpush.bf16.msrb.mxu1 %v6467_v28  ;;  %v3505_v20 = vadd.f32 %v3504_v15, %v3492_v32  ;;  %v5542_v28 = vld [vmem:[%s11700_s3 + $0x390] sm:$0xf] }
 0x17b   :  { %v7008_v27 = vld [vmem:[%s11700_s3 + $0xf28] sm:$0xf0]  ;;  %v5190_v15 = vld [vmem:[%s11700_s3 + $0xd0] sm:$0xf] }
 0x17c   :  { %v7705_v30 = vld [vmem:[%s11700_s3 + $0x88c] sm:$0xf]  ;;  %v7011_v39 = vor.u32 %v7913_v26, %v7008_v27  ;;  %3758 = vmatpush.bf16.msrb.mxu2 %v6755_v33  ;;  %v7486_v27 = vld [vmem:[%s11700_s3 + $0x1ac] sm:$0xf0]  ;;  %v3506_v54 = vpop.f32.mrf.mxu2 }
 0x17d   :  { %v6176_v31 = vld [vmem:[%s11700_s3 + $0x8a8] sm:$0xf0] }
 0x17e   :  { %v7769_v34 = vld [vmem:[%s11700_s3 + $0xa8c] sm:$0xf]  ;;  %v6179_v44 = vor.u32 %v7705_v30, %v6176_v31  ;;  %3771 = vmatpush.bf16.msrb.mxu3 %v7011_v39  ;;  %v7550_v30 = vld [vmem:[%s11700_s3 + $0x3ac] sm:$0xf0]  ;;  %v9801_v31 = vadd.f32 %v3517_v16, %v3505_v20  ;;  %v3530_v20 = vpop.f32.mrf.mxu0 }
 0x17f   :  { %v6432_v36 = vld [vmem:[%s11700_s3 + $0xaa8] sm:$0xf0]  ;;  %v5830_v39 = vld [vmem:[%s11700_s3 + $0x5d0] sm:$0xf] }
 0x180   :  { %v7841_v41 = vld [vmem:[%s11700_s3 + $0xccc] sm:$0xf]  ;;  %v6435_v23 = vor.u32 %v7769_v34, %v6432_v36  ;;  %3734 = vmatpush.bf16.msrb.mxu0 %v6179_v44  ;;  %v7686_v44 = vld [vmem:[%s11700_s3 + $0x7ec] sm:$0xf0] }
 0x181   :  { %v6720_v42 = vld [vmem:[%s11700_s3 + $0xce8] sm:$0xf0]  ;;  %v7462_v16 = vld [vmem:[%s11700_s3 + $0xec] sm:$0xf0] }
 0x182   :  { %v7905_v46 = vld [vmem:[%s11700_s3 + $0xecc] sm:$0xf]  ;;  %v6723_v51 = vor.u32 %v7841_v41, %v6720_v42  ;;  %3747 = vmatpush.bf16.msrb.mxu1 %v6435_v23  ;;  %v7622_v41 = vld [vmem:[%s11700_s3 + $0x5ec] sm:$0xf0]  ;;  %v5287_v42 = vor.u32 %v7486_v27, %v5286_v24  ;;  %v5191_v27 = vor.u32 %v7462_v16, %v5190_v15 }
 0x183   :  { %v6976_v47 = vld [vmem:[%s11700_s3 + $0xee8] sm:$0xf0]  ;;  %v5254_v23 = vld [vmem:[%s11700_s3 + $0x150] sm:$0xf] }
 0x184   :  { %v7697_v48 = vld [vmem:[%s11700_s3 + $0x84c] sm:$0xf]  ;;  %v6979_v55 = vor.u32 %v7905_v46, %v6976_v47  ;;  %3759 = vmatpush.bf16.msrb.mxu2 %v6723_v51  ;;  %v5543_v46 = vor.u32 %v7550_v30, %v5542_v28  ;;  %v5831_v51 = vor.u32 %v7622_v41, %v5830_v39  ;;  %v7598_v24 = vld [vmem:[%s11700_s3 + $0x52c] sm:$0xf0] }
 0x185   :  { %v6144_v50 = vld [vmem:[%s11700_s3 + $0x868] sm:$0xf0]  ;;  %v5990_v28 = vld [vmem:[%s11700_s3 + $0x710] sm:$0xf] }
 0x186   :  { %v7761_v52 = vld [vmem:[%s11700_s3 + $0xa4c] sm:$0xf]  ;;  %v6147_v59 = vor.u32 %v7697_v48, %v6144_v50  ;;  %3772 = vmatpush.bf16.msrb.mxu3 %v6979_v55  ;;  %v7478_v48 = vld [vmem:[%s11700_s3 + $0x16c] sm:$0xf0]  ;;  %v3519_v55 = vpop.f32.mrf.mxu3  ;;  %v3532_v54 = vpop.f32.mrf.mxu0 }
 0x187   :  { %v6400_v53 = vld [vmem:[%s11700_s3 + $0xa68] sm:$0xf0]  ;;  %v7662_v30 = vld [vmem:[%s11700_s3 + $0x72c] sm:$0xf0] }
 0x188   :  { %v7833_v56 = vld [vmem:[%s11700_s3 + $0xc8c] sm:$0xf]  ;;  %v6403_v63 = vor.u32 %v7761_v52, %v6400_v53  ;;  %3735 = vmatpush.bf16.msrb.mxu0 %v6147_v59  ;;  %v5510_v52 = vld [vmem:[%s11700_s3 + $0x350] sm:$0xf]  ;;  %v5255_v59 = vor.u32 %v7478_v48, %v5254_v23  ;;  %v5991_v41 = vor.u32 %v7662_v30, %v5990_v28 }
 0x189   :  { %v6688_v57 = vld [vmem:[%s11700_s3 + $0xca8] sm:$0xf0]  ;;  %v7542_v53 = vld [vmem:[%s11700_s3 + $0x36c] sm:$0xf0] }
 0x18a   :  { %v7897_v60 = vld [vmem:[%s11700_s3 + $0xe8c] sm:$0xf]  ;;  %v6691_v4 = vor.u32 %v7833_v56, %v6688_v57  ;;  %3748 = vmatpush.bf16.msrb.mxu1 %v6403_v63  ;;  %v6087_v56 = vor.u32 %v7686_v44, %v6086_v43  ;;  %v5798_v57 = vld [vmem:[%s11700_s3 + $0x590] sm:$0xf] }
 0x18b   :  { %v6944_v61 = vld [vmem:[%s11700_s3 + $0xea8] sm:$0xf0]  ;;  %v5222_v63 = vld [vmem:[%s11700_s3 + $0x110] sm:$0xf] }
 0x18c   :  { %v7689_v62 = vld [vmem:[%s11700_s3 + $0x80c] sm:$0xf]  ;;  %v6947_v10 = vor.u32 %v7897_v60, %v6944_v61  ;;  %3760 = vmatpush.bf16.msrb.mxu2 %v6691_v4  ;;  %v6054_v60 = vld [vmem:[%s11700_s3 + $0x790] sm:$0xf] }
 0x18d   :  { %v6112_v1 = vld [vmem:[%s11700_s3 + $0x828] sm:$0xf0]  ;;  %v7678_v61 = vld [vmem:[%s11700_s3 + $0x7ac] sm:$0xf0] }
 0x18e   :  { %v7753_v2 = vld [vmem:[%s11700_s3 + $0xa0c] sm:$0xf]  ;;  %v6115_v17 = vor.u32 %v7689_v62, %v6112_v1  ;;  %3773 = vmatpush.bf16.msrb.mxu3 %v6947_v10  ;;  %v5511_v62 = vor.u32 %v7542_v53, %v5510_v52  ;;  %v7470_v1 = vld [vmem:[%s11700_s3 + $0x12c] sm:$0xf0]  ;;  %v6055_v6 = vor.u32 %v7678_v61, %v6054_v60 }
 0x18f   :  { %v6368_v3 = vld [vmem:[%s11700_s3 + $0xa28] sm:$0xf0]  ;;  %v7534_v4 = vld [vmem:[%s11700_s3 + $0x32c] sm:$0xf0]  ;;  %v5223_v10 = vor.u32 %v7470_v1, %v5222_v63 }
 0x190   :  { %v7825_v11 = vld [vmem:[%s11700_s3 + $0xc4c] sm:$0xf]  ;;  %v6371_v21 = vor.u32 %v7753_v2, %v6368_v3  ;;  %3736 = vmatpush.bf16.msrb.mxu0 %v6115_v17  ;;  %v5799_v2 = vor.u32 %v7614_v58, %v5798_v57  ;;  %v5478_v3 = vld [vmem:[%s11700_s3 + $0x310] sm:$0xf]  ;;  %v5767_v17 = vor.u32 %v7606_v9, %v5766_v8 }
 0x191   :  { %v6656_v13 = vld [vmem:[%s11700_s3 + $0xc68] sm:$0xf0]  ;;  %v7518_v39 = vld [vmem:[%s11700_s3 + $0x2ac] sm:$0xf0] }
 0x192   :  { %v7889_v18 = vld [vmem:[%s11700_s3 + $0xe4c] sm:$0xf]  ;;  %v6659_v26 = vor.u32 %v7825_v11, %v6656_v13  ;;  %3749 = vmatpush.bf16.msrb.mxu1 %v6371_v21  ;;  %v7670_v11 = vld [vmem:[%s11700_s3 + $0x76c] sm:$0xf0]  ;;  %v5479_v13 = vor.u32 %v7534_v4, %v5478_v3 }
 0x193   :  { %v6912_v19 = vld [vmem:[%s11700_s3 + $0xe68] sm:$0xf0]  ;;  %3737 = vmatmul.bf16.vlgmr.msrb.gmra.mxu0 %v8698_v7  ;;  %v6023_v21 = vor.u32 %v7670_v11, %v6022_v49  ;;  %v7590_v43 = vld [vmem:[%s11700_s3 + $0x4ec] sm:$0xf0] }
 0x194   :  { %v6915_v32 = vor.u32 %v7889_v18, %v6912_v19  ;;  %v7817_v33 = vld [vmem:[%s11700_s3 + $0xc0c] sm:$0xf]  ;;  %3781 = vmatpush.bf16.msra.mxu0 %v5319_v22  ;;  %3761 = vmatpush.bf16.msrb.mxu2 %v6659_v26  ;;  %v5446_v18 = vld [vmem:[%s11700_s3 + $0x2d0] sm:$0xf]  ;;  %v3543_v26 = vpop.f32.mrf.mxu1 }
 0x195   :  { %v6624_v34 = vld [vmem:[%s11700_s3 + $0xc28] sm:$0xf0]  ;;  %3750 = vmatmul.bf16.vlgmr.msrb.gmra.mxu1 %v8709_v12  ;;  %v7526_v19 = vld [vmem:[%s11700_s3 + $0x2ec] sm:$0xf0] }
 0x196   :  { %v7881_v36 = vld [vmem:[%s11700_s3 + $0xe0c] sm:$0xf]  ;;  %3794 = vmatpush.bf16.msra.mxu1 %v5575_v25  ;;  %v6627_v47 = vor.u32 %v7817_v33, %v6624_v34  ;;  %3774 = vmatpush.bf16.msrb.mxu3 %v6915_v32  ;;  %v5734_v22 = vld [vmem:[%s11700_s3 + $0x510] sm:$0xf]  ;;  %v3531_v25 = vadd.f32 %v3530_v20, %v9801_v31  ;;  %v5447_v32 = vor.u32 %v7526_v19, %v5446_v18 }
 0x197   :  { %v6880_v37 = vld [vmem:[%s11700_s3 + $0xe28] sm:$0xf0]  ;;  %v5158_v33 = vld [vmem:[%s11700_s3 + $0x90] sm:$0xf] }
 0x198   :  { %v6883_v50 = vor.u32 %v7881_v36, %v6880_v37  ;;  %3782 = vmatpush.bf16.msra.mxu0 %v5287_v42  ;;  %3762 = vmatpush.bf16.msrb.mxu2 %v6627_v47  ;;  %v7454_v31 = vld [vmem:[%s11700_s3 + $0xac] sm:$0xf0]  ;;  %v3544_v34 = vadd.f32 %v3543_v26, %v3531_v25  ;;  %v5735_v36 = vor.u32 %v7598_v24, %v5734_v22 }
 0x199   :  { %v5414_v37 = vld [vmem:[%s11700_s3 + $0x290] sm:$0xf]  ;;  %v5159_v44 = vor.u32 %v7454_v31, %v5158_v33 }
 0x19a   :  { %3795 = vmatpush.bf16.msra.mxu1 %v5543_v46  ;;  %3775 = vmatpush.bf16.msrb.mxu3 %v6883_v50  ;;  %v5702_v42 = vld [vmem:[%s11700_s3 + $0x4d0] sm:$0xf]  ;;  %v5415_v23 = vor.u32 %v7518_v39, %v5414_v37  ;;  %v4197_v39 = vmax.f32 %v9685_v14, 0.0 }
 0x19b   :  { %3763 = vmatmul.bf16.vlgmr.msrb.gmra.mxu2 %v8746_v40  ;;  %v5958_v46 = vld [vmem:[%s11700_s3 + $0x6d0] sm:$0xf] }
 0x19c   :  { %3807 = vmatpush.bf16.msra.mxu2 %v5831_v51  ;;  %3783 = vmatpush.bf16.msra.mxu0 %v5255_v59  ;;  %v7654_v47 = vld [vmem:[%s11700_s3 + $0x6ec] sm:$0xf0]  ;;  %v5703_v51 = vor.u32 %v7590_v43, %v5702_v42  ;;  %v3545_v58 = vpop.f32.mrf.mxu1 }
 0x19d   :  { %3776 = vmatmul.bf16.vlgmr.msrb.gmra.mxu3 %v8757_v45  ;;  %v5126_v48 = vld [vmem:[%s11700_s3 + $0x50] sm:$0xf]  ;;  %v5959_v55 = vor.u32 %v7654_v47, %v5958_v46 }
 0x19e   :  { %3820 = vmatpush.bf16.msra.mxu3 %v6087_v56  ;;  %3796 = vmatpush.bf16.msra.mxu1 %v5511_v62  ;;  %v7446_v50 = vld [vmem:[%s11700_s3 + $0x6c] sm:$0xf0] }
 0x19f   :  { %v5382_v52 = vld [vmem:[%s11700_s3 + $0x250] sm:$0xf]  ;;  %v5127_v59 = vor.u32 %v7446_v50, %v5126_v48 }
 0x1a0   :  { %3808 = vmatpush.bf16.msra.mxu2 %v5799_v2  ;;  %3784 = vmatpush.bf16.msra.mxu0 %v5223_v10  ;;  %v7510_v53 = vld [vmem:[%s11700_s3 + $0x26c] sm:$0xf0]  ;;  %v3556_v10 = vpop.f32.mrf.mxu2 }
 0x1a1   :  { %v5670_v56 = vld [vmem:[%s11700_s3 + $0x490] sm:$0xf]  ;;  %v5383_v63 = vor.u32 %v7510_v53, %v5382_v52  ;;  %v3557_v16 = vadd.f32 %v3556_v10, %v3544_v34 }
 0x1a2   :  { %3821 = vmatpush.bf16.msra.mxu3 %v6055_v6  ;;  %3797 = vmatpush.bf16.msra.mxu1 %v5479_v13  ;;  %v7582_v57 = vld [vmem:[%s11700_s3 + $0x4ac] sm:$0xf0] }
 0x1a3   :  { %v5926_v60 = vld [vmem:[%s11700_s3 + $0x690] sm:$0xf]  ;;  %v5671_v4 = vor.u32 %v7582_v57, %v5670_v56 }
 0x1a4   :  { %3809 = vmatpush.bf16.msra.mxu2 %v5767_v17  ;;  %3785 = vmatpush.bf16.msra.mxu0 %v5191_v27  ;;  %v7646_v61 = vld [vmem:[%s11700_s3 + $0x6ac] sm:$0xf0]  ;;  %v3569_v17 = vpop.f32.mrf.mxu3 }
 0x1a5   :  { %v5094_v62 = vld [vmem:[%s11700_s3 + $0x10] sm:$0xf]  ;;  %v5927_v49 = vor.u32 %v7646_v61, %v5926_v60  ;;  %v3570_v26 = vadd.f32 %v3569_v17, %v3557_v16 }
 0x1a6   :  { %3822 = vmatpush.bf16.msra.mxu3 %v6023_v21  ;;  %3798 = vmatpush.bf16.msra.mxu1 %v5447_v32  ;;  %v7438_v1 = vld [vmem:[%s11700_s3 + $0x2c] sm:$0xf0] }
 0x1a7   :  { %v5350_v2 = vld [vmem:[%s11700_s3 + $0x210] sm:$0xf]  ;;  %v5095_v18 = vor.u32 %v7438_v1, %v5094_v62 }
 0x1a8   :  { %3810 = vmatpush.bf16.msra.mxu2 %v5735_v36  ;;  %3786 = vmatpush.bf16.msra.mxu0 %v5159_v44  ;;  %v7502_v3 = vld [vmem:[%s11700_s3 + $0x22c] sm:$0xf0]  ;;  %v3558_v52 = vpop.f32.mrf.mxu2 }
 0x1a9   :  { %v6342_v6 = vld [vmem:[%s11700_s3 + $0x9d0] sm:$0xf]  ;;  %v5351_v21 = vor.u32 %v7502_v3, %v5350_v2 }
 0x1aa   :  { %3823 = vmatpush.bf16.msra.mxu3 %v5991_v41  ;;  %3799 = vmatpush.bf16.msra.mxu1 %v5415_v23  ;;  %v7750_v8 = vld [vmem:[%s11700_s3 + $0x9ec] sm:$0xf0]  ;;  %v4198_v41 = vmax.f32 %v3570_v26, 0.0 }
 0x1ab   :  { %v6598_v9 = vld [vmem:[%s11700_s3 + $0xbd0] sm:$0xf]  ;;  %v6343_v22 = vor.u32 %v7750_v8, %v6342_v6 }
 0x1ac   :  { %3811 = vmatpush.bf16.msra.mxu2 %v5703_v51  ;;  %v7814_v11 = vld [vmem:[%s11700_s3 + $0xbec] sm:$0xf0]  ;;  %3787 = vmatpush.bf16.msra.mxu0 %v5127_v59  ;;  %v10025_v47 = vpack.c.bf16 %v4198_v41, %v4197_v39  ;;  %v3571_v57 = vpop.f32.mrf.mxu3 }
 0x1ad   :  { %v5638_v13 = vld [vmem:[%s11700_s3 + $0x450] sm:$0xf]  ;;  %v6599_v27 = vor.u32 %v7814_v11, %v6598_v9  ;;  %v791_v11 = vperm.slane %v9433_v38, 2 }
 0x1ae   :  { %3824 = vmatpush.bf16.msra.mxu3 %v5959_v55  ;;  %v7574_v15 = vld [vmem:[%s11700_s3 + $0x46c] sm:$0xf0]  ;;  %3800 = vmatpush.bf16.msra.mxu1 %v5383_v63 }
 0x1af   :  { %v5894_v19 = vld [vmem:[%s11700_s3 + $0x650] sm:$0xf]  ;;  %v5639_v28 = vor.u32 %v7574_v15, %v5638_v13 }
 0x1b0   :  { %v7638_v20 = vld [vmem:[%s11700_s3 + $0x66c] sm:$0xf0]  ;;  %3812 = vmatpush.bf16.msra.mxu2 %v5671_v4  ;;  %3788 = vmatpush.bf16.msra.mxu0 %v5095_v18 }
 0x1b1   :  { %v6310_v24 = vld [vmem:[%s11700_s3 + $0x990] sm:$0xf]  ;;  %v5895_v31 = vor.u32 %v7638_v20, %v5894_v19 }
 0x1b2   :  { %v7742_v25 = vld [vmem:[%s11700_s3 + $0x9ac] sm:$0xf0]  ;;  %3825 = vmatpush.bf16.msra.mxu3 %v5927_v49  ;;  %3801 = vmatpush.bf16.msra.mxu1 %v5351_v21 }
 0x1b3   :  { %v6566_v30 = vld [vmem:[%s11700_s3 + $0xb90] sm:$0xf]  ;;  %v6311_v44 = vor.u32 %v7742_v25, %v6310_v24  ;;  %3789 = vmatmul.bf16.vlgmr.msra.gmra.mxu0 %v8591_v0 }
 0x1b4   :  { %v7806_v32 = vld [vmem:[%s11700_s3 + $0xbac] sm:$0xf0]  ;;  %3833 = vmatpush.bf16.msrb.mxu0 %v6343_v22  ;;  %3813 = vmatpush.bf16.msra.mxu2 %v5639_v28  ;;  %v3582_v22 = vpop.f32.mrf.mxu0  ;;  %v3595_v28 = vpop.f32.mrf.mxu1 }
 0x1b5   :  { %v5606_v33 = vld [vmem:[%s11700_s3 + $0x410] sm:$0xf]  ;;  %v6567_v23 = vor.u32 %v7806_v32, %v6566_v30  ;;  %3802 = vmatmul.bf16.vlgmr.msra.gmra.mxu1 %v8600_v5 }
 0x1b6   :  { %v7566_v34 = vld [vmem:[%s11700_s3 + $0x42c] sm:$0xf0]  ;;  %3846 = vmatpush.bf16.msrb.mxu1 %v6599_v27  ;;  %3826 = vmatpush.bf16.msra.mxu3 %v5895_v31  ;;  %v3583_v27 = vadd.f32 %v3582_v22, %v791_v11  ;;  %v3608_v11 = vpop.f32.mrf.mxu2 }
 0x1b7   :  { %v5862_v36 = vld [vmem:[%s11700_s3 + $0x610] sm:$0xf]  ;;  %v5607_v48 = vor.u32 %v7566_v34, %v5606_v33 }
 0x1b8   :  { %v7630_v37 = vld [vmem:[%s11700_s3 + $0x62c] sm:$0xf0]  ;;  %3834 = vmatpush.bf16.msrb.mxu0 %v6311_v44 }
 0x1b9   :  { %v6854_v42 = vld [vmem:[%s11700_s3 + $0xdd0] sm:$0xf]  ;;  %v5863_v53 = vor.u32 %v7630_v37, %v5862_v36  ;;  %3814 = vmatpush.bf16.msra.mxu2 %v5607_v48  ;;  %v3596_v37 = vadd.f32 %v3595_v28, %v3583_v27 }
 0x1ba   :  { %v7878_v43 = vld [vmem:[%s11700_s3 + $0xdec] sm:$0xf0]  ;;  %3847 = vmatpush.bf16.msrb.mxu1 %v6567_v23 }
 0x1bb   :  { %v7110_v46 = vld [vmem:[%s11700_s3 + $0xfd0] sm:$0xf]  ;;  %v6855_v54 = vor.u32 %v7878_v43, %v6854_v42  ;;  %3827 = vmatpush.bf16.msra.mxu3 %v5863_v53 }
 0x1bc   :  { %v7942_v14 = vld [vmem:[%s11700_s3 + $0xfec] sm:$0xf0]  ;;  %3815 = vmatmul.bf16.vlgmr.msra.gmra.mxu2 %v8635_v29 }
 0x1bd   :  { %v6278_v50 = vld [vmem:[%s11700_s3 + $0x950] sm:$0xf]  ;;  %v7111_v58 = vor.u32 %v7942_v14, %v7110_v46  ;;  %3859 = vmatpush.bf16.msrb.mxu2 %v6855_v54 }
 0x1be   :  { %v7734_v51 = vld [vmem:[%s11700_s3 + $0x96c] sm:$0xf0]  ;;  %3828 = vmatmul.bf16.vlgmr.msra.gmra.mxu3 %v8646_v35 }
 0x1bf   :  { %v6534_v55 = vld [vmem:[%s11700_s3 + $0xb50] sm:$0xf]  ;;  %v6279_v61 = vor.u32 %v7734_v51, %v6278_v50  ;;  %3872 = vmatpush.bf16.msrb.mxu3 %v7111_v58 }
 0x1c0   :  { %v7798_v56 = vld [vmem:[%s11700_s3 + $0xb6c] sm:$0xf0] }
 0x1c1   :  { %v6822_v59 = vld [vmem:[%s11700_s3 + $0xd90] sm:$0xf]  ;;  %v6535_v1 = vor.u32 %v7798_v56, %v6534_v55  ;;  %3835 = vmatpush.bf16.msrb.mxu0 %v6279_v61  ;;  %v3584_v56 = vpop.f32.mrf.mxu0 }
 0x1c2   :  { %v7870_v60 = vld [vmem:[%s11700_s3 + $0xdac] sm:$0xf0] }
 0x1c3   :  { %v7078_v62 = vld [vmem:[%s11700_s3 + $0xf90] sm:$0xf]  ;;  %v6823_v4 = vor.u32 %v7870_v60, %v6822_v59  ;;  %3848 = vmatpush.bf16.msrb.mxu1 %v6535_v1  ;;  %v3597_v60 = vpop.f32.mrf.mxu1 }
 0x1c4   :  { %v7934_v63 = vld [vmem:[%s11700_s3 + $0xfac] sm:$0xf0] }
 0x1c5   :  { %v6246_v2 = vld [vmem:[%s11700_s3 + $0x910] sm:$0xf]  ;;  %v7079_v9 = vor.u32 %v7934_v63, %v7078_v62  ;;  %3860 = vmatpush.bf16.msrb.mxu2 %v6823_v4 }
 0x1c6   :  { %v7726_v3 = vld [vmem:[%s11700_s3 + $0x92c] sm:$0xf0] }
 0x1c7   :  { %v6502_v6 = vld [vmem:[%s11700_s3 + $0xb10] sm:$0xf]  ;;  %v6247_v13 = vor.u32 %v7726_v3, %v6246_v2  ;;  %3873 = vmatpush.bf16.msrb.mxu3 %v7079_v9  ;;  %v7490_v9 = vld [vmem:[%s11700_s3 + $0x1d4] sm:$0xf] }
 0x1c8   :  { %v7790_v8 = vld [vmem:[%s11700_s3 + $0xb2c] sm:$0xf0] }
 0x1c9   :  { %v6790_v10 = vld [vmem:[%s11700_s3 + $0xd50] sm:$0xf]  ;;  %v6503_v17 = vor.u32 %v7790_v8, %v6502_v6  ;;  %3836 = vmatpush.bf16.msrb.mxu0 %v6247_v13 }
 0x1ca   :  { %v7862_v49 = vld [vmem:[%s11700_s3 + $0xd6c] sm:$0xf0] }
 0x1cb   :  { %v7046_v15 = vld [vmem:[%s11700_s3 + $0xf50] sm:$0xf]  ;;  %v6791_v19 = vor.u32 %v7862_v49, %v6790_v10  ;;  %3849 = vmatpush.bf16.msrb.mxu1 %v6503_v17  ;;  %v5320_v10 = vld [vmem:[%s11700_s3 + $0x1f0] sm:$0xf0] }
 0x1cc   :  { %v7926_v16 = vld [vmem:[%s11700_s3 + $0xf6c] sm:$0xf0]  ;;  %v7554_v49 = vld [vmem:[%s11700_s3 + $0x3d4] sm:$0xf] }
 0x1cd   :  { %v6214_v18 = vld [vmem:[%s11700_s3 + $0x8d0] sm:$0xf]  ;;  %v7047_v24 = vor.u32 %v7926_v16, %v7046_v15  ;;  %3861 = vmatpush.bf16.msrb.mxu2 %v6791_v19  ;;  %v5576_v15 = vld [vmem:[%s11700_s3 + $0x3f0] sm:$0xf0] }
 0x1ce   :  { %v7718_v38 = vld [vmem:[%s11700_s3 + $0x8ec] sm:$0xf0]  ;;  %v5579_v27 = vor.u32 %v7554_v49, %v5576_v15 }
 0x1cf   :  { %v6470_v20 = vld [vmem:[%s11700_s3 + $0xad0] sm:$0xf]  ;;  %v6215_v30 = vor.u32 %v7718_v38, %v6214_v18  ;;  %3874 = vmatpush.bf16.msrb.mxu3 %v7047_v24  ;;  %v3609_v18 = vadd.f32 %v3608_v11, %v3596_v37  ;;  %v3621_v38 = vpop.f32.mrf.mxu3  ;;  %v5323_v24 = vor.u32 %v7490_v9, %v5320_v10  ;;  %v7602_v9 = vld [vmem:[%s11700_s3 + $0x554] sm:$0xf] }
 0x1d0   :  { %v7782_v21 = vld [vmem:[%s11700_s3 + $0xaec] sm:$0xf0]  ;;  %v5768_v10 = vld [vmem:[%s11700_s3 + $0x570] sm:$0xf0] }
 0x1d1   :  { %v6758_v25 = vld [vmem:[%s11700_s3 + $0xd10] sm:$0xf]  ;;  %v6471_v31 = vor.u32 %v7782_v21, %v6470_v20  ;;  %3837 = vmatpush.bf16.msrb.mxu0 %v6215_v30  ;;  %v5288_v30 = vld [vmem:[%s11700_s3 + $0x1b0] sm:$0xf0] }
 0x1d2   :  { %v7854_v26 = vld [vmem:[%s11700_s3 + $0xd2c] sm:$0xf0]  ;;  %v7666_v11 = vld [vmem:[%s11700_s3 + $0x754] sm:$0xf] }
 0x1d3   :  { %v7014_v32 = vld [vmem:[%s11700_s3 + $0xf10] sm:$0xf]  ;;  %v6759_v39 = vor.u32 %v7854_v26, %v6758_v25  ;;  %3850 = vmatpush.bf16.msrb.mxu1 %v6471_v31  ;;  %v7482_v25 = vld [vmem:[%s11700_s3 + $0x194] sm:$0xf]  ;;  %v10191_v26 = vadd.f32 %v3621_v38, %v3609_v18  ;;  %v5771_v18 = vor.u32 %v7602_v9, %v5768_v10 }
 0x1d4   :  { %v7918_v33 = vld [vmem:[%s11700_s3 + $0xf2c] sm:$0xf0]  ;;  %v7522_v38 = vld [vmem:[%s11700_s3 + $0x2d4] sm:$0xf] }
 0x1d5   :  { %v6182_v34 = vld [vmem:[%s11700_s3 + $0x890] sm:$0xf]  ;;  %v7015_v43 = vor.u32 %v7918_v33, %v7014_v32  ;;  %3862 = vmatpush.bf16.msrb.mxu2 %v6759_v39  ;;  %v7546_v32 = vld [vmem:[%s11700_s3 + $0x394] sm:$0xf] }
 0x1d6   :  { %v7710_v36 = vld [vmem:[%s11700_s3 + $0x8ac] sm:$0xf0]  ;;  %v5544_v33 = vld [vmem:[%s11700_s3 + $0x3b0] sm:$0xf0] }
 0x1d7   :  { %v6438_v41 = vld [vmem:[%s11700_s3 + $0xa90] sm:$0xf]  ;;  %v6183_v14 = vor.u32 %v7710_v36, %v6182_v34  ;;  %3875 = vmatpush.bf16.msrb.mxu3 %v7015_v43  ;;  %v5291_v43 = vor.u32 %v7482_v25, %v5288_v30  ;;  %v3623_v56 = vpop.f32.mrf.mxu3  ;;  %v7658_v30 = vld [vmem:[%s11700_s3 + $0x714] sm:$0xf] }
 0x1d8   :  { %v7774_v42 = vld [vmem:[%s11700_s3 + $0xaac] sm:$0xf0]  ;;  %v7578_v56 = vld [vmem:[%s11700_s3 + $0x494] sm:$0xf] }
 0x1d9   :  { %v6726_v44 = vld [vmem:[%s11700_s3 + $0xcd0] sm:$0xf]  ;;  %v6439_v50 = vor.u32 %v7774_v42, %v6438_v41  ;;  %3838 = vmatpush.bf16.msrb.mxu0 %v6183_v14  ;;  %v7618_v41 = vld [vmem:[%s11700_s3 + $0x5d4] sm:$0xf]  ;;  %v5547_v14 = vor.u32 %v7546_v32, %v5544_v33 }
 0x1da   :  { %v7846_v46 = vld [vmem:[%s11700_s3 + $0xcec] sm:$0xf0]  ;;  %v5832_v42 = vld [vmem:[%s11700_s3 + $0x5f0] sm:$0xf0] }
 0x1db   :  { %v6982_v23 = vld [vmem:[%s11700_s3 + $0xed0] sm:$0xf]  ;;  %v6727_v53 = vor.u32 %v7846_v46, %v6726_v44  ;;  %3851 = vmatpush.bf16.msrb.mxu1 %v6439_v50  ;;  %v7682_v44 = vld [vmem:[%s11700_s3 + $0x7d4] sm:$0xf] }
 0x1dc   :  { %v7910_v48 = vld [vmem:[%s11700_s3 + $0xeec] sm:$0xf0]  ;;  %v6088_v46 = vld [vmem:[%s11700_s3 + $0x7f0] sm:$0xf0] }
 0x1dd   :  { %v6150_v51 = vld [vmem:[%s11700_s3 + $0x850] sm:$0xf]  ;;  %v6983_v57 = vor.u32 %v7910_v48, %v6982_v23  ;;  %3863 = vmatpush.bf16.msrb.mxu2 %v6727_v53  ;;  %v7474_v48 = vld [vmem:[%s11700_s3 + $0x154] sm:$0xf]  ;;  %v5835_v53 = vor.u32 %v7618_v41, %v5832_v42 }
 0x1de   :  { %v7702_v52 = vld [vmem:[%s11700_s3 + $0x86c] sm:$0xf0]  ;;  %v5256_v50 = vld [vmem:[%s11700_s3 + $0x170] sm:$0xf0] }
 0x1df   :  { %v6406_v54 = vld [vmem:[%s11700_s3 + $0xa50] sm:$0xf]  ;;  %v6151_v61 = vor.u32 %v7702_v52, %v6150_v51  ;;  %3876 = vmatpush.bf16.msrb.mxu3 %v6983_v57  ;;  %v3610_v51 = vpop.f32.mrf.mxu2  ;;  %v6091_v57 = vor.u32 %v7682_v44, %v6088_v46  ;;  %v5259_v60 = vor.u32 %v7474_v48, %v5256_v50  ;;  %v5992_v32 = vld [vmem:[%s11700_s3 + $0x730] sm:$0xf0] }
 0x1e0   :  { %v7766_v55 = vld [vmem:[%s11700_s3 + $0xa6c] sm:$0xf0]  ;;  %v5995_v41 = vor.u32 %v7658_v30, %v5992_v32  ;;  %v7586_v42 = vld [vmem:[%s11700_s3 + $0x4d4] sm:$0xf] }
 0x1e1   :  { %v6694_v58 = vld [vmem:[%s11700_s3 + $0xc90] sm:$0xf]  ;;  %v6407_v2 = vor.u32 %v7766_v55, %v6406_v54  ;;  %3839 = vmatpush.bf16.msrb.mxu0 %v6151_v61  ;;  %v7538_v54 = vld [vmem:[%s11700_s3 + $0x354] sm:$0xf] }
 0x1e2   :  { %v7838_v59 = vld [vmem:[%s11700_s3 + $0xcac] sm:$0xf0]  ;;  %v5512_v55 = vld [vmem:[%s11700_s3 + $0x370] sm:$0xf0] }
 0x1e3   :  { %v6950_v62 = vld [vmem:[%s11700_s3 + $0xe90] sm:$0xf]  ;;  %v6695_v8 = vor.u32 %v7838_v59, %v6694_v58  ;;  %3852 = vmatpush.bf16.msrb.mxu1 %v6407_v2  ;;  %v7610_v58 = vld [vmem:[%s11700_s3 + $0x594] sm:$0xf] }
 0x1e4   :  { %v7902_v63 = vld [vmem:[%s11700_s3 + $0xeac] sm:$0xf0]  ;;  %v5800_v59 = vld [vmem:[%s11700_s3 + $0x5b0] sm:$0xf0] }
 0x1e5   :  { %v6118_v1 = vld [vmem:[%s11700_s3 + $0x810] sm:$0xf]  ;;  %v6951_v13 = vor.u32 %v7902_v63, %v6950_v62  ;;  %3864 = vmatpush.bf16.msrb.mxu2 %v6695_v8  ;;  %v7674_v61 = vld [vmem:[%s11700_s3 + $0x794] sm:$0xf]  ;;  %v5515_v63 = vor.u32 %v7538_v54, %v5512_v55 }
 0x1e6   :  { %v7694_v3 = vld [vmem:[%s11700_s3 + $0x82c] sm:$0xf0]  ;;  %v6056_v62 = vld [vmem:[%s11700_s3 + $0x7b0] sm:$0xf0] }
 0x1e7   :  { %v6374_v4 = vld [vmem:[%s11700_s3 + $0xa10] sm:$0xf]  ;;  %v6119_v19 = vor.u32 %v7694_v3, %v6118_v1  ;;  %3877 = vmatpush.bf16.msrb.mxu3 %v6951_v13  ;;  %v7466_v1 = vld [vmem:[%s11700_s3 + $0x114] sm:$0xf]  ;;  %v5803_v3 = vor.u32 %v7610_v58, %v5800_v59  ;;  %v6059_v8 = vor.u32 %v7674_v61, %v6056_v62  ;;  %v10374_v10 = vpop.f32.mrf.mxu2 }
 0x1e8   :  { %v7758_v6 = vld [vmem:[%s11700_s3 + $0xa2c] sm:$0xf0]  ;;  %v5224_v2 = vld [vmem:[%s11700_s3 + $0x130] sm:$0xf0] }
 0x1e9   :  { %v6662_v16 = vld [vmem:[%s11700_s3 + $0xc50] sm:$0xf]  ;;  %v6375_v22 = vor.u32 %v7758_v6, %v6374_v4  ;;  %3840 = vmatpush.bf16.msrb.mxu0 %v6119_v19  ;;  %v7530_v4 = vld [vmem:[%s11700_s3 + $0x314] sm:$0xf]  ;;  %v5227_v49 = vor.u32 %v7466_v1, %v5224_v2 }
 0x1ea   :  { %v7830_v17 = vld [vmem:[%s11700_s3 + $0xc6c] sm:$0xf0]  ;;  %v5480_v6 = vld [vmem:[%s11700_s3 + $0x330] sm:$0xf0] }
 0x1eb   :  { %v6918_v20 = vld [vmem:[%s11700_s3 + $0xe50] sm:$0xf]  ;;  %v6663_v28 = vor.u32 %v7830_v17, %v6662_v16  ;;  %3853 = vmatpush.bf16.msrb.mxu1 %v6375_v22  ;;  %v6024_v13 = vld [vmem:[%s11700_s3 + $0x770] sm:$0xf0]  ;;  %v5483_v15 = vor.u32 %v7530_v4, %v5480_v6 }
 0x1ec   :  { %v7894_v21 = vld [vmem:[%s11700_s3 + $0xe6c] sm:$0xf0]  ;;  %3841 = vmatmul.bf16.vlgmr.msrb.gmra.mxu0 %v8698_v7  ;;  %v7458_v16 = vld [vmem:[%s11700_s3 + $0xd4] sm:$0xf] }
 0x1ed   :  { %v6919_v31 = vor.u32 %v7894_v21, %v6918_v20  ;;  %v6630_v34 = vld [vmem:[%s11700_s3 + $0xc10] sm:$0xf]  ;;  %3885 = vmatpush.bf16.msra.mxu0 %v5323_v24  ;;  %3865 = vmatpush.bf16.msrb.mxu2 %v6663_v28  ;;  %v5192_v17 = vld [vmem:[%s11700_s3 + $0xf0] sm:$0xf0]  ;;  %v3634_v20 = vpop.f32.mrf.mxu0  ;;  %v6027_v21 = vor.u32 %v7666_v11, %v6024_v13 }
 0x1ee   :  { %v7822_v36 = vld [vmem:[%s11700_s3 + $0xc2c] sm:$0xf0]  ;;  %3854 = vmatmul.bf16.vlgmr.msrb.gmra.mxu1 %v8709_v12  ;;  %v5448_v19 = vld [vmem:[%s11700_s3 + $0x2f0] sm:$0xf0]  ;;  %v3635_v25 = vadd.f32 %v3634_v20, %v10191_v26  ;;  %v5195_v28 = vor.u32 %v7458_v16, %v5192_v17  ;;  %v10385_v16 = vpop.f32.mrf.mxu3 }
 0x1ef   :  { %v6886_v37 = vld [vmem:[%s11700_s3 + $0xe10] sm:$0xf]  ;;  %3898 = vmatpush.bf16.msra.mxu1 %v5579_v27  ;;  %v6631_v23 = vor.u32 %v7822_v36, %v6630_v34  ;;  %3878 = vmatpush.bf16.msrb.mxu3 %v6919_v31  ;;  %v7594_v22 = vld [vmem:[%s11700_s3 + $0x514] sm:$0xf]  ;;  %v3647_v27 = vpop.f32.mrf.mxu1  ;;  %v5451_v33 = vor.u32 %v7522_v38, %v5448_v19 }
 0x1f0   :  { %v7886_v39 = vld [vmem:[%s11700_s3 + $0xe2c] sm:$0xf0]  ;;  %v5736_v24 = vld [vmem:[%s11700_s3 + $0x530] sm:$0xf0]  ;;  %v10309_v34 = vadd.f32 %v3647_v27, %v3635_v25 }
 0x1f1   :  { %v6887_v52 = vor.u32 %v7886_v39, %v6886_v37  ;;  %3886 = vmatpush.bf16.msra.mxu0 %v5291_v43  ;;  %3866 = vmatpush.bf16.msrb.mxu2 %v6631_v23  ;;  %v7450_v31 = vld [vmem:[%s11700_s3 + $0x94] sm:$0xf]  ;;  %v5739_v36 = vor.u32 %v7594_v22, %v5736_v24 }
 0x1f2   :  { %v5160_v26 = vld [vmem:[%s11700_s3 + $0xb0] sm:$0xf0] }
 0x1f3   :  { %3899 = vmatpush.bf16.msra.mxu1 %v5547_v14  ;;  %3879 = vmatpush.bf16.msrb.mxu3 %v6887_v52  ;;  %v7514_v37 = vld [vmem:[%s11700_s3 + $0x294] sm:$0xf]  ;;  %v5163_v44 = vor.u32 %v7450_v31, %v5160_v26 }
 0x1f4   :  { %3867 = vmatmul.bf16.vlgmr.msrb.gmra.mxu2 %v8746_v40  ;;  %v5416_v39 = vld [vmem:[%s11700_s3 + $0x2b0] sm:$0xf0] }
 0x1f5   :  { %3911 = vmatpush.bf16.msra.mxu2 %v5835_v53  ;;  %3887 = vmatpush.bf16.msra.mxu0 %v5259_v60  ;;  %v5704_v43 = vld [vmem:[%s11700_s3 + $0x4f0] sm:$0xf0]  ;;  %v5419_v23 = vor.u32 %v7514_v37, %v5416_v39  ;;  %v3636_v54 = vpop.f32.mrf.mxu0 }
 0x1f6   :  { %3880 = vmatmul.bf16.vlgmr.msrb.gmra.mxu3 %v8757_v45  ;;  %v7650_v46 = vld [vmem:[%s11700_s3 + $0x6d4] sm:$0xf]  ;;  %v5707_v51 = vor.u32 %v7586_v42, %v5704_v43 }
 0x1f7   :  { %3924 = vmatpush.bf16.msra.mxu3 %v6091_v57  ;;  %3900 = vmatpush.bf16.msra.mxu1 %v5515_v63  ;;  %v5960_v14 = vld [vmem:[%s11700_s3 + $0x6f0] sm:$0xf0]  ;;  %v3649_v58 = vpop.f32.mrf.mxu1 }
 0x1f8   :  { %v7442_v48 = vld [vmem:[%s11700_s3 + $0x54] sm:$0xf]  ;;  %v5963_v55 = vor.u32 %v7650_v46, %v5960_v14 }
 0x1f9   :  { %3912 = vmatpush.bf16.msra.mxu2 %v5803_v3  ;;  %3888 = vmatpush.bf16.msra.mxu0 %v5227_v49  ;;  %v5128_v50 = vld [vmem:[%s11700_s3 + $0x70] sm:$0xf0] }
 0x1fa   :  { %v7506_v52 = vld [vmem:[%s11700_s3 + $0x254] sm:$0xf]  ;;  %v5131_v59 = vor.u32 %v7442_v48, %v5128_v50 }
 0x1fb   :  { %3925 = vmatpush.bf16.msra.mxu3 %v6059_v8  ;;  %3901 = vmatpush.bf16.msra.mxu1 %v5483_v15  ;;  %v5384_v53 = vld [vmem:[%s11700_s3 + $0x270] sm:$0xf0] }
 0x1fc   :  { %v5672_v57 = vld [vmem:[%s11700_s3 + $0x4b0] sm:$0xf0]  ;;  %v5387_v63 = vor.u32 %v7506_v52, %v5384_v53  ;;  %v3675_v53 = vpop.f32.mrf.mxu3 }
 0x1fd   :  { %3913 = vmatpush.bf16.msra.mxu2 %v5771_v18  ;;  %3889 = vmatpush.bf16.msra.mxu0 %v5195_v28  ;;  %v7642_v60 = vld [vmem:[%s11700_s3 + $0x694] sm:$0xf]  ;;  %v5675_v4 = vor.u32 %v7578_v56, %v5672_v57 }
 0x1fe   :  { %v5928_v61 = vld [vmem:[%s11700_s3 + $0x6b0] sm:$0xf0] }
 0x1ff   :  { %3926 = vmatpush.bf16.msra.mxu3 %v6027_v21  ;;  %3902 = vmatpush.bf16.msra.mxu1 %v5451_v33  ;;  %v7434_v62 = vld [vmem:[%s11700_s3 + $0x14] sm:$0xf]  ;;  %v5931_v49 = vor.u32 %v7642_v60, %v5928_v61 }
 0x200   :  { %v5096_v1 = vld [vmem:[%s11700_s3 + $0x30] sm:$0xf0] }
 0x201   :  { %3914 = vmatpush.bf16.msra.mxu2 %v5739_v36  ;;  %3890 = vmatpush.bf16.msra.mxu0 %v5163_v44  ;;  %v7498_v2 = vld [vmem:[%s11700_s3 + $0x214] sm:$0xf]  ;;  %v5099_v17 = vor.u32 %v7434_v62, %v5096_v1 }
 0x202   :  { %v5352_v3 = vld [vmem:[%s11700_s3 + $0x230] sm:$0xf0] }
 0x203   :  { %3927 = vmatpush.bf16.msra.mxu3 %v5995_v41  ;;  %3903 = vmatpush.bf16.msra.mxu1 %v5419_v23  ;;  %v7746_v6 = vld [vmem:[%s11700_s3 + $0x9d4] sm:$0xf]  ;;  %v5355_v19 = vor.u32 %v7498_v2, %v5352_v3  ;;  %v3662_v23 = vpop.f32.mrf.mxu2 }
 0x204   :  { %v6344_v8 = vld [vmem:[%s11700_s3 + $0x9f0] sm:$0xf0] }
 0x205   :  { %3915 = vmatpush.bf16.msra.mxu2 %v5707_v51  ;;  %v7810_v9 = vld [vmem:[%s11700_s3 + $0xbd4] sm:$0xf]  ;;  %3891 = vmatpush.bf16.msra.mxu0 %v5131_v59  ;;  %v6347_v20 = vor.u32 %v7746_v6, %v6344_v8 }
 0x206   :  { %v6600_v11 = vld [vmem:[%s11700_s3 + $0xbf0] sm:$0xf0] }
 0x207   :  { %3928 = vmatpush.bf16.msra.mxu3 %v5963_v55  ;;  %v7570_v13 = vld [vmem:[%s11700_s3 + $0x454] sm:$0xf]  ;;  %3904 = vmatpush.bf16.msra.mxu1 %v5387_v63  ;;  %v6603_v22 = vor.u32 %v7810_v9, %v6600_v11 }
 0x208   :  { %v5640_v15 = vld [vmem:[%s11700_s3 + $0x470] sm:$0xf0] }
 0x209   :  { %v7634_v18 = vld [vmem:[%s11700_s3 + $0x654] sm:$0xf]  ;;  %3916 = vmatpush.bf16.msra.mxu2 %v5675_v4  ;;  %v5643_v24 = vor.u32 %v7570_v13, %v5640_v15  ;;  %3892 = vmatpush.bf16.msra.mxu0 %v5099_v17 }
 0x20a   :  { %v5896_v38 = vld [vmem:[%s11700_s3 + $0x670] sm:$0xf0] }
 0x20b   :  { %v7738_v21 = vld [vmem:[%s11700_s3 + $0x994] sm:$0xf]  ;;  %3929 = vmatpush.bf16.msra.mxu3 %v5931_v49  ;;  %v5899_v30 = vor.u32 %v7634_v18, %v5896_v38  ;;  %3905 = vmatpush.bf16.msra.mxu1 %v5355_v19  ;;  %v10493_v19 = vpop.f32.mrf.mxu0 }
 0x20c   :  { %v6312_v25 = vld [vmem:[%s11700_s3 + $0x9b0] sm:$0xf0]  ;;  %3893 = vmatmul.bf16.vlgmr.msra.gmra.mxu0 %v8591_v0 }
 0x20d   :  { %v7802_v27 = vld [vmem:[%s11700_s3 + $0xb94] sm:$0xf]  ;;  %3937 = vmatpush.bf16.msrb.mxu0 %v6347_v20  ;;  %v6315_v39 = vor.u32 %v7738_v21, %v6312_v25  ;;  %3917 = vmatpush.bf16.msra.mxu2 %v5643_v24  ;;  %v10501_v24 = vpop.f32.mrf.mxu1 }
 0x20e   :  { %v6568_v28 = vld [vmem:[%s11700_s3 + $0xbb0] sm:$0xf0]  ;;  %3906 = vmatmul.bf16.vlgmr.msra.gmra.mxu1 %v8600_v5 }
 0x20f   :  { %v7562_v32 = vld [vmem:[%s11700_s3 + $0x414] sm:$0xf]  ;;  %3950 = vmatpush.bf16.msrb.mxu1 %v6603_v22  ;;  %v6571_v43 = vor.u32 %v7802_v27, %v6568_v28  ;;  %3930 = vmatpush.bf16.msra.mxu3 %v5899_v30 }
 0x210   :  { %v5608_v33 = vld [vmem:[%s11700_s3 + $0x430] sm:$0xf0] }
 0x211   :  { %v7626_v31 = vld [vmem:[%s11700_s3 + $0x614] sm:$0xf]  ;;  %v5611_v44 = vor.u32 %v7562_v32, %v5608_v33  ;;  %3938 = vmatpush.bf16.msrb.mxu0 %v6315_v39 }
 0x212   :  { %v5864_v26 = vld [vmem:[%s11700_s3 + $0x630] sm:$0xf0] }
 0x213   :  { %v7874_v36 = vld [vmem:[%s11700_s3 + $0xdd4] sm:$0xf]  ;;  %v5867_v48 = vor.u32 %v7626_v31, %v5864_v26  ;;  %3951 = vmatpush.bf16.msrb.mxu1 %v6571_v43  ;;  %3918 = vmatpush.bf16.msra.mxu2 %v5611_v44 }
 0x214   :  { %v6856_v37 = vld [vmem:[%s11700_s3 + $0xdf0] sm:$0xf0] }
 0x215   :  { %v7938_v41 = vld [vmem:[%s11700_s3 + $0xfd4] sm:$0xf]  ;;  %v6859_v50 = vor.u32 %v7874_v36, %v6856_v37  ;;  %3931 = vmatpush.bf16.msra.mxu3 %v5867_v48 }
 0x216   :  { %v7112_v42 = vld [vmem:[%s11700_s3 + $0xff0] sm:$0xf0]  ;;  %3919 = vmatmul.bf16.vlgmr.msra.gmra.mxu2 %v8635_v29 }
 0x217   :  { %v7730_v46 = vld [vmem:[%s11700_s3 + $0x954] sm:$0xf]  ;;  %v7115_v54 = vor.u32 %v7938_v41, %v7112_v42  ;;  %3963 = vmatpush.bf16.msrb.mxu2 %v6859_v50 }
 0x218   :  { %v6280_v14 = vld [vmem:[%s11700_s3 + $0x970] sm:$0xf0]  ;;  %3932 = vmatmul.bf16.vlgmr.msra.gmra.mxu3 %v8646_v35 }
 0x219   :  { %v7794_v51 = vld [vmem:[%s11700_s3 + $0xb54] sm:$0xf]  ;;  %v6283_v57 = vor.u32 %v7730_v46, %v6280_v14  ;;  %3976 = vmatpush.bf16.msrb.mxu3 %v7115_v54 }
 0x21a   :  { %v6536_v52 = vld [vmem:[%s11700_s3 + $0xb70] sm:$0xf0] }
 0x21b   :  { %v7866_v55 = vld [vmem:[%s11700_s3 + $0xd94] sm:$0xf]  ;;  %v6539_v60 = vor.u32 %v7794_v51, %v6536_v52  ;;  %3939 = vmatpush.bf16.msrb.mxu0 %v6283_v57  ;;  %v3688_v52 = vpop.f32.mrf.mxu0 }
 0x21c   :  { %v6824_v56 = vld [vmem:[%s11700_s3 + $0xdb0] sm:$0xf0] }
 0x21d   :  { %v7930_v58 = vld [vmem:[%s11700_s3 + $0xf94] sm:$0xf]  ;;  %v6827_v63 = vor.u32 %v7866_v55, %v6824_v56  ;;  %3952 = vmatpush.bf16.msrb.mxu1 %v6539_v60  ;;  %v3701_v56 = vpop.f32.mrf.mxu1 }
 0x21e   :  { %v7080_v59 = vld [vmem:[%s11700_s3 + $0xfb0] sm:$0xf0]  ;;  %v7543_v56 = vld [vmem:[%s11700_s3 + $0x374] sm:$0xf0] }
 0x21f   :  { %v7722_v61 = vld [vmem:[%s11700_s3 + $0x914] sm:$0xf]  ;;  %v7083_v3 = vor.u32 %v7930_v58, %v7080_v59  ;;  %3964 = vmatpush.bf16.msrb.mxu2 %v6827_v63 }
 0x220   :  { %v6248_v62 = vld [vmem:[%s11700_s3 + $0x930] sm:$0xf0] }
 0x221   :  { %v7786_v1 = vld [vmem:[%s11700_s3 + $0xb14] sm:$0xf]  ;;  %v6251_v8 = vor.u32 %v7722_v61, %v6248_v62  ;;  %3977 = vmatpush.bf16.msrb.mxu3 %v7083_v3  ;;  %v5326_v3 = vld [vmem:[%s11700_s3 + $0x1d8] sm:$0xf] }
 0x222   :  { %v6504_v2 = vld [vmem:[%s11700_s3 + $0xb30] sm:$0xf0] }
 0x223   :  { %v7858_v4 = vld [vmem:[%s11700_s3 + $0xd54] sm:$0xf]  ;;  %v6507_v11 = vor.u32 %v7786_v1, %v6504_v2  ;;  %3940 = vmatpush.bf16.msrb.mxu0 %v6251_v8  ;;  %v10578_v8 = vpop.f32.mrf.mxu2 }
 0x224   :  { %v6792_v6 = vld [vmem:[%s11700_s3 + $0xd70] sm:$0xf0] }
 0x225   :  { %v7922_v9 = vld [vmem:[%s11700_s3 + $0xf54] sm:$0xf]  ;;  %v6795_v17 = vor.u32 %v7858_v4, %v6792_v6  ;;  %3953 = vmatpush.bf16.msrb.mxu1 %v6507_v11  ;;  %v7495_v4 = vld [vmem:[%s11700_s3 + $0x1f4] sm:$0xf0] }
 0x226   :  { %v7048_v49 = vld [vmem:[%s11700_s3 + $0xf70] sm:$0xf0]  ;;  %v5582_v6 = vld [vmem:[%s11700_s3 + $0x3d8] sm:$0xf] }
 0x227   :  { %v7714_v13 = vld [vmem:[%s11700_s3 + $0x8d4] sm:$0xf]  ;;  %v7051_v20 = vor.u32 %v7922_v9, %v7048_v49  ;;  %3965 = vmatpush.bf16.msrb.mxu2 %v6795_v17  ;;  %v7559_v49 = vld [vmem:[%s11700_s3 + $0x3f4] sm:$0xf0] }
 0x228   :  { %v6216_v15 = vld [vmem:[%s11700_s3 + $0x8f0] sm:$0xf0] }
 0x229   :  { %v7778_v18 = vld [vmem:[%s11700_s3 + $0xad4] sm:$0xf]  ;;  %v6219_v25 = vor.u32 %v7714_v13, %v6216_v15  ;;  %3978 = vmatpush.bf16.msrb.mxu3 %v7051_v20  ;;  %v10589_v15 = vpop.f32.mrf.mxu3 }
 0x22a   :  { %v6472_v38 = vld [vmem:[%s11700_s3 + $0xaf0] sm:$0xf0] }
 0x22b   :  { %v7850_v21 = vld [vmem:[%s11700_s3 + $0xd14] sm:$0xf]  ;;  %v6475_v30 = vor.u32 %v7778_v18, %v6472_v38  ;;  %3941 = vmatpush.bf16.msrb.mxu0 %v6219_v25  ;;  %v5583_v25 = vor.u32 %v7559_v49, %v5582_v6  ;;  %v3714_v52 = vpop.f32.mrf.mxu2  ;;  %v7535_v49 = vld [vmem:[%s11700_s3 + $0x334] sm:$0xf0] }
 0x22c   :  { %v6760_v22 = vld [vmem:[%s11700_s3 + $0xd30] sm:$0xf0] }
 0x22d   :  { %v7914_v27 = vld [vmem:[%s11700_s3 + $0xf14] sm:$0xf]  ;;  %v6763_v31 = vor.u32 %v7850_v21, %v6760_v22  ;;  %3954 = vmatpush.bf16.msrb.mxu1 %v6475_v30  ;;  %v5327_v21 = vor.u32 %v7495_v4, %v5326_v3  ;;  %v5294_v22 = vld [vmem:[%s11700_s3 + $0x198] sm:$0xf] }
 0x22e   :  { %v7016_v28 = vld [vmem:[%s11700_s3 + $0xf30] sm:$0xf0]  ;;  %v5550_v30 = vld [vmem:[%s11700_s3 + $0x398] sm:$0xf] }
 0x22f   :  { %v7706_v32 = vld [vmem:[%s11700_s3 + $0x894] sm:$0xf]  ;;  %v7019_v37 = vor.u32 %v7914_v27, %v7016_v28  ;;  %3966 = vmatpush.bf16.msrb.mxu2 %v6763_v31  ;;  %v7487_v28 = vld [vmem:[%s11700_s3 + $0x1b4] sm:$0xf0] }
 0x230   :  { %v6184_v33 = vld [vmem:[%s11700_s3 + $0x8b0] sm:$0xf0]  ;;  %v7471_v3 = vld [vmem:[%s11700_s3 + $0x134] sm:$0xf0] }
 0x231   :  { %v7770_v26 = vld [vmem:[%s11700_s3 + $0xa94] sm:$0xf]  ;;  %v6187_v42 = vor.u32 %v7706_v32, %v6184_v33  ;;  %3979 = vmatpush.bf16.msrb.mxu3 %v7019_v37  ;;  %v7551_v32 = vld [vmem:[%s11700_s3 + $0x3b4] sm:$0xf0] }
 0x232   :  { %v6440_v36 = vld [vmem:[%s11700_s3 + $0xab0] sm:$0xf0] }
 0x233   :  { %v7842_v39 = vld [vmem:[%s11700_s3 + $0xcd4] sm:$0xf]  ;;  %v6443_v46 = vor.u32 %v7770_v26, %v6440_v36  ;;  %3942 = vmatpush.bf16.msrb.mxu0 %v6187_v42  ;;  %v5295_v42 = vor.u32 %v7487_v28, %v5294_v22  ;;  %v7463_v22 = vld [vmem:[%s11700_s3 + $0xf4] sm:$0xf0] }
 0x234   :  { %v6728_v41 = vld [vmem:[%s11700_s3 + $0xcf0] sm:$0xf0]  ;;  %v5454_v28 = vld [vmem:[%s11700_s3 + $0x2d8] sm:$0xf] }
 0x235   :  { %v7906_v43 = vld [vmem:[%s11700_s3 + $0xed4] sm:$0xf]  ;;  %v6731_v48 = vor.u32 %v7842_v39, %v6728_v41  ;;  %3955 = vmatpush.bf16.msrb.mxu1 %v6443_v46  ;;  %v5838_v39 = vld [vmem:[%s11700_s3 + $0x5d8] sm:$0xf]  ;;  %v5551_v46 = vor.u32 %v7551_v32, %v5550_v30  ;;  %v3738_v32 = vpop.f32.mrf.mxu0 }
 0x236   :  { %v6984_v44 = vld [vmem:[%s11700_s3 + $0xef0] sm:$0xf0]  ;;  %v7623_v41 = vld [vmem:[%s11700_s3 + $0x5f4] sm:$0xf0] }
 0x237   :  { %v7698_v14 = vld [vmem:[%s11700_s3 + $0x854] sm:$0xf]  ;;  %v6987_v53 = vor.u32 %v7906_v43, %v6984_v44  ;;  %3967 = vmatpush.bf16.msrb.mxu2 %v6731_v48  ;;  %v6094_v43 = vld [vmem:[%s11700_s3 + $0x7d8] sm:$0xf] }
 0x238   :  { %v6152_v23 = vld [vmem:[%s11700_s3 + $0x870] sm:$0xf0]  ;;  %v7687_v44 = vld [vmem:[%s11700_s3 + $0x7f4] sm:$0xf0] }
 0x239   :  { %v7762_v50 = vld [vmem:[%s11700_s3 + $0xa54] sm:$0xf]  ;;  %v6155_v57 = vor.u32 %v7698_v14, %v6152_v23  ;;  %3980 = vmatpush.bf16.msrb.mxu3 %v6987_v53  ;;  %v5262_v23 = vld [vmem:[%s11700_s3 + $0x158] sm:$0xf] }
 0x23a   :  { %v6408_v51 = vld [vmem:[%s11700_s3 + $0xa70] sm:$0xf0]  ;;  %v7479_v48 = vld [vmem:[%s11700_s3 + $0x174] sm:$0xf0] }
 0x23b   :  { %v7834_v54 = vld [vmem:[%s11700_s3 + $0xc94] sm:$0xf]  ;;  %v6411_v61 = vor.u32 %v7762_v50, %v6408_v51  ;;  %3943 = vmatpush.bf16.msrb.mxu0 %v6155_v57  ;;  %v10642_v50 = vld [vmem:[%s11702_s4] sm:$0xff]  ;;  %v3727_v57 = vpop.f32.mrf.mxu3  ;;  %v7527_v30 = vld [vmem:[%s11700_s3 + $0x2f4] sm:$0xf0] }
 0x23c   :  { %v6696_v55 = vld [vmem:[%s11700_s3 + $0xcb0] sm:$0xf0]  ;;  %v792_v51 = vperm.slane %v10642_v50, 3  ;;  %v5134_v57 = vld [vmem:[%s11700_s3 + $0x58] sm:$0xf] }
 0x23d   :  { %v7898_v58 = vld [vmem:[%s11700_s3 + $0xe94] sm:$0xf]  ;;  %v6699_v2 = vor.u32 %v7834_v54, %v6696_v55  ;;  %3956 = vmatpush.bf16.msrb.mxu1 %v6411_v61  ;;  %v5839_v54 = vor.u32 %v7623_v41, %v5838_v39  ;;  %v5518_v55 = vld [vmem:[%s11700_s3 + $0x358] sm:$0xf]  ;;  %v5263_v61 = vor.u32 %v7479_v48, %v5262_v23 }
 0x23e   :  { %v6952_v59 = vld [vmem:[%s11700_s3 + $0xeb0] sm:$0xf0]  ;;  %v3687_v4 = vadd.f32 %v10493_v19, %v792_v51  ;;  %v7607_v19 = vld [vmem:[%s11700_s3 + $0x574] sm:$0xf0] }
 0x23f   :  { %v7690_v60 = vld [vmem:[%s11700_s3 + $0x814] sm:$0xf]  ;;  %v6955_v9 = vor.u32 %v7898_v58, %v6952_v59  ;;  %3968 = vmatpush.bf16.msrb.mxu2 %v6699_v2  ;;  %v6095_v58 = vor.u32 %v7687_v44, %v6094_v43  ;;  %v5806_v59 = vld [vmem:[%s11700_s3 + $0x598] sm:$0xf] }
 0x240   :  { %v6120_v62 = vld [vmem:[%s11700_s3 + $0x830] sm:$0xf0]  ;;  %v5230_v2 = vld [vmem:[%s11700_s3 + $0x118] sm:$0xf] }
 0x241   :  { %v7754_v63 = vld [vmem:[%s11700_s3 + $0xa14] sm:$0xf]  ;;  %v6123_v17 = vor.u32 %v7690_v60, %v6120_v62  ;;  %3981 = vmatpush.bf16.msrb.mxu3 %v6955_v9  ;;  %v7615_v60 = vld [vmem:[%s11700_s3 + $0x5b4] sm:$0xf0] }
 0x242   :  { %v6376_v1 = vld [vmem:[%s11700_s3 + $0xa30] sm:$0xf0]  ;;  %v6062_v62 = vld [vmem:[%s11700_s3 + $0x798] sm:$0xf]  ;;  %v5807_v6 = vor.u32 %v7615_v60, %v5806_v59 }
 0x243   :  { %v7826_v11 = vld [vmem:[%s11700_s3 + $0xc54] sm:$0xf]  ;;  %v6379_v20 = vor.u32 %v7754_v63, %v6376_v1  ;;  %3944 = vmatpush.bf16.msrb.mxu0 %v6123_v17  ;;  %v7679_v63 = vld [vmem:[%s11700_s3 + $0x7b4] sm:$0xf0]  ;;  %v5519_v1 = vor.u32 %v7543_v56, %v5518_v55  ;;  %v5231_v17 = vor.u32 %v7471_v3, %v5230_v2  ;;  %v3661_v3 = vadd.f32 %v10374_v10, %v10309_v34 }
 0x244   :  { %v6664_v13 = vld [vmem:[%s11700_s3 + $0xc70] sm:$0xf0]  ;;  %v5486_v9 = vld [vmem:[%s11700_s3 + $0x318] sm:$0xf] }
 0x245   :  { %v7890_v18 = vld [vmem:[%s11700_s3 + $0xe54] sm:$0xf]  ;;  %v6667_v27 = vor.u32 %v7826_v11, %v6664_v13  ;;  %3957 = vmatpush.bf16.msrb.mxu1 %v6379_v20  ;;  %v6063_v11 = vor.u32 %v7679_v63, %v6062_v62  ;;  %v5774_v13 = vld [vmem:[%s11700_s3 + $0x558] sm:$0xf]  ;;  %v5487_v20 = vor.u32 %v7535_v49, %v5486_v9  ;;  %v3740_v62 = vpop.f32.mrf.mxu0 }
 0x246   :  { %v6920_v38 = vld [vmem:[%s11700_s3 + $0xe70] sm:$0xf0]  ;;  %3945 = vmatmul.bf16.vlgmr.msrb.gmra.mxu0 %v8698_v7  ;;  %v5998_v39 = vld [vmem:[%s11700_s3 + $0x718] sm:$0xf] }
 0x247   :  { %v6923_v33 = vor.u32 %v7890_v18, %v6920_v38  ;;  %v7818_v31 = vld [vmem:[%s11700_s3 + $0xc14] sm:$0xf]  ;;  %3989 = vmatpush.bf16.msra.mxu0 %v5327_v21  ;;  %3969 = vmatpush.bf16.msrb.mxu2 %v6667_v27  ;;  %v6030_v18 = vld [vmem:[%s11700_s3 + $0x758] sm:$0xf]  ;;  %v5775_v27 = vor.u32 %v7607_v19, %v5774_v13 }
 0x248   :  { %v6632_v26 = vld [vmem:[%s11700_s3 + $0xc30] sm:$0xf0]  ;;  %3958 = vmatmul.bf16.vlgmr.msrb.gmra.mxu1 %v8709_v12  ;;  %v7671_v38 = vld [vmem:[%s11700_s3 + $0x774] sm:$0xf0] }
 0x249   :  { %v7882_v36 = vld [vmem:[%s11700_s3 + $0xe14] sm:$0xf]  ;;  %4002 = vmatpush.bf16.msra.mxu1 %v5583_v25  ;;  %v6635_v14 = vor.u32 %v7818_v31, %v6632_v26  ;;  %3982 = vmatpush.bf16.msrb.mxu3 %v6923_v33  ;;  %v5198_v21 = vld [vmem:[%s11700_s3 + $0xd8] sm:$0xf]  ;;  %v3700_v25 = vadd.f32 %v10501_v24, %v3687_v4  ;;  %v6031_v33 = vor.u32 %v7671_v38, %v6030_v18 }
 0x24a   :  { %v6888_v37 = vld [vmem:[%s11700_s3 + $0xe30] sm:$0xf0]  ;;  %v5742_v31 = vld [vmem:[%s11700_s3 + $0x518] sm:$0xf] }
 0x24b   :  { %v6891_v53 = vor.u32 %v7882_v36, %v6888_v37  ;;  %3990 = vmatpush.bf16.msra.mxu0 %v5295_v42  ;;  %3970 = vmatpush.bf16.msrb.mxu2 %v6635_v14  ;;  %v7599_v24 = vld [vmem:[%s11700_s3 + $0x534] sm:$0xf0]  ;;  %v3713_v26 = vadd.f32 %v10578_v8, %v3700_v25  ;;  %v3751_v36 = vpop.f32.mrf.mxu1  ;;  %v5199_v37 = vor.u32 %v7463_v22, %v5198_v21  ;;  %v3764_v22 = vpop.f32.mrf.mxu2 }
 0x24c   :  { %v7663_v41 = vld [vmem:[%s11700_s3 + $0x734] sm:$0xf0]  ;;  %v5455_v42 = vor.u32 %v7527_v30, %v5454_v28  ;;  %v5743_v44 = vor.u32 %v7599_v24, %v5742_v31  ;;  %v3777_v31 = vpop.f32.mrf.mxu3 }
 0x24d   :  { %4003 = vmatpush.bf16.msra.mxu1 %v5551_v46  ;;  %3983 = vmatpush.bf16.msrb.mxu3 %v6891_v53  ;;  %v5166_v43 = vld [vmem:[%s11700_s3 + $0x98] sm:$0xf]  ;;  %v5999_v23 = vor.u32 %v7663_v41, %v5998_v39  ;;  %v3726_v52 = vadd.f32 %v10589_v15, %v3713_v26 }
 0x24e   :  { %3971 = vmatmul.bf16.vlgmr.msrb.gmra.mxu2 %v8746_v40  ;;  %v7455_v8 = vld [vmem:[%s11700_s3 + $0xb4] sm:$0xf0] }
 0x24f   :  { %4015 = vmatpush.bf16.msra.mxu2 %v5839_v54  ;;  %3991 = vmatpush.bf16.msra.mxu0 %v5263_v61  ;;  %v5422_v46 = vld [vmem:[%s11700_s3 + $0x298] sm:$0xf]  ;;  %v5167_v53 = vor.u32 %v7455_v8, %v5166_v43 }
 0x250   :  { %3984 = vmatmul.bf16.vlgmr.msrb.gmra.mxu3 %v8757_v45  ;;  %v7519_v14 = vld [vmem:[%s11700_s3 + $0x2b4] sm:$0xf0] }
 0x251   :  { %4028 = vmatpush.bf16.msra.mxu3 %v6095_v58  ;;  %4004 = vmatpush.bf16.msra.mxu1 %v5519_v1  ;;  %v5710_v48 = vld [vmem:[%s11700_s3 + $0x4d8] sm:$0xf]  ;;  %v5423_v56 = vor.u32 %v7519_v14, %v5422_v46  ;;  %v3739_v58 = vadd.f32 %v3738_v32, %v3726_v52  ;;  %v3674_v32 = vadd.f32 %v10385_v16, %v3661_v3 }
 0x252   :  { %v7591_v51 = vld [vmem:[%s11700_s3 + $0x4f4] sm:$0xf0] }
 0x253   :  { %4016 = vmatpush.bf16.msra.mxu2 %v5807_v6  ;;  %3992 = vmatpush.bf16.msra.mxu0 %v5231_v17  ;;  %v5966_v54 = vld [vmem:[%s11700_s3 + $0x6d8] sm:$0xf]  ;;  %v5711_v59 = vor.u32 %v7591_v51, %v5710_v48  ;;  %v3753_v4 = vpop.f32.mrf.mxu1  ;;  %v3752_v17 = vadd.f32 %v3751_v36, %v3739_v58 }
 0x254   :  { %v7655_v55 = vld [vmem:[%s11700_s3 + $0x6f4] sm:$0xf0] }
 0x255   :  { %4029 = vmatpush.bf16.msra.mxu3 %v6063_v11  ;;  %4005 = vmatpush.bf16.msra.mxu1 %v5487_v20  ;;  %v7447_v15 = vld [vmem:[%s11700_s3 + $0x74] sm:$0xf0]  ;;  %v5967_v63 = vor.u32 %v7655_v55, %v5966_v54 }
 0x256   :  { %v5390_v60 = vld [vmem:[%s11700_s3 + $0x258] sm:$0xf]  ;;  %v5135_v6 = vor.u32 %v7447_v15, %v5134_v57 }
 0x257   :  { %4017 = vmatpush.bf16.msra.mxu2 %v5775_v27  ;;  %3993 = vmatpush.bf16.msra.mxu0 %v5199_v37  ;;  %v7511_v61 = vld [vmem:[%s11700_s3 + $0x274] sm:$0xf0] }
 0x258   :  { %v5678_v1 = vld [vmem:[%s11700_s3 + $0x498] sm:$0xf]  ;;  %v5391_v13 = vor.u32 %v7511_v61, %v5390_v60 }
 0x259   :  { %4030 = vmatpush.bf16.msra.mxu3 %v6031_v33  ;;  %4006 = vmatpush.bf16.msra.mxu1 %v5455_v42  ;;  %v7583_v2 = vld [vmem:[%s11700_s3 + $0x4b4] sm:$0xf0]  ;;  %v3765_v33 = vadd.f32 %v3764_v22, %v3752_v17 }
 0x25a   :  { %v5934_v9 = vld [vmem:[%s11700_s3 + $0x698] sm:$0xf]  ;;  %v5679_v18 = vor.u32 %v7583_v2, %v5678_v1  ;;  %v3766_v2 = vpop.f32.mrf.mxu2 }
 0x25b   :  { %4018 = vmatpush.bf16.msra.mxu2 %v5743_v44  ;;  %3994 = vmatpush.bf16.msra.mxu0 %v5167_v53  ;;  %v7647_v49 = vld [vmem:[%s11700_s3 + $0x6b4] sm:$0xf0]  ;;  %v3778_v42 = vadd.f32 %v3777_v31, %v3765_v33  ;;  %v4199_v53 = vmax.f32 %v3674_v32, 0.0 }
 0x25c   :  { %v5102_v11 = vld [vmem:[%s11700_s3 + $0x18] sm:$0xf]  ;;  %v5935_v25 = vor.u32 %v7647_v49, %v5934_v9 }
 0x25d   :  { %4031 = vmatpush.bf16.msra.mxu3 %v5999_v23  ;;  %4007 = vmatpush.bf16.msra.mxu1 %v5423_v56  ;;  %v7439_v34 = vld [vmem:[%s11700_s3 + $0x34] sm:$0xf0]  ;;  %v4200_v54 = vmax.f32 %v3778_v42, 0.0 }
 0x25e   :  { %v5358_v10 = vld [vmem:[%s11700_s3 + $0x218] sm:$0xf]  ;;  %v5103_v24 = vor.u32 %v7439_v34, %v5102_v11 }
 0x25f   :  { %v7503_v19 = vld [vmem:[%s11700_s3 + $0x234] sm:$0xf0]  ;;  %4019 = vmatpush.bf16.msra.mxu2 %v5711_v59  ;;  %3995 = vmatpush.bf16.msra.mxu0 %v5135_v6  ;;  %v4213_v59 = vrot.slane %v10025_v47, 2  ;;  %v4206_v60 = vpack.c.bf16 %v4200_v54, %v4199_v53 }
 0x260   :  { %v6350_v38 = vld [vmem:[%s11700_s3 + $0x9d8] sm:$0xf]  ;;  %v5359_v37 = vor.u32 %v7503_v19, %v5358_v10 }
 0x261   :  { %v7751_v20 = vld [vmem:[%s11700_s3 + $0x9f4] sm:$0xf0]  ;;  %4032 = vmatpush.bf16.msra.mxu3 %v5967_v63  ;;  %4008 = vmatpush.bf16.msra.mxu1 %v5391_v13  ;;  %v4214_v49 = vrot.slane %v4206_v60, 4  ;;  %v4215_v11 = vrot.slane %v4206_v60, 6  ;;  %v3779_v13 = vpop.f32.mrf.mxu3 }
 0x262   :  { %v6606_v21 = vld [vmem:[%s11700_s3 + $0xbd8] sm:$0xf]  ;;  %v6351_v39 = vor.u32 %v7751_v20, %v6350_v38  ;;  %v4222_v20 = vsel %vm4219_vm1, %v10025_v47, %v4213_v59 }
 0x263   :  { %v7815_v27 = vld [vmem:[%s11700_s3 + $0xbf4] sm:$0xf0]  ;;  %4020 = vmatpush.bf16.msra.mxu2 %v5679_v18  ;;  %3996 = vmatpush.bf16.msra.mxu0 %v5103_v24 }
 0x264   :  { %v5646_v28 = vld [vmem:[%s11700_s3 + $0x458] sm:$0xf]  ;;  %v6607_v43 = vor.u32 %v7815_v27, %v6606_v21  ;;  %v4226_v21 = vsel %vm4223_vm2, %v4214_v49, %v4215_v11 }
 0x265   :  { %v7575_v30 = vld [vmem:[%s11700_s3 + $0x474] sm:$0xf0]  ;;  %4033 = vmatpush.bf16.msra.mxu3 %v5935_v25  ;;  %4009 = vmatpush.bf16.msra.mxu1 %v5359_v37 }
 0x266   :  { %v5902_v26 = vld [vmem:[%s11700_s3 + $0x658] sm:$0xf]  ;;  %v5647_v8 = vor.u32 %v7575_v30, %v5646_v28  ;;  %3997 = vmatmul.bf16.vlgmr.msra.gmra.mxu0 %v8591_v0  ;;  %v4228_v28 = vsel %vm4227_vm3, %v4222_v20, %v4226_v21 }
 0x267   :  { %v7639_v36 = vld [vmem:[%s11700_s3 + $0x674] sm:$0xf0]  ;;  %4041 = vmatpush.bf16.msrb.mxu0 %v6351_v39  ;;  %4487 = vst [vmem:[#allocation1] ss:$4 sm:$0xff] %v4228_v28 }
 0x268   :  { %v6318_v41 = vld [vmem:[%s11700_s3 + $0x998] sm:$0xf]  ;;  %v5903_v23 = vor.u32 %v7639_v36, %v5902_v26  ;;  %4021 = vmatpush.bf16.msra.mxu2 %v5647_v8  ;;  %4010 = vmatmul.bf16.vlgmr.msra.gmra.mxu1 %v8600_v5  ;;  %v793_v26 = vperm.slane %v10642_v50, 4 }
 0x269   :  { %v7743_v16 = vld [vmem:[%s11700_s3 + $0x9b4] sm:$0xf0]  ;;  %4054 = vmatpush.bf16.msrb.mxu1 %v6607_v43 }
 0x26a   :  { %v6574_v44 = vld [vmem:[%s11700_s3 + $0xb98] sm:$0xf]  ;;  %v6319_v57 = vor.u32 %v7743_v16, %v6318_v41  ;;  %4034 = vmatpush.bf16.msra.mxu3 %v5903_v23 }
 0x26b   :  { %v7807_v46 = vld [vmem:[%s11700_s3 + $0xbb4] sm:$0xf0] }
 0x26c   :  { %v5614_v14 = vld [vmem:[%s11700_s3 + $0x418] sm:$0xf]  ;;  %v6575_v61 = vor.u32 %v7807_v46, %v6574_v44  ;;  %4042 = vmatpush.bf16.msrb.mxu0 %v6319_v57  ;;  %v3790_v46 = vpop.f32.mrf.mxu0 }
 0x26d   :  { %v7567_v48 = vld [vmem:[%s11700_s3 + $0x434] sm:$0xf0] }
 0x26e   :  { %v5870_v51 = vld [vmem:[%s11700_s3 + $0x618] sm:$0xf]  ;;  %v5615_v62 = vor.u32 %v7567_v48, %v5614_v14  ;;  %4055 = vmatpush.bf16.msrb.mxu1 %v6575_v61 }
 0x26f   :  { %v7631_v52 = vld [vmem:[%s11700_s3 + $0x634] sm:$0xf0] }
 0x270   :  { %v6862_v55 = vld [vmem:[%s11700_s3 + $0xdd8] sm:$0xf]  ;;  %v5871_v3 = vor.u32 %v7631_v52, %v5870_v51  ;;  %4022 = vmatpush.bf16.msra.mxu2 %v5615_v62  ;;  %v3791_v51 = vadd.f32 %v3790_v46, %v793_v26  ;;  %v3803_v52 = vpop.f32.mrf.mxu1  ;;  %v3816_v26 = vpop.f32.mrf.mxu2 }
 0x271   :  { %v7879_v56 = vld [vmem:[%s11700_s3 + $0xdf4] sm:$0xf0] }
 0x272   :  { %v7118_v15 = vld [vmem:[%s11700_s3 + $0xfd8] sm:$0xf]  ;;  %v6863_v4 = vor.u32 %v7879_v56, %v6862_v55  ;;  %4035 = vmatpush.bf16.msra.mxu3 %v5871_v3 }
 0x273   :  { %v7943_v58 = vld [vmem:[%s11700_s3 + $0xff4] sm:$0xf0]  ;;  %4023 = vmatmul.bf16.vlgmr.msra.gmra.mxu2 %v8635_v29 }
 0x274   :  { %v6286_v63 = vld [vmem:[%s11700_s3 + $0x958] sm:$0xf]  ;;  %v7119_v34 = vor.u32 %v7943_v58, %v7118_v15  ;;  %4067 = vmatpush.bf16.msrb.mxu2 %v6863_v4  ;;  %v3804_v58 = vadd.f32 %v3803_v52, %v3791_v51 }
 0x275   :  { %v7735_v1 = vld [vmem:[%s11700_s3 + $0x974] sm:$0xf0]  ;;  %4036 = vmatmul.bf16.vlgmr.msra.gmra.mxu3 %v8646_v35 }
 0x276   :  { %v6542_v6 = vld [vmem:[%s11700_s3 + $0xb58] sm:$0xf]  ;;  %v6287_v17 = vor.u32 %v7735_v1, %v6286_v63  ;;  %4080 = vmatpush.bf16.msrb.mxu3 %v7119_v34 }
 0x277   :  { %v7799_v9 = vld [vmem:[%s11700_s3 + $0xb74] sm:$0xf0] }
 0x278   :  { %v6830_v10 = vld [vmem:[%s11700_s3 + $0xd98] sm:$0xf]  ;;  %v6543_v22 = vor.u32 %v7799_v9, %v6542_v6  ;;  %4043 = vmatpush.bf16.msrb.mxu0 %v6287_v17 }
 0x279   :  { %v7871_v19 = vld [vmem:[%s11700_s3 + $0xdb4] sm:$0xf0] }
 0x27a   :  { %v7086_v18 = vld [vmem:[%s11700_s3 + $0xf98] sm:$0xf]  ;;  %v6831_v30 = vor.u32 %v7871_v19, %v6830_v10  ;;  %4056 = vmatpush.bf16.msrb.mxu1 %v6543_v22  ;;  %v3792_v10 = vpop.f32.mrf.mxu0 }
 0x27b   :  { %v7935_v38 = vld [vmem:[%s11700_s3 + $0xfb4] sm:$0xf0] }
 0x27c   :  { %v6254_v25 = vld [vmem:[%s11700_s3 + $0x918] sm:$0xf]  ;;  %v7087_v33 = vor.u32 %v7935_v38, %v7086_v18  ;;  %4068 = vmatpush.bf16.msrb.mxu2 %v6831_v30  ;;  %v3805_v38 = vpop.f32.mrf.mxu1 }
 0x27d   :  { %v7727_v27 = vld [vmem:[%s11700_s3 + $0x934] sm:$0xf0] }
 0x27e   :  { %v6510_v47 = vld [vmem:[%s11700_s3 + $0xb18] sm:$0xf]  ;;  %v6255_v36 = vor.u32 %v7727_v27, %v6254_v25  ;;  %4081 = vmatpush.bf16.msrb.mxu3 %v7087_v33  ;;  %v7491_v33 = vld [vmem:[%s11700_s3 + $0x1dc] sm:$0xf] }
 0x27f   :  { %v7791_v32 = vld [vmem:[%s11700_s3 + $0xb34] sm:$0xf0] }
 0x280   :  { %v6798_v31 = vld [vmem:[%s11700_s3 + $0xd58] sm:$0xf]  ;;  %v6511_v41 = vor.u32 %v7791_v32, %v6510_v47  ;;  %4044 = vmatpush.bf16.msrb.mxu0 %v6255_v36 }
 0x281   :  { %v7863_v24 = vld [vmem:[%s11700_s3 + $0xd74] sm:$0xf0] }
 0x282   :  { %v7054_v37 = vld [vmem:[%s11700_s3 + $0xf58] sm:$0xf]  ;;  %v6799_v43 = vor.u32 %v7863_v24, %v6798_v31  ;;  %4057 = vmatpush.bf16.msrb.mxu1 %v6511_v41  ;;  %v5328_v31 = vld [vmem:[%s11700_s3 + $0x1f8] sm:$0xf0] }
 0x283   :  { %v7927_v39 = vld [vmem:[%s11700_s3 + $0xf74] sm:$0xf0]  ;;  %v7555_v24 = vld [vmem:[%s11700_s3 + $0x3dc] sm:$0xf] }
 0x284   :  { %v6222_v16 = vld [vmem:[%s11700_s3 + $0x8d8] sm:$0xf]  ;;  %v7055_v14 = vor.u32 %v7927_v39, %v7054_v37  ;;  %4069 = vmatpush.bf16.msrb.mxu2 %v6799_v43  ;;  %v5584_v37 = vld [vmem:[%s11700_s3 + $0x3f8] sm:$0xf0] }
 0x285   :  { %v7719_v42 = vld [vmem:[%s11700_s3 + $0x8f4] sm:$0xf0]  ;;  %v5587_v51 = vor.u32 %v7555_v24, %v5584_v37 }
 0x286   :  { %v6478_v8 = vld [vmem:[%s11700_s3 + $0xad8] sm:$0xf]  ;;  %v6223_v53 = vor.u32 %v7719_v42, %v6222_v16  ;;  %4082 = vmatpush.bf16.msrb.mxu3 %v7055_v14  ;;  %v3817_v16 = vadd.f32 %v3816_v26, %v3804_v58  ;;  %v3829_v42 = vpop.f32.mrf.mxu3  ;;  %v5331_v14 = vor.u32 %v7491_v33, %v5328_v31  ;;  %v7603_v33 = vld [vmem:[%s11700_s3 + $0x55c] sm:$0xf] }
 0x287   :  { %v7783_v44 = vld [vmem:[%s11700_s3 + $0xaf4] sm:$0xf0]  ;;  %v5776_v31 = vld [vmem:[%s11700_s3 + $0x578] sm:$0xf0] }
 0x288   :  { %v6766_v23 = vld [vmem:[%s11700_s3 + $0xd18] sm:$0xf]  ;;  %v6479_v56 = vor.u32 %v7783_v44, %v6478_v8  ;;  %4045 = vmatpush.bf16.msrb.mxu0 %v6223_v53  ;;  %v5296_v53 = vld [vmem:[%s11700_s3 + $0x1b8] sm:$0xf0] }
 0x289   :  { %v7855_v48 = vld [vmem:[%s11700_s3 + $0xd34] sm:$0xf0]  ;;  %v7667_v26 = vld [vmem:[%s11700_s3 + $0x75c] sm:$0xf] }
 0x28a   :  { %v7022_v54 = vld [vmem:[%s11700_s3 + $0xf18] sm:$0xf]  ;;  %v6767_v59 = vor.u32 %v7855_v48, %v6766_v23  ;;  %4058 = vmatpush.bf16.msrb.mxu1 %v6479_v56  ;;  %v7483_v23 = vld [vmem:[%s11700_s3 + $0x19c] sm:$0xf]  ;;  %v11011_v48 = vadd.f32 %v3829_v42, %v3817_v16  ;;  %v5779_v16 = vor.u32 %v7603_v33, %v5776_v31 }
 0x28b   :  { %v7919_v55 = vld [vmem:[%s11700_s3 + $0xf34] sm:$0xf0]  ;;  %v7523_v42 = vld [vmem:[%s11700_s3 + $0x2dc] sm:$0xf] }
 0x28c   :  { %v6190_v57 = vld [vmem:[%s11700_s3 + $0x898] sm:$0xf]  ;;  %v7023_v62 = vor.u32 %v7919_v55, %v7022_v54  ;;  %4070 = vmatpush.bf16.msrb.mxu2 %v6767_v59  ;;  %v7547_v54 = vld [vmem:[%s11700_s3 + $0x39c] sm:$0xf] }
 0x28d   :  { %v7711_v15 = vld [vmem:[%s11700_s3 + $0x8b4] sm:$0xf0]  ;;  %v5552_v55 = vld [vmem:[%s11700_s3 + $0x3b8] sm:$0xf0] }
 0x28e   :  { %v6446_v60 = vld [vmem:[%s11700_s3 + $0xa98] sm:$0xf]  ;;  %v6191_v2 = vor.u32 %v7711_v15, %v6190_v57  ;;  %4083 = vmatpush.bf16.msrb.mxu3 %v7023_v62  ;;  %v5299_v62 = vor.u32 %v7483_v23, %v5296_v53  ;;  %v3831_v10 = vpop.f32.mrf.mxu3  ;;  %v7659_v53 = vld [vmem:[%s11700_s3 + $0x71c] sm:$0xf] }
 0x28f   :  { %v7775_v61 = vld [vmem:[%s11700_s3 + $0xab4] sm:$0xf0]  ;;  %v7579_v10 = vld [vmem:[%s11700_s3 + $0x49c] sm:$0xf] }
 0x290   :  { %v6734_v63 = vld [vmem:[%s11700_s3 + $0xcd8] sm:$0xf]  ;;  %v6447_v6 = vor.u32 %v7775_v61, %v6446_v60  ;;  %4046 = vmatpush.bf16.msrb.mxu0 %v6191_v2  ;;  %v7619_v60 = vld [vmem:[%s11700_s3 + $0x5dc] sm:$0xf]  ;;  %v5555_v2 = vor.u32 %v7547_v54, %v5552_v55 }
 0x291   :  { %v7847_v1 = vld [vmem:[%s11700_s3 + $0xcf4] sm:$0xf0]  ;;  %v5840_v61 = vld [vmem:[%s11700_s3 + $0x5f8] sm:$0xf0] }
 0x292   :  { %v6990_v3 = vld [vmem:[%s11700_s3 + $0xed8] sm:$0xf]  ;;  %v6735_v11 = vor.u32 %v7847_v1, %v6734_v63  ;;  %4059 = vmatpush.bf16.msrb.mxu1 %v6447_v6  ;;  %v7683_v63 = vld [vmem:[%s11700_s3 + $0x7dc] sm:$0xf] }
 0x293   :  { %v7911_v4 = vld [vmem:[%s11700_s3 + $0xef4] sm:$0xf0]  ;;  %v6096_v1 = vld [vmem:[%s11700_s3 + $0x7f8] sm:$0xf0] }
 0x294   :  { %v6158_v9 = vld [vmem:[%s11700_s3 + $0x858] sm:$0xf]  ;;  %v6991_v19 = vor.u32 %v7911_v4, %v6990_v3  ;;  %4071 = vmatpush.bf16.msrb.mxu2 %v6735_v11  ;;  %v7475_v4 = vld [vmem:[%s11700_s3 + $0x15c] sm:$0xf]  ;;  %v5843_v11 = vor.u32 %v7619_v60, %v5840_v61 }
 0x295   :  { %v7703_v49 = vld [vmem:[%s11700_s3 + $0x874] sm:$0xf0]  ;;  %v5264_v6 = vld [vmem:[%s11700_s3 + $0x178] sm:$0xf0] }
 0x296   :  { %v6414_v13 = vld [vmem:[%s11700_s3 + $0xa58] sm:$0xf]  ;;  %v6159_v20 = vor.u32 %v7703_v49, %v6158_v9  ;;  %4084 = vmatpush.bf16.msrb.mxu3 %v6991_v19  ;;  %v3818_v9 = vpop.f32.mrf.mxu2  ;;  %v6099_v19 = vor.u32 %v7683_v63, %v6096_v1  ;;  %v5267_v38 = vor.u32 %v7475_v4, %v5264_v6  ;;  %v6000_v54 = vld [vmem:[%s11700_s3 + $0x738] sm:$0xf0] }
 0x297   :  { %v7767_v34 = vld [vmem:[%s11700_s3 + $0xa74] sm:$0xf0]  ;;  %v6003_v60 = vor.u32 %v7659_v53, %v6000_v54  ;;  %v7587_v61 = vld [vmem:[%s11700_s3 + $0x4dc] sm:$0xf] }
 0x298   :  { %v6702_v17 = vld [vmem:[%s11700_s3 + $0xc98] sm:$0xf]  ;;  %v6415_v27 = vor.u32 %v7767_v34, %v6414_v13  ;;  %4047 = vmatpush.bf16.msrb.mxu0 %v6159_v20  ;;  %v7539_v13 = vld [vmem:[%s11700_s3 + $0x35c] sm:$0xf] }
 0x299   :  { %v7839_v18 = vld [vmem:[%s11700_s3 + $0xcb4] sm:$0xf0]  ;;  %v5520_v34 = vld [vmem:[%s11700_s3 + $0x378] sm:$0xf0] }
 0x29a   :  { %v6958_v21 = vld [vmem:[%s11700_s3 + $0xe98] sm:$0xf]  ;;  %v6703_v32 = vor.u32 %v7839_v18, %v6702_v17  ;;  %4060 = vmatpush.bf16.msrb.mxu1 %v6415_v27  ;;  %v7611_v17 = vld [vmem:[%s11700_s3 + $0x59c] sm:$0xf] }
 0x29b   :  { %v7903_v22 = vld [vmem:[%s11700_s3 + $0xeb4] sm:$0xf0]  ;;  %v5808_v18 = vld [vmem:[%s11700_s3 + $0x5b8] sm:$0xf0] }
 0x29c   :  { %v6126_v25 = vld [vmem:[%s11700_s3 + $0x818] sm:$0xf]  ;;  %v6959_v36 = vor.u32 %v7903_v22, %v6958_v21  ;;  %4072 = vmatpush.bf16.msrb.mxu2 %v6703_v32  ;;  %v7675_v20 = vld [vmem:[%s11700_s3 + $0x79c] sm:$0xf]  ;;  %v5523_v22 = vor.u32 %v7539_v13, %v5520_v34 }
 0x29d   :  { %v7695_v28 = vld [vmem:[%s11700_s3 + $0x834] sm:$0xf0]  ;;  %v6064_v21 = vld [vmem:[%s11700_s3 + $0x7b8] sm:$0xf0] }
 0x29e   :  { %v6382_v30 = vld [vmem:[%s11700_s3 + $0xa18] sm:$0xf]  ;;  %v6127_v43 = vor.u32 %v7695_v28, %v6126_v25  ;;  %4085 = vmatpush.bf16.msrb.mxu3 %v6959_v36  ;;  %v7467_v25 = vld [vmem:[%s11700_s3 + $0x11c] sm:$0xf]  ;;  %v5811_v28 = vor.u32 %v7611_v17, %v5808_v18  ;;  %v6067_v32 = vor.u32 %v7675_v20, %v6064_v21  ;;  %v3868_v31 = vpop.f32.mrf.mxu2 }
 0x29f   :  { %v7759_v47 = vld [vmem:[%s11700_s3 + $0xa34] sm:$0xf0]  ;;  %v5232_v27 = vld [vmem:[%s11700_s3 + $0x138] sm:$0xf0] }
 0x2a0   :  { %v6670_v39 = vld [vmem:[%s11700_s3 + $0xc58] sm:$0xf]  ;;  %v6383_v46 = vor.u32 %v7759_v47, %v6382_v30  ;;  %4048 = vmatpush.bf16.msrb.mxu0 %v6127_v43  ;;  %v7531_v30 = vld [vmem:[%s11700_s3 + $0x31c] sm:$0xf]  ;;  %v5235_v24 = vor.u32 %v7467_v25, %v5232_v27 }
 0x2a1   :  { %v7831_v41 = vld [vmem:[%s11700_s3 + $0xc74] sm:$0xf0]  ;;  %v5488_v47 = vld [vmem:[%s11700_s3 + $0x338] sm:$0xf0] }
 0x2a2   :  { %v6926_v8 = vld [vmem:[%s11700_s3 + $0xe58] sm:$0xf]  ;;  %v6671_v52 = vor.u32 %v7831_v41, %v6670_v39  ;;  %4061 = vmatpush.bf16.msrb.mxu1 %v6383_v46  ;;  %v6032_v36 = vld [vmem:[%s11700_s3 + $0x778] sm:$0xf0]  ;;  %v5491_v37 = vor.u32 %v7531_v30, %v5488_v47 }
 0x2a3   :  { %v7895_v44 = vld [vmem:[%s11700_s3 + $0xe74] sm:$0xf0]  ;;  %4049 = vmatmul.bf16.vlgmr.msrb.gmra.mxu0 %v8698_v7  ;;  %v7459_v39 = vld [vmem:[%s11700_s3 + $0xdc] sm:$0xf] }
 0x2a4   :  { %v6927_v56 = vor.u32 %v7895_v44, %v6926_v8  ;;  %v6638_v57 = vld [vmem:[%s11700_s3 + $0xc18] sm:$0xf]  ;;  %4093 = vmatpush.bf16.msra.mxu0 %v5331_v14  ;;  %4073 = vmatpush.bf16.msrb.mxu2 %v6671_v52  ;;  %v5200_v41 = vld [vmem:[%s11700_s3 + $0xf8] sm:$0xf0]  ;;  %v3842_v8 = vpop.f32.mrf.mxu0  ;;  %v6035_v44 = vor.u32 %v7667_v26, %v6032_v36 }
 0x2a5   :  { %v7823_v15 = vld [vmem:[%s11700_s3 + $0xc34] sm:$0xf0]  ;;  %4062 = vmatmul.bf16.vlgmr.msrb.gmra.mxu1 %v8709_v12  ;;  %v5456_v43 = vld [vmem:[%s11700_s3 + $0x2f8] sm:$0xf0]  ;;  %v3843_v23 = vadd.f32 %v3842_v8, %v11011_v48  ;;  %v5203_v52 = vor.u32 %v7459_v39, %v5200_v41  ;;  %v3881_v41 = vpop.f32.mrf.mxu3 }
 0x2a6   :  { %v6894_v58 = vld [vmem:[%s11700_s3 + $0xe18] sm:$0xf]  ;;  %4106 = vmatpush.bf16.msra.mxu1 %v5587_v51  ;;  %v6639_v3 = vor.u32 %v7823_v15, %v6638_v57  ;;  %4086 = vmatpush.bf16.msrb.mxu3 %v6927_v56  ;;  %v7595_v46 = vld [vmem:[%s11700_s3 + $0x51c] sm:$0xf]  ;;  %v3855_v51 = vpop.f32.mrf.mxu1  ;;  %v5459_v55 = vor.u32 %v7523_v42, %v5456_v43 }
 0x2a7   :  { %v7887_v59 = vld [vmem:[%s11700_s3 + $0xe34] sm:$0xf0]  ;;  %v5744_v14 = vld [vmem:[%s11700_s3 + $0x538] sm:$0xf0]  ;;  %v3856_v57 = vadd.f32 %v3855_v51, %v3843_v23 }
 0x2a8   :  { %v6895_v49 = vor.u32 %v7887_v59, %v6894_v58  ;;  %4094 = vmatpush.bf16.msra.mxu0 %v5299_v62  ;;  %4074 = vmatpush.bf16.msrb.mxu2 %v6639_v3  ;;  %v7451_v56 = vld [vmem:[%s11700_s3 + $0x9c] sm:$0xf]  ;;  %v5747_v15 = vor.u32 %v7595_v46, %v5744_v14 }
 0x2a9   :  { %v5168_v48 = vld [vmem:[%s11700_s3 + $0xb8] sm:$0xf0]  ;;  %v3869_v39 = vadd.f32 %v3868_v31, %v3856_v57 }
 0x2aa   :  { %4107 = vmatpush.bf16.msra.mxu1 %v5555_v2  ;;  %4087 = vmatpush.bf16.msrb.mxu3 %v6895_v49  ;;  %v7515_v58 = vld [vmem:[%s11700_s3 + $0x29c] sm:$0xf]  ;;  %v5171_v63 = vor.u32 %v7451_v56, %v5168_v48 }
 0x2ab   :  { %4075 = vmatmul.bf16.vlgmr.msrb.gmra.mxu2 %v8746_v40  ;;  %v5424_v59 = vld [vmem:[%s11700_s3 + $0x2b8] sm:$0xf0]  ;;  %v11210_v14 = vadd.f32 %v3881_v41, %v3869_v39 }
 0x2ac   :  { %4119 = vmatpush.bf16.msra.mxu2 %v5843_v11  ;;  %4095 = vmatpush.bf16.msra.mxu0 %v5267_v38  ;;  %v5712_v62 = vld [vmem:[%s11700_s3 + $0x4f8] sm:$0xf0]  ;;  %v5427_v3 = vor.u32 %v7515_v58, %v5424_v59  ;;  %v3844_v13 = vpop.f32.mrf.mxu0 }
 0x2ad   :  { %4088 = vmatmul.bf16.vlgmr.msrb.gmra.mxu3 %v8757_v45  ;;  %v7651_v1 = vld [vmem:[%s11700_s3 + $0x6dc] sm:$0xf]  ;;  %v5715_v9 = vor.u32 %v7587_v61, %v5712_v62  ;;  %v3883_v13 = vpop.f32.mrf.mxu3 }
 0x2ae   :  { %4132 = vmatpush.bf16.msra.mxu3 %v6099_v19  ;;  %4108 = vmatpush.bf16.msra.mxu1 %v5523_v22  ;;  %v5968_v2 = vld [vmem:[%s11700_s3 + $0x6f8] sm:$0xf0]  ;;  %v3857_v17 = vpop.f32.mrf.mxu1 }
 0x2af   :  { %v7443_v4 = vld [vmem:[%s11700_s3 + $0x5c] sm:$0xf]  ;;  %v5971_v34 = vor.u32 %v7651_v1, %v5968_v2 }
 0x2b0   :  { %4120 = vmatpush.bf16.msra.mxu2 %v5811_v28  ;;  %4096 = vmatpush.bf16.msra.mxu0 %v5235_v24  ;;  %v5136_v6 = vld [vmem:[%s11700_s3 + $0x78] sm:$0xf0] }
 0x2b1   :  { %v7507_v49 = vld [vmem:[%s11700_s3 + $0x25c] sm:$0xf]  ;;  %v5139_v18 = vor.u32 %v7443_v4, %v5136_v6  ;;  %v3870_v4 = vpop.f32.mrf.mxu2 }
 0x2b2   :  { %4133 = vmatpush.bf16.msra.mxu3 %v6067_v32  ;;  %4109 = vmatpush.bf16.msra.mxu1 %v5491_v37  ;;  %v5392_v11 = vld [vmem:[%s11700_s3 + $0x278] sm:$0xf0] }
 0x2b3   :  { %v5680_v19 = vld [vmem:[%s11700_s3 + $0x4b8] sm:$0xf0]  ;;  %v5395_v22 = vor.u32 %v7507_v49, %v5392_v11 }
 0x2b4   :  { %4121 = vmatpush.bf16.msra.mxu2 %v5779_v16  ;;  %4097 = vmatpush.bf16.msra.mxu0 %v5203_v52  ;;  %v7643_v38 = vld [vmem:[%s11700_s3 + $0x69c] sm:$0xf]  ;;  %v5683_v30 = vor.u32 %v7579_v10, %v5680_v19 }
 0x2b5   :  { %v5936_v20 = vld [vmem:[%s11700_s3 + $0x6b8] sm:$0xf0] }
 0x2b6   :  { %4134 = vmatpush.bf16.msra.mxu3 %v6035_v44  ;;  %4110 = vmatpush.bf16.msra.mxu1 %v5459_v55  ;;  %v7435_v21 = vld [vmem:[%s11700_s3 + $0x1c] sm:$0xf]  ;;  %v5939_v24 = vor.u32 %v7643_v38, %v5936_v20 }
 0x2b7   :  { %v5104_v25 = vld [vmem:[%s11700_s3 + $0x38] sm:$0xf0] }
 0x2b8   :  { %4122 = vmatpush.bf16.msra.mxu2 %v5747_v15  ;;  %4098 = vmatpush.bf16.msra.mxu0 %v5171_v63  ;;  %v7499_v27 = vld [vmem:[%s11700_s3 + $0x21c] sm:$0xf]  ;;  %v5107_v16 = vor.u32 %v7435_v21, %v5104_v25 }
 0x2b9   :  { %v5360_v28 = vld [vmem:[%s11700_s3 + $0x238] sm:$0xf0] }
 0x2ba   :  { %4135 = vmatpush.bf16.msra.mxu3 %v6003_v60  ;;  %4111 = vmatpush.bf16.msra.mxu1 %v5427_v3  ;;  %v7747_v47 = vld [vmem:[%s11700_s3 + $0x9dc] sm:$0xf]  ;;  %v5363_v8 = vor.u32 %v7499_v27, %v5360_v28 }
 0x2bb   :  { %v6352_v32 = vld [vmem:[%s11700_s3 + $0x9f8] sm:$0xf0] }
 0x2bc   :  { %4123 = vmatpush.bf16.msra.mxu2 %v5715_v9  ;;  %v7811_v33 = vld [vmem:[%s11700_s3 + $0xbdc] sm:$0xf]  ;;  %4099 = vmatpush.bf16.msra.mxu0 %v5139_v18  ;;  %v6355_v44 = vor.u32 %v7747_v47, %v6352_v32  ;;  %v794_v47 = vperm.slane %v10642_v50, 5 }
 0x2bd   :  { %v6608_v26 = vld [vmem:[%s11700_s3 + $0xbf8] sm:$0xf0] }
 0x2be   :  { %4136 = vmatpush.bf16.msra.mxu3 %v5971_v34  ;;  %v7571_v36 = vld [vmem:[%s11700_s3 + $0x45c] sm:$0xf]  ;;  %4112 = vmatpush.bf16.msra.mxu1 %v5395_v22  ;;  %v6611_v23 = vor.u32 %v7811_v33, %v6608_v26 }
 0x2bf   :  { %v5648_v37 = vld [vmem:[%s11700_s3 + $0x478] sm:$0xf0] }
 0x2c0   :  { %v7635_v42 = vld [vmem:[%s11700_s3 + $0x65c] sm:$0xf]  ;;  %4124 = vmatpush.bf16.msra.mxu2 %v5683_v30  ;;  %v5651_v51 = vor.u32 %v7571_v36, %v5648_v37  ;;  %4100 = vmatpush.bf16.msra.mxu0 %v5107_v16  ;;  %v3894_v37 = vpop.f32.mrf.mxu0 }
 0x2c1   :  { %v5904_v43 = vld [vmem:[%s11700_s3 + $0x678] sm:$0xf0] }
 0x2c2   :  { %v7739_v46 = vld [vmem:[%s11700_s3 + $0x99c] sm:$0xf]  ;;  %4137 = vmatpush.bf16.msra.mxu3 %v5939_v24  ;;  %v5907_v55 = vor.u32 %v7635_v42, %v5904_v43  ;;  %4113 = vmatpush.bf16.msra.mxu1 %v5363_v8  ;;  %v3895_v42 = vadd.f32 %v3894_v37, %v794_v47  ;;  %v3907_v43 = vpop.f32.mrf.mxu1 }
 0x2c3   :  { %v6320_v52 = vld [vmem:[%s11700_s3 + $0x9b8] sm:$0xf0]  ;;  %4101 = vmatmul.bf16.vlgmr.msra.gmra.mxu0 %v8591_v0 }
 0x2c4   :  { %v7803_v53 = vld [vmem:[%s11700_s3 + $0xb9c] sm:$0xf]  ;;  %4145 = vmatpush.bf16.msrb.mxu0 %v6355_v44  ;;  %v6323_v60 = vor.u32 %v7739_v46, %v6320_v52  ;;  %4125 = vmatpush.bf16.msra.mxu2 %v5651_v51 }
 0x2c5   :  { %v6576_v54 = vld [vmem:[%s11700_s3 + $0xbb8] sm:$0xf0]  ;;  %4114 = vmatmul.bf16.vlgmr.msra.gmra.mxu1 %v8600_v5 }
 0x2c6   :  { %v7563_v56 = vld [vmem:[%s11700_s3 + $0x41c] sm:$0xf]  ;;  %4158 = vmatpush.bf16.msrb.mxu1 %v6611_v23  ;;  %v6579_v63 = vor.u32 %v7803_v53, %v6576_v54  ;;  %4138 = vmatpush.bf16.msra.mxu3 %v5907_v55  ;;  %v3908_v53 = vadd.f32 %v3907_v43, %v3895_v42  ;;  %v7128_v43 = vld [vmem:[%s11703_s7 + $0x10] sm:$0xf0] }
 0x2c7   :  { %v5616_v48 = vld [vmem:[%s11700_s3 + $0x438] sm:$0xf0] }
 0x2c8   :  { %v7627_v57 = vld [vmem:[%s11700_s3 + $0x61c] sm:$0xf]  ;;  %v5619_v1 = vor.u32 %v7563_v56, %v5616_v48  ;;  %4146 = vmatpush.bf16.msrb.mxu0 %v6323_v60  ;;  %v3896_v4 = vpop.f32.mrf.mxu0 }
 0x2c9   :  { %v5872_v15 = vld [vmem:[%s11700_s3 + $0x638] sm:$0xf0] }
 0x2ca   :  { %v7875_v58 = vld [vmem:[%s11700_s3 + $0xddc] sm:$0xf]  ;;  %v5875_v6 = vor.u32 %v7627_v57, %v5872_v15  ;;  %4159 = vmatpush.bf16.msrb.mxu1 %v6579_v63  ;;  %4126 = vmatpush.bf16.msra.mxu2 %v5619_v1 }
 0x2cb   :  { %v6864_v59 = vld [vmem:[%s11700_s3 + $0xdf8] sm:$0xf0] }
 0x2cc   :  { %v7939_v61 = vld [vmem:[%s11700_s3 + $0xfdc] sm:$0xf]  ;;  %v6867_v9 = vor.u32 %v7875_v58, %v6864_v59  ;;  %4139 = vmatpush.bf16.msra.mxu3 %v5875_v6 }
 0x2cd   :  { %v7120_v62 = vld [vmem:[%s11700_s3 + $0xff8] sm:$0xf0]  ;;  %4127 = vmatmul.bf16.vlgmr.msra.gmra.mxu2 %v8635_v29 }
 0x2ce   :  { %v7731_v2 = vld [vmem:[%s11700_s3 + $0x95c] sm:$0xf]  ;;  %v7123_v34 = vor.u32 %v7939_v61, %v7120_v62  ;;  %4171 = vmatpush.bf16.msrb.mxu2 %v6867_v9 }
 0x2cf   :  { %v6288_v3 = vld [vmem:[%s11700_s3 + $0x978] sm:$0xf0]  ;;  %4140 = vmatmul.bf16.vlgmr.msra.gmra.mxu3 %v8646_v35 }
 0x2d0   :  { %v7795_v49 = vld [vmem:[%s11700_s3 + $0xb5c] sm:$0xf]  ;;  %v6291_v19 = vor.u32 %v7731_v2, %v6288_v3  ;;  %4184 = vmatpush.bf16.msrb.mxu3 %v7123_v34 }
 0x2d1   :  { %v6544_v11 = vld [vmem:[%s11700_s3 + $0xb78] sm:$0xf0] }
 0x2d2   :  { %v7867_v10 = vld [vmem:[%s11700_s3 + $0xd9c] sm:$0xf]  ;;  %v6547_v5 = vor.u32 %v7795_v49, %v6544_v11  ;;  %4147 = vmatpush.bf16.msrb.mxu0 %v6291_v19  ;;  %v3909_v11 = vpop.f32.mrf.mxu1 }
 0x2d3   :  { %v6832_v0 = vld [vmem:[%s11700_s3 + $0xdb8] sm:$0xf0]  ;;  %v7957_v11 = vld [vmem:[%s11704_s5 + $0x28] sm:$0xff] }
 0x2d4   :  { %v7931_v17 = vld [vmem:[%s11700_s3 + $0xf9c] sm:$0xf]  ;;  %v6835_v21 = vor.u32 %v7867_v10, %v6832_v0  ;;  %4160 = vmatpush.bf16.msrb.mxu1 %v6547_v5 }
 0x2d5   :  { %v7088_v18 = vld [vmem:[%s11700_s3 + $0xfb8] sm:$0xf0] }
 0x2d6   :  { %v7723_v38 = vld [vmem:[%s11700_s3 + $0x91c] sm:$0xf]  ;;  %v7091_v27 = vor.u32 %v7931_v17, %v7088_v18  ;;  %4172 = vmatpush.bf16.msrb.mxu2 %v6835_v21  ;;  %v7950_v21 = vld [vmem:[%s11703_s7 + $0x2c] sm:$0xf0] }
 0x2d7   :  { %v6256_v20 = vld [vmem:[%s11700_s3 + $0x938] sm:$0xf0] }
 0x2d8   :  { %v7787_v22 = vld [vmem:[%s11700_s3 + $0xb1c] sm:$0xf]  ;;  %v6259_v32 = vor.u32 %v7723_v38, %v6256_v20  ;;  %4185 = vmatpush.bf16.msrb.mxu3 %v7091_v27  ;;  %v7142_v20 = vld [vmem:[%s11703_s7 + $0x20] sm:$0xf] }
 0x2d9   :  { %v6512_v25 = vld [vmem:[%s11700_s3 + $0xb38] sm:$0xf0] }
 0x2da   :  { %v7859_v28 = vld [vmem:[%s11700_s3 + $0xd5c] sm:$0xf]  ;;  %v6515_v24 = vor.u32 %v7787_v22, %v6512_v25  ;;  %4148 = vmatpush.bf16.msrb.mxu0 %v6259_v32  ;;  %v7948_v22 = vld [vmem:[%s11703_s7 + $0x24] sm:$0xf]  ;;  %v3920_v25 = vpop.f32.mrf.mxu2 }
 0x2db   :  { %v6800_v30 = vld [vmem:[%s11700_s3 + $0xd78] sm:$0xf0]  ;;  %v3921_v32 = vadd.f32 %v3920_v25, %v3908_v53  ;;  %v7951_v53 = vld [vmem:[%s11703_s7 + $0x34] sm:$0xf0] }
 0x2dc   :  { %v7923_v33 = vld [vmem:[%s11700_s3 + $0xf5c] sm:$0xf]  ;;  %v6803_v26 = vor.u32 %v7859_v28, %v6800_v30  ;;  %4161 = vmatpush.bf16.msrb.mxu1 %v6515_v24  ;;  %v7144_v28 = vld [vmem:[%s11703_s7 + $0x30] sm:$0xf0] }
 0x2dd   :  { %v7056_v31 = vld [vmem:[%s11700_s3 + $0xf78] sm:$0xf0] }
 0x2de   :  { %v7715_v29 = vld [vmem:[%s11700_s3 + $0x8dc] sm:$0xf]  ;;  %v7059_v39 = vor.u32 %v7923_v33, %v7056_v31  ;;  %4173 = vmatpush.bf16.msrb.mxu2 %v6803_v26  ;;  %v3933_v33 = vpop.f32.mrf.mxu3  ;;  %v7143_v26 = vor.u32 %v7950_v21, %v7142_v20 }
 0x2df   :  { %v6224_v50 = vld [vmem:[%s11700_s3 + $0x8f8] sm:$0xf0] }
 0x2e0   :  { %v7779_v36 = vld [vmem:[%s11700_s3 + $0xadc] sm:$0xf]  ;;  %v6227_v8 = vor.u32 %v7715_v29, %v6224_v50  ;;  %4186 = vmatpush.bf16.msrb.mxu3 %v7059_v39  ;;  %v7126_v39 = vld [vmem:[%s11703_s7] sm:$0xf] }
 0x2e1   :  { %v6480_v35 = vld [vmem:[%s11700_s3 + $0xaf8] sm:$0xf0] }
 0x2e2   :  { %v7851_v41 = vld [vmem:[%s11700_s3 + $0xd1c] sm:$0xf]  ;;  %v6483_v23 = vor.u32 %v7779_v36, %v6480_v35  ;;  %4149 = vmatpush.bf16.msrb.mxu0 %v6227_v8  ;;  %v11406_v36 = vadd.f32 %v3933_v33, %v3921_v32  ;;  %v7147_v35 = vor.u32 %v7948_v22, %v7144_v28  ;;  %v8018_v22 = vld [vmem:[%s11699_s0] sm:$0x3]  ;;  %v7962_v33 = vld [vmem:[%s11704_s5 + $0x50] sm:$0xff] }
 0x2e3   :  { %v6768_v16 = vld [vmem:[%s11700_s3 + $0xd38] sm:$0xf0]  ;;  %v7972_v28 = vld [vmem:[%s11704_s5 + $0xa0] sm:$0xff] }
 0x2e4   :  { %v7915_v44 = vld [vmem:[%s11700_s3 + $0xf1c] sm:$0xf]  ;;  %v6771_v54 = vor.u32 %v7851_v41, %v6768_v16  ;;  %4162 = vmatpush.bf16.msrb.mxu1 %v6483_v23  ;;  %v7946_v41 = vld [vmem:[%s11703_s7 + $0xc] sm:$0xf0]  ;;  %v7944_v16 = vld [vmem:[%s11703_s7 + $0x4] sm:$0xf] }
 0x2e5   :  { %v7024_v46 = vld [vmem:[%s11700_s3 + $0xf38] sm:$0xf0] }
 0x2e6   :  { %v7707_v51 = vld [vmem:[%s11700_s3 + $0x89c] sm:$0xf]  ;;  %v7027_v48 = vor.u32 %v7915_v44, %v7024_v46  ;;  %4174 = vmatpush.bf16.msrb.mxu2 %v6771_v54  ;;  %v7131_v54 = vor.u32 %v7944_v16, %v7128_v43  ;;  %v7978_v16 = vld [vmem:[%s11704_s5 + $0xd0] sm:$0xff]  ;;  %v7952_v43 = vld [vmem:[%s11704_s5] sm:$0xff] }
 0x2e7   :  { %v6192_v52 = vld [vmem:[%s11700_s3 + $0x8b8] sm:$0xf0] }
 0x2e8   :  { %v7771_v55 = vld [vmem:[%s11700_s3 + $0xa9c] sm:$0xf]  ;;  %v6195_v58 = vor.u32 %v7707_v51, %v6192_v52  ;;  %4187 = vmatpush.bf16.msrb.mxu3 %v7027_v48  ;;  %v7127_v51 = vor.u32 %v7946_v41, %v7126_v39  ;;  %v7150_v52 = vld [vmem:[%s11703_s7 + $0x28] sm:$0xf]  ;;  %v7970_v41 = vld [vmem:[%s11704_s5 + $0x90] sm:$0xff] }
 0x2e9   :  { %v6448_v56 = vld [vmem:[%s11700_s3 + $0xab8] sm:$0xf0] }
 0x2ea   :  { %v7843_v57 = vld [vmem:[%s11700_s3 + $0xcdc] sm:$0xf]  ;;  %v6451_v61 = vor.u32 %v7771_v55, %v6448_v56  ;;  %4150 = vmatpush.bf16.msrb.mxu0 %v6195_v58  ;;  %v7949_v56 = vld [vmem:[%s11703_s7 + $0x2c] sm:$0xf] }
 0x2eb   :  { %v6736_v15 = vld [vmem:[%s11700_s3 + $0xcf8] sm:$0xf0] }
 0x2ec   :  { %v7907_v59 = vld [vmem:[%s11700_s3 + $0xedc] sm:$0xf]  ;;  %v6739_v1 = vor.u32 %v7843_v57, %v6736_v15  ;;  %4163 = vmatpush.bf16.msrb.mxu1 %v6451_v61  ;;  %v3922_v57 = vpop.f32.mrf.mxu2  ;;  %v7151_v61 = vor.u32 %v7951_v53, %v7150_v52  ;;  %v7968_v52 = vld [vmem:[%s11704_s5 + $0x80] sm:$0xff]  ;;  %v4492_v53 = vld.sshfl [vmem:[#allocation1 + $0x8] sm:$0xff pattern:$0x73625140] }
 0x2ed   :  { %v6992_v60 = vld [vmem:[%s11700_s3 + $0xef8] sm:$0xf0] }
 0x2ee   :  { %v7699_v62 = vld [vmem:[%s11700_s3 + $0x85c] sm:$0xf]  ;;  %v6995_v6 = vor.u32 %v7907_v59, %v6992_v60  ;;  %4175 = vmatpush.bf16.msrb.mxu2 %v6739_v1  ;;  %v3935_v59 = vpop.f32.mrf.mxu3 }
 0x2ef   :  { %v6160_v63 = vld [vmem:[%s11700_s3 + $0x878] sm:$0xf0] }
 0x2f0   :  { %v7763_v2 = vld [vmem:[%s11700_s3 + $0xa5c] sm:$0xf]  ;;  %v6163_v13 = vor.u32 %v7699_v62, %v6160_v63  ;;  %4188 = vmatpush.bf16.msrb.mxu3 %v6995_v6  ;;  %v7134_v63 = vld [vmem:[%s11703_s7 + $0x8] sm:$0xf] }
 0x2f1   :  { %v6416_v3 = vld [vmem:[%s11700_s3 + $0xa78] sm:$0xf0] }
 0x2f2   :  { %v7835_v9 = vld [vmem:[%s11700_s3 + $0xc9c] sm:$0xf]  ;;  %v6419_v19 = vor.u32 %v7763_v2, %v6416_v3  ;;  %4151 = vmatpush.bf16.msrb.mxu0 %v6163_v13  ;;  %v7958_v2 = vld [vmem:[%s11704_s5 + $0x30] sm:$0xff]  ;;  %v3946_v13 = vpop.f32.mrf.mxu0 }
 0x2f3   :  { %v6704_v49 = vld [vmem:[%s11700_s3 + $0xcb8] sm:$0xf0]  ;;  %v7966_v3 = vld [vmem:[%s11704_s5 + $0x70] sm:$0xff] }
 0x2f4   :  { %v7899_v34 = vld [vmem:[%s11700_s3 + $0xe9c] sm:$0xf]  ;;  %v6707_v38 = vor.u32 %v7835_v9, %v6704_v49  ;;  %4164 = vmatpush.bf16.msrb.mxu1 %v6419_v19  ;;  %v3972_v32 = vpop.f32.mrf.mxu2 }
 0x2f5   :  { %v6960_v10 = vld [vmem:[%s11700_s3 + $0xeb8] sm:$0xf0] }
 0x2f6   :  { %v7691_v0 = vld [vmem:[%s11700_s3 + $0x81c] sm:$0xf]  ;;  %v6963_v27 = vor.u32 %v7899_v34, %v6960_v10  ;;  %4176 = vmatpush.bf16.msrb.mxu2 %v6707_v38  ;;  %v3947_v34 = vadd.f32 %v3946_v13, %v11406_v36  ;;  %v7974_v10 = vld [vmem:[%s11704_s5 + $0xb0] sm:$0xff]  ;;  %v7981_v38 = vld [vmem:[%s11704_s5 + $0xe8] sm:$0xff] }
 0x2f7   :  { %v6128_v17 = vld [vmem:[%s11700_s3 + $0x838] sm:$0xf0]  ;;  %v7953_v36 = vld [vmem:[%s11704_s5 + $0x8] sm:$0xff] }
 0x2f8   :  { %v7755_v18 = vld [vmem:[%s11700_s3 + $0xa1c] sm:$0xf]  ;;  %v6131_v31 = vor.u32 %v7691_v0, %v6128_v17  ;;  %4189 = vmatpush.bf16.msrb.mxu3 %v6963_v27  ;;  %v7982_v0 = vld [vmem:[%s11704_s5 + $0xf0] sm:$0xff]  ;;  %v7956_v17 = vld [vmem:[%s11704_s5 + $0x20] sm:$0xff] }
 0x2f9   :  { %v6384_v5 = vld [vmem:[%s11700_s3 + $0xa38] sm:$0xf0] }
 0x2fa   :  { %v7827_v30 = vld [vmem:[%s11700_s3 + $0xc5c] sm:$0xf]  ;;  %v6387_v50 = vor.u32 %v7755_v18, %v6384_v5  ;;  %4152 = vmatpush.bf16.msrb.mxu0 %v6131_v31  ;;  %v7964_v18 = vld [vmem:[%s11704_s5 + $0x60] sm:$0xff]  ;;  %v7973_v5 = vld [vmem:[%s11704_s5 + $0xa8] sm:$0xff]  ;;  %v3948_v21 = vpop.f32.mrf.mxu0 }
 0x2fb   :  { %v6672_v47 = vld [vmem:[%s11700_s3 + $0xc78] sm:$0xf0]  ;;  %v7998_v21 = vld [vmem:[%s11704_s5 + $0x170] sm:$0xff] }
 0x2fc   :  { %v7891_v24 = vld [vmem:[%s11700_s3 + $0xe5c] sm:$0xf]  ;;  %v6675_v37 = vor.u32 %v7827_v30, %v6672_v47  ;;  %4165 = vmatpush.bf16.msrb.mxu1 %v6387_v50  ;;  %v7980_v30 = vld [vmem:[%s11704_s5 + $0xe0] sm:$0xff]  ;;  %v7954_v47 = vld [vmem:[%s11704_s5 + $0x10] sm:$0xff] }
 0x2fd   :  { %v6928_v29 = vld [vmem:[%s11700_s3 + $0xe78] sm:$0xf0]  ;;  %4153 = vmatmul.bf16.vlgmr.msrb.gmra.mxu0 %v8698_v7  ;;  %v7947_v7 = vld [vmem:[%s11703_s7 + $0x14] sm:$0xf0] }
 0x2fe   :  { %v6931_v42 = vor.u32 %v7891_v24, %v6928_v29  ;;  %v7819_v8 = vld [vmem:[%s11700_s3 + $0xc1c] sm:$0xf]  ;;  %4294 = vmatpush.bf16.msra.mxu0 %v7143_v26  ;;  %4177 = vmatpush.bf16.msrb.mxu2 %v6675_v37  ;;  %v7135_v4 = vor.u32 %v7947_v7, %v7134_v63  ;;  %v3985_v24 = vpop.f32.mrf.mxu3  ;;  %v4201_v37 = vmax.f32 %v11210_v14, 0.0  ;;  %v3974_v14 = vpop.f32.mrf.mxu2 }
 0x2ff   :  { %v6640_v44 = vld [vmem:[%s11700_s3 + $0xc38] sm:$0xf0]  ;;  %4166 = vmatmul.bf16.vlgmr.msrb.gmra.mxu1 %v8709_v12  ;;  %v7945_v12 = vld [vmem:[%s11703_s7 + $0xc] sm:$0xf] }
 0x300   :  { %v7883_v46 = vld [vmem:[%s11700_s3 + $0xe1c] sm:$0xf]  ;;  %4307 = vmatpush.bf16.msra.mxu1 %v7147_v35  ;;  %v6643_v55 = vor.u32 %v7819_v8, %v6640_v44  ;;  %4190 = vmatpush.bf16.msrb.mxu3 %v6931_v42  ;;  %v7961_v35 = vld [vmem:[%s11704_s5 + $0x48] sm:$0xff]  ;;  %v7960_v8 = vld [vmem:[%s11704_s5 + $0x40] sm:$0xff] }
 0x301   :  { %v6896_v23 = vld [vmem:[%s11700_s3 + $0xe38] sm:$0xf0] }
 0x302   :  { %v7152_v48 = vld [vmem:[%s11703_s7 + $0x38] sm:$0xf0]  ;;  %v6899_v15 = vor.u32 %v7883_v46, %v6896_v23  ;;  %4295 = vmatpush.bf16.msra.mxu0 %v7127_v51  ;;  %4178 = vmatpush.bf16.msrb.mxu2 %v6643_v55  ;;  %v7969_v46 = vld [vmem:[%s11704_s5 + $0x88] sm:$0xff]  ;;  %v4491_v51 = vld.sshfl [vmem:[#allocation1] sm:$0xff pattern:$0x73625140] }
 0x303   :  { %v7959_v58 = vld [vmem:[%s11704_s5 + $0x38] sm:$0xff]  ;;  %v7155_v62 = vor.u32 %v7949_v56, %v7152_v48  ;;  %v7977_v23 = vld [vmem:[%s11704_s5 + $0xc8] sm:$0xff]  ;;  %v11570_v55 = vld [vmem:[%s11702_s4] sm:$0xff]  ;;  %v3998_v48 = vpop.f32.mrf.mxu0 }
 0x304   :  { %v7967_v60 = vld [vmem:[%s11704_s5 + $0x78] sm:$0xff]  ;;  %4308 = vmatpush.bf16.msra.mxu1 %v7131_v54  ;;  %4191 = vmatpush.bf16.msrb.mxu3 %v6899_v15  ;;  %v7976_v54 = vld [vmem:[%s11704_s5 + $0xc0] sm:$0xff]  ;;  %v795_v56 = vperm.slane %v11570_v55, 6 }
 0x305   :  { %v7136_v1 = vld [vmem:[%s11703_s7 + $0x18] sm:$0xf0]  ;;  %4179 = vmatmul.bf16.vlgmr.msrb.gmra.mxu2 %v8746_v40  ;;  %v7965_v40 = vld [vmem:[%s11704_s5 + $0x68] sm:$0xff] }
 0x306   :  { %4891 = vmatpush.bf16.msrb.mxu0 %v7959_v58  ;;  %4320 = vmatpush.bf16.msra.mxu2 %v7151_v61  ;;  %v7139_v6 = vor.u32 %v7945_v12, %v7136_v1  ;;  %v7975_v9 = vld [vmem:[%s11704_s5 + $0xb8] sm:$0xff]  ;;  %v3987_v44 = vpop.f32.mrf.mxu3  ;;  %v3999_v57 = vadd.f32 %v3998_v48, %v795_v56  ;;  %v4493_v58 = vld.sshfl [vmem:[#allocation1 + $0x10] sm:$0xff pattern:$0x73625140]  ;;  %v4024_v63 = vpop.f32.mrf.mxu2 }
 0x307   :  { %4192 = vmatmul.bf16.vlgmr.msrb.gmra.mxu3 %v8757_v45  ;;  %v7983_v49 = vld [vmem:[%s11704_s5 + $0xf8] sm:$0xff]  ;;  %v3959_v45 = vpop.f32.mrf.mxu1  ;;  %v7994_v44 = vld [vmem:[%s11704_s5 + $0x150] sm:$0xff] }
 0x308   :  { %4904 = vmatpush.bf16.msrb.mxu1 %v7967_v60  ;;  %4333 = vmatpush.bf16.msra.mxu3 %v7155_v62  ;;  %v3960_v19 = vadd.f32 %v3959_v45, %v3947_v34  ;;  %v7955_v20 = vld [vmem:[%s11704_s5 + $0x18] sm:$0xff] }
 0x309   :  { %v7963_v25 = vld [vmem:[%s11704_s5 + $0x58] sm:$0xff] }
 0x30a   :  { %4892 = vmatpush.bf16.msrb.mxu0 %v7958_v2  ;;  %4321 = vmatpush.bf16.msra.mxu2 %v7135_v4  ;;  %v3973_v31 = vadd.f32 %v3972_v32, %v3960_v19  ;;  %v7971_v29 = vld [vmem:[%s11704_s5 + $0x98] sm:$0xff] }
 0x30b   :  { %v7979_v50 = vld [vmem:[%s11704_s5 + $0xd8] sm:$0xff]  ;;  %v4000_v61 = vpop.f32.mrf.mxu0 }
 0x30c   :  { %4905 = vmatpush.bf16.msrb.mxu1 %v7966_v3  ;;  %4334 = vmatpush.bf16.msra.mxu3 %v7139_v6  ;;  %v3986_v26 = vadd.f32 %v3985_v24, %v3973_v31  ;;  %v4494_v60 = vld.sshfl [vmem:[#allocation1 + $0x18] sm:$0xff pattern:$0x73625140]  ;;  %v8008_v61 = vld [vmem:[%s11704_s5 + $0x1c0] sm:$0xff] }
 0x30d   :  { %7156 = vmatmul.msk.bf16.vlgmr.msra.gmra.mxu0 %vm151_vm0, %v8018_v22  ;;  %v7991_v19 = vld [vmem:[%s11704_s5 + $0x138] sm:$0xff] }
 0x30e   :  { %4917 = vmatpush.bf16.msrb.mxu2 %v7975_v9  ;;  %4893 = vmatpush.bf16.msrb.mxu0 %v7957_v11  ;;  %v4202_v39 = vmax.f32 %v3986_v26, 0.0  ;;  %v4037_v12 = vpop.f32.mrf.mxu3  ;;  %v4026_v2 = vpop.f32.mrf.mxu2  ;;  %v8004_v26 = vld [vmem:[%s11704_s5 + $0x1a0] sm:$0xff] }
 0x30f   :  { %v3961_v27 = vpop.f32.mrf.mxu1  ;;  %7157 = vmatmul.msk.bf16.vlgmr.msra.gmra.mxu1 %vm151_vm0, %v8018_v22 }
 0x310   :  { %4930 = vmatpush.bf16.msrb.mxu3 %v7983_v49  ;;  %4906 = vmatpush.bf16.msrb.mxu1 %v7965_v40  ;;  %v11547_v42 = vpack.c.bf16 %v4202_v39, %v4201_v37  ;;  %v7989_v27 = vld [vmem:[%s11704_s5 + $0x128] sm:$0xff]  ;;  %v7995_v37 = vld [vmem:[%s11704_s5 + $0x158] sm:$0xff] }
 0x311   :  { %v8003_v39 = vld [vmem:[%s11704_s5 + $0x198] sm:$0xff] }
 0x312   :  { %4918 = vmatpush.bf16.msrb.mxu2 %v7974_v10  ;;  %4894 = vmatpush.bf16.msrb.mxu0 %v7956_v17  ;;  %v7999_v17 = vld [vmem:[%s11704_s5 + $0x178] sm:$0xff] }
 0x314   :  { %4931 = vmatpush.bf16.msrb.mxu3 %v7982_v0  ;;  %4907 = vmatpush.bf16.msrb.mxu1 %v7964_v18  ;;  %v8007_v18 = vld [vmem:[%s11704_s5 + $0x1b8] sm:$0xff] }
 0x315   :  { %7158 = vmatmul.msk.bf16.vlgmr.msra.gmra.mxu2 %vm151_vm0, %v8018_v22 }
 0x316   :  { %4919 = vmatpush.bf16.msrb.mxu2 %v7973_v5  ;;  %4895 = vmatpush.bf16.msrb.mxu0 %v7955_v20  ;;  %v4039_v3 = vpop.f32.mrf.mxu3  ;;  %v7990_v20 = vld [vmem:[%s11704_s5 + $0x130] sm:$0xff] }
 0x317   :  { %7159 = vmatmul.msk.bf16.vlgmr.msra.gmra.mxu3 %vm151_vm0, %v8018_v22  ;;  %v4011_v15 = vpop.f32.mrf.mxu1  ;;  %v8006_v22 = vld [vmem:[%s11704_s5 + $0x1b0] sm:$0xff] }
 0x318   :  { %4932 = vmatpush.bf16.msrb.mxu3 %v7981_v38  ;;  %4908 = vmatpush.bf16.msrb.mxu1 %v7963_v25  ;;  %v4012_v59 = vadd.f32 %v4011_v15, %v3999_v57  ;;  %v8015_v38 = vld [vmem:[%s11704_s5 + $0x1f8] sm:$0xff]  ;;  %v8014_v25 = vld [vmem:[%s11704_s5 + $0x1f0] sm:$0xff] }
 0x31a   :  { %4920 = vmatpush.bf16.msrb.mxu2 %v7972_v28  ;;  %4896 = vmatpush.bf16.msrb.mxu0 %v7954_v47  ;;  %v4025_v7 = vadd.f32 %v4024_v63, %v4012_v59  ;;  %v7997_v28 = vld [vmem:[%s11704_s5 + $0x168] sm:$0xff]  ;;  %v7992_v59 = vld [vmem:[%s11704_s5 + $0x140] sm:$0xff] }
 0x31b   :  { %v8013_v47 = vld [vmem:[%s11704_s5 + $0x1e8] sm:$0xff] }
 0x31c   :  { %4933 = vmatpush.bf16.msrb.mxu3 %v7980_v30  ;;  %4909 = vmatpush.bf16.msrb.mxu1 %v7962_v33  ;;  %v4038_v1 = vadd.f32 %v4037_v12, %v4025_v7  ;;  %v8005_v30 = vld [vmem:[%s11704_s5 + $0x1a8] sm:$0xff] }
 0x31e   :  { %4921 = vmatpush.bf16.msrb.mxu2 %v7971_v29  ;;  %4897 = vmatpush.bf16.msrb.mxu0 %v7953_v36  ;;  %v7988_v29 = vld [vmem:[%s11704_s5 + $0x120] sm:$0xff] }
 0x31f   :  { %v4013_v62 = vpop.f32.mrf.mxu1  ;;  %v8012_v36 = vld [vmem:[%s11704_s5 + $0x1e0] sm:$0xff] }
 0x320   :  { %4934 = vmatpush.bf16.msrb.mxu3 %v7979_v50  ;;  %4910 = vmatpush.bf16.msrb.mxu1 %v7961_v35  ;;  %v4050_v4 = vpop.f32.mrf.mxu0  ;;  %v7996_v50 = vld [vmem:[%s11704_s5 + $0x160] sm:$0xff]  ;;  %v7987_v35 = vld [vmem:[%s11704_s5 + $0x118] sm:$0xff] }
 0x321   :  { %v4051_v6 = vadd.f32 %v4050_v4, %v4038_v1 }
 0x322   :  { %4922 = vmatpush.bf16.msrb.mxu2 %v7970_v41  ;;  %4898 = vmatpush.bf16.msrb.mxu0 %v7952_v43  ;;  %v796_v41 = vperm.slane %v11570_v55, 7  ;;  %v8011_v43 = vld [vmem:[%s11704_s5 + $0x1d8] sm:$0xff]  ;;  %v8009_v55 = vld [vmem:[%s11704_s5 + $0x1c8] sm:$0xff] }
 0x324   :  { %4935 = vmatpush.bf16.msrb.mxu3 %v7978_v16  ;;  %4911 = vmatpush.bf16.msrb.mxu1 %v7960_v8  ;;  %v7986_v8 = vld [vmem:[%s11704_s5 + $0x110] sm:$0xff] }
 0x325   :  { %4899 = vmatmul.bf16.vlgmr.msrb.gmra.mxu0 %v4491_v51 }
 0x326   :  { %4923 = vmatpush.bf16.msrb.mxu2 %v7969_v46  ;;  %4943 = vmatpush.bf16.msra.mxu0 %v7991_v19  ;;  %v8002_v46 = vld [vmem:[%s11704_s5 + $0x190] sm:$0xff]  ;;  %v4216_v19 = vrot.slane %v11547_v42, 2 }
 0x327   :  { %4912 = vmatmul.bf16.vlgmr.msrb.gmra.mxu1 %v4492_v53  ;;  %v4063_v9 = vpop.f32.mrf.mxu1  ;;  %v7993_v53 = vld [vmem:[%s11704_s5 + $0x148] sm:$0xff] }
 0x328   :  { %4936 = vmatpush.bf16.msrb.mxu3 %v7977_v23  ;;  %v11573_v49 = vadd.f32 %v4063_v9, %v4051_v6  ;;  %v4052_v11 = vpop.f32.mrf.mxu0  ;;  %4956 = vmatpush.bf16.msra.mxu1 %v7999_v17  ;;  %v8010_v23 = vld [vmem:[%s11704_s5 + $0x1d0] sm:$0xff] }
 0x32a   :  { %4924 = vmatpush.bf16.msrb.mxu2 %v7968_v52  ;;  %4944 = vmatpush.bf16.msra.mxu0 %v7990_v20  ;;  %v7985_v52 = vld [vmem:[%s11704_s5 + $0x108] sm:$0xff] }
 0x32c   :  { %4937 = vmatpush.bf16.msrb.mxu3 %v7976_v54  ;;  %4957 = vmatpush.bf16.msra.mxu1 %v7998_v21  ;;  %v8001_v54 = vld [vmem:[%s11704_s5 + $0x188] sm:$0xff] }
 0x32d   :  { %4925 = vmatmul.bf16.vlgmr.msrb.gmra.mxu2 %v4493_v58  ;;  %v7984_v58 = vld [vmem:[%s11704_s5 + $0x100] sm:$0xff] }
 0x32e   :  { %v11575_v40 = vpop.f32.mrf.mxu2  ;;  %4969 = vmatpush.bf16.msra.mxu2 %v8007_v18  ;;  %4945 = vmatpush.bf16.msra.mxu0 %v7989_v27 }
 0x32f   :  { %4938 = vmatmul.bf16.vlgmr.msrb.gmra.mxu3 %v4494_v60  ;;  %v4065_v13 = vpop.f32.mrf.mxu1  ;;  %v8000_v60 = vld [vmem:[%s11704_s5 + $0x180] sm:$0xff]  ;;  %v4077_v12 = vadd.f32 %v11575_v40, %v11573_v49 }
 0x330   :  { %v11577_v34 = vpop.f32.mrf.mxu3  ;;  %4982 = vmatpush.bf16.msra.mxu3 %v8015_v38  ;;  %4958 = vmatpush.bf16.msra.mxu1 %v7997_v28 }
 0x331   :  { %v4090_v4 = vadd.f32 %v11577_v34, %v4077_v12  ;;  %v4231_v34 = vsel %vm4219_vm1, %v11547_v42, %v4216_v19 }
 0x332   :  { %4970 = vmatpush.bf16.msra.mxu2 %v8006_v22  ;;  %4946 = vmatpush.bf16.msra.mxu0 %v7988_v29 }
 0x333   :  { %v4203_v13 = vmax.f32 %v4090_v4, 0.0 }
 0x334   :  { %4983 = vmatpush.bf16.msra.mxu3 %v8014_v25  ;;  %4959 = vmatpush.bf16.msra.mxu1 %v7996_v50 }
 0x336   :  { %v4078_v45 = vpop.f32.mrf.mxu2  ;;  %4971 = vmatpush.bf16.msra.mxu2 %v8005_v30  ;;  %4947 = vmatpush.bf16.msra.mxu0 %v7987_v35 }
 0x338   :  { %v4091_v10 = vpop.f32.mrf.mxu3  ;;  %4984 = vmatpush.bf16.msra.mxu3 %v8013_v47  ;;  %4960 = vmatpush.bf16.msra.mxu1 %v7995_v37 }
 0x33a   :  { %4972 = vmatpush.bf16.msra.mxu2 %v8004_v26  ;;  %4948 = vmatpush.bf16.msra.mxu0 %v7986_v8 }
 0x33c   :  { %4985 = vmatpush.bf16.msra.mxu3 %v8012_v36  ;;  %4961 = vmatpush.bf16.msra.mxu1 %v7994_v44 }
 0x33e   :  { %4973 = vmatpush.bf16.msra.mxu2 %v8003_v39  ;;  %4949 = vmatpush.bf16.msra.mxu0 %v7985_v52 }
 0x340   :  { %v4102_v0 = vpop.f32.mrf.mxu0  ;;  %4986 = vmatpush.bf16.msra.mxu3 %v8011_v43  ;;  %4962 = vmatpush.bf16.msra.mxu1 %v7993_v53 }
 0x341   :  { %v4103_v51 = vadd.f32 %v4102_v0, %v796_v41 }
 0x342   :  { %v4115_v5 = vpop.f32.mrf.mxu1  ;;  %4974 = vmatpush.bf16.msra.mxu2 %v8002_v46  ;;  %4950 = vmatpush.bf16.msra.mxu0 %v7984_v58 }
 0x343   :  { %v4116_v56 = vadd.f32 %v4115_v5, %v4103_v51 }
 0x344   :  { %4987 = vmatpush.bf16.msra.mxu3 %v8010_v23  ;;  %4963 = vmatpush.bf16.msra.mxu1 %v7992_v59 }
 0x346   :  { %4975 = vmatpush.bf16.msra.mxu2 %v8001_v54 }
 0x348   :  { %v4104_v32 = vpop.f32.mrf.mxu0  ;;  %4988 = vmatpush.bf16.msra.mxu3 %v8009_v55 }
 0x349   :  { %v8016_v32 = vld [vmem:[%s11705_s6] ss:$0 sm:$0xff] }
 0x34a   :  { %v4117_v33 = vpop.f32.mrf.mxu1  ;;  %4976 = vmatpush.bf16.msra.mxu2 %v8000_v60 }
 0x34c   :  { %4989 = vmatpush.bf16.msra.mxu3 %v8008_v61 }
 0x350   :  { %v4128_v31 = vpop.f32.mrf.mxu2 }
 0x351   :  { %v4129_v57 = vadd.f32 %v4128_v31, %v4116_v56 }
 0x352   :  { %v4141_v24 = vpop.f32.mrf.mxu3 }
 0x353   :  { %v4142_v62 = vadd.f32 %v4141_v24, %v4129_v57 }
 0x358   :  { %v4130_v16 = vpop.f32.mrf.mxu2 }
 0x35a   :  { %v4143_v14 = vpop.f32.mrf.mxu3 }
 0x37a   :  { %v4154_v48 = vpop.f32.mrf.mxu0 }
 0x37b   :  { %v4155_v63 = vadd.f32 %v4154_v48, %v4142_v62 }
 0x37c   :  { %v4167_v15 = vpop.f32.mrf.mxu1 }
 0x37d   :  { %v4168_v2 = vadd.f32 %v4167_v15, %v4155_v63 }
 0x382   :  { %v4156_v7 = vpop.f32.mrf.mxu0 }
 0x384   :  { %v4169_v1 = vpop.f32.mrf.mxu1 }
 0x388   :  { %v4180_v3 = vpop.f32.mrf.mxu2 }
 0x389   :  { %v4181_v6 = vadd.f32 %v4180_v3, %v4168_v2 }
 0x38a   :  { %v4193_v9 = vpop.f32.mrf.mxu3  ;;  %v4297_v10 = vpop.f32.mrf.mxu0 }
 0x38b   :  { %v4194_v11 = vadd.f32 %v4193_v9, %v4181_v6 }
 0x38c   :  { %v4310_v0 = vpop.f32.mrf.mxu1 }
 0x38d   :  { %v4204_v45 = vmax.f32 %v4194_v11, 0.0  ;;  %v4344_v18 = vrot.slane %v4310_v0, 4 }
 0x38f   :  { %v4208_v17 = vpack.c.bf16 %v4204_v45, %v4203_v13  ;;  %v4346_v49 = vsel %vm4227_vm3, %v4297_v10, %v4344_v18 }
 0x390   :  { %v4182_v5 = vpop.f32.mrf.mxu2  ;;  %4350 = vst [vmem:[%s11706_s9] sm:$0xff] %v4346_v49 }
 0x391   :  { %v4217_v38 = vrot.slane %v4208_v17, 4  ;;  %v4218_v20 = vrot.slane %v4208_v17, 6 }
 0x392   :  { %v4195_v40 = vpop.f32.mrf.mxu3  ;;  %v4299_v25 = vpop.f32.mrf.mxu0 }
 0x393   :  { %v4234_v21 = vsel %vm4223_vm2, %v4217_v38, %v4218_v20 }
 0x394   :  { %v4235_v22 = vsel %vm4227_vm3, %v4231_v34, %v4234_v21  ;;  %v4312_v27 = vpop.f32.mrf.mxu1 }
 0x395   :  { %4490 = vst [vmem:[#allocation1 + $0x20] ss:$4 sm:$0xff] %v4235_v22 }
 0x398   :  { %v4323_v28 = vpop.f32.mrf.mxu2 }
 0x39a   :  { %v4336_v30 = vpop.f32.mrf.mxu3 }
 0x39b   :  { %v4345_v47 = vrot.slane %v4336_v30, 4 }
 0x39c   :  { %v4495_v33 = vld.sshfl [vmem:[#allocation1 + $0x20] sm:$0xff pattern:$0x73625140]  ;;  %v4496_v31 = vld.sshfl [vmem:[#allocation1 + $0x28] sm:$0xff pattern:$0x73625140] }
 0x39d   :  { %v4347_v24 = vsel %vm4227_vm3, %v4323_v28, %v4345_v47  ;;  %4951 = vmatmul.bf16.vlgmr.msra.gmra.mxu0 %v4495_v33  ;;  %4964 = vmatmul.bf16.vlgmr.msra.gmra.mxu1 %v4496_v31  ;;  %v4497_v42 = vld.sshfl [vmem:[#allocation1 + $0x30] sm:$0xff pattern:$0x73625140]  ;;  %v4498_v29 = vld.sshfl [vmem:[#allocation1 + $0x38] sm:$0xff pattern:$0x73625140] }
 0x39e   :  { %4351 = vst [vmem:[%s11706_s9 + $0x8] sm:$0xff] %v4347_v24  ;;  %4977 = vmatmul.bf16.vlgmr.msra.gmra.mxu2 %v4497_v42  ;;  %4990 = vmatmul.bf16.vlgmr.msra.gmra.mxu3 %v4498_v29 }
 0x3a0   :  { %v4325_v35 = vpop.f32.mrf.mxu2 }
 0x3a2   :  { %v4900_v50 = vpop.f32.mrf.mxu0  ;;  %v4338_v39 = vpop.f32.mrf.mxu3 }
 0x3a3   :  { %v4901_v26 = vadd.f32 %v8016_v32, %v4900_v50 }
 0x3a4   :  { %v4913_v36 = vpop.f32.mrf.mxu1 }
 0x3a5   :  { %v4914_v37 = vadd.f32 %v4913_v36, %v4901_v26 }
 0x3aa   :  { %v4902_v41 = vpop.f32.mrf.mxu0 }
 0x3ac   :  { %v4915_v16 = vpop.f32.mrf.mxu1 }
 0x3b0   :  { %v4926_v43 = vpop.f32.mrf.mxu2 }
 0x3b1   :  { %v4927_v14 = vadd.f32 %v4926_v43, %v4914_v37 }
 0x3b2   :  { %v4939_v8 = vpop.f32.mrf.mxu3 }
 0x3b3   :  { %v4940_v44 = vadd.f32 %v4939_v8, %v4927_v14 }
 0x3b8   :  { %v4928_v46 = vpop.f32.mrf.mxu2 }
 0x3ba   :  { %v4941_v23 = vpop.f32.mrf.mxu3 }
 0x41a   :  { %v4952_v51 = vpop.f32.mrf.mxu0  ;;  %v4965_v52 = vpop.f32.mrf.mxu1 }
 0x41b   :  { %v4953_v53 = vadd.f32 %v4952_v51, %v4940_v44 }
 0x41d   :  { %v4966_v54 = vadd.f32 %v4965_v52, %v4953_v53 }
 0x421   :  { %v4978_v55 = vpop.f32.mrf.mxu2  ;;  %v4991_v56 = vpop.f32.mrf.mxu3 }
 0x422   :  { %v4979_v48 = vadd.f32 %v4978_v55, %v4966_v54  ;;  %v4954_v57 = vpop.f32.mrf.mxu0  ;;  %v4967_v15 = vpop.f32.mrf.mxu1 }
 0x424   :  { %v4992_v58 = vadd.f32 %v4991_v56, %v4979_v48 }
 0x426   :  { %4995 = vst [vmem:[%s11707_s8] sm:$0xf] %v4992_v58 }
 0x429   :  { %v4980_v59 = vpop.f32.mrf.mxu2  ;;  %v4993_v60 = vpop.f32.mrf.mxu3 }

</bundles_post_ra>
